<compile_context>
chip_gen: v7x
topology: tpu7x:2x2x1
jax: 0.10.0
libtpu: 0.0.40
codegen_flags: <defaults>
</compile_context>

<pallas_src>
import functools

import jax
import jax.numpy as jnp
from jax.experimental import pallas as pl
from jax.experimental.pallas import tpu as pltpu


def _layernorm(x, gamma, beta, eps=1e-5):
    # x: (rows, E), gamma/beta: (1, E).  Biased variance (PyTorch LayerNorm).
    mu = jnp.mean(x, axis=-1, keepdims=True)
    xc = x - mu
    var = jnp.mean(xc * xc, axis=-1, keepdims=True)
    inv = jax.lax.rsqrt(var + eps)
    return xc * inv * gamma + beta


def _transformer_block_kernel(
    x_ref,
    wq_ref, bq_ref, wk_ref, bk_ref, wv_ref, bv_ref, wo_ref, bo_ref,
    w1_ref, b1_ref, w2_ref, b2_ref,
    g1_ref, be1_ref, g2_ref, be2_ref,
    out_ref, attw_ref,
    *, num_heads, head_dim, block_q, compute_dtype,
):
    H, Dh, Tq = num_heads, head_dim, block_q
    E = H * Dh
    cd = compute_dtype

    x_full = x_ref[0]                               # (S, E) f32, full sequence (K/V source)
    S = x_full.shape[0]

    qi = pl.program_id(1)
    q_start = pl.multiple_of(qi * Tq, Tq)
    xq = x_ref[0, pl.ds(q_start, Tq), :]            # (Tq, E) f32 query tile (residual path)

    # --- QKV projections: single MXU matmuls, f32 accumulation ---
    q = jnp.dot(xq.astype(cd), wq_ref[...].astype(cd),
                preferred_element_type=jnp.float32) + bq_ref[...]      # (Tq, E)
    k = jnp.dot(x_full.astype(cd), wk_ref[...].astype(cd),
                preferred_element_type=jnp.float32) + bk_ref[...]      # (S, E)
    v = jnp.dot(x_full.astype(cd), wv_ref[...].astype(cd),
                preferred_element_type=jnp.float32) + bv_ref[...]      # (S, E)

    # --- head-major layout (H, rows, Dh): one relayout per tensor, then all
    # per-head work is a single batched dot_general. ---
    qh = q.reshape(Tq, H, Dh).transpose(1, 0, 2)    # (H, Tq, Dh)
    kh = k.reshape(S, H, Dh).transpose(1, 0, 2)     # (H, S, Dh)
    vh = v.reshape(S, H, Dh).transpose(1, 0, 2)     # (H, S, Dh)

    scale = 1.0 / (jnp.float32(Dh) ** 0.5)
    # scores[h,q,k] = sum_d qh[h,q,d] * kh[h,k,d]  (k "transpose" absorbed into contraction)
    scores = jax.lax.dot_general(
        qh.astype(cd), kh.astype(cd),
        dimension_numbers=(((2,), (2,)), ((0,), (0,))),
        preferred_element_type=jnp.float32) * scale                    # (H, Tq, S)

    # softmax in f32
    scores = scores - jnp.max(scores, axis=-1, keepdims=True)
    e = jnp.exp(scores)
    w = e / jnp.sum(e, axis=-1, keepdims=True)                         # (H, Tq, S)

    attw_ref[0] = w                                  # single stacked (H, Tq, S) store

    # TODO(synk): attention dropout / dropout1 / dropout2 are identity (eval mode).

    # context[h,q,d] = sum_k w[h,q,k] * vh[h,k,d]
    ctx = jax.lax.dot_general(
        w.astype(cd), vh.astype(cd),
        dimension_numbers=(((2,), (1,)), ((0,), (0,))),
        preferred_element_type=jnp.float32)                            # (H, Tq, Dh)
    ctx = ctx.transpose(1, 0, 2).reshape(Tq, E)                        # merge heads -> (Tq, E)

    attn_out = jnp.dot(ctx.astype(cd), wo_ref[...].astype(cd),
                       preferred_element_type=jnp.float32) + bo_ref[...]

    out1 = _layernorm(xq + attn_out, g1_ref[...], be1_ref[...])

    # FFN: Linear -> ReLU -> Linear
    h1 = jnp.dot(out1.astype(cd), w1_ref[...].astype(cd),
                 preferred_element_type=jnp.float32) + b1_ref[...]
    h1 = jnp.maximum(h1, 0.0)
    ffn = jnp.dot(h1.astype(cd), w2_ref[...].astype(cd),
                  preferred_element_type=jnp.float32) + b2_ref[...]

    out_ref[0] = _layernorm(out1 + ffn, g2_ref[...], be2_ref[...]).astype(out_ref.dtype)


def transformer_block(x, params, num_heads, *, block_q=None, compute_dtype=jnp.float32):
    B, S, E = x.shape
    assert E % num_heads == 0
    Dh = E // num_heads
    F = params["w1"].shape[1]

    if block_q is None:
        block_q = min(128, S)
    if S % block_q != 0:
        block_q = S
    nq = S // block_q

    kernel = functools.partial(
        _transformer_block_kernel,
        num_heads=num_heads, head_dim=Dh, block_q=block_q, compute_dtype=compute_dtype,
    )

    param_order = [
        "wq", "bq", "wk", "bk", "wv", "bv", "wo", "bo",
        "w1", "b1", "w2", "b2", "g1", "be1", "g2", "be2",
    ]
    param_vals = [params[name] for name in param_order]

    def full_spec(shape):
        # grid-invariant parameter: one block = the full array, same block every step
        # (NOTE: could be single-buffered via pipeline_mode=pl.Buffered(1) at large E/F).
        return pl.BlockSpec(shape, lambda b, qi: (0,) * len(shape))

    in_specs = [pl.BlockSpec((1, S, E), lambda b, qi: (b, 0, 0))] + [
        full_spec(p.shape) for p in param_vals
    ]

    out_shape = (
        jax.ShapeDtypeStruct((B, S, E), x.dtype),
        jax.ShapeDtypeStruct((B, num_heads, S, S), jnp.float32),
    )
    out_specs = (
        pl.BlockSpec((1, block_q, E), lambda b, qi: (b, qi, 0)),
        pl.BlockSpec((1, num_heads, block_q, S), lambda b, qi: (b, 0, qi, 0)),
    )

    # Advisory cost estimate so XLA does not treat the custom call as zero-cost.
    flops = int(B) * (
        2 * S * E * E                        # Q projection (totalled over q-tiles)
        + nq * 2 * 2 * S * E * E             # K/V projections (recomputed per q-tile)
        + 2 * 2 * num_heads * S * S * Dh     # scores + probs @ V
        + 2 * S * E * E                      # output projection
        + 2 * S * E * F + 2 * S * F * E      # FFN
    )
    transcendentals = int(B * num_heads * S * S)
    param_bytes = sum(int(p.size) * p.dtype.itemsize for p in param_vals)
    bytes_accessed = int(
        x.size * x.dtype.itemsize * (nq + 1)     # x re-read per q-tile + out written
        + B * num_heads * S * S * 4              # attention-weights writeback (dominant)
        + param_bytes
    )

    return pl.pallas_call(
        kernel,
        out_shape=out_shape,
        grid=(B, nq),
        in_specs=in_specs,
        out_specs=out_specs,
        compiler_params=pltpu.CompilerParams(
            dimension_semantics=("parallel", "parallel"),
        ),
        cost_estimate=pl.CostEstimate(
            flops=flops,
            transcendentals=transcendentals,
            bytes_accessed=bytes_accessed,
        ),
    )(x, *param_vals)


# ---------------- pure-JAX reference (for correctness check) ----------------
def transformer_block_ref(x, p, num_heads):
    B, S, E = x.shape
    Dh = E // num_heads

    def ln(y, g, b, eps=1e-5):
        mu = jnp.mean(y, axis=-1, keepdims=True)
        var = jnp.mean((y - mu) ** 2, axis=-1, keepdims=True)
        return (y - mu) / jnp.sqrt(var + eps) * g + b

    q = x @ p["wq"] + p["bq"]
    k = x @ p["wk"] + p["bk"]
    v = x @ p["wv"] + p["bv"]

    def split(t):  # (B,S,E) -> (B,H,S,Dh)
        return t.reshape(B, S, num_heads, Dh).transpose(0, 2, 1, 3)

    qh, kh, vh = split(q), split(k), split(v)
    scores = jnp.einsum("bhsd,bhtd->bhst", qh, kh) / (Dh ** 0.5)
    w = jax.nn.softmax(scores, axis=-1)
    attn = jnp.einsum("bhst,bhtd->bhsd", w, vh)
    attn = attn.transpose(0, 2, 1, 3).reshape(B, S, E)
    attn_out = attn @ p["wo"] + p["bo"]

    out1 = ln(x + attn_out, p["g1"], p["be1"])
    ffn = jnp.maximum(out1 @ p["w1"] + p["b1"], 0.0) @ p["w2"] + p["b2"]
    out2 = ln(out1 + ffn, p["g2"], p["be2"])
    return out2, w


# ---------------------------------------------------------------------------
if __name__ == "__main__":
    # Lane-dense small shapes: last dims are multiples of 128 so stores are unmasked.
    B, S, E, H, FF = 2, 128, 128, 4, 256

    key = jax.random.PRNGKey(0)
    keys = jax.random.split(key, 16)

    def init(k, shape, scale=0.1):
        return (scale * jax.random.normal(k, shape)).astype(jnp.float32)

    params = {
        "wq": init(keys[0], (E, E)), "bq": init(keys[1], (1, E)),
        "wk": init(keys[2], (E, E)), "bk": init(keys[3], (1, E)),
        "wv": init(keys[4], (E, E)), "bv": init(keys[5], (1, E)),
        "wo": init(keys[6], (E, E)), "bo": init(keys[7], (1, E)),
        "w1": init(keys[8], (E, FF)), "b1": init(keys[9], (1, FF)),
        "w2": init(keys[10], (FF, E)), "b2": init(keys[11], (1, E)),
        "g1": jnp.ones((1, E), jnp.float32), "be1": jnp.zeros((1, E), jnp.float32),
        "g2": jnp.ones((1, E), jnp.float32), "be2": jnp.zeros((1, E), jnp.float32),
    }

    x = jax.random.normal(keys[12], (B, S, E), dtype=jnp.float32)

    # f32 path (exercises the 2-D (batch, q-tile) grid with 2 query tiles)
    out, attw = transformer_block(x, params, num_heads=H, block_q=64)
    out = jax.block_until_ready(out)
    attw = jax.block_until_ready(attw)

    out_ref, attw_ref = transformer_block_ref(x, params, num_heads=H)

    assert out.shape == (B, S, E)
    assert attw.shape == (B, H, S, S)
    assert jnp.allclose(out, out_ref, atol=1e-3, rtol=1e-3)
    assert jnp.allclose(attw, attw_ref, atol=1e-3, rtol=1e-3)

    # bf16 MXU-operand path (f32 accumulation; softmax/LayerNorm stay f32)
    out_bf, attw_bf = transformer_block(
        x, params, num_heads=H, block_q=64, compute_dtype=jnp.bfloat16
    )
    out_bf = jax.block_until_ready(out_bf)
    attw_bf = jax.block_until_ready(attw_bf)
    assert jnp.allclose(out_bf, out_ref, atol=1e-1, rtol=1e-1)
    assert jnp.allclose(attw_bf, attw_ref, atol=1e-1, rtol=1e-1)

    print("KERNEL_OK")
</pallas_src>

<mosaic_0001>
module attributes {stable_mosaic.version = 11 : i64} {
  func.func @_transformer_block_kernel(%arg0: i32, %arg1: i32, %arg2: memref<1x128x128xf32, #tpu.memory_space<vmem>>, %arg3: memref<128x128xf32, #tpu.memory_space<vmem>>, %arg4: memref<1x128xf32, #tpu.memory_space<vmem>>, %arg5: memref<128x128xf32, #tpu.memory_space<vmem>>, %arg6: memref<1x128xf32, #tpu.memory_space<vmem>>, %arg7: memref<128x128xf32, #tpu.memory_space<vmem>>, %arg8: memref<1x128xf32, #tpu.memory_space<vmem>>, %arg9: memref<128x128xf32, #tpu.memory_space<vmem>>, %arg10: memref<1x128xf32, #tpu.memory_space<vmem>>, %arg11: memref<128x256xf32, #tpu.memory_space<vmem>>, %arg12: memref<1x256xf32, #tpu.memory_space<vmem>>, %arg13: memref<256x128xf32, #tpu.memory_space<vmem>>, %arg14: memref<1x128xf32, #tpu.memory_space<vmem>>, %arg15: memref<1x128xf32, #tpu.memory_space<vmem>>, %arg16: memref<1x128xf32, #tpu.memory_space<vmem>>, %arg17: memref<1x128xf32, #tpu.memory_space<vmem>>, %arg18: memref<1x128xf32, #tpu.memory_space<vmem>>, %arg19: memref<1x64x128xf32, #tpu.memory_space<vmem>>, %arg20: memref<1x4x64x128xf32, #tpu.memory_space<vmem>>) attributes {dimension_semantics = [#tpu.dimension_semantics<parallel>, #tpu.dimension_semantics<parallel>], iteration_bounds = array<i64: 2, 2>, scalar_prefetch = 0 : i64, scratch_operands = 0 : i64, tpu.core_type = #tpu.core_type<tc>, window_params = [{transform_indices = @transform_0, window_bounds = array<i64: 1, 128, 128>}, {pipeline_mode = #tpu.pipeline_mode<synchronous>, transform_indices = @transform_1, window_bounds = array<i64: 128, 128>}, {pipeline_mode = #tpu.pipeline_mode<synchronous>, transform_indices = @transform_2, window_bounds = array<i64: 1, 128>}, {pipeline_mode = #tpu.pipeline_mode<synchronous>, transform_indices = @transform_3, window_bounds = array<i64: 128, 128>}, {pipeline_mode = #tpu.pipeline_mode<synchronous>, transform_indices = @transform_4, window_bounds = array<i64: 1, 128>}, {pipeline_mode = #tpu.pipeline_mode<synchronous>, transform_indices = @transform_5, window_bounds = array<i64: 128, 128>}, {pipeline_mode = #tpu.pipeline_mode<synchronous>, transform_indices = @transform_6, window_bounds = array<i64: 1, 128>}, {pipeline_mode = #tpu.pipeline_mode<synchronous>, transform_indices = @transform_7, window_bounds = array<i64: 128, 128>}, {pipeline_mode = #tpu.pipeline_mode<synchronous>, transform_indices = @transform_8, window_bounds = array<i64: 1, 128>}, {pipeline_mode = #tpu.pipeline_mode<synchronous>, transform_indices = @transform_9, window_bounds = array<i64: 128, 256>}, {pipeline_mode = #tpu.pipeline_mode<synchronous>, transform_indices = @transform_10, window_bounds = array<i64: 1, 256>}, {pipeline_mode = #tpu.pipeline_mode<synchronous>, transform_indices = @transform_11, window_bounds = array<i64: 256, 128>}, {pipeline_mode = #tpu.pipeline_mode<synchronous>, transform_indices = @transform_12, window_bounds = array<i64: 1, 128>}, {pipeline_mode = #tpu.pipeline_mode<synchronous>, transform_indices = @transform_13, window_bounds = array<i64: 1, 128>}, {pipeline_mode = #tpu.pipeline_mode<synchronous>, transform_indices = @transform_14, window_bounds = array<i64: 1, 128>}, {pipeline_mode = #tpu.pipeline_mode<synchronous>, transform_indices = @transform_15, window_bounds = array<i64: 1, 128>}, {pipeline_mode = #tpu.pipeline_mode<synchronous>, transform_indices = @transform_16, window_bounds = array<i64: 1, 128>}, {transform_indices = @transform_17, window_bounds = array<i64: 1, 64, 128>}, {transform_indices = @transform_18, window_bounds = array<i64: 1, 4, 64, 128>}]} {
    %c0 = arith.constant 0 : index
    %c0_0 = arith.constant 0 : index
    %c0_1 = arith.constant 0 : index
    %0 = vector.load %arg2[%c0, %c0_0, %c0_1] : memref<1x128x128xf32, #tpu.memory_space<vmem>>, vector<1x128x128xf32>
    %1 = vector.shape_cast %0 : vector<1x128x128xf32> to vector<128x128xf32>
    %c64_i32 = arith.constant 64 : i32
    %2 = arith.muli %arg1, %c64_i32 : i32
    %3 = tpu.assume_multiple %2, 64 : i32
    %c0_2 = arith.constant 0 : index
    %4 = arith.index_cast %3 : i32 to index
    %c0_3 = arith.constant 0 : index
    %5 = vector.load %arg2[%c0_2, %4, %c0_3] : memref<1x128x128xf32, #tpu.memory_space<vmem>>, vector<1x64x128xf32>
    %6 = vector.shape_cast %5 : vector<1x64x128xf32> to vector<64x128xf32>
    %c0_4 = arith.constant 0 : index
    %c0_5 = arith.constant 0 : index
    %7 = vector.load %arg3[%c0_4, %c0_5] : memref<128x128xf32, #tpu.memory_space<vmem>>, vector<128x128xf32>
    %cst = arith.constant dense<0.000000e+00> : vector<64x128xf32>
    %8 = tpu.matmul %6, %7, %cst {dimension_numbers = #tpu.dot_dimension_numbers<[1], [0], [0], [1], [0, 0, 1, 1], [], []>} : vector<64x128xf32>, vector<128x128xf32>, vector<64x128xf32> -> vector<64x128xf32>
    %c0_6 = arith.constant 0 : index
    %c0_7 = arith.constant 0 : index
    %9 = vector.load %arg4[%c0_6, %c0_7] : memref<1x128xf32, #tpu.memory_space<vmem>>, vector<1x128xf32>
    %10 = vector.broadcast %9 : vector<1x128xf32> to vector<64x128xf32>
    %11 = arith.addf %8, %10 : vector<64x128xf32>
    %c0_8 = arith.constant 0 : index
    %c0_9 = arith.constant 0 : index
    %12 = vector.load %arg5[%c0_8, %c0_9] : memref<128x128xf32, #tpu.memory_space<vmem>>, vector<128x128xf32>
    %cst_10 = arith.constant dense<0.000000e+00> : vector<128x128xf32>
    %13 = tpu.matmul %1, %12, %cst_10 {dimension_numbers = #tpu.dot_dimension_numbers<[1], [0], [0], [1], [0, 0, 1, 1], [], []>} : vector<128x128xf32>, vector<128x128xf32>, vector<128x128xf32> -> vector<128x128xf32>
    %c0_11 = arith.constant 0 : index
    %c0_12 = arith.constant 0 : index
    %14 = vector.load %arg6[%c0_11, %c0_12] : memref<1x128xf32, #tpu.memory_space<vmem>>, vector<1x128xf32>
    %15 = vector.broadcast %14 : vector<1x128xf32> to vector<128x128xf32>
    %16 = arith.addf %13, %15 : vector<128x128xf32>
    %c0_13 = arith.constant 0 : index
    %c0_14 = arith.constant 0 : index
    %17 = vector.load %arg7[%c0_13, %c0_14] : memref<128x128xf32, #tpu.memory_space<vmem>>, vector<128x128xf32>
    %cst_15 = arith.constant dense<0.000000e+00> : vector<128x128xf32>
    %18 = tpu.matmul %1, %17, %cst_15 {dimension_numbers = #tpu.dot_dimension_numbers<[1], [0], [0], [1], [0, 0, 1, 1], [], []>} : vector<128x128xf32>, vector<128x128xf32>, vector<128x128xf32> -> vector<128x128xf32>
    %c0_16 = arith.constant 0 : index
    %c0_17 = arith.constant 0 : index
    %19 = vector.load %arg8[%c0_16, %c0_17] : memref<1x128xf32, #tpu.memory_space<vmem>>, vector<1x128xf32>
    %20 = vector.broadcast %19 : vector<1x128xf32> to vector<128x128xf32>
    %21 = arith.addf %18, %20 : vector<128x128xf32>
    %22 = vector.shape_cast %11 : vector<64x128xf32> to vector<64x4x32xf32>
    %23 = tpu.transpose %22, [1, 0, 2] : vector<64x4x32xf32> -> vector<4x64x32xf32>
    %24 = vector.shape_cast %16 : vector<128x128xf32> to vector<128x4x32xf32>
    %25 = tpu.transpose %24, [1, 0, 2] : vector<128x4x32xf32> -> vector<4x128x32xf32>
    %26 = vector.shape_cast %21 : vector<128x128xf32> to vector<128x4x32xf32>
    %27 = tpu.transpose %26, [1, 0, 2] : vector<128x4x32xf32> -> vector<4x128x32xf32>
    %cst_18 = arith.constant 3.200000e+01 : f32
    %cst_19 = arith.constant 5.000000e-01 : f32
    %28 = math.powf %cst_18, %cst_19 : f32
    %cst_20 = arith.constant 1.000000e+00 : f32
    %29 = arith.divf %cst_20, %28 : f32
    %cst_21 = arith.constant dense<0.000000e+00> : vector<4x64x128xf32>
    %30 = tpu.matmul %23, %25, %cst_21 {dimension_numbers = #tpu.dot_dimension_numbers<[2], [2], [1], [1], [0, 0, 0, 1, 1, 1], [0], [0]>} : vector<4x64x32xf32>, vector<4x128x32xf32>, vector<4x64x128xf32> -> vector<4x64x128xf32>
    %31 = vector.broadcast %29 : f32 to vector<4x64x128xf32>
    %32 = arith.mulf %30, %31 : vector<4x64x128xf32>
    %cst_22 = arith.constant dense<0xFF800000> : vector<4x64xf32>
    %33 = vector.multi_reduction <maximumf>, %32, %cst_22 [2] : vector<4x64x128xf32> to vector<4x64xf32>
    %34 = vector.shape_cast %33 : vector<4x64xf32> to vector<4x64x1xf32>
    %35 = vector.broadcast %34 : vector<4x64x1xf32> to vector<4x64x128xf32>
    %36 = arith.subf %32, %35 : vector<4x64x128xf32>
    %37 = math.exp %36 : vector<4x64x128xf32>
    %cst_23 = arith.constant dense<0.000000e+00> : vector<4x64xf32>
    %38 = vector.multi_reduction <add>, %37, %cst_23 [2] : vector<4x64x128xf32> to vector<4x64xf32>
    %39 = vector.shape_cast %38 : vector<4x64xf32> to vector<4x64x1xf32>
    %40 = vector.broadcast %39 : vector<4x64x1xf32> to vector<4x64x128xf32>
    %41 = arith.divf %37, %40 : vector<4x64x128xf32>
    %c0_24 = arith.constant 0 : index
    %c0_25 = arith.constant 0 : index
    %c0_26 = arith.constant 0 : index
    %c0_27 = arith.constant 0 : index
    %42 = vector.load %arg20[%c0_24, %c0_25, %c0_26, %c0_27] : memref<1x4x64x128xf32, #tpu.memory_space<vmem>>, vector<1x4x64x128xf32>
    %43 = vector.shape_cast %42 : vector<1x4x64x128xf32> to vector<4x64x128xf32>
    %44 = vector.shape_cast %41 : vector<4x64x128xf32> to vector<1x4x64x128xf32>
    tpu.vector_store %arg20[%c0_24, %c0_25, %c0_26, %c0_27], %44 {strides = array<i32>} : memref<1x4x64x128xf32, #tpu.memory_space<vmem>>, vector<1x4x64x128xf32>,
    %cst_28 = arith.constant dense<0.000000e+00> : vector<4x64x32xf32>
    %45 = tpu.matmul %41, %27, %cst_28 {dimension_numbers = #tpu.dot_dimension_numbers<[2], [1], [1], [2], [0, 0, 0, 1, 1, 2], [0], [0]>} : vector<4x64x128xf32>, vector<4x128x32xf32>, vector<4x64x32xf32> -> vector<4x64x32xf32>
    %46 = tpu.transpose %45, [1, 0, 2] : vector<4x64x32xf32> -> vector<64x4x32xf32>
    %47 = vector.shape_cast %46 : vector<64x4x32xf32> to vector<64x128xf32>
    %c0_29 = arith.constant 0 : index
    %c0_30 = arith.constant 0 : index
    %48 = vector.load %arg9[%c0_29, %c0_30] : memref<128x128xf32, #tpu.memory_space<vmem>>, vector<128x128xf32>
    %cst_31 = arith.constant dense<0.000000e+00> : vector<64x128xf32>
    %49 = tpu.matmul %47, %48, %cst_31 {dimension_numbers = #tpu.dot_dimension_numbers<[1], [0], [0], [1], [0, 0, 1, 1], [], []>} : vector<64x128xf32>, vector<128x128xf32>, vector<64x128xf32> -> vector<64x128xf32>
    %c0_32 = arith.constant 0 : index
    %c0_33 = arith.constant 0 : index
    %50 = vector.load %arg10[%c0_32, %c0_33] : memref<1x128xf32, #tpu.memory_space<vmem>>, vector<1x128xf32>
    %51 = vector.broadcast %50 : vector<1x128xf32> to vector<64x128xf32>
    %52 = arith.addf %49, %51 : vector<64x128xf32>
    %53 = arith.addf %6, %52 : vector<64x128xf32>
    %c0_34 = arith.constant 0 : index
    %c0_35 = arith.constant 0 : index
    %54 = vector.load %arg15[%c0_34, %c0_35] : memref<1x128xf32, #tpu.memory_space<vmem>>, vector<1x128xf32>
    %c0_36 = arith.constant 0 : index
    %c0_37 = arith.constant 0 : index
    %55 = vector.load %arg16[%c0_36, %c0_37] : memref<1x128xf32, #tpu.memory_space<vmem>>, vector<1x128xf32>
    %cst_38 = arith.constant dense<0.000000e+00> : vector<64xf32>
    %56 = vector.multi_reduction <add>, %53, %cst_38 [1] : vector<64x128xf32> to vector<64xf32>
    %57 = vector.shape_cast %56 : vector<64xf32> to vector<64x1xf32>
    %cst_39 = arith.constant 1.280000e+02 : f32
    %58 = vector.broadcast %cst_39 : f32 to vector<64x1xf32>
    %59 = arith.divf %57, %58 : vector<64x1xf32>
    %60 = vector.broadcast %59 : vector<64x1xf32> to vector<64x128xf32>
    %61 = arith.subf %53, %60 : vector<64x128xf32>
    %62 = arith.mulf %61, %61 : vector<64x128xf32>
    %cst_40 = arith.constant dense<0.000000e+00> : vector<64xf32>
    %63 = vector.multi_reduction <add>, %62, %cst_40 [1] : vector<64x128xf32> to vector<64xf32>
    %64 = vector.shape_cast %63 : vector<64xf32> to vector<64x1xf32>
    %cst_41 = arith.constant 1.280000e+02 : f32
    %65 = vector.broadcast %cst_41 : f32 to vector<64x1xf32>
    %66 = arith.divf %64, %65 : vector<64x1xf32>
    %cst_42 = arith.constant 9.99999974E-6 : f32
    %67 = vector.broadcast %cst_42 : f32 to vector<64x1xf32>
    %68 = arith.addf %66, %67 : vector<64x1xf32>
    %69 = math.rsqrt %68 : vector<64x1xf32>
    %70 = vector.broadcast %69 : vector<64x1xf32> to vector<64x128xf32>
    %71 = arith.mulf %61, %70 : vector<64x128xf32>
    %72 = vector.broadcast %54 : vector<1x128xf32> to vector<64x128xf32>
    %73 = arith.mulf %71, %72 : vector<64x128xf32>
    %74 = vector.broadcast %55 : vector<1x128xf32> to vector<64x128xf32>
    %75 = arith.addf %73, %74 : vector<64x128xf32>
    %c0_43 = arith.constant 0 : index
    %c0_44 = arith.constant 0 : index
    %76 = vector.load %arg11[%c0_43, %c0_44] : memref<128x256xf32, #tpu.memory_space<vmem>>, vector<128x256xf32>
    %cst_45 = arith.constant dense<0.000000e+00> : vector<64x256xf32>
    %77 = tpu.matmul %75, %76, %cst_45 {dimension_numbers = #tpu.dot_dimension_numbers<[1], [0], [0], [1], [0, 0, 1, 1], [], []>} : vector<64x128xf32>, vector<128x256xf32>, vector<64x256xf32> -> vector<64x256xf32>
    %c0_46 = arith.constant 0 : index
    %c0_47 = arith.constant 0 : index
    %78 = vector.load %arg12[%c0_46, %c0_47] : memref<1x256xf32, #tpu.memory_space<vmem>>, vector<1x256xf32>
    %79 = vector.broadcast %78 : vector<1x256xf32> to vector<64x256xf32>
    %80 = arith.addf %77, %79 : vector<64x256xf32>
    %cst_48 = arith.constant 0.000000e+00 : f32
    %81 = vector.broadcast %cst_48 : f32 to vector<64x256xf32>
    %82 = arith.maximumf %80, %81 : vector<64x256xf32>
    %c0_49 = arith.constant 0 : index
    %c0_50 = arith.constant 0 : index
    %83 = vector.load %arg13[%c0_49, %c0_50] : memref<256x128xf32, #tpu.memory_space<vmem>>, vector<256x128xf32>
    %cst_51 = arith.constant dense<0.000000e+00> : vector<64x128xf32>
    %84 = tpu.matmul %82, %83, %cst_51 {dimension_numbers = #tpu.dot_dimension_numbers<[1], [0], [0], [1], [0, 0, 1, 1], [], []>} : vector<64x256xf32>, vector<256x128xf32>, vector<64x128xf32> -> vector<64x128xf32>
    %c0_52 = arith.constant 0 : index
    %c0_53 = arith.constant 0 : index
    %85 = vector.load %arg14[%c0_52, %c0_53] : memref<1x128xf32, #tpu.memory_space<vmem>>, vector<1x128xf32>
    %86 = vector.broadcast %85 : vector<1x128xf32> to vector<64x128xf32>
    %87 = arith.addf %84, %86 : vector<64x128xf32>
    %88 = arith.addf %75, %87 : vector<64x128xf32>
    %c0_54 = arith.constant 0 : index
    %c0_55 = arith.constant 0 : index
    %89 = vector.load %arg17[%c0_54, %c0_55] : memref<1x128xf32, #tpu.memory_space<vmem>>, vector<1x128xf32>
    %c0_56 = arith.constant 0 : index
    %c0_57 = arith.constant 0 : index
    %90 = vector.load %arg18[%c0_56, %c0_57] : memref<1x128xf32, #tpu.memory_space<vmem>>, vector<1x128xf32>
    %cst_58 = arith.constant dense<0.000000e+00> : vector<64xf32>
    %91 = vector.multi_reduction <add>, %88, %cst_58 [1] : vector<64x128xf32> to vector<64xf32>
    %92 = vector.shape_cast %91 : vector<64xf32> to vector<64x1xf32>
    %cst_59 = arith.constant 1.280000e+02 : f32
    %93 = vector.broadcast %cst_59 : f32 to vector<64x1xf32>
    %94 = arith.divf %92, %93 : vector<64x1xf32>
    %95 = vector.broadcast %94 : vector<64x1xf32> to vector<64x128xf32>
    %96 = arith.subf %88, %95 : vector<64x128xf32>
    %97 = arith.mulf %96, %96 : vector<64x128xf32>
    %cst_60 = arith.constant dense<0.000000e+00> : vector<64xf32>
    %98 = vector.multi_reduction <add>, %97, %cst_60 [1] : vector<64x128xf32> to vector<64xf32>
    %99 = vector.shape_cast %98 : vector<64xf32> to vector<64x1xf32>
    %cst_61 = arith.constant 1.280000e+02 : f32
    %100 = vector.broadcast %cst_61 : f32 to vector<64x1xf32>
    %101 = arith.divf %99, %100 : vector<64x1xf32>
    %cst_62 = arith.constant 9.99999974E-6 : f32
    %102 = vector.broadcast %cst_62 : f32 to vector<64x1xf32>
    %103 = arith.addf %101, %102 : vector<64x1xf32>
    %104 = math.rsqrt %103 : vector<64x1xf32>
    %105 = vector.broadcast %104 : vector<64x1xf32> to vector<64x128xf32>
    %106 = arith.mulf %96, %105 : vector<64x128xf32>
    %107 = vector.broadcast %89 : vector<1x128xf32> to vector<64x128xf32>
    %108 = arith.mulf %106, %107 : vector<64x128xf32>
    %109 = vector.broadcast %90 : vector<1x128xf32> to vector<64x128xf32>
    %110 = arith.addf %108, %109 : vector<64x128xf32>
    %c0_63 = arith.constant 0 : index
    %c0_64 = arith.constant 0 : index
    %c0_65 = arith.constant 0 : index
    %111 = vector.load %arg19[%c0_63, %c0_64, %c0_65] : memref<1x64x128xf32, #tpu.memory_space<vmem>>, vector<1x64x128xf32>
    %112 = vector.shape_cast %111 : vector<1x64x128xf32> to vector<64x128xf32>
    %113 = vector.shape_cast %110 : vector<64x128xf32> to vector<1x64x128xf32>
    tpu.vector_store %arg19[%c0_63, %c0_64, %c0_65], %113 {strides = array<i32>} : memref<1x64x128xf32, #tpu.memory_space<vmem>>, vector<1x64x128xf32>,
    return
  }
  func.func @transform_0(%arg0: i32, %arg1: i32) -> (i32, i32, i32) {
    %c0_i32 = arith.constant 0 : i32
    %c0_i32_0 = arith.constant 0 : i32
    %c0_i32_1 = arith.constant 0 : i32
    return %arg0, %c0_i32, %c0_i32_0 : i32, i32, i32
  }
  func.func @transform_1(%arg0: i32, %arg1: i32) -> (i32, i32) {
    %c0_i32 = arith.constant 0 : i32
    %c0_i32_0 = arith.constant 0 : i32
    %c0_i32_1 = arith.constant 0 : i32
    return %c0_i32, %c0_i32_0 : i32, i32
  }
  func.func @transform_2(%arg0: i32, %arg1: i32) -> (i32, i32) {
    %c0_i32 = arith.constant 0 : i32
    %c0_i32_0 = arith.constant 0 : i32
    %c0_i32_1 = arith.constant 0 : i32
    return %c0_i32, %c0_i32_0 : i32, i32
  }
  func.func @transform_3(%arg0: i32, %arg1: i32) -> (i32, i32) {
    %c0_i32 = arith.constant 0 : i32
    %c0_i32_0 = arith.constant 0 : i32
    %c0_i32_1 = arith.constant 0 : i32
    return %c0_i32, %c0_i32_0 : i32, i32
  }
  func.func @transform_4(%arg0: i32, %arg1: i32) -> (i32, i32) {
    %c0_i32 = arith.constant 0 : i32
    %c0_i32_0 = arith.constant 0 : i32
    %c0_i32_1 = arith.constant 0 : i32
    return %c0_i32, %c0_i32_0 : i32, i32
  }
  func.func @transform_5(%arg0: i32, %arg1: i32) -> (i32, i32) {
    %c0_i32 = arith.constant 0 : i32
    %c0_i32_0 = arith.constant 0 : i32
    %c0_i32_1 = arith.constant 0 : i32
    return %c0_i32, %c0_i32_0 : i32, i32
  }
  func.func @transform_6(%arg0: i32, %arg1: i32) -> (i32, i32) {
    %c0_i32 = arith.constant 0 : i32
    %c0_i32_0 = arith.constant 0 : i32
    %c0_i32_1 = arith.constant 0 : i32
    return %c0_i32, %c0_i32_0 : i32, i32
  }
  func.func @transform_7(%arg0: i32, %arg1: i32) -> (i32, i32) {
    %c0_i32 = arith.constant 0 : i32
    %c0_i32_0 = arith.constant 0 : i32
    %c0_i32_1 = arith.constant 0 : i32
    return %c0_i32, %c0_i32_0 : i32, i32
  }
  func.func @transform_8(%arg0: i32, %arg1: i32) -> (i32, i32) {
    %c0_i32 = arith.constant 0 : i32
    %c0_i32_0 = arith.constant 0 : i32
    %c0_i32_1 = arith.constant 0 : i32
    return %c0_i32, %c0_i32_0 : i32, i32
  }
  func.func @transform_9(%arg0: i32, %arg1: i32) -> (i32, i32) {
    %c0_i32 = arith.constant 0 : i32
    %c0_i32_0 = arith.constant 0 : i32
    %c0_i32_1 = arith.constant 0 : i32
    return %c0_i32, %c0_i32_0 : i32, i32
  }
  func.func @transform_10(%arg0: i32, %arg1: i32) -> (i32, i32) {
    %c0_i32 = arith.constant 0 : i32
    %c0_i32_0 = arith.constant 0 : i32
    %c0_i32_1 = arith.constant 0 : i32
    return %c0_i32, %c0_i32_0 : i32, i32
  }
  func.func @transform_11(%arg0: i32, %arg1: i32) -> (i32, i32) {
    %c0_i32 = arith.constant 0 : i32
    %c0_i32_0 = arith.constant 0 : i32
    %c0_i32_1 = arith.constant 0 : i32
    return %c0_i32, %c0_i32_0 : i32, i32
  }
  func.func @transform_12(%arg0: i32, %arg1: i32) -> (i32, i32) {
    %c0_i32 = arith.constant 0 : i32
    %c0_i32_0 = arith.constant 0 : i32
    %c0_i32_1 = arith.constant 0 : i32
    return %c0_i32, %c0_i32_0 : i32, i32
  }
  func.func @transform_13(%arg0: i32, %arg1: i32) -> (i32, i32) {
    %c0_i32 = arith.constant 0 : i32
    %c0_i32_0 = arith.constant 0 : i32
    %c0_i32_1 = arith.constant 0 : i32
    return %c0_i32, %c0_i32_0 : i32, i32
  }
  func.func @transform_14(%arg0: i32, %arg1: i32) -> (i32, i32) {
    %c0_i32 = arith.constant 0 : i32
    %c0_i32_0 = arith.constant 0 : i32
    %c0_i32_1 = arith.constant 0 : i32
    return %c0_i32, %c0_i32_0 : i32, i32
  }
  func.func @transform_15(%arg0: i32, %arg1: i32) -> (i32, i32) {
    %c0_i32 = arith.constant 0 : i32
    %c0_i32_0 = arith.constant 0 : i32
    %c0_i32_1 = arith.constant 0 : i32
    return %c0_i32, %c0_i32_0 : i32, i32
  }
  func.func @transform_16(%arg0: i32, %arg1: i32) -> (i32, i32) {
    %c0_i32 = arith.constant 0 : i32
    %c0_i32_0 = arith.constant 0 : i32
    %c0_i32_1 = arith.constant 0 : i32
    return %c0_i32, %c0_i32_0 : i32, i32
  }
  func.func @transform_17(%arg0: i32, %arg1: i32) -> (i32, i32, i32) {
    %c0_i32 = arith.constant 0 : i32
    %c0_i32_0 = arith.constant 0 : i32
    return %arg0, %arg1, %c0_i32 : i32, i32, i32
  }
  func.func @transform_18(%arg0: i32, %arg1: i32) -> (i32, i32, i32, i32) {
    %c0_i32 = arith.constant 0 : i32
    %c0_i32_0 = arith.constant 0 : i32
    %c0_i32_1 = arith.constant 0 : i32
    return %arg0, %c0_i32, %arg1, %c0_i32_0 : i32, i32, i32, i32
  }
}

</mosaic_0001>

<bundles_post_ra>
// kernel: tpu_custom_call.1
= control target key start
LH: loop header
LB: loop body
LE: loop exit
PB: predicated region body
PF: predicated region fallthrough
CT: control target
= control target key end

     0   :  { %s17275_s0 = inlined_call_operand.hbm [shape: f32[2,128,128], index: 0, kind: input, shape index: {}]   ;;  %s17276_s1 = inlined_call_operand.hbm [shape: f32[128,128], index: 1, kind: input, shape index: {}]   ;;  %s17277_s2 = inlined_call_operand.vmem [shape: f32[1,128], index: 2, kind: input, shape index: {}]   ;;  %s17278_s3 = inlined_call_operand.hbm [shape: f32[128,128], index: 3, kind: input, shape index: {}]   ;;  %s17279_s4 = inlined_call_operand.vmem [shape: f32[1,128], index: 4, kind: input, shape index: {}]   ;;  %s17280_s5 = inlined_call_operand.hbm [shape: f32[128,128], index: 5, kind: input, shape index: {}]   ;;  %s17281_s6 = inlined_call_operand.vmem [shape: f32[1,128], index: 6, kind: input, shape index: {}]   ;;  %s17282_s7 = inlined_call_operand.hbm [shape: f32[128,128], index: 7, kind: input, shape index: {}]   ;;  %s17283_s8 = inlined_call_operand.vmem [shape: f32[1,128], index: 8, kind: input, shape index: {}]   ;;  %s17284_s9 = inlined_call_operand.hbm [shape: f32[128,256], index: 9, kind: input, shape index: {}]   ;;  %s17285_s10 = inlined_call_operand.vmem [shape: f32[1,256], index: 10, kind: input, shape index: {}]   ;;  %s17286_s11 = inlined_call_operand.hbm [shape: f32[256,128], index: 11, kind: input, shape index: {}]   ;;  %s17287_s12 = inlined_call_operand.vmem [shape: f32[1,128], index: 12, kind: input, shape index: {}]   ;;  %s17288_s13 = inlined_call_operand.vmem [shape: f32[1,128], index: 13, kind: input, shape index: {}]   ;;  %s17289_s14 = inlined_call_operand.vmem [shape: f32[1,128], index: 14, kind: input, shape index: {}]   ;;  %s17290_s15 = inlined_call_operand.vmem [shape: f32[1,128], index: 15, kind: input, shape index: {}]   ;;  %s17291_s16 = inlined_call_operand.vmem [shape: f32[1,128], index: 16, kind: input, shape index: {}]   ;;  %s17292_s17 = inlined_call_operand.hbm [shape: f32[2,128,128], index: 17, kind: output, shape index: {0}]   ;;  %s17293_s18 = inlined_call_operand.hbm [shape: f32[2,4,128,128], index: 18, kind: output, shape index: {1}]  }
   0x1   :  { %17415 = sst [smem:[#allocation93_spill]] %s17275_s0 }
   0x2   :  { %17416 = sst [smem:[#allocation94_spill]] %s17276_s1 }
   0x3   :  { %17417 = sst [smem:[#allocation95_spill]] %s17277_s2 }
   0x4   :  { %17418 = sst [smem:[#allocation96_spill]] %s17278_s3 }
   0x5   :  { %17419 = sst [smem:[#allocation97_spill]] %s17279_s4 }
   0x6   :  { %17420 = sst [smem:[#allocation98_spill]] %s17280_s5 }
   0x7   :  { %17421 = sst [smem:[#allocation99_spill]] %s17281_s6 }
   0x8   :  { %17422 = sst [smem:[#allocation100_spill]] %s17282_s7 }
   0x9   :  { %17423 = sst [smem:[#allocation101_spill]] %s17283_s8 }
   0xa   :  { %17424 = sst [smem:[#allocation102_spill]] %s17284_s9 }
   0xb   :  { %17425 = sst [smem:[#allocation103_spill]] %s17285_s10 }
   0xc   :  { %17426 = sst [smem:[#allocation104_spill]] %s17286_s11 }
   0xd   :  { %17427 = sst [smem:[#allocation105_spill]] %s17287_s12 }
   0xe   :  { %17428 = sst [smem:[#allocation106_spill]] %s17288_s13 }
   0xf   :  { %17429 = sst [smem:[#allocation107_spill]] %s17289_s14 }
  0x10   :  { %17430 = sst [smem:[#allocation108_spill]] %s17290_s15 }
  0x11   :  { %17431 = sst [smem:[#allocation109_spill]] %s17291_s16 }
  0x12   :  { %17432 = sst [smem:[#allocation110_spill]] %s17292_s17 }
  0x13   :  { %17433 = sst [smem:[#allocation111_spill]] %s17293_s18 }
  0x14   :  { %24 = vsyncpa [#allocation3], 0 }
  0x15   :  { %26 = vsyncpa [#allocation3 + $0x1], 0 }
  0x16   :  { %27 = vsyncpa [#allocation6], 0 }
  0x17   :  { %28 = vsyncpa [#allocation9], 0 }
  0x18   :  { %29 = vsyncpa [#allocation12], 0 }
  0x19   :  { %30 = vsyncpa [#allocation4], 0 }
  0x1a   :  { %32 = vsyncpa [#allocation4 + $0x1], 0 }
  0x1b   :  { %33 = vsyncpa [#allocation16], 0 }
  0x1c   :  { %35 = vsyncpa [#allocation16 + $0x1], 0  ;;  %s13226_s27 = smov 0   ;;  %s13228_s28 = smov 0  }
  0x1d   :  { %s13230_s29 = smov 0   ;;  %s13232_s30 = smov 0  }
  0x1e   :  { %s13234_s0 = smov 0   ;;  %s13236_s19 = smov 0  }
  0x1f   :  { %s13238_s1 = smov 0   ;;  %s13240_s20 = smov 0  }
  0x20   :  { %s13242_s21 = smov 0   ;;  %s13244_s22 = smov 0  }
  0x21   :  { %s13246_s2 = smov 0  }
  0x22 LB: > { %17434 = sst [smem:[#allocation25_spill]] %s13063_s27  ;;  %s10686_s23 = sadd.s32 4294967295, %s13103_s2   ;;  %s13103_s2 = sphi %s13246_s2, %s41_s2   ;;  %s13099_s22 = sphi %s13244_s22, %s17718_s22   ;;  %s13095_s21 = sphi %s13242_s21, %s17717_s21   ;;  %s13091_s20 = sphi %s13240_s20, %s17716_s20   ;;  %s13087_s1 = sphi %s13238_s1, %s17715_s1   ;;  %s13083_s19 = sphi %s13236_s19, %s17714_s19   ;;  %s13079_s0 = sphi %s13234_s0, %s17713_s0   ;;  %s13075_s30 = sphi %s13232_s30, %s17712_s30   ;;  %s13071_s29 = sphi %s13230_s29, %s17711_s29   ;;  %s13067_s28 = sphi %s13228_s28, %s17710_s28   ;;  %s13063_s27 = sphi %s13226_s27, %s17709_s27  }
  0x23   : > { %17435 = sst [smem:[#allocation26_spill]] %s13087_s1  ;;  %p10688_p0 = scmp.ge.s32.totalorder %s13103_s2, 1 }
  0x24   : > { %17436 = sst [smem:[#allocation27_spill]] %s13091_s20  ;;  %p13283_p1 = scmp.eq.s32.totalorder %s10686_s23, 0 }
  0x25   : > { %p13287_p2 = scmp.eq.s32.totalorder %s10686_s23, 3  ;;  %p476_p3 = scmp.lt.s32.totalorder %s13103_s2, 5 }
  0x26   : > { %s17437_s24 = scalar_select %p13283_p1, 1, 0 }
  0x27   : > { %s17438_s25 = scalar_select %p13287_p2, 1, 0 }
  0x28   : > { %p13292_p4 = pnand %p10688_p0, %p476_p3  ;;  %s13105_s18 = smov [#allocation5]  }
  0x29   : > { %17439 = sst [smem:[#allocation28_spill]] %s17438_s25  ;;  %s488_s17 = sshll.u32 %s13105_s18, 4  ;;  %s13296_s17 = int_to_ptr.vmem [resolvable:$true] %s488_s17 }
  0x2a   : > { %s17440_s26 = scalar_select %p13292_p4, 1, 0 }
  0x2b   : > { %p12382_p5 = pneg %p13292_p4  ;;  %s13106_s23 = smov [#allocation8]  }
  0x2c   : > { %17441 = sst [smem:[#allocation29_spill]] %s17440_s26  ;;  %s520_s16 = sshll.u32 %s13106_s23, 4  ;;  %s13306_s16 = int_to_ptr.vmem [resolvable:$true] %s520_s16 }
  0x2d   : > { %p13302_p6 = pnand %p12382_p5, %p13283_p1  ;;  %s13107_s15 = smov [#allocation11]  }
  0x2e   : > { %s552_s12 = sshll.u32 %s13107_s15, 4  ;;  %s17443_s14 = sld [smem:[#allocation94_spill]]  ;;  %s13308_s12 = int_to_ptr.vmem [resolvable:$true] %s552_s12 }
  0x2f   : > { %p13318_p8 = pneg %p13302_p6 }
  0x34   : > { %s12767_s13 = scalar_lea.hbm %s17443_s14, 2048 }
  0x35   : > { %p12768_p7 = scmp.ne.s32.totalorder %s17443_s14, %s12767_s13  ;;  %p12774_p11 = scmp.lt.u32.totalorder %s12767_s13, %s17443_s14 }
  0x37   : > { %p12770_p9 = pnand %p13318_p8, %p12768_p7 }
  0x39   : > { %p12771_p10 = pneg %p12770_p9 }
  0x3b   : > { %p12776_p12 = pnand %p12774_p11, %p12771_p10 }
  0x3d   : > { %12779 = shalt.err (!%p12776_p12)
}
  0x3e   : > { %s12780_s6 = scalar_lea.vmem %s13296_s17, 2048  ;;  %p12788_p5 = scmp.lt.s32.totalorder %s13296_s17, %s13296_s17 }
  0x3f   : > { %p12781_p13 = scmp.ne.s32.totalorder %s13296_s17, %s12780_s6  ;;  %p12789_p4 = scmp.lt.s32.totalorder %s12780_s6, %s12780_s6 }
  0x41   : > { %p12783_p0 = pnand %p12781_p13, %p13318_p8  ;;  %p12790_p7 = por %p12789_p4, %p12788_p5 }
  0x43   : > { %p12784_p3 = pneg %p12783_p0 }
  0x45   : > { %p12791_p9 = pnand %p12790_p7, %p12784_p3 }
  0x47   : > { %12794 = shalt.err (!%p12791_p9)
}
  0x48   : > { %s17303_s8 = smov 128   ;;  %s17305_s10 = smov 8  }
  0x49   : > { %12385 = dma.hbm_to_vmem [thread:$0]  (!%p13302_p6), %s17443_s14, 2048, %s13296_s17, [#allocation6], %s17303_s8, %s17303_s8, %s17305_s10  }
  0x4a   : > { %s17445_s5 = sld [smem:[#allocation98_spill]] }
  0x50   : > { %s12795_s6 = scalar_lea.hbm %s17445_s5, 2048 }
  0x51   : > { %p12796_p4 = scmp.ne.s32.totalorder %s17445_s5, %s12795_s6  ;;  %p12802_p12 = scmp.lt.u32.totalorder %s12795_s6, %s17445_s5 }
  0x53   : > { %p12798_p10 = pnand %p12796_p4, %p13318_p8 }
  0x55   : > { %p12799_p11 = pneg %p12798_p10 }
  0x57   : > { %p12804_p13 = pnand %p12802_p12, %p12799_p11 }
  0x59   : > { %12807 = shalt.err (!%p12804_p13)
}
  0x5a   : > { %s12808_s17 = scalar_lea.vmem %s13306_s16, 2048  ;;  %p12816_p7 = scmp.lt.s32.totalorder %s13306_s16, %s13306_s16 }
  0x5b   : > { %p12809_p0 = scmp.ne.s32.totalorder %s13306_s16, %s12808_s17  ;;  %p12817_p9 = scmp.lt.s32.totalorder %s12808_s17, %s12808_s17 }
  0x5d   : > { %p12811_p3 = pnand %p12809_p0, %p13318_p8  ;;  %p12818_p4 = por %p12817_p9, %p12816_p7 }
  0x5f   : > { %p12812_p5 = pneg %p12811_p3 }
  0x61   : > { %p12819_p10 = pnand %p12818_p4, %p12812_p5 }
  0x63   : > { %12822 = shalt.err (!%p12819_p10)
}
  0x64   : > { %12391 = dma.hbm_to_vmem [thread:$0]  (!%p13302_p6), %s17445_s5, 2048, %s13306_s16, [#allocation9], %s17303_s8, %s17303_s8, %s17305_s10  }
  0x65   : > { %s17446_s9 = sld [smem:[#allocation102_spill]] }
  0x6b   : > { %s12823_s13 = scalar_lea.hbm %s17446_s9, 4096 }
  0x6c   : > { %p12824_p11 = scmp.ne.s32.totalorder %s17446_s9, %s12823_s13  ;;  %p12830_p0 = scmp.lt.u32.totalorder %s12823_s13, %s17446_s9 }
  0x6e   : > { %p12826_p12 = pnand %p12824_p11, %p13318_p8 }
  0x70   : > { %p12827_p13 = pneg %p12826_p12 }
  0x72   : > { %p12832_p3 = pnand %p12830_p0, %p12827_p13 }
  0x74   : > { %12835 = shalt.err (!%p12832_p3)
}
  0x75   : > { %s12836_s16 = scalar_lea.vmem %s13308_s12, 4096  ;;  %p12844_p4 = scmp.lt.s32.totalorder %s13308_s12, %s13308_s12 }
  0x76   : > { %p12837_p5 = scmp.ne.s32.totalorder %s13308_s12, %s12836_s16  ;;  %p12845_p10 = scmp.lt.s32.totalorder %s12836_s16, %s12836_s16 }
  0x78   : > { %p12839_p7 = pnand %p12837_p5, %p13318_p8  ;;  %p12846_p11 = por %p12845_p10, %p12844_p4 }
  0x7a   : > { %p12840_p9 = pneg %p12839_p7 }
  0x7c   : > { %p12847_p12 = pnand %p12846_p11, %p12840_p9 }
  0x7e   : > { %12850 = shalt.err (!%p12847_p12)
}
  0x7f   : > { %s13110_s17 = smov 256   ;;  %s13111_s27 = smov 16  }
  0x80   : > { %12397 = dma.hbm_to_vmem [thread:$0]  (!%p13302_p6), %s17446_s9, 4096, %s13308_s12, [#allocation12], %s13110_s17, %s13110_s17, %s13111_s27  }
  0x81   : > { %s13112_s26 = smov [#allocation7]   ;;  %s13113_s18 = smov [#allocation10]  }
  0x82   : > { %s504_s13 = sshll.u32 %s13112_s26, 4  ;;  %s536_s15 = sshll.u32 %s13113_s18, 4  ;;  %s505_s13 = int_to_ptr.vmem [resolvable:$true] %s504_s13  ;;  %s13391_s15 = int_to_ptr.vmem [resolvable:$true] %s536_s15 }
  0x83   : > { %s17447_s3 = sld [smem:[#allocation96_spill]] }
  0x89   : > { %s12851_s16 = scalar_lea.hbm %s17447_s3, 2048 }
  0x8a   : > { %p12852_p13 = scmp.ne.s32.totalorder %s17447_s3, %s12851_s16  ;;  %p12858_p5 = scmp.lt.u32.totalorder %s12851_s16, %s17447_s3 }
  0x8c   : > { %p12854_p0 = pnand %p12852_p13, %p13318_p8 }
  0x8e   : > { %p12855_p3 = pneg %p12854_p0 }
  0x90   : > { %p12860_p7 = pnand %p12858_p5, %p12855_p3 }
  0x92   : > { %12863 = shalt.err (!%p12860_p7)
}
  0x93   : > { %s12864_s17 = scalar_lea.vmem %s505_s13, 2048  ;;  %p12872_p11 = scmp.lt.s32.totalorder %s505_s13, %s505_s13 }
  0x94   : > { %p12865_p9 = scmp.ne.s32.totalorder %s505_s13, %s12864_s17  ;;  %p12873_p12 = scmp.lt.s32.totalorder %s12864_s17, %s12864_s17 }
  0x96   : > { %p12867_p4 = pnand %p12865_p9, %p13318_p8  ;;  %p12874_p2 = por %p12873_p12, %p12872_p11 }
  0x98   : > { %p12868_p10 = pneg %p12867_p4 }
  0x9a   : > { %p12875_p1 = pnand %p12874_p2, %p12868_p10 }
  0x9c   : > { %12878 = shalt.err (!%p12875_p1)
}
  0x9d   : > { %s17448_s8 = smov 8   ;;  %s17449_s10 = smov 128  }
  0x9e   : > { %12388 = dma.hbm_to_vmem [thread:$0]  (!%p13302_p6), %s17447_s3, 2048, %s505_s13, [#allocation6], %s17449_s10, %s17449_s10, %s17448_s8  }
  0x9f   : > { %s17450_s7 = sld [smem:[#allocation100_spill]] }
  0xa5   : > { %s12879_s23 = scalar_lea.hbm %s17450_s7, 2048 }
  0xa6   : > { %p12880_p13 = scmp.ne.s32.totalorder %s17450_s7, %s12879_s23  ;;  %p12886_p0 = scmp.lt.u32.totalorder %s12879_s23, %s17450_s7 }
  0xa8   : > { %p12882_p1 = pnand %p12880_p13, %p13318_p8 }
  0xaa   : > { %p12883_p2 = pneg %p12882_p1 }
  0xac   : > { %p12888_p3 = pnand %p12886_p0, %p12883_p2 }
  0xae   : > { %12891 = shalt.err (!%p12888_p3)
}
  0xaf   : > { %s12892_s13 = scalar_lea.vmem %s13391_s15, 2048  ;;  %p12900_p4 = scmp.lt.s32.totalorder %s13391_s15, %s13391_s15 }
  0xb0   : > { %p12893_p5 = scmp.ne.s32.totalorder %s13391_s15, %s12892_s13  ;;  %p12901_p10 = scmp.lt.s32.totalorder %s12892_s13, %s12892_s13 }
  0xb2   : > { %p12895_p7 = pnand %p12893_p5, %p13318_p8  ;;  %p12902_p11 = por %p12901_p10, %p12900_p4 }
  0xb4   : > { %p12896_p9 = pneg %p12895_p7 }
  0xb6   : > { %p12903_p12 = pnand %p12902_p11, %p12896_p9 }
  0xb8   : > { %12906 = shalt.err (!%p12903_p12)
}
  0xb9   : > { %12394 = dma.hbm_to_vmem [thread:$0]  (!%p13302_p6), %s17450_s7, 2048, %s13391_s15, [#allocation9], %s17449_s10, %s17449_s10, %s17448_s8  }
  0xba   : > { %s13114_s25 = smov [#allocation13]   ;;  %s17451_s11 = sld [smem:[#allocation104_spill]] }
  0xbb   : > { %s568_s26 = sshll.u32 %s13114_s25, 4  ;;  %s569_s26 = int_to_ptr.vmem [resolvable:$true] %s568_s26 }
  0xc0   : > { %s12907_s6 = scalar_lea.hbm %s17451_s11, 4096 }
  0xc1   : > { %p12908_p13 = scmp.ne.s32.totalorder %s17451_s11, %s12907_s6  ;;  %p12914_p0 = scmp.lt.u32.totalorder %s12907_s6, %s17451_s11 }
  0xc3   : > { %p12910_p1 = pnand %p12908_p13, %p13318_p8 }
  0xc5   : > { %p12911_p2 = pneg %p12910_p1 }
  0xc7   : > { %p12916_p3 = pnand %p12914_p0, %p12911_p2 }
  0xc9   : > { %12919 = shalt.err (!%p12916_p3)
}
  0xca   : > { %s12920_s15 = scalar_lea.vmem %s569_s26, 4096  ;;  %p12928_p4 = scmp.lt.s32.totalorder %s569_s26, %s569_s26 }
  0xcb   : > { %p12921_p5 = scmp.ne.s32.totalorder %s569_s26, %s12920_s15  ;;  %p12929_p10 = scmp.lt.s32.totalorder %s12920_s15, %s12920_s15 }
  0xcd   : > { %p12923_p7 = pnand %p12921_p5, %p13318_p8  ;;  %p12930_p11 = por %p12929_p10, %p12928_p4 }
  0xcf   : > { %p12924_p9 = pneg %p12923_p7 }
  0xd1   : > { %p12931_p12 = pnand %p12930_p11, %p12924_p9 }
  0xd3   : > { %12934 = shalt.err (!%p12931_p12)
}
  0xd4   : > { %12400 = dma.hbm_to_vmem [thread:$0]  (!%p13302_p6), %s17451_s11, 4096, %s569_s26, [#allocation12], %s17449_s10, %s17449_s10, %s17448_s8  }
  0xd5   : > { %s10687_s4 = sadd.s32 4294967294, %s13103_s2   ;;  %s50_s20 = sadd.s32 1, %s13095_s21 }
  0xd6   : > { %s17452_s25 = sld [smem:[#allocation25_spill]]  ;;  %s53_s18 = sadd.s32 1, %s13099_s22 }
  0xd7   : > { %p51_p8 = scmp.ge.s32.totalorder %s50_s20, 2  ;;  %s60_s23 = sadd.s32 1, %s13083_s19 }
  0xd8   : > { %p67_p13 = scmp.ne.s32.totalorder %s13083_s19, %s13079_s0  ;;  %p68_p1 = scmp.eq.s32.totalorder %s13103_s2, 0 }
  0xd9   : > { %s17720_s20 = smov (%p51_p8, %s50_s20), 0  ;;  %s17453_s6 = sld [smem:[#allocation28_spill]] }
  0xda   : > { %s17722_s18 = smov (!%p51_p8, %s53_s18), %s13099_s22  ;;  %p13471_p2 = por %p68_p1, %p67_p13 }
  0xdb   : > { %p73_p6 = scmp.ne.s32.totalorder %s13079_s0, %s13075_s30  ;;  %p55_p0 = scmp.ge.s32.totalorder %s17722_s18, 2 }
  0xdc   : > { %s420_s16 = ssub.s32 %s13095_s21, %s17720_s20  ;;  %p17455_p3 = scmp.ne.s32.totalorder %s17437_s24, 0 }
  0xdd   : > { %s424_s12 = sadd.s32 1, %s13071_s29  ;;  %s17724_s18 = smov (%p55_p0, %s17722_s18), 0 }
  0xde   : > { %p13481_p5 = por %p17455_p3, %p73_p6  ;;  %p434_p7 = scmp.ne.s32.totalorder %s13071_s29, %s13067_s28 }
  0xdf   : > { %p440_p9 = scmp.ne.s32.totalorder %s13067_s28, %s17452_s25  ;;  %s57_s13 = ssub.s32 %s13099_s22, %s17724_s18 }
  0xe0   : > { %p441_p4 = scmp.eq.s32.totalorder %s10687_s4, 3  ;;  %p58_p10 = scmp.eq.s32.totalorder %s57_s13, 0 }
  0xe1   : > { %s421_s30 = sor.u32 %s420_s16, %s57_s13  ;;  %p17457_p12 = scmp.ne.s32.totalorder %s17453_s6, 0 }
  0xe2   : > { %p422_p11 = scmp.eq.s32.totalorder %s421_s30, 0  ;;  %p13506_p13 = por %p441_p4, %p440_p9 }
  0xe3   : > { %p13496_p8 = por %p17457_p12, %p434_p7  ;;  %p12418_p1 = scmp.lt.s32.totalorder %s13103_s2, 4 }
  0xe4   : > { %s13501_s17 = scalar_select %p58_p10, %s13083_s19, %s60_s23  }
  0xe5   : > { %s17458_s15 = scalar_select %p13496_p8, 1, 0 }
  0xe6   : > { %s13504_s27 = scalar_select %p422_p11, %s13071_s29, %s424_s12  }
  0xe7   : > { %s17459_s3 = scalar_select %p13506_p13, 1, 0 }
  0xe8   : > { %s597_s25 = sand.u32 1, %s13083_s19   ;;  %s10921_s5 = sshll.u32 %s13099_s22, 11 }
  0xe9   : > { %s10696_s4 = sshll.u32 %s597_s25, 7  ;;  %s17460_s13 = sld [smem:[#allocation93_spill]] }
  0xea   : > { %s601_s23 = scalar_lea.vmem [#allocation2], %s10696_s4  ;;  %p13520_p6 = pnand %p12418_p1, %p13471_p2 }
  0xeb   : > { %s608_s12 = sshll.u32 %s601_s23, 4  ;;  %s13526_s9 = scalar_lea.sflag [#allocation3], %s597_s25  ;;  %s13524_s12 = int_to_ptr.vmem [resolvable:$true] %s608_s12 }
  0xec   : > { %p12937_p3 = pneg %p13520_p6 }
  0xef   : > { %s13516_s6 = scalar_lea.hbm %s17460_s13, %s10921_s5  ;;  %s12940_s4 = scalar_lea.hbm %s17460_s13, 4096 }
  0xf0   : > { %s12935_s7 = scalar_lea.hbm %s13516_s6, 2048  ;;  %p12941_p2 = scmp.lt.u32.totalorder %s13516_s6, %s17460_s13 }
  0xf1   : > { %p12936_p0 = scmp.ne.s32.totalorder %s13516_s6, %s12935_s7  ;;  %p12942_p4 = scmp.lt.u32.totalorder %s12940_s4, %s12935_s7 }
  0xf2   : > { %p12944_p11 = scmp.lt.u32.totalorder %s12935_s7, %s13516_s6 }
  0xf3   : > { %p12938_p7 = pnand %p12937_p3, %p12936_p0  ;;  %p12943_p10 = por %p12942_p4, %p12941_p2 }
  0xf5   : > { %p12939_p9 = pneg %p12938_p7  ;;  %p12945_p12 = por %p12944_p11, %p12943_p10 }
  0xf7   : > { %p12946_p1 = pnand %p12945_p12, %p12939_p9 }
  0xf9   : > { %12949 = shalt.err (!%p12946_p1)
}
  0xfa   : > { %s12950_s25 = scalar_lea.vmem %s13524_s12, 2048  ;;  %s13115_s5 = smov [#allocation2]  }
  0xfb   : > { %p12951_p0 = scmp.ne.s32.totalorder %s13524_s12, %s12950_s25  ;;  %s12955_s26 = sshll.u32 %s13115_s5, 4  ;;  %s12956_s26 = int_to_ptr.vmem [resolvable:$false] %s12955_s26 }
  0xfc   : > { %s12957_s16 = scalar_lea.vmem %s12956_s26, 4096  ;;  %p12958_p8 = scmp.lt.s32.totalorder %s13524_s12, %s12956_s26 }
  0xfd   : > { %p12953_p7 = pnand %p12951_p0, %p12937_p3  ;;  %p12959_p2 = scmp.lt.s32.totalorder %s12957_s16, %s12950_s25 }
  0xff   : > { %p12954_p13 = pneg %p12953_p7  ;;  %p12960_p4 = por %p12959_p2, %p12958_p8 }
 0x101   : > { %p12961_p10 = pnand %p12960_p4, %p12954_p13 }
 0x103   : > { %12964 = shalt.err (!%p12961_p10)
}
 0x104   : > { %12404 = dma.hbm_to_vmem [thread:$0]  (!%p13520_p6), %s13516_s6, 2048, %s13524_s12, %s13526_s9, %s17449_s10, %s17449_s10, %s17448_s8  }
 0x105   : > { %s17462_s7 = sld [smem:[#allocation29_spill]] }
 0x10b   : > { %p17463_p3 = scmp.ne.s32.totalorder %s17462_s7, 0 }
 0x10d   : > { %620 = sbr.rel (%p17463_p3) target bundleno = 3164 (0xc5c), region = 88 }
 0x114   : > { %s622_s4 = sand.u32 1, %s13079_s0  }
 0x115   : > { %s10700_s23 = sshll.u32 %s622_s4, 7  ;;  %s623_s25 = scalar_lea.sflag [#allocation3], %s622_s4 }
 0x116   : > { %s13560_s5 = scalar_lea.vmem [#allocation2], %s10700_s23 }
 0x117   : > { %13038 = dma.done.wait (%p13481_p5), %s623_s25, 2048  }
 0x118   : > { %13040 = vsyncadd (%p13481_p5), %s623_s25, 4294965248  ;;  %p17464_p8 = scmp.ne.s32.totalorder %s17437_s24, 0 }
 0x11a   : > { %13042 = dma.done.wait (%p17464_p8), [#allocation6], 4096  }
 0x11b   : > { %13044 = vsyncadd (%p17464_p8), [#allocation6], 4294963200 }
 0x11c   : > { %13046 = dma.done.wait (%p17464_p8), [#allocation9], 4096  }
 0x11d   : > { %13048 = vsyncadd (%p17464_p8), [#allocation9], 4294963200 }
 0x11e   : > { %13050 = dma.done.wait (%p17464_p8), [#allocation12], 8192  }
 0x11f   : > { %13052 = vsyncadd (%p17464_p8), [#allocation12], 4294959104  ;;  %v864_v0 = vld [vmem:[#allocation7] sm:$0xff]  ;;  %v865_v1 = vld [vmem:[#allocation7 + $0x8] sm:$0xff]  ;;  %s17465_s9 = sld [smem:[#allocation26_spill]]  ;;  %s13116_s12 = smov 64  }
 0x120   : > { %v866_v2 = vld [vmem:[#allocation7 + $0x10] sm:$0xff]  ;;  %v11866_v3 = vpack.c.bf16 %v865_v1, %v864_v0  ;;  %v867_v4 = vld [vmem:[#allocation7 + $0x18] sm:$0xff]  ;;  %v868_v6 = vld [vmem:[#allocation7 + $0x20] sm:$0xff]  ;;  %s17466_s6 = sld [smem:[#allocation97_spill]]  ;;  %s13117_s30 = smov 96   ;;  %vm7040_vm0 = vcmask 261120  }
 0x121   : > { %v11870_v5 = vpack.c.bf16 %v867_v4, %v866_v2  ;;  %v869_v7 = vld [vmem:[#allocation7 + $0x28] sm:$0xff]  ;;  %v13579_v9 = vld [vmem:[%s13560_s5] sm:$0xff]  ;;  %v870_v10 = vld [vmem:[#allocation7 + $0x30] sm:$0xff]  ;;  %s13118_s26 = smov 32   ;;  %s17467_s4 = sld [smem:[#allocation95_spill]]  ;;  %vm9713_vm2 = vcmask 523264  }
 0x122   : > { %11867 = vmatprep.subr.bf16.mxu1 %v11866_v3  ;;  %v11874_v8 = vpack.c.bf16 %v869_v7, %v868_v6  ;;  %v871_v11 = vld [vmem:[#allocation7 + $0x38] sm:$0xff]  ;;  %11358 = vmatprep.mubr.f32.mxu1 %v13579_v9  ;;  %v872_v13 = vld [vmem:[#allocation7 + $0x40] sm:$0xff]  ;;  %v737_v15 = vld [vmem:[#allocation5 + $0x8] sm:$0xff]  ;;  %s16223_s1 = sand.u32 1, %s13067_s28   ;;  %vm9722_vm3 = vcmask 785408   ;;  %s17698_s23 = sld [smem:[#allocation108_spill]] }
 0x123   : > { %11869 = vmatpush3.bf16.msra.mxu1 %v11866_v3  ;;  %v11878_v12 = vpack.c.bf16 %v871_v11, %v870_v10  ;;  %v736_v14 = vld [vmem:[#allocation5] sm:$0xff]  ;;  %v873_v16 = vld [vmem:[#allocation7 + $0x48] sm:$0xff]  ;;  %v738_v18 = vld [vmem:[#allocation5 + $0x10] sm:$0xff]  ;;  %s10707_s25 = sshll.u32 %s16223_s1, 6  ;;  %s17701_s10 = sld [smem:[#allocation110_spill]] }
 0x124   : > { %11871 = vmatprep.subr.bf16.mxu1 %v11870_v5  ;;  %v11834_v17 = vpack.c.bf16 %v737_v15, %v736_v14  ;;  %v739_v19 = vld [vmem:[#allocation5 + $0x18] sm:$0xff]  ;;  %v740_v21 = vld [vmem:[#allocation5 + $0x20] sm:$0xff]  ;;  %v741_v22 = vld [vmem:[#allocation5 + $0x28] sm:$0xff]  ;;  %v11882_v23 = vpack.c.bf16 %v873_v16, %v872_v13  ;;  %p17702_p13 = scmp.ne.s32.totalorder %s17458_s15, 0 }
 0x125   : > { %s10709_s24 = sshll.u32 %s17465_s9, 6  ;;  %v11838_v20 = vpack.c.bf16 %v739_v19, %v738_v18  ;;  %v874_v24 = vld [vmem:[#allocation7 + $0x50] sm:$0xff]  ;;  %v875_v25 = vld [vmem:[#allocation7 + $0x58] sm:$0xff]  ;;  %v11842_v26 = vpack.c.bf16 %v741_v22, %v740_v21  ;;  %v876_v31 = vld [vmem:[#allocation7 + $0x60] sm:$0xff] }
 0x126   : > { %11835 = vmatprep.subr.bf16.mxu0 %v11834_v17  ;;  %s13584_s8 = scalar_lea.vmem %s13560_s5, %s10709_s24 [#allocation2]  ;;  %v742_v27 = vld [vmem:[#allocation5 + $0x30] sm:$0xff]  ;;  %v743_v28 = vld [vmem:[#allocation5 + $0x38] sm:$0xff]  ;;  %v11886_v30 = vpack.c.bf16 %v875_v25, %v874_v24  ;;  %v877_v32 = vld [vmem:[#allocation7 + $0x68] sm:$0xff]  ;;  %s17694_s24 = sld [smem:[#allocation107_spill]] }
 0x127   : > { %11873 = vmatpush3.bf16.msra.mxu1 %v11870_v5  ;;  %11837 = vmatpush3.bf16.msra.mxu0 %v11834_v17  ;;  %v728_v29 = vld [vmem:[%s13584_s8] sm:$0xff]  ;;  %v11846_v33 = vpack.c.bf16 %v743_v28, %v742_v27  ;;  %v745_v35 = vld [vmem:[#allocation5 + $0x48] sm:$0xff]  ;;  %v11890_v36 = vpack.c.bf16 %v877_v32, %v876_v31  ;;  %v878_v37 = vld [vmem:[#allocation7 + $0x70] sm:$0xff] }
 0x128   : > { %11875 = vmatprep.subr.bf16.mxu1 %v11874_v8  ;;  %11839 = vmatprep.subr.bf16.mxu0 %v11838_v20  ;;  %v744_v34 = vld [vmem:[#allocation5 + $0x40] sm:$0xff]  ;;  %v879_v38 = vld [vmem:[#allocation7 + $0x78] sm:$0xff]  ;;  %v746_v40 = vld [vmem:[#allocation5 + $0x50] sm:$0xff] }
 0x129   : > { %11314 = vmatprep.mubr.f32.mxu0 %v728_v29  ;;  %v11850_v39 = vpack.c.bf16 %v745_v35, %v744_v34  ;;  %v747_v41 = vld [vmem:[#allocation5 + $0x58] sm:$0xff]  ;;  %v11894_v42 = vpack.c.bf16 %v879_v38, %v878_v37  ;;  %v748_v44 = vld [vmem:[#allocation5 + $0x60] sm:$0xff]  ;;  %v749_v45 = vld [vmem:[#allocation5 + $0x68] sm:$0xff] }
 0x12a   : > { %v11854_v43 = vpack.c.bf16 %v747_v41, %v746_v40  ;;  %v11858_v46 = vpack.c.bf16 %v749_v45, %v748_v44  ;;  %v750_v47 = vld [vmem:[#allocation5 + $0x70] sm:$0xff]  ;;  %v751_v48 = vld [vmem:[#allocation5 + $0x78] sm:$0xff]  ;;  %v13588_v49 = vld [vmem:[%s13560_s5 + $0x8] sm:$0xff] }
 0x12b   : > { %11877 = vmatpush3.bf16.msra.mxu1 %v11874_v8  ;;  %11841 = vmatpush3.bf16.msra.mxu0 %v11838_v20  ;;  %v13591_v50 = vld [vmem:[%s13560_s5 + $0x10] sm:$0xff]  ;;  %v11862_v51 = vpack.c.bf16 %v751_v48, %v750_v47  ;;  %v1032_v52 = vld [vmem:[#allocation8] sm:$0xff]  ;;  %v1033_v53 = vld [vmem:[#allocation8 + $0x8] sm:$0xff] }
 0x12c   : > { %11879 = vmatprep.subr.bf16.mxu1 %v11878_v12  ;;  %11843 = vmatprep.subr.bf16.mxu0 %v11842_v26  ;;  %v13596_v54 = vld [vmem:[%s13560_s5 + $0x18] sm:$0xff]  ;;  %v13599_v55 = vld [vmem:[%s13560_s5 + $0x20] sm:$0xff]  ;;  %v11898_v56 = vpack.c.bf16 %v1033_v53, %v1032_v52  ;;  %v1034_v57 = vld [vmem:[#allocation8 + $0x10] sm:$0xff] }
 0x12d   : > { %v1035_v58 = vld [vmem:[#allocation8 + $0x18] sm:$0xff]  ;;  %v13604_v59 = vld [vmem:[%s13560_s5 + $0x28] sm:$0xff]  ;;  %v13607_v60 = vld [vmem:[%s13560_s5 + $0x30] sm:$0xff] }
 0x12e   : > { %v729_v61 = vld [vmem:[%s13584_s8 + $0x8] sm:$0xff]  ;;  %v730_v62 = vld [vmem:[%s13584_s8 + $0x10] sm:$0xff]  ;;  %v11902_v63 = vpack.c.bf16 %v1035_v58, %v1034_v57  ;;  %v1036_v0 = vld [vmem:[#allocation8 + $0x20] sm:$0xff] }
 0x12f   : > { %11881 = vmatpush3.bf16.msra.mxu1 %v11878_v12  ;;  %11845 = vmatpush3.bf16.msra.mxu0 %v11842_v26  ;;  %v1037_v1 = vld [vmem:[#allocation8 + $0x28] sm:$0xff]  ;;  %v13614_v2 = vld [vmem:[%s13560_s5 + $0x38] sm:$0xff]  ;;  %v13617_v3 = vld [vmem:[%s13560_s5 + $0x40] sm:$0xff] }
 0x130   : > { %11883 = vmatprep.subr.bf16.mxu1 %v11882_v23  ;;  %11847 = vmatprep.subr.bf16.mxu0 %v11846_v33  ;;  %v731_v4 = vld [vmem:[%s13584_s8 + $0x18] sm:$0xff]  ;;  %v732_v5 = vld [vmem:[%s13584_s8 + $0x20] sm:$0xff]  ;;  %v11906_v6 = vpack.c.bf16 %v1037_v1, %v1036_v0  ;;  %v1038_v7 = vld [vmem:[#allocation8 + $0x30] sm:$0xff] }
 0x131   : > { %v1039_v8 = vld [vmem:[#allocation8 + $0x38] sm:$0xff]  ;;  %v719_v10 = vld [vmem:[%s13560_s5 + $0x48] sm:$0xff]  ;;  %v720_v11 = vld [vmem:[%s13560_s5 + $0x50] sm:$0xff] }
 0x132   : > { %v733_v12 = vld [vmem:[%s13584_s8 + $0x28] sm:$0xff]  ;;  %v734_v13 = vld [vmem:[%s13584_s8 + $0x30] sm:$0xff]  ;;  %v11910_v14 = vpack.c.bf16 %v1039_v8, %v1038_v7  ;;  %v1040_v15 = vld [vmem:[#allocation8 + $0x40] sm:$0xff] }
 0x133   : > { %11885 = vmatpush3.bf16.msra.mxu1 %v11882_v23  ;;  %11849 = vmatpush3.bf16.msra.mxu0 %v11846_v33  ;;  %v1041_v16 = vld [vmem:[#allocation8 + $0x48] sm:$0xff]  ;;  %v721_v17 = vld [vmem:[%s13560_s5 + $0x58] sm:$0xff]  ;;  %v722_v18 = vld [vmem:[%s13560_s5 + $0x60] sm:$0xff] }
 0x134   : > { %11887 = vmatprep.subr.bf16.mxu1 %v11886_v30  ;;  %11851 = vmatprep.subr.bf16.mxu0 %v11850_v39  ;;  %v735_v19 = vld [vmem:[%s13584_s8 + $0x38] sm:$0xff]  ;;  %v11914_v20 = vpack.c.bf16 %v1041_v16, %v1040_v15  ;;  %v1042_v21 = vld [vmem:[#allocation8 + $0x50] sm:$0xff]  ;;  %v723_v23 = vld [vmem:[%s13560_s5 + $0x68] sm:$0xff] }
 0x135   : > { %v1043_v22 = vld [vmem:[#allocation8 + $0x58] sm:$0xff]  ;;  %v724_v24 = vld [vmem:[%s13560_s5 + $0x70] sm:$0xff]  ;;  %v1044_v26 = vld [vmem:[#allocation8 + $0x60] sm:$0xff] }
 0x136   : > { %v11918_v25 = vpack.c.bf16 %v1043_v22, %v1042_v21  ;;  %v1045_v27 = vld [vmem:[#allocation8 + $0x68] sm:$0xff]  ;;  %v725_v28 = vld [vmem:[%s13560_s5 + $0x78] sm:$0xff]  ;;  %s17472_s5 = sld [smem:[#allocation99_spill]]  ;;  %vm14025_vm1 = vmpackc.low %vm7040_vm0, %vm7040_vm0 }
 0x137   : > { %11889 = vmatpush3.bf16.msra.mxu1 %v11886_v30  ;;  %11853 = vmatpush3.bf16.msra.mxu0 %v11850_v39  ;;  %v11922_v29 = vpack.c.bf16 %v1045_v27, %v1044_v26  ;;  %v1046_v30 = vld [vmem:[#allocation8 + $0x70] sm:$0xff]  ;;  %v1047_v31 = vld [vmem:[#allocation8 + $0x78] sm:$0xff] }
 0x138   : > { %11891 = vmatprep.subr.bf16.mxu1 %v11890_v36  ;;  %11855 = vmatprep.subr.bf16.mxu0 %v11854_v43  ;;  %v11926_v32 = vpack.c.bf16 %v1047_v31, %v1046_v30 }
 0x13b   : > { %11893 = vmatpush3.bf16.msra.mxu1 %v11890_v36  ;;  %11857 = vmatpush3.bf16.msra.mxu0 %v11854_v43 }
 0x13c   : > { %11895 = vmatprep.subr.bf16.mxu1 %v11894_v42  ;;  %11859 = vmatprep.subr.bf16.mxu0 %v11858_v46 }
 0x13f   : > { %11897 = vmatpush3.bf16.msra.mxu1 %v11894_v42  ;;  %11861 = vmatpush3.bf16.msra.mxu0 %v11858_v46 }
 0x140   : > { %11863 = vmatprep.subr.bf16.mxu0 %v11862_v51 }
 0x142   : > { %11359 = vmatmul.mubr.f32.vlgmr.msra.gmra.mrb[0].mxu1 %v13588_v49 }
 0x143   : > { %11361 = vmatprep.mubr.f32.mxu1 %v13591_v50  ;;  %11865 = vmatpush3.bf16.msra.mxu0 %v11862_v51 }
 0x144   : > { %11899 = vmatprep.subr.bf16.mxu0 %v11898_v56 }
 0x146   : > { %11362 = vmatmul.mubr.f32.gmra.mrb[2].mxu1 %v13596_v54  ;;  %11315 = vmatmul.mubr.f32.vlgmr.msra.gmra.mrb[0].mxu0 %v729_v61 }
 0x147   : > { %11364 = vmatprep.mubr.f32.mxu1 %v13599_v55  ;;  %11317 = vmatprep.mubr.f32.mxu0 %v730_v62 }
 0x148   : > { %11901 = vmatpush3.bf16.msra.mxu0 %v11898_v56 }
 0x149   : > { %11903 = vmatprep.subr.bf16.mxu0 %v11902_v63 }
 0x14a   : > { %11365 = vmatmul.mubr.f32.gmra.mrb[4].mxu1 %v13604_v59  ;;  %11318 = vmatmul.mubr.f32.gmra.mrb[2].mxu0 %v731_v4 }
 0x14b   : > { %11367 = vmatprep.mubr.f32.mxu1 %v13607_v60  ;;  %11320 = vmatprep.mubr.f32.mxu0 %v732_v5 }
 0x14c   : > { %11905 = vmatpush3.bf16.msra.mxu0 %v11902_v63 }
 0x14d   : > { %11907 = vmatprep.subr.bf16.mxu0 %v11906_v6 }
 0x14e   : > { %11368 = vmatmul.mubr.f32.gmra.mrb[6].mxu1 %v13614_v2  ;;  %11321 = vmatmul.mubr.f32.gmra.mrb[4].mxu0 %v733_v12 }
 0x14f   : > { %11370 = vmatprep.mubr.f32.mxu1 %v13617_v3  ;;  %11323 = vmatprep.mubr.f32.mxu0 %v734_v13 }
 0x150   : > { %11909 = vmatpush3.bf16.msra.mxu0 %v11906_v6 }
 0x151   : > { %11911 = vmatprep.subr.bf16.mxu0 %v11910_v14 }
 0x152   : > { %11371 = vmatmul.mubr.f32.gmra.mrb[8].mxu1 %v719_v10  ;;  %11324 = vmatmul.mubr.f32.gmra.mrb[6].mxu0 %v735_v19  ;;  %v1285_v19 = vlaneseq }
 0x153   : > { %11373 = vmatprep.mubr.f32.mxu1 %v720_v11  ;;  %11414 = vmatprep.mubr.f32.mxu0 %v13579_v9  ;;  %v13645_v9 = vld [vmem:[%s17466_s6] ss:$0 sm:$0xff]  ;;  %s10708_s6 = sshll.u32 %s16223_s1, 8 }
 0x154   : > { %11913 = vmatpush3.bf16.msra.mxu0 %v11910_v14  ;;  %s16397_s16 = scalar_lea.vmem [#allocation15], %s10708_s6  ;;  %s17699_s6 = sld [smem:[#allocation109_spill]] }
 0x155   : > { %11915 = vmatprep.subr.bf16.mxu0 %v11914_v20 }
 0x156   : > { %11374 = vmatmul.mubr.f32.gmra.mrb[10].mxu1 %v721_v17 }
 0x157   : > { %11376 = vmatprep.mubr.f32.mxu1 %v722_v18 }
 0x158   : > { %11917 = vmatpush3.bf16.msra.mxu0 %v11914_v20  ;;  %v13120_v20 = vmov 1934713408  }
 0x159   : > { %11919 = vmatprep.subr.bf16.mxu0 %v11918_v25  ;;  %v1315_v21 = vunpack.c.l.s4 %v13120_v20 }
 0x15a   : > { %11377 = vmatmul.mubr.f32.gmra.mrb[12].mxu1 %v723_v23 }
 0x15b   : > { %11379 = vmatprep.mubr.f32.mxu1 %v724_v24 }
 0x15c   : > { %11921 = vmatpush3.bf16.msra.mxu0 %v11918_v25 }
 0x15d   : > { %11923 = vmatprep.subr.bf16.mxu0 %v11922_v29 }
 0x15e   : > { %11380 = vmatmul.mubr.f32.gmra.mrb[14].mxu1 %v725_v28 }
 0x160   : > { %11925 = vmatpush3.bf16.msra.mxu0 %v11922_v29 }
 0x161   : > { %11927 = vmatprep.subr.bf16.mxu0 %v11926_v32 }
 0x164   : > { %11929 = vmatpush3.bf16.msra.mxu0 %v11926_v32 }
 0x167   : > { %11415 = vmatmul.mubr.f32.vlgmr.msra.gmra.mrb[8].mxu0 %v13588_v49 }
 0x168   : > { %11417 = vmatprep.mubr.f32.mxu0 %v13591_v50 }
 0x16b   : > { %11418 = vmatmul.mubr.f32.gmra.mrb[10].mxu0 %v13596_v54 }
 0x16c   : > { %11420 = vmatprep.mubr.f32.mxu0 %v13599_v55 }
 0x16f   : > { %11421 = vmatmul.mubr.f32.gmra.mrb[12].mxu0 %v13604_v59 }
 0x170   : > { %11423 = vmatprep.mubr.f32.mxu0 %v13607_v60 }
 0x173   : > { %11424 = vmatmul.mubr.f32.gmra.mrb[14].mxu0 %v13614_v2 }
 0x174   : > { %11426 = vmatprep.mubr.f32.mxu0 %v13617_v3 }
 0x177   : > { %11427 = vmatmul.mubr.f32.gmra.mrb[16].mxu0 %v719_v10 }
 0x178   : > { %11429 = vmatprep.mubr.f32.mxu0 %v720_v11  ;;  %v10710_v11 = vld [vmem:[%s17467_s4] ss:$0 sm:$0xff]  ;;  %s17693_s4 = sld [smem:[#allocation106_spill]] }
 0x17b   : > { %11430 = vmatmul.mubr.f32.gmra.mrb[18].mxu0 %v721_v17  ;;  %v13119_v17 = vmov 1983009808  }
 0x17c   : > { %11432 = vmatprep.mubr.f32.mxu0 %v722_v18  ;;  %v1283_v18 = vunpack.c.l.s4 %v13119_v17 }
 0x17f   : > { %11433 = vmatmul.mubr.f32.gmra.mrb[20].mxu0 %v723_v23  ;;  %v1284_v23 = vunpack.c.0.s8 %v1283_v18 }
 0x180   : > { %11435 = vmatprep.mubr.f32.mxu0 %v724_v24  ;;  %v13842_v24 = vshrl.u32 %v1285_v19, 7 }
 0x182   : > { %17469 = vst [vmem:[#allocation31_spill] sm:$0xff] %v13842_v24  ;;  %v13852_v30 = vsub.s32 %v1284_v23, %v13842_v24 }
 0x183   : > { %11436 = vmatmul.mubr.f32.gmra.mrb[22].mxu0 %v725_v28  ;;  %v1316_v28 = vunpack.c.0.s8 %v1315_v21 }
 0x184   : > { %17471 = vst [vmem:[#allocation33_spill] sm:$0xff] %v13852_v30 }
 0x215   : > { %v11360_v33 = vpop.f32.mrb[0].mxu1 }
 0x216   : > { %v13648_v34 = vadd.f32 %v11360_v33, %v13645_v9  ;;  %v953_v35 = vpop.f32.mrb[1].mxu1 }
 0x217   : > { %v13655_v37 = vadd.f32 %v13645_v9, %v953_v35  ;;  %v13857_v35 = vsub.s32 %v1316_v28, %v13842_v24 }
 0x218   : > { %2434 = vrot.lane.b32.xlu1 %v13648_v34, %s13116_s12  ;;  %2386 = vrot.lane.b32.xlu0 %v13648_v34, %s13117_s30 }
 0x219   : > { %v11363_v36 = vpop.f32.mrb[2].mxu1  ;;  %v13661_v41 = vpop.f32.mrb[0].mxu0 }
 0x21a   : > { %v963_v38 = vpop.f32.mrb[3].mxu1  ;;  %v13663_v42 = vpop.f32.mrb[1].mxu0  ;;  %v13666_v43 = vadd.f32 %v11363_v36, %v13645_v9  ;;  %v13818_v13 = vadd.f32 %v13661_v41, %v10710_v11 }
 0x21b   : > { %v13669_v44 = vadd.f32 %v13645_v9, %v963_v38  ;;  %v13807_v12 = vadd.f32 %v10710_v11, %v13663_v42 }
 0x21c   : > { %2482 = vrot.lane.b32.xlu1 %v13648_v34, %s13118_s26  ;;  %2384 = vrot.lane.b32.xlu0 %v13655_v37, %s13117_s30 }
 0x21d   : > { %v11366_v39 = vpop.f32.mrb[4].mxu1  ;;  %v13675_v47 = vpop.f32.mrb[2].mxu0 }
 0x21e   : > { %v973_v40 = vpop.f32.mrb[5].mxu1  ;;  %v13677_v48 = vpop.f32.mrb[3].mxu0  ;;  %v13696_v57 = vadd.f32 %v11366_v39, %v13645_v9  ;;  %v13832_v16 = vadd.f32 %v13675_v47, %v10710_v11  ;;  %v10712_v39 = vld [vmem:[%s17472_s5] ss:$0 sm:$0xff] }
 0x21f   : > { %v13699_v58 = vadd.f32 %v13645_v9, %v973_v40  ;;  %v13829_v15 = vadd.f32 %v10710_v11, %v13677_v48 }
 0x220   : > { %2432 = vrot.lane.b32.xlu1 %v13655_v37, %s13116_s12  ;;  %2480 = vrot.lane.b32.xlu0 %v13655_v37, %s13118_s26  ;;  %17468 = vst [vmem:[#allocation30_spill] sm:$0xff] %v13832_v16 }
 0x221   : > { %v11369_v45 = vpop.f32.mrb[6].mxu1  ;;  %v13683_v51 = vpop.f32.mrb[4].mxu0 }
 0x222   : > { %v983_v46 = vpop.f32.mrb[7].mxu1  ;;  %v13685_v52 = vpop.f32.mrb[5].mxu0  ;;  %v13726_v3 = vadd.f32 %v11369_v45, %v13645_v9  ;;  %v13863_v40 = vadd.f32 %v13683_v51, %v10710_v11 }
 0x223   : > { %v13729_v4 = vadd.f32 %v13645_v9, %v983_v46  ;;  %v13849_v29 = vadd.f32 %v10710_v11, %v13685_v52 }
 0x224   : > { %2390 = vrot.lane.b32.xlu1 %v13666_v43, %s13117_s30  ;;  %2388 = vrot.lane.b32.xlu0 %v13669_v44, %s13117_s30  ;;  %17473 = vst [vmem:[#allocation34_spill] sm:$0xff] %v13863_v40 }
 0x225   : > { %v11372_v49 = vpop.f32.mrb[8].mxu1  ;;  %v13691_v55 = vpop.f32.mrb[6].mxu0  ;;  %17470 = vst [vmem:[#allocation32_spill] sm:$0xff] %v13849_v29 }
 0x226   : > { %v993_v50 = vpop.f32.mrb[9].mxu1  ;;  %v13693_v56 = vpop.f32.mrb[7].mxu0  ;;  %v13744_v5 = vadd.f32 %v11372_v49, %v13645_v9 }
 0x227   : > { %v13747_v6 = vadd.f32 %v13645_v9, %v993_v50  ;;  %v13873_v41 = vadd.f32 %v10710_v11, %v13693_v56 }
 0x228   : > { %2438 = vrot.lane.b32.xlu1 %v13666_v43, %s13116_s12  ;;  %2436 = vrot.lane.b32.xlu0 %v13669_v44, %s13116_s12 }
 0x229   : > { %v11375_v53 = vpop.f32.mrb[10].mxu1  ;;  %17475 = vst [vmem:[#allocation36_spill] sm:$0xff] %v13873_v41 }
 0x22a   : > { %v1003_v54 = vpop.f32.mrb[11].mxu1  ;;  %v13762_v7 = vadd.f32 %v11375_v53, %v13645_v9 }
 0x22b   : > { %v13765_v8 = vadd.f32 %v13645_v9, %v1003_v54 }
 0x22c   : > { %2486 = vrot.lane.b32.xlu1 %v13666_v43, %s13118_s26  ;;  %2484 = vrot.lane.b32.xlu0 %v13669_v44, %s13118_s26 }
 0x22d   : > { %v11378_v59 = vpop.f32.mrb[12].mxu1 }
 0x22e   : > { %v13706_v60 = vadd.f32 %v11378_v59, %v13645_v9  ;;  %v1013_v61 = vpop.f32.mrb[13].mxu1 }
 0x22f   : > { %v13709_v62 = vadd.f32 %v13645_v9, %v1013_v61 }
 0x230   : > { %2394 = vrot.lane.b32.xlu1 %v13696_v57, %s13117_s30  ;;  %2392 = vrot.lane.b32.xlu0 %v13699_v58, %s13117_s30 }
 0x231   : > { %v11381_v63 = vpop.f32.mrb[14].mxu1 }
 0x232   : > { %v13716_v0 = vadd.f32 %v11381_v63, %v13645_v9  ;;  %v1023_v1 = vpop.f32.mrb[15].mxu1 }
 0x233   : > { %v13719_v2 = vadd.f32 %v13645_v9, %v1023_v1 }
 0x234   : > { %2442 = vrot.lane.b32.xlu1 %v13696_v57, %s13116_s12  ;;  %2440 = vrot.lane.b32.xlu0 %v13699_v58, %s13116_s12 }
 0x238   : > { %2490 = vrot.lane.b32.xlu1 %v13696_v57, %s13118_s26  ;;  %2488 = vrot.lane.b32.xlu0 %v13699_v58, %s13118_s26 }
 0x23a   : > { %v11416_v10 = vpop.f32.mrb[8].mxu0 }
 0x23b   : > { %v1121_v14 = vpop.f32.mrb[9].mxu0  ;;  %v13879_v50 = vadd.f32 %v11416_v10, %v10712_v39 }
 0x23c   : > { %2398 = vrot.lane.b32.xlu1 %v13726_v3, %s13117_s30  ;;  %2396 = vrot.lane.b32.xlu0 %v13729_v4, %s13117_s30  ;;  %v13881_v51 = vadd.f32 %v10712_v39, %v1121_v14 }
 0x23d   : > { %17476 = vst [vmem:[#allocation37_spill] sm:$0xff] %v13879_v50 }
 0x23e   : > { %v11419_v22 = vpop.f32.mrb[10].mxu0  ;;  %17477 = vst [vmem:[#allocation38_spill] sm:$0xff] %v13881_v51 }
 0x23f   : > { %v1131_v25 = vpop.f32.mrb[11].mxu0  ;;  %v13883_v52 = vadd.f32 %v11419_v22, %v10712_v39 }
 0x240   : > { %2446 = vrot.lane.b32.xlu1 %v13726_v3, %s13116_s12  ;;  %2444 = vrot.lane.b32.xlu0 %v13729_v4, %s13116_s12  ;;  %v13885_v53 = vadd.f32 %v10712_v39, %v1131_v25 }
 0x241   : > { %17478 = vst [vmem:[#allocation39_spill] sm:$0xff] %v13883_v52 }
 0x242   : > { %17479 = vst [vmem:[#allocation40_spill] sm:$0xff] %v13885_v53 }
 0x244   : > { %2494 = vrot.lane.b32.xlu1 %v13726_v3, %s13118_s26  ;;  %2492 = vrot.lane.b32.xlu0 %v13729_v4, %s13118_s26 }
 0x248   : > { %2402 = vrot.lane.b32.xlu1 %v13744_v5, %s13117_s30  ;;  %2400 = vrot.lane.b32.xlu0 %v13747_v6, %s13117_s30 }
 0x24c   : > { %2450 = vrot.lane.b32.xlu1 %v13744_v5, %s13116_s12  ;;  %2448 = vrot.lane.b32.xlu0 %v13747_v6, %s13116_s12 }
 0x250   : > { %2498 = vrot.lane.b32.xlu1 %v13744_v5, %s13118_s26  ;;  %2496 = vrot.lane.b32.xlu0 %v13747_v6, %s13118_s26 }
 0x254   : > { %2406 = vrot.lane.b32.xlu1 %v13762_v7, %s13117_s30  ;;  %2404 = vrot.lane.b32.xlu0 %v13765_v8, %s13117_s30 }
 0x258   : > { %2454 = vrot.lane.b32.xlu1 %v13762_v7, %s13116_s12  ;;  %2452 = vrot.lane.b32.xlu0 %v13765_v8, %s13116_s12 }
 0x25c   : > { %2502 = vrot.lane.b32.xlu1 %v13762_v7, %s13118_s26  ;;  %2500 = vrot.lane.b32.xlu0 %v13765_v8, %s13118_s26 }
 0x260   : > { %2410 = vrot.lane.b32.xlu1 %v13706_v60, %s13117_s30  ;;  %2408 = vrot.lane.b32.xlu0 %v13709_v62, %s13117_s30 }
 0x264   : > { %2458 = vrot.lane.b32.xlu1 %v13706_v60, %s13116_s12  ;;  %2456 = vrot.lane.b32.xlu0 %v13709_v62, %s13116_s12 }
 0x268   : > { %2506 = vrot.lane.b32.xlu1 %v13706_v60, %s13118_s26  ;;  %2504 = vrot.lane.b32.xlu0 %v13709_v62, %s13118_s26 }
 0x26c   : > { %2414 = vrot.lane.b32.xlu1 %v13716_v0, %s13117_s30  ;;  %2412 = vrot.lane.b32.xlu0 %v13719_v2, %s13117_s30 }
 0x270   : > { %2462 = vrot.lane.b32.xlu1 %v13716_v0, %s13116_s12  ;;  %2460 = vrot.lane.b32.xlu0 %v13719_v2, %s13116_s12 }
 0x274   : > { %2510 = vrot.lane.b32.xlu1 %v13716_v0, %s13118_s26  ;;  %2508 = vrot.lane.b32.xlu0 %v13719_v2, %s13118_s26 }
 0x278   : > { %1232 = vrot.lane.b32.xlu1 %v13807_v12, %s13116_s12  ;;  %1208 = vrot.lane.b32.xlu0 %v13807_v12, %s13117_s30 }
 0x27c   : > { %1210 = vrot.lane.b32.xlu1 %v13818_v13, %s13117_s30  ;;  %1256 = vrot.lane.b32.xlu0 %v13807_v12, %s13118_s26 }
 0x280   : > { %1258 = vrot.lane.b32.xlu1 %v13818_v13, %s13118_s26  ;;  %1234 = vrot.lane.b32.xlu0 %v13818_v13, %s13116_s12 }
 0x284   : > { %1236 = vrot.lane.b32.xlu1 %v13829_v15, %s13116_s12  ;;  %1212 = vrot.lane.b32.xlu0 %v13829_v15, %s13117_s30 }
 0x288   : > { %1214 = vrot.lane.b32.xlu1 %v13832_v16, %s13117_s30  ;;  %1260 = vrot.lane.b32.xlu0 %v13829_v15, %s13118_s26 }
 0x28a   : > { %v2435_v26 = vpop.permute.xlu1 %2434  ;;  %v2387_v27 = vpop.permute.xlu0 %2386 }
 0x28b   : > { %v2596_v31 = vcombine.low %v13648_v34, %v2435_v26  ;;  %v2597_v32 = vcombine.high %v13648_v34, %v2435_v26  ;;  %v13870_v34 = vadd.f32 %v13691_v55, %v10710_v11 }
 0x28c   : > { %1262 = vrot.lane.b32.xlu1 %v13832_v16, %s13118_s26  ;;  %1238 = vrot.lane.b32.xlu0 %v13832_v16, %s13116_s12 }
 0x28d   : > { %17474 = vst [vmem:[#allocation35_spill] sm:$0xff] %v13870_v34  ;;  %v2604_v42 = vrot.slane %v2596_v31, %v13852_v30  ;;  %v2611_v45 = vrot.slane %v2597_v32, %v13852_v30 }
 0x28e   : > { %v2483_v9 = vpop.permute.xlu1 %2482  ;;  %v2385_v33 = vpop.permute.xlu0 %2384 }
 0x28f   : > { %v2612_v36 = vcombine.low %v2387_v27, %v2483_v9  ;;  %v2613_v38 = vcombine.high %v2387_v27, %v2483_v9 }
 0x290   : > { %1240 = vrot.lane.b32.xlu1 %v13849_v29, %s13116_s12  ;;  %1216 = vrot.lane.b32.xlu0 %v13849_v29, %s13117_s30 }
 0x291   : > { %v2620_v46 = vrot.slane %v2612_v36, %v13852_v30  ;;  %v2627_v47 = vrot.slane %v2613_v38, %v13852_v30 }
 0x292   : > { %v2433_v48 = vpop.permute.xlu1 %2432  ;;  %v2481_v49 = vpop.permute.xlu0 %2480 }
 0x293   : > { %v2628_v54 = vcombine.low %v2604_v42, %v2620_v46  ;;  %v2629_v55 = vcombine.high %v2604_v42, %v2620_v46  ;;  %v2644_v56 = vcombine.low %v2611_v45, %v2627_v47  ;;  %v2645_v59 = vcombine.high %v2611_v45, %v2627_v47 }
 0x294   : > { %v2528_v61 = vcombine.low %v13655_v37, %v2433_v48  ;;  %v2529_v63 = vcombine.high %v13655_v37, %v2433_v48  ;;  %v2544_v1 = vcombine.low %v2385_v33, %v2481_v49  ;;  %v2545_v11 = vcombine.high %v2385_v33, %v2481_v49  ;;  %1218 = vrot.lane.b32.xlu1 %v13863_v40, %s13117_s30 }
 0x295   : > { %v2636_v10 = vrot.slane %v2628_v54, %v13857_v35  ;;  %v2643_v14 = vrot.slane %v2629_v55, %v13857_v35  ;;  %v2652_v17 = vrot.slane %v2644_v56, %v13857_v35  ;;  %v2659_v18 = vrot.slane %v2645_v59, %v13857_v35  ;;  %1264 = vrot.lane.b32.xlu0 %v13849_v29, %s13118_s26 }
 0x296   : > { %v2536_v19 = vrot.slane %v2528_v61, %v13852_v30  ;;  %v2543_v37 = vrot.slane %v2529_v63, %v13852_v30  ;;  %v2552_v20 = vrot.slane %v2544_v1, %v13852_v30  ;;  %v2559_v21 = vrot.slane %v2545_v11, %v13852_v30  ;;  %v2391_v22 = vpop.permute.xlu1 %2390  ;;  %v2389_v23 = vpop.permute.xlu0 %2388 }
 0x297   : > { %v3684_v25 = vcombine.low %v2636_v10, %v2643_v14  ;;  %v10731_v26 = vcombine.high %v2636_v10, %v2643_v14  ;;  %v3700_v27 = vcombine.low %v2652_v17, %v2659_v18  ;;  %v10732_v28 = vcombine.high %v2652_v17, %v2659_v18  ;;  %v13925_v63 = vpop.f32.mrb[12].mxu0 }
 0x298   : > { %v2560_v31 = vcombine.low %v2536_v19, %v2552_v20  ;;  %v2561_v32 = vcombine.high %v2536_v19, %v2552_v20  ;;  %v2576_v9 = vcombine.low %v2543_v37, %v2559_v21  ;;  %v2577_v33 = vcombine.high %v2543_v37, %v2559_v21  ;;  %1266 = vrot.lane.b32.xlu1 %v13863_v40, %s13118_s26  ;;  %v13929_v17 = vpop.f32.mrb[13].mxu0 }
 0x299   : > { %v13904_v36 = vrot.slane %v3684_v25, %v13852_v30  ;;  %v13907_v38 = vrot.slane %v10731_v26, %v13852_v30  ;;  %v13910_v39 = vrot.slane %v3700_v27, %v13852_v30  ;;  %v13913_v42 = vrot.slane %v10732_v28, %v13852_v30  ;;  %1242 = vrot.lane.b32.xlu0 %v13863_v40, %s13116_s12 }
 0x29a   : > { %v2568_v45 = vrot.slane %v2560_v31, %v13857_v35  ;;  %v2575_v46 = vrot.slane %v2561_v32, %v13857_v35  ;;  %v2584_v47 = vrot.slane %v2576_v9, %v13857_v35  ;;  %v2591_v48 = vrot.slane %v2577_v33, %v13857_v35  ;;  %v2439_v49 = vpop.permute.xlu1 %2438  ;;  %v2437_v54 = vpop.permute.xlu0 %2436 }
 0x29b   : > { %v2732_v55 = vcombine.low %v13666_v43, %v2439_v49  ;;  %v2733_v56 = vcombine.high %v13666_v43, %v2439_v49  ;;  %v2664_v59 = vcombine.low %v13669_v44, %v2437_v54  ;;  %v2665_v61 = vcombine.high %v13669_v44, %v2437_v54 }
 0x29c   : > { %v3616_v1 = vcombine.low %v2568_v45, %v2575_v46  ;;  %v10729_v11 = vcombine.high %v2568_v45, %v2575_v46  ;;  %v3632_v10 = vcombine.low %v2584_v47, %v2591_v48  ;;  %v10730_v14 = vcombine.high %v2584_v47, %v2591_v48  ;;  %1244 = vrot.lane.b32.xlu1 %v13873_v41, %s13116_s12 }
 0x29d   : > { %v2740_v18 = vrot.slane %v2732_v55, %v13852_v30  ;;  %v2747_v19 = vrot.slane %v2733_v56, %v13852_v30  ;;  %v2672_v43 = vrot.slane %v2664_v59, %v13852_v30  ;;  %v2679_v37 = vrot.slane %v2665_v61, %v13852_v30  ;;  %1220 = vrot.lane.b32.xlu0 %v13873_v41, %s13117_s30 }
 0x29e   : > { %v13938_v44 = vrot.slane %v3616_v1, %v13852_v30  ;;  %v13941_v20 = vrot.slane %v10729_v11, %v13852_v30  ;;  %v13944_v21 = vrot.slane %v3632_v10, %v13852_v30  ;;  %v13947_v25 = vrot.slane %v10730_v14, %v13852_v30  ;;  %v2487_v26 = vpop.permute.xlu1 %2486  ;;  %v2485_v27 = vpop.permute.xlu0 %2484 }
 0x29f   : > { %v2748_v28 = vcombine.low %v2391_v22, %v2487_v26  ;;  %v2749_v31 = vcombine.high %v2391_v22, %v2487_v26  ;;  %v2680_v32 = vcombine.low %v2389_v23, %v2485_v27  ;;  %v2681_v9 = vcombine.high %v2389_v23, %v2485_v27 }
 0x2a0   : > { %1222 = vrot.lane.b32.xlu1 %v13870_v34, %s13117_s30  ;;  %v3648_v33 = vcombine.low %v13938_v44, %v13941_v20  ;;  %v3664_v45 = vcombine.low %v13944_v21, %v13947_v25  ;;  %v3716_v46 = vcombine.low %v13904_v36, %v13907_v38  ;;  %v3732_v47 = vcombine.low %v13910_v39, %v13913_v42 }
 0x2a1   : > { %v2756_v48 = vrot.slane %v2748_v28, %v13852_v30  ;;  %v2763_v22 = vrot.slane %v2749_v31, %v13852_v30  ;;  %v2688_v23 = vrot.slane %v2680_v32, %v13852_v30  ;;  %v2695_v49 = vrot.slane %v2681_v9, %v13852_v30  ;;  %1268 = vrot.lane.b32.xlu0 %v13873_v41, %s13118_s26 }
 0x2a2   : > { %v13965_v54 = vpop.permute.xlu1 %2394  ;;  %v13967_v55 = vpop.permute.xlu0 %2392  ;;  %v3656_v56 = vrot.slane %v3648_v33, %v13857_v35  ;;  %v3672_v59 = vrot.slane %v3664_v45, %v13857_v35  ;;  %v3724_v61 = vrot.slane %v3716_v46, %v13857_v35  ;;  %v3740_v1 = vrot.slane %v3732_v47, %v13857_v35 }
 0x2a3   : > { %v2764_v11 = vcombine.low %v2740_v18, %v2756_v48  ;;  %v2765_v10 = vcombine.high %v2740_v18, %v2756_v48  ;;  %v2780_v14 = vcombine.low %v2747_v19, %v2763_v22  ;;  %v2781_v26 = vcombine.high %v2747_v19, %v2763_v22 }
 0x2a4   : > { %v2696_v27 = vcombine.low %v2672_v43, %v2688_v23  ;;  %v2697_v28 = vcombine.high %v2672_v43, %v2688_v23  ;;  %v2712_v31 = vcombine.low %v2679_v37, %v2695_v49  ;;  %v2713_v32 = vcombine.high %v2679_v37, %v2695_v49  ;;  %1270 = vrot.lane.b32.xlu1 %v13870_v34, %s13118_s26 }
 0x2a5   : > { %v2772_v9 = vrot.slane %v2764_v11, %v13857_v35  ;;  %v2779_v33 = vrot.slane %v2765_v10, %v13857_v35  ;;  %v2788_v45 = vrot.slane %v2780_v14, %v13857_v35  ;;  %v2795_v46 = vrot.slane %v2781_v26, %v13857_v35  ;;  %1246 = vrot.lane.b32.xlu0 %v13870_v34, %s13116_s12 }
 0x2a6   : > { %v2704_v18 = vrot.slane %v2696_v27, %v13857_v35  ;;  %v2711_v19 = vrot.slane %v2697_v28, %v13857_v35  ;;  %v2720_v43 = vrot.slane %v2712_v31, %v13857_v35  ;;  %v2727_v37 = vrot.slane %v2713_v32, %v13857_v35  ;;  %v2443_v47 = vpop.permute.xlu1 %2442  ;;  %v2441_v48 = vpop.permute.xlu0 %2440 }
 0x2a7   : > { %v3820_v22 = vcombine.low %v2772_v9, %v2779_v33  ;;  %v10735_v23 = vcombine.high %v2772_v9, %v2779_v33  ;;  %v3836_v49 = vcombine.low %v2788_v45, %v2795_v46  ;;  %v10736_v11 = vcombine.high %v2788_v45, %v2795_v46 }
 0x2a8   : > { %v3752_v10 = vcombine.low %v2704_v18, %v2711_v19  ;;  %v10733_v14 = vcombine.high %v2704_v18, %v2711_v19  ;;  %v3768_v26 = vcombine.low %v2720_v43, %v2727_v37  ;;  %v10734_v24 = vcombine.high %v2720_v43, %v2727_v37  ;;  %4770 = vrot.lane.b32.xlu1 %v13879_v50, %s13116_s12 }
 0x2a9   : > { %v13988_v27 = vrot.slane %v3820_v22, %v13852_v30  ;;  %v13991_v28 = vrot.slane %v10735_v23, %v13852_v30  ;;  %v13994_v31 = vrot.slane %v3836_v49, %v13852_v30  ;;  %v13997_v32 = vrot.slane %v10736_v11, %v13852_v30  ;;  %4722 = vrot.lane.b32.xlu0 %v13879_v50, %s13117_s30 }
 0x2aa   : > { %v14002_v9 = vrot.slane %v3752_v10, %v13852_v30  ;;  %v14005_v33 = vrot.slane %v10733_v14, %v13852_v30  ;;  %v14008_v45 = vrot.slane %v3768_v26, %v13852_v30  ;;  %v14011_v46 = vrot.slane %v10734_v24, %v13852_v30  ;;  %v2491_v18 = vpop.permute.xlu1 %2490  ;;  %v2489_v19 = vpop.permute.xlu0 %2488 }
 0x2ab   : > { %17480 = vst [vmem:[#allocation41_spill] sm:$0xff] %v13988_v27  ;;  %17481 = vst [vmem:[#allocation42_spill] sm:$0xff] %v13991_v28  ;;  %v2868_v43 = vcombine.low %v13696_v57, %v2443_v47  ;;  %v2869_v37 = vcombine.high %v13696_v57, %v2443_v47  ;;  %v2800_v22 = vcombine.low %v13699_v58, %v2441_v48 }
 0x2ac   : > { %17482 = vst [vmem:[#allocation43_spill] sm:$0xff] %v13994_v31  ;;  %17483 = vst [vmem:[#allocation44_spill] sm:$0xff] %v13997_v32  ;;  %v2801_v23 = vcombine.high %v13699_v58, %v2441_v48  ;;  %v3680_v49 = vcombine.low %v3656_v56, %v3672_v59  ;;  %v3748_v11 = vcombine.low %v3724_v61, %v3740_v1  ;;  %4818 = vrot.lane.b32.xlu1 %v13879_v50, %s13118_s26 }
 0x2ad   : > { %17484 = vst [vmem:[#allocation45_spill] sm:$0xff] %v14002_v9  ;;  %17485 = vst [vmem:[#allocation46_spill] sm:$0xff] %v14005_v33  ;;  %v3681_v10 = vcombine.high %v3656_v56, %v3672_v59  ;;  %v3749_v14 = vcombine.high %v3724_v61, %v3740_v1  ;;  %v2876_v24 = vrot.slane %v2868_v43, %v13852_v30  ;;  %4816 = vrot.lane.b32.xlu0 %v13881_v51, %s13118_s26 }
 0x2ae   : > { %17486 = vst [vmem:[#allocation47_spill] sm:$0xff] %v14008_v45  ;;  %17487 = vst [vmem:[#allocation48_spill] sm:$0xff] %v14011_v46  ;;  %v2883_v26 = vrot.slane %v2869_v37, %v13852_v30  ;;  %v2808_v34 = vrot.slane %v2800_v22, %v13852_v30  ;;  %v2815_v41 = vrot.slane %v2801_v23, %v13852_v30  ;;  %v14033_v1 = vpop.permute.xlu1 %2398  ;;  %v14035_v47 = vpop.permute.xlu0 %2396 }
 0x2af   : > { %v11930_v58 = vpack.c.bf16 %v3748_v11, %v3680_v49  ;;  %v11978_v56 = vpack.c.bf16 %v3749_v14, %v3681_v10  ;;  %v2884_v59 = vcombine.low %v13965_v54, %v2491_v18  ;;  %v2885_v61 = vcombine.high %v13965_v54, %v2491_v18  ;;  %v14043_v23 = vpop.f32.mrb[14].mxu0 }
 0x2b0   : > { %v2816_v48 = vcombine.low %v13967_v55, %v2489_v19  ;;  %v2817_v43 = vcombine.high %v13967_v55, %v2489_v19  ;;  %v3784_v37 = vcombine.low %v14002_v9, %v14005_v33  ;;  %v3800_v22 = vcombine.low %v14008_v45, %v14011_v46  ;;  %17490 = vst [vmem:[#allocation49_spill] sm:$0xff] %v14043_v23  ;;  %v14053_v19 = vpop.f32.mrb[15].mxu0 }
 0x2b1   : > { %11932 = vmatprep.subr.msk.bf16.mxu1 %vm14025_vm1, %v11930_v58  ;;  %11980 = vmatprep.subr.msk.bf16.mxu0 %vm14025_vm1, %v11978_v56  ;;  %v2892_v54 = vrot.slane %v2884_v59, %v13852_v30  ;;  %v2899_v18 = vrot.slane %v2885_v61, %v13852_v30  ;;  %v3852_v55 = vcombine.low %v13988_v27, %v13991_v28 }
 0x2b2   : > { %17491 = vst [vmem:[#allocation50_spill] sm:$0xff] %v14053_v19  ;;  %11935 = vmatpush3.bf16.xpose.msk.msra.mxu1 %vm14025_vm1, %v11930_v58  ;;  %11983 = vmatpush3.bf16.xpose.msk.msra.mxu0 %vm14025_vm1, %v11978_v56  ;;  %v2824_v49 = vrot.slane %v2816_v48, %v13852_v30  ;;  %v2831_v11 = vrot.slane %v2817_v43, %v13852_v30  ;;  %v2447_v40 = vpop.permute.xlu1 %2446  ;;  %v2445_v27 = vpop.permute.xlu0 %2444 }
 0x2b3   : > { %v14062_v10 = vrot.slane %v3784_v37, %v13857_v35  ;;  %v2900_v14 = vcombine.low %v2876_v24, %v2892_v54  ;;  %v2901_v59 = vcombine.high %v2876_v24, %v2892_v54  ;;  %v2916_v61 = vcombine.low %v2883_v26, %v2899_v18  ;;  %4720 = vrot.lane.b32.xlu1 %v13881_v51, %s13117_s30 }
 0x2b4   : > { %v2917_v50 = vcombine.high %v2883_v26, %v2899_v18  ;;  %v2832_v58 = vcombine.low %v2808_v34, %v2824_v49  ;;  %v2833_v28 = vcombine.high %v2808_v34, %v2824_v49  ;;  %v2848_v45 = vcombine.low %v2815_v41, %v2831_v11  ;;  %4724 = vrot.lane.b32.xlu0 %v13885_v53, %s13117_s30 }
 0x2b5   : > { %v2849_v56 = vcombine.high %v2815_v41, %v2831_v11  ;;  %v2908_v48 = vrot.slane %v2900_v14, %v13857_v35  ;;  %v2915_v43 = vrot.slane %v2901_v59, %v13857_v35  ;;  %v2924_v24 = vrot.slane %v2916_v61, %v13857_v35 }
 0x2b6   : > { %v2931_v26 = vrot.slane %v2917_v50, %v13857_v35  ;;  %v2840_v37 = vrot.slane %v2832_v58, %v13857_v35  ;;  %v2847_v54 = vrot.slane %v2833_v28, %v13857_v35  ;;  %v2856_v18 = vrot.slane %v2848_v45, %v13857_v35  ;;  %v2495_v9 = vpop.permute.xlu1 %2494  ;;  %v2493_v14 = vpop.permute.xlu0 %2492 }
 0x2b7   : > { %v2863_v34 = vrot.slane %v2849_v56, %v13857_v35  ;;  %v3956_v41 = vcombine.low %v2908_v48, %v2915_v43  ;;  %v10739_v49 = vcombine.high %v2908_v48, %v2915_v43  ;;  %4768 = vrot.lane.b32.xlu1 %v13881_v51, %s13116_s12 }
 0x2b8   : > { %v3972_v11 = vcombine.low %v2924_v24, %v2931_v26  ;;  %v10740_v46 = vcombine.high %v2924_v24, %v2931_v26  ;;  %v3888_v59 = vcombine.low %v2840_v37, %v2847_v54  ;;  %v10737_v61 = vcombine.high %v2840_v37, %v2847_v54  ;;  %4772 = vrot.lane.b32.xlu0 %v13885_v53, %s13116_s12 }
 0x2b9   : > { %v3904_v50 = vcombine.low %v2856_v18, %v2863_v34  ;;  %v10738_v33 = vcombine.high %v2856_v18, %v2863_v34  ;;  %v14081_v28 = vrot.slane %v3956_v41, %v13852_v30  ;;  %v14084_v45 = vrot.slane %v10739_v49, %v13852_v30 }
 0x2ba   : > { %v14087_v58 = vrot.slane %v3972_v11, %v13852_v30  ;;  %v14090_v56 = vrot.slane %v10740_v46, %v13852_v30  ;;  %v14093_v48 = vrot.slane %v3888_v59, %v13852_v30  ;;  %v14096_v43 = vrot.slane %v10737_v61, %v13852_v30  ;;  %v14108_v34 = vpop.permute.xlu1 %2402  ;;  %v14110_v41 = vpop.permute.xlu0 %2400 }
 0x2bb   : > { %17492 = vst [vmem:[#allocation51_spill] sm:$0xff] %v14081_v28  ;;  %17493 = vst [vmem:[#allocation52_spill] sm:$0xff] %v14084_v45  ;;  %v14099_v24 = vrot.slane %v3904_v50, %v13852_v30  ;;  %v14102_v26 = vrot.slane %v10738_v33, %v13852_v30  ;;  %v3004_v37 = vcombine.low %v13726_v3, %v2447_v40  ;;  %4726 = vrot.lane.b32.xlu1 %v13883_v52, %s13117_s30 }
 0x2bc   : > { %17494 = vst [vmem:[#allocation53_spill] sm:$0xff] %v14087_v58  ;;  %17495 = vst [vmem:[#allocation54_spill] sm:$0xff] %v14090_v56  ;;  %v3005_v54 = vcombine.high %v13726_v3, %v2447_v40  ;;  %v2936_v18 = vcombine.low %v13729_v4, %v2445_v27  ;;  %v2937_v46 = vcombine.high %v13729_v4, %v2445_v27  ;;  %4820 = vrot.lane.b32.xlu0 %v13885_v53, %s13118_s26 }
 0x2bd   : > { %17496 = vst [vmem:[#allocation55_spill] sm:$0xff] %v14093_v48  ;;  %17497 = vst [vmem:[#allocation56_spill] sm:$0xff] %v14096_v43  ;;  %v3808_v49 = vrot.slane %v3800_v22, %v13857_v35  ;;  %v3860_v33 = vrot.slane %v3852_v55, %v13857_v35  ;;  %v3868_v11 = vcombine.low %v13994_v31, %v13997_v32 }
 0x2be   : > { %17498 = vst [vmem:[#allocation57_spill] sm:$0xff] %v14099_v24  ;;  %17499 = vst [vmem:[#allocation58_spill] sm:$0xff] %v14102_v26  ;;  %v3020_v3 = vcombine.low %v14033_v1, %v2495_v9  ;;  %v3012_v4 = vrot.slane %v3004_v37, %v13852_v30  ;;  %v3019_v40 = vrot.slane %v3005_v54, %v13852_v30  ;;  %v2451_v31 = vpop.permute.xlu1 %2450  ;;  %v14132_v54 = vpop.permute.xlu0 %2448 }
 0x2bf   : > { %v2944_v27 = vrot.slane %v2936_v18, %v13852_v30  ;;  %v2951_v59 = vrot.slane %v2937_v46, %v13852_v30  ;;  %v3816_v22 = vcombine.low %v14062_v10, %v3808_v49  ;;  %v3876_v55 = vrot.slane %v3868_v11, %v13857_v35  ;;  %4774 = vrot.lane.b32.xlu1 %v13883_v52, %s13116_s12 }
 0x2c0   : > { %v3817_v61 = vcombine.high %v14062_v10, %v3808_v49  ;;  %v3021_v50 = vcombine.high %v14033_v1, %v2495_v9  ;;  %v3028_v51 = vrot.slane %v3020_v3, %v13852_v30  ;;  %v2952_v53 = vcombine.low %v14035_v47, %v2493_v14 }
 0x2c1   : > { %v2953_v37 = vcombine.high %v14035_v47, %v2493_v14  ;;  %v3920_v18 = vcombine.low %v14093_v48, %v14096_v43  ;;  %v3884_v46 = vcombine.low %v3860_v33, %v3876_v55  ;;  %v3885_v11 = vcombine.high %v3860_v33, %v3876_v55  ;;  %v14142_v48 = vpop.f32.mrb[16].mxu0 }
 0x2c2   : > { %v3035_v10 = vrot.slane %v3021_v50, %v13852_v30  ;;  %v3140_v9 = vcombine.low %v13744_v5, %v2451_v31  ;;  %v3036_v1 = vcombine.low %v3012_v4, %v3028_v51  ;;  %v3037_v49 = vcombine.high %v3012_v4, %v3028_v51  ;;  %v2499_v23 = vpop.permute.xlu1 %2498  ;;  %v2497_v16 = vpop.permute.xlu0 %2496 }
 0x2c3   : > { %v2960_v3 = vrot.slane %v2952_v53, %v13852_v30  ;;  %v2967_v47 = vrot.slane %v2953_v37, %v13852_v30  ;;  %v11936_v14 = vpack.c.bf16 %v3884_v46, %v3816_v22  ;;  %v11984_v32 = vpack.c.bf16 %v3885_v11, %v3817_v61  ;;  %4822 = vrot.lane.b32.xlu1 %v13883_v52, %s13118_s26 }
 0x2c4   : > { %v3052_v29 = vcombine.low %v3019_v40, %v3035_v10  ;;  %v3053_v19 = vcombine.high %v3019_v40, %v3035_v10  ;;  %v3044_v43 = vrot.slane %v3036_v1, %v13857_v35  ;;  %v3051_v33 = vrot.slane %v3037_v49, %v13857_v35  ;;  %v14154_v40 = vpop.f32.mrb[17].mxu0 }
 0x2c5   : > { %v2968_v55 = vcombine.low %v2944_v27, %v2960_v3  ;;  %v2969_v50 = vcombine.high %v2944_v27, %v2960_v3  ;;  %11938 = vmatprep.subr.msk.bf16.mxu1 %vm14025_vm1, %v11936_v14  ;;  %11986 = vmatprep.subr.msk.bf16.mxu0 %vm14025_vm1, %v11984_v32  ;;  %v2984_v4 = vcombine.low %v2951_v59, %v2967_v47 }
 0x2c6   : > { %v3060_v51 = vrot.slane %v3052_v29, %v13857_v35  ;;  %v3067_v53 = vrot.slane %v3053_v19, %v13857_v35  ;;  %17500 = vst [vmem:[#allocation59_spill] sm:$0xff] %v14154_v40  ;;  %11941 = vmatpush3.bf16.xpose.msk.msra.mxu1 %vm14025_vm1, %v11936_v14  ;;  %11989 = vmatpush3.bf16.xpose.msk.msra.mxu0 %vm14025_vm1, %v11984_v32  ;;  %v14170_v32 = vpop.permute.xlu1 %2406 }
 0x2c7   : > { %v4092_v27 = vcombine.low %v3044_v43, %v3051_v33  ;;  %v10743_v22 = vcombine.high %v3044_v43, %v3051_v33  ;;  %v2976_v61 = vrot.slane %v2968_v55, %v13857_v35  ;;  %v2983_v11 = vrot.slane %v2969_v50, %v13857_v35  ;;  %v14172_v43 = vpop.permute.xlu0 %2404 }
 0x2c8   : > { %v4108_v37 = vcombine.low %v3060_v51, %v3067_v53  ;;  %v10744_v46 = vcombine.high %v3060_v51, %v3067_v53  ;;  %v2985_v29 = vcombine.high %v2951_v59, %v2967_v47  ;;  %v2992_v1 = vrot.slane %v2984_v4, %v13857_v35 }
 0x2c9   : > { %v14163_v19 = vrot.slane %v4092_v27, %v13852_v30  ;;  %v14166_v10 = vrot.slane %v10743_v22, %v13852_v30  ;;  %v3141_v49 = vcombine.high %v13744_v5, %v2451_v31  ;;  %v4024_v47 = vcombine.low %v2976_v61, %v2983_v11 }
 0x2ca   : > { %v14175_v3 = vrot.slane %v4108_v37, %v13852_v30  ;;  %v14178_v14 = vrot.slane %v10744_v46, %v13852_v30  ;;  %v2999_v59 = vrot.slane %v2985_v29, %v13857_v35  ;;  %v10741_v33 = vcombine.high %v2976_v61, %v2983_v11  ;;  %v14197_v37 = vpop.permute.xlu1 %2454 }
 0x2cb   : > { %17501 = vst [vmem:[#allocation60_spill] sm:$0xff] %v14163_v19  ;;  %17502 = vst [vmem:[#allocation61_spill] sm:$0xff] %v14166_v10  ;;  %v3148_v55 = vrot.slane %v3140_v9, %v13852_v30  ;;  %v3155_v50 = vrot.slane %v3141_v49, %v13852_v30  ;;  %v3072_v5 = vcombine.low %v13747_v6, %v14132_v54  ;;  %v14199_v46 = vpop.permute.xlu0 %2452 }
 0x2cc   : > { %17503 = vst [vmem:[#allocation62_spill] sm:$0xff] %v14175_v3  ;;  %17504 = vst [vmem:[#allocation63_spill] sm:$0xff] %v14178_v14  ;;  %v14186_v31 = vrot.slane %v4024_v47, %v13852_v30  ;;  %v4040_v51 = vcombine.low %v2992_v1, %v2999_v59  ;;  %v10742_v53 = vcombine.high %v2992_v1, %v2999_v59 }
 0x2cd   : > { %v3073_v4 = vcombine.high %v13747_v6, %v14132_v54  ;;  %v14191_v27 = vrot.slane %v10741_v33, %v13852_v30  ;;  %v3080_v22 = vrot.slane %v3072_v5, %v13852_v30  ;;  %v3928_v9 = vrot.slane %v3920_v18, %v13857_v35 }
 0x2ce   : > { %v3936_v61 = vcombine.low %v14099_v24, %v14102_v26  ;;  %v14202_v11 = vrot.slane %v4040_v51, %v13852_v30  ;;  %v14205_v29 = vrot.slane %v10742_v53, %v13852_v30  ;;  %v3988_v54 = vcombine.low %v14081_v28, %v14084_v45 }
 0x2cf   : > { %v3087_v6 = vrot.slane %v3073_v4, %v13852_v30  ;;  %v4004_v1 = vcombine.low %v14087_v58, %v14090_v56  ;;  %v3156_v49 = vcombine.low %v14108_v34, %v2499_v23  ;;  %v3157_v59 = vcombine.high %v14108_v34, %v2499_v23  ;;  %v14222_v58 = vpop.permute.xlu1 %2502 }
 0x2d0   : > { %17505 = vst [vmem:[#allocation64_spill] sm:$0xff] %v14202_v11  ;;  %v3944_v18 = vrot.slane %v3936_v61, %v13857_v35  ;;  %v3996_v47 = vrot.slane %v3988_v54, %v13857_v35  ;;  %v3088_v33 = vcombine.low %v14110_v41, %v2497_v16  ;;  %v3089_v5 = vcombine.high %v14110_v41, %v2497_v16  ;;  %v14229_v41 = vpop.permute.xlu0 %2500 }
 0x2d1   : > { %v3276_v51 = vcombine.low %v13762_v7, %v14197_v37  ;;  %v4012_v4 = vrot.slane %v4004_v1, %v13857_v35  ;;  %v3164_v52 = vrot.slane %v3156_v49, %v13852_v30  ;;  %v3171_v56 = vrot.slane %v3157_v59, %v13852_v30 }
 0x2d2   : > { %v3952_v53 = vcombine.low %v3928_v9, %v3944_v18  ;;  %v3953_v61 = vcombine.high %v3928_v9, %v3944_v18  ;;  %v3096_v23 = vrot.slane %v3088_v33, %v13852_v30  ;;  %v3103_v34 = vrot.slane %v3089_v5, %v13852_v30 }
 0x2d3   : > { %v3277_v16 = vcombine.high %v13762_v7, %v14197_v37  ;;  %v4020_v54 = vcombine.low %v3996_v47, %v4012_v4  ;;  %v4021_v28 = vcombine.high %v3996_v47, %v4012_v4  ;;  %v3172_v45 = vcombine.low %v3148_v55, %v3164_v52  ;;  %v14233_v5 = vpop.permute.xlu1 %2410 }
 0x2d4   : > { %v3173_v1 = vcombine.high %v3148_v55, %v3164_v52  ;;  %v3188_v9 = vcombine.low %v3155_v50, %v3171_v56  ;;  %v3189_v18 = vcombine.high %v3155_v50, %v3171_v56  ;;  %v3104_v49 = vcombine.low %v3080_v22, %v3096_v23 }
 0x2d5   : > { %v3105_v24 = vcombine.high %v3080_v22, %v3096_v23  ;;  %v11942_v26 = vpack.c.bf16 %v4020_v54, %v3952_v53  ;;  %v11990_v40 = vpack.c.bf16 %v4021_v28, %v3953_v61  ;;  %v3180_v59 = vrot.slane %v3172_v45, %v13857_v35  ;;  %v14247_v53 = vpop.permute.xlu0 %2408 }
 0x2d6   : > { %v3187_v33 = vrot.slane %v3173_v1, %v13857_v35  ;;  %v3196_v7 = vrot.slane %v3188_v9, %v13857_v35  ;;  %v3203_v37 = vrot.slane %v3189_v18, %v13857_v35  ;;  %v3112_v47 = vrot.slane %v3104_v49, %v13857_v35 }
 0x2d7   : > { %v3119_v52 = vrot.slane %v3105_v24, %v13857_v35  ;;  %11944 = vmatprep.subr.msk.bf16.mxu1 %vm14025_vm1, %v11942_v26  ;;  %11992 = vmatprep.subr.msk.bf16.mxu0 %vm14025_vm1, %v11990_v40  ;;  %v3120_v56 = vcombine.low %v3087_v6, %v3103_v34  ;;  %v3121_v22 = vcombine.high %v3087_v6, %v3103_v34  ;;  %v14270_v49 = vpop.permute.xlu1 %2458 }
 0x2d8   : > { %v4228_v28 = vcombine.low %v3180_v59, %v3187_v33  ;;  %v10747_v45 = vcombine.high %v3180_v59, %v3187_v33  ;;  %11947 = vmatpush3.bf16.xpose.msk.msra.mxu1 %vm14025_vm1, %v11942_v26  ;;  %11995 = vmatpush3.bf16.xpose.msk.msra.mxu0 %vm14025_vm1, %v11990_v40  ;;  %v4244_v55 = vcombine.low %v3196_v7, %v3203_v37 }
 0x2d9   : > { %v10748_v50 = vcombine.high %v3196_v7, %v3203_v37  ;;  %v3128_v61 = vrot.slane %v3120_v56, %v13857_v35  ;;  %v4160_v23 = vcombine.low %v3112_v47, %v3119_v52  ;;  %v3135_v40 = vrot.slane %v3121_v22, %v13857_v35 }
 0x2da   : > { %v14250_v24 = vrot.slane %v4228_v28, %v13852_v30  ;;  %v14253_v4 = vrot.slane %v10747_v45, %v13852_v30  ;;  %v14257_v54 = vrot.slane %v4244_v55, %v13852_v30  ;;  %v10745_v6 = vcombine.high %v3112_v47, %v3119_v52  ;;  %v14277_v47 = vpop.f32.mrb[18].mxu0  ;;  %v14295_v55 = vpop.permute.xlu0 %2456 }
 0x2db   : > { %v14260_v26 = vrot.slane %v10748_v50, %v13852_v30  ;;  %v14264_v34 = vrot.slane %v4160_v23, %v13852_v30  ;;  %v3284_v1 = vrot.slane %v3276_v51, %v13852_v30  ;;  %v3291_v9 = vrot.slane %v3277_v16, %v13852_v30  ;;  %17510 = vst [vmem:[#allocation69_spill] sm:$0xff] %v14277_v47  ;;  %v14297_v50 = vpop.f32.mrb[19].mxu0 }
 0x2dc   : > { %17506 = vst [vmem:[#allocation65_spill] sm:$0xff] %v14250_v24  ;;  %17507 = vst [vmem:[#allocation66_spill] sm:$0xff] %v14253_v4  ;;  %v3208_v18 = vcombine.low %v13765_v8, %v14199_v46  ;;  %v14273_v59 = vrot.slane %v10745_v6, %v13852_v30  ;;  %v4176_v33 = vcombine.low %v3128_v61, %v3135_v40 }
 0x2dd   : > { %17508 = vst [vmem:[#allocation67_spill] sm:$0xff] %v14257_v54  ;;  %17509 = vst [vmem:[#allocation68_spill] sm:$0xff] %v14260_v26  ;;  %v10746_v7 = vcombine.high %v3128_v61, %v3135_v40  ;;  %v3209_v37 = vcombine.high %v13765_v8, %v14199_v46  ;;  %v4056_v51 = vcombine.low %v14186_v31, %v14191_v27 }
 0x2de   : > { %v3216_v52 = vrot.slane %v3208_v18, %v13852_v30  ;;  %v4072_v16 = vcombine.low %v14202_v11, %v14205_v29  ;;  %v4124_v28 = vcombine.low %v14163_v19, %v14166_v10  ;;  %v14287_v45 = vrot.slane %v4176_v33, %v13852_v30  ;;  %17513 = vst [vmem:[#allocation72_spill] sm:$0xff] %v14297_v50  ;;  %v14314_v50 = vpop.permute.xlu1 %2506  ;;  %v14321_v10 = vpop.permute.xlu0 %2504 }
 0x2df   : > { %v14290_v56 = vrot.slane %v10746_v7, %v13852_v30  ;;  %v3223_v8 = vrot.slane %v3209_v37, %v13852_v30  ;;  %v4140_v46 = vcombine.low %v14175_v3, %v14178_v14  ;;  %v4064_v22 = vrot.slane %v4056_v51, %v13857_v35 }
 0x2e0   : > { %17511 = vst [vmem:[#allocation70_spill] sm:$0xff] %v14287_v45  ;;  %v4080_v61 = vrot.slane %v4072_v16, %v13857_v35  ;;  %v4132_v23 = vrot.slane %v4124_v28, %v13857_v35  ;;  %v3292_v40 = vcombine.low %v14170_v32, %v14222_v58  ;;  %v3293_v18 = vcombine.high %v14170_v32, %v14222_v58 }
 0x2e1   : > { %17512 = vst [vmem:[#allocation71_spill] sm:$0xff] %v14290_v56  ;;  %v4148_v6 = vrot.slane %v4140_v46, %v13857_v35  ;;  %v3224_v33 = vcombine.low %v14172_v43, %v14229_v41  ;;  %v3225_v7 = vcombine.high %v14172_v43, %v14229_v41  ;;  %v3412_v28 = vcombine.low %v13706_v60, %v14270_v49 }
 0x2e2   : > { %v4088_v37 = vcombine.low %v4064_v22, %v4080_v61  ;;  %v4089_v51 = vcombine.high %v4064_v22, %v4080_v61  ;;  %v3300_v16 = vrot.slane %v3292_v40, %v13852_v30  ;;  %v3307_v3 = vrot.slane %v3293_v18, %v13852_v30 }
 0x2e3   : > { %v4156_v47 = vcombine.low %v4132_v23, %v4148_v6  ;;  %v4157_v46 = vcombine.high %v4132_v23, %v4148_v6  ;;  %v3232_v58 = vrot.slane %v3224_v33, %v13852_v30  ;;  %v3239_v19 = vrot.slane %v3225_v7, %v13852_v30 }
 0x2e4   : > { %v3308_v32 = vcombine.low %v3284_v1, %v3300_v16  ;;  %v3309_v14 = vcombine.high %v3284_v1, %v3300_v16  ;;  %v3413_v43 = vcombine.high %v13706_v60, %v14270_v49  ;;  %v3324_v61 = vcombine.low %v3291_v9, %v3307_v3 }
 0x2e5   : > { %v11948_v41 = vpack.c.bf16 %v4156_v47, %v4088_v37  ;;  %v11996_v22 = vpack.c.bf16 %v4157_v46, %v4089_v51  ;;  %v3325_v40 = vcombine.high %v3291_v9, %v3307_v3  ;;  %v3240_v6 = vcombine.low %v3216_v52, %v3232_v58  ;;  %v14331_v3 = vpop.f32.mrb[20].mxu0 }
 0x2e6   : > { %v3316_v11 = vrot.slane %v3308_v32, %v13857_v35  ;;  %v3323_v23 = vrot.slane %v3309_v14, %v13857_v35  ;;  %v3241_v18 = vcombine.high %v3216_v52, %v3232_v58  ;;  %v3332_v60 = vrot.slane %v3324_v61, %v13857_v35  ;;  %17514 = vst [vmem:[#allocation73_spill] sm:$0xff] %v14331_v3  ;;  %v14338_v52 = vpop.permute.xlu1 %2414  ;;  %v14340_v33 = vpop.f32.mrb[21].mxu0 }
 0x2e7   : > { %11950 = vmatprep.subr.msk.bf16.mxu1 %vm14025_vm1, %v11948_v41  ;;  %11998 = vmatprep.subr.msk.bf16.mxu0 %vm14025_vm1, %v11996_v22  ;;  %v3339_v1 = vrot.slane %v3325_v40, %v13857_v35  ;;  %v3256_v49 = vcombine.low %v3223_v8, %v3239_v19  ;;  %v3248_v47 = vrot.slane %v3240_v6, %v13857_v35 }
 0x2e8   : > { %11953 = vmatpush3.bf16.xpose.msk.msra.mxu1 %vm14025_vm1, %v11948_v41  ;;  %12001 = vmatpush3.bf16.xpose.msk.msra.mxu0 %vm14025_vm1, %v11996_v22  ;;  %v4364_v14 = vcombine.low %v3316_v11, %v3323_v23  ;;  %v10751_v9 = vcombine.high %v3316_v11, %v3323_v23  ;;  %17515 = vst [vmem:[#allocation74_spill] sm:$0xff] %v14340_v33 }
 0x2e9   : > { %v4380_v7 = vcombine.low %v3332_v60, %v3339_v1  ;;  %v10752_v37 = vcombine.high %v3332_v60, %v3339_v1  ;;  %v3255_v51 = vrot.slane %v3241_v18, %v13857_v35  ;;  %v3257_v16 = vcombine.high %v3223_v8, %v3239_v19  ;;  %v14358_v19 = vpop.permute.xlu0 %2412 }
 0x2ea   : > { %v14344_v46 = vrot.slane %v4364_v14, %v13852_v30  ;;  %v14347_v58 = vrot.slane %v10751_v9, %v13852_v30  ;;  %v3264_v32 = vrot.slane %v3256_v49, %v13857_v35  ;;  %v3420_v11 = vrot.slane %v3412_v28, %v13852_v30 }
 0x2eb   : > { %v14352_v41 = vrot.slane %v4380_v7, %v13852_v30  ;;  %v14355_v22 = vrot.slane %v10752_v37, %v13852_v30  ;;  %v3271_v61 = vrot.slane %v3257_v16, %v13857_v35  ;;  %v4296_v40 = vcombine.low %v3248_v47, %v3255_v51  ;;  %v14377_v7 = vpop.permute.xlu1 %2462 }
 0x2ec   : > { %17516 = vst [vmem:[#allocation75_spill] sm:$0xff] %v14344_v46  ;;  %17517 = vst [vmem:[#allocation76_spill] sm:$0xff] %v14347_v58  ;;  %v10749_v8 = vcombine.high %v3248_v47, %v3255_v51  ;;  %v3427_v23 = vrot.slane %v3413_v43, %v13852_v30  ;;  %v3344_v6 = vcombine.low %v13709_v62, %v14295_v55 }
 0x2ed   : > { %17518 = vst [vmem:[#allocation77_spill] sm:$0xff] %v14352_v41  ;;  %17519 = vst [vmem:[#allocation78_spill] sm:$0xff] %v14355_v22  ;;  %v3345_v28 = vcombine.high %v13709_v62, %v14295_v55  ;;  %v14366_v18 = vrot.slane %v4296_v40, %v13852_v30  ;;  %v4312_v60 = vcombine.low %v3264_v32, %v3271_v61 }
 0x2ee   : > { %v10750_v1 = vcombine.high %v3264_v32, %v3271_v61  ;;  %v4192_v49 = vcombine.low %v14264_v34, %v14273_v59  ;;  %v14371_v14 = vrot.slane %v10749_v8, %v13852_v30  ;;  %v3352_v9 = vrot.slane %v3344_v6, %v13852_v30 }
 0x2ef   : > { %v3359_v43 = vrot.slane %v3345_v28, %v13852_v30  ;;  %v4208_v47 = vcombine.low %v14287_v45, %v14290_v56  ;;  %v14380_v62 = vrot.slane %v4312_v60, %v13852_v30  ;;  %v4260_v51 = vcombine.low %v14250_v24, %v14253_v4 }
 0x2f0   : > { %v14383_v55 = vrot.slane %v10750_v1, %v13852_v30  ;;  %v4200_v37 = vrot.slane %v4192_v49, %v13857_v35  ;;  %v4276_v32 = vcombine.low %v14257_v54, %v14260_v26  ;;  %v3428_v61 = vcombine.low %v14233_v5, %v14314_v50  ;;  %v14402_v1 = vpop.permute.xlu0 %2460 }
 0x2f1   : > { %v4216_v16 = vrot.slane %v4208_v47, %v13857_v35  ;;  %v3429_v40 = vcombine.high %v14233_v5, %v14314_v50  ;;  %v4268_v8 = vrot.slane %v4260_v51, %v13857_v35  ;;  %v3360_v6 = vcombine.low %v14247_v53, %v14321_v10 }
 0x2f2   : > { %v3361_v28 = vcombine.high %v14247_v53, %v14321_v10  ;;  %v3548_v60 = vcombine.low %v13716_v0, %v14377_v7  ;;  %v4284_v47 = vrot.slane %v4276_v32, %v13857_v35  ;;  %v3436_v3 = vrot.slane %v3428_v61, %v13852_v30 }
 0x2f3   : > { %v4224_v49 = vcombine.low %v4200_v37, %v4216_v16  ;;  %v4225_v33 = vcombine.high %v4200_v37, %v4216_v16  ;;  %v3443_v5 = vrot.slane %v3429_v40, %v13852_v30  ;;  %v3368_v50 = vrot.slane %v3360_v6, %v13852_v30 }
 0x2f4   : > { %v3375_v51 = vrot.slane %v3361_v28, %v13852_v30  ;;  %v3549_v10 = vcombine.high %v13716_v0, %v14377_v7  ;;  %v4292_v53 = vcombine.low %v4268_v8, %v4284_v47  ;;  %v4293_v54 = vcombine.high %v4268_v8, %v4284_v47  ;;  %v2509_v8 = vpop.permute.xlu0 %2508 }
 0x2f5   : > { %v3444_v26 = vcombine.low %v3420_v11, %v3436_v3  ;;  %v3445_v24 = vcombine.high %v3420_v11, %v3436_v3  ;;  %v3460_v4 = vcombine.low %v3427_v23, %v3443_v5  ;;  %v3461_v45 = vcombine.high %v3427_v23, %v3443_v5  ;;  %v14417_v3 = vpop.f32.mrb[22].mxu0 }
 0x2f6   : > { %v3376_v56 = vcombine.low %v3352_v9, %v3368_v50  ;;  %v3377_v32 = vcombine.high %v3352_v9, %v3368_v50  ;;  %v11954_v37 = vpack.c.bf16 %v4292_v53, %v4224_v49  ;;  %v12002_v16 = vpack.c.bf16 %v4293_v54, %v4225_v33  ;;  %17520 = vst [vmem:[#allocation79_spill] sm:$0xff] %v14417_v3  ;;  %v2511_v33 = vpop.permute.xlu1 %2510  ;;  %v14427_v11 = vpop.f32.mrb[23].mxu0 }
 0x2f7   : > { %v3452_v61 = vrot.slane %v3444_v26, %v13857_v35  ;;  %v3459_v40 = vrot.slane %v3445_v24, %v13857_v35  ;;  %v3468_v6 = vrot.slane %v3460_v4, %v13857_v35  ;;  %v3475_v28 = vrot.slane %v3461_v45, %v13857_v35  ;;  %17521 = vst [vmem:[#allocation80_spill] sm:$0xff] %v14427_v11 }
 0x2f8   : > { %v3384_v0 = vrot.slane %v3376_v56, %v13857_v35  ;;  %v3391_v7 = vrot.slane %v3377_v32, %v13857_v35  ;;  %11956 = vmatprep.subr.msk.bf16.mxu1 %vm14025_vm1, %v11954_v37  ;;  %12004 = vmatprep.subr.msk.bf16.mxu0 %vm14025_vm1, %v12002_v16  ;;  %v3392_v24 = vcombine.low %v3359_v43, %v3375_v51 }
 0x2f9   : > { %v4500_v54 = vcombine.low %v3452_v61, %v3459_v40  ;;  %v10755_v26 = vcombine.high %v3452_v61, %v3459_v40  ;;  %11959 = vmatpush3.bf16.xpose.msk.msra.mxu1 %vm14025_vm1, %v11954_v37  ;;  %12007 = vmatpush3.bf16.xpose.msk.msra.mxu0 %vm14025_vm1, %v12002_v16  ;;  %v4516_v4 = vcombine.low %v3468_v6, %v3475_v28 }
 0x2fa   : > { %v10756_v45 = vcombine.high %v3468_v6, %v3475_v28  ;;  %v3393_v56 = vcombine.high %v3359_v43, %v3375_v51  ;;  %v3400_v49 = vrot.slane %v3392_v24, %v13857_v35  ;;  %v4432_v47 = vcombine.low %v3384_v0, %v3391_v7 }
 0x2fb   : > { %v14430_v23 = vrot.slane %v4500_v54, %v13852_v30  ;;  %v14433_v9 = vrot.slane %v10755_v26, %v13852_v30  ;;  %v14437_v5 = vrot.slane %v4516_v4, %v13852_v30  ;;  %v10753_v51 = vcombine.high %v3384_v0, %v3391_v7  ;;  %v14455_v54 = vpop.permute.xlu0 %1208  ;;  %v1233_v4 = vpop.permute.xlu1 %1232 }
 0x2fc   : > { %v14440_v50 = vrot.slane %v10756_v45, %v13852_v30  ;;  %v3407_v43 = vrot.slane %v3393_v56, %v13857_v35  ;;  %v14444_v53 = vrot.slane %v4432_v47, %v13852_v30  ;;  %v3556_v32 = vrot.slane %v3548_v60, %v13852_v30 }
 0x2fd   : > { %17522 = vst [vmem:[#allocation81_spill] sm:$0xff] %v14437_v5  ;;  %v3563_v37 = vrot.slane %v3549_v10, %v13852_v30  ;;  %v3480_v16 = vcombine.low %v13719_v2, %v14402_v1  ;;  %v14451_v61 = vrot.slane %v10753_v51, %v13852_v30  ;;  %v3481_v28 = vcombine.high %v13719_v2, %v14402_v1 }
 0x2fe   : > { %17523 = vst [vmem:[#allocation82_spill] sm:$0xff] %v14440_v50  ;;  %v4448_v40 = vcombine.low %v3400_v49, %v3407_v43  ;;  %v10754_v6 = vcombine.high %v3400_v49, %v3407_v43  ;;  %v4328_v60 = vcombine.low %v14366_v18, %v14371_v14  ;;  %v4344_v10 = vcombine.low %v14380_v62, %v14383_v55 }
 0x2ff   : > { %v3488_v0 = vrot.slane %v3480_v16, %v13852_v30  ;;  %v4396_v7 = vcombine.low %v14344_v46, %v14347_v58  ;;  %v3495_v2 = vrot.slane %v3481_v28, %v13852_v30  ;;  %v4412_v1 = vcombine.low %v14352_v41, %v14355_v22  ;;  %v1257_v22 = vpop.permute.xlu0 %1256 }
 0x300   : > { %v14465_v26 = vrot.slane %v4448_v40, %v13852_v30  ;;  %v14468_v24 = vrot.slane %v10754_v6, %v13852_v30  ;;  %v4336_v45 = vrot.slane %v4328_v60, %v13857_v35  ;;  %v4352_v56 = vrot.slane %v4344_v10, %v13857_v35 }
 0x301   : > { %v4404_v49 = vrot.slane %v4396_v7, %v13857_v35  ;;  %v3564_v47 = vcombine.low %v14338_v52, %v2511_v33  ;;  %v4420_v43 = vrot.slane %v4412_v1, %v13857_v35  ;;  %v3565_v51 = vcombine.high %v14338_v52, %v2511_v33 }
 0x302   : > { %v3496_v16 = vcombine.low %v14358_v19, %v2509_v8  ;;  %v3497_v40 = vcombine.high %v14358_v19, %v2509_v8  ;;  %v4360_v6 = vcombine.low %v4336_v45, %v4352_v56  ;;  %v4361_v28 = vcombine.high %v4336_v45, %v4352_v56 }
 0x303   : > { %v3572_v11 = vrot.slane %v3564_v47, %v13852_v30  ;;  %v1280_v60 = vcombine.low %v13807_v12, %v1233_v4  ;;  %v4428_v3 = vcombine.low %v4404_v49, %v4420_v43  ;;  %v4429_v10 = vcombine.high %v4404_v49, %v4420_v43 }
 0x304   : > { %v3579_v7 = vrot.slane %v3565_v51, %v13852_v30  ;;  %v3504_v41 = vrot.slane %v3496_v16, %v13852_v30  ;;  %v3511_v52 = vrot.slane %v3497_v40, %v13852_v30  ;;  %v1281_v33 = vcombine.high %v13807_v12, %v1233_v4  ;;  %v14501_v40 = vpop.permute.xlu0 %1234 }
 0x305   : > { %v3580_v1 = vcombine.low %v3556_v32, %v3572_v11  ;;  %v3581_v46 = vcombine.high %v3556_v32, %v3572_v11  ;;  %v11960_v19 = vpack.c.bf16 %v4428_v3, %v4360_v6  ;;  %v12008_v8 = vpack.c.bf16 %v4429_v10, %v4361_v28 }
 0x306   : > { %v3596_v45 = vcombine.low %v3563_v37, %v3579_v7  ;;  %v3597_v56 = vcombine.high %v3563_v37, %v3579_v7  ;;  %v3512_v49 = vcombine.low %v3488_v0, %v3504_v41  ;;  %v3513_v43 = vcombine.high %v3488_v0, %v3504_v41  ;;  %v1211_v37 = vpop.permute.xlu1 %1210 }
 0x307   : > { %v3588_v47 = vrot.slane %v3580_v1, %v13857_v35  ;;  %v3595_v58 = vrot.slane %v3581_v46, %v13857_v35  ;;  %11962 = vmatprep.subr.msk.bf16.mxu1 %vm14025_vm1, %v11960_v19  ;;  %12010 = vmatprep.subr.msk.bf16.mxu0 %vm14025_vm1, %v12008_v8  ;;  %v3528_v3 = vcombine.low %v3495_v2, %v3511_v52 }
 0x308   : > { %v3604_v11 = vrot.slane %v3596_v45, %v13857_v35  ;;  %v3611_v12 = vrot.slane %v3597_v56, %v13857_v35  ;;  %11965 = vmatpush3.bf16.xpose.msk.msra.mxu1 %vm14025_vm1, %v11960_v19  ;;  %12013 = vmatpush3.bf16.xpose.msk.msra.mxu0 %vm14025_vm1, %v12008_v8  ;;  %v3520_v41 = vrot.slane %v3512_v49, %v13857_v35 }
 0x309   : > { %v4636_v46 = vcombine.low %v3588_v47, %v3595_v58  ;;  %v10759_v32 = vcombine.high %v3588_v47, %v3595_v58  ;;  %v3527_v51 = vrot.slane %v3513_v43, %v13857_v35  ;;  %v3529_v16 = vcombine.high %v3495_v2, %v3511_v52 }
 0x30a   : > { %v4652_v0 = vcombine.low %v3604_v11, %v3611_v12  ;;  %v10760_v4 = vcombine.high %v3604_v11, %v3611_v12  ;;  %v3536_v10 = vrot.slane %v3528_v3, %v13857_v35  ;;  %v1288_v58 = vrot.slane %v1280_v60, %v13852_v30 }
 0x30b   : > { %v14504_v6 = vrot.slane %v4636_v46, %v13852_v30  ;;  %v14507_v28 = vrot.slane %v10759_v32, %v13852_v30  ;;  %v3543_v2 = vrot.slane %v3529_v16, %v13857_v35  ;;  %v4568_v52 = vcombine.low %v3520_v41, %v3527_v51  ;;  %v1259_v46 = vpop.permute.xlu1 %1258 }
 0x30c   : > { %v14512_v7 = vrot.slane %v4652_v0, %v13852_v30  ;;  %v14515_v1 = vrot.slane %v10760_v4, %v13852_v30  ;;  %v10757_v19 = vcombine.high %v3520_v41, %v3527_v51  ;;  %v1295_v8 = vrot.slane %v1281_v33, %v13852_v30  ;;  %v1213_v0 = vpop.permute.xlu0 %1212 }
 0x30d   : > { %17524 = vst [vmem:[#allocation83_spill] sm:$0xff] %v14504_v6  ;;  %17525 = vst [vmem:[#allocation84_spill] sm:$0xff] %v14507_v28  ;;  %v1296_v45 = vcombine.low %v14455_v54, %v1257_v22  ;;  %v1297_v56 = vcombine.high %v14455_v54, %v1257_v22  ;;  %v14522_v47 = vrot.slane %v4568_v52, %v13852_v30 }
 0x30e   : > { %17526 = vst [vmem:[#allocation85_spill] sm:$0xff] %v14512_v7  ;;  %17527 = vst [vmem:[#allocation86_spill] sm:$0xff] %v14515_v1  ;;  %v4584_v60 = vcombine.low %v3536_v10, %v3543_v2  ;;  %v10758_v49 = vcombine.high %v3536_v10, %v3543_v2  ;;  %v4464_v43 = vcombine.low %v14444_v53, %v14451_v61 }
 0x30f   : > { %v14527_v11 = vrot.slane %v10757_v19, %v13852_v30  ;;  %v1304_v12 = vrot.slane %v1296_v45, %v13852_v30  ;;  %v1311_v3 = vrot.slane %v1297_v56, %v13852_v30  ;;  %v4480_v33 = vcombine.low %v14465_v26, %v14468_v24 }
 0x310   : > { %v14534_v22 = vrot.slane %v4584_v60, %v13852_v30  ;;  %v14537_v54 = vrot.slane %v10758_v49, %v13852_v30  ;;  %v4472_v32 = vrot.slane %v4464_v43, %v13857_v35  ;;  %v4532_v41 = vcombine.low %v14430_v23, %v14433_v9 }
 0x311   : > { %v1312_v4 = vcombine.low %v1288_v58, %v1304_v12  ;;  %v1313_v51 = vcombine.high %v1288_v58, %v1304_v12  ;;  %v1328_v16 = vcombine.low %v1295_v8, %v1311_v3  ;;  %v1329_v10 = vcombine.high %v1295_v8, %v1311_v3 }
 0x312   : > { %17528 = vst [vmem:[#allocation87_spill] sm:$0xff] %v14534_v22  ;;  %17529 = vst [vmem:[#allocation88_spill] sm:$0xff] %v14537_v54  ;;  %v4488_v2 = vrot.slane %v4480_v33, %v13857_v35  ;;  %v4540_v52 = vrot.slane %v4532_v41, %v13857_v35  ;;  %v4548_v19 = vcombine.low %v14437_v5, %v14440_v50 }
 0x313   : > { %v1364_v45 = vcombine.low %v1211_v37, %v1259_v46  ;;  %v14547_v56 = vrot.slane %v1312_v4, %v13857_v35  ;;  %v14550_v60 = vrot.slane %v1313_v51, %v13857_v35  ;;  %v14553_v49 = vrot.slane %v1328_v16, %v13857_v35  ;;  %v1237_v16 = vpop.permute.xlu1 %1236 }
 0x314   : > { %v14556_v58 = vrot.slane %v1329_v10, %v13857_v35  ;;  %v4496_v8 = vcombine.low %v4472_v32, %v4488_v2  ;;  %v4556_v43 = vrot.slane %v4548_v19, %v13857_v35  ;;  %v4497_v12 = vcombine.high %v4472_v32, %v4488_v2  ;;  %v14576_v19 = vld [vmem:[%s17472_s5] ss:$0 sm:$0xff] }
 0x315   : > { %v1365_v3 = vcombine.high %v1211_v37, %v1259_v46  ;;  %v1372_v50 = vrot.slane %v1364_v45, %v13852_v30  ;;  %v1261_v37 = vpop.permute.xlu0 %1260  ;;  %v1348_v46 = vcombine.low %v13818_v13, %v14501_v40  ;;  %v1349_v2 = vcombine.high %v13818_v13, %v14501_v40 }
 0x316   : > { %v4564_v10 = vcombine.low %v4540_v52, %v4556_v43  ;;  %v4565_v5 = vcombine.high %v4540_v52, %v4556_v43  ;;  %v14580_v51 = vadd.f32 %v14576_v19, %v13925_v63  ;;  %v14584_v52 = vadd.f32 %v14576_v19, %v13929_v17 }
 0x317   : > { %v1379_v32 = vrot.slane %v1365_v3, %v13852_v30  ;;  %v1416_v3 = vcombine.low %v13829_v15, %v1237_v16  ;;  %v1417_v4 = vcombine.high %v13829_v15, %v1237_v16  ;;  %v1356_v13 = vrot.slane %v1348_v46, %v13852_v30 }
 0x318   : > { %17530 = vst [vmem:[#allocation89_spill] sm:$0xff] %v14580_v51  ;;  %17531 = vst [vmem:[#allocation90_spill] sm:$0xff] %v14584_v52  ;;  %v11966_v45 = vpack.c.bf16 %v4564_v10, %v4496_v8  ;;  %v12014_v43 = vpack.c.bf16 %v4565_v5, %v4497_v12  ;;  %v1363_v40 = vrot.slane %v1349_v2, %v13852_v30  ;;  %4730 = vrot.lane.b32.xlu1 %v14580_v51, %s13117_s30 }
 0x319   : > { %4728 = vrot.lane.b32.xlu0 %v14584_v52, %s13117_s30  ;;  %v1432_v63 = vcombine.low %v1213_v0, %v1261_v37  ;;  %v1424_v17 = vrot.slane %v1416_v3, %v13852_v30  ;;  %v1431_v15 = vrot.slane %v1417_v4, %v13852_v30  ;;  %v1433_v5 = vcombine.high %v1213_v0, %v1261_v37 }
 0x31a   : > { %11968 = vmatprep.subr.msk.bf16.mxu1 %vm14025_vm1, %v11966_v45  ;;  %12016 = vmatprep.subr.msk.bf16.mxu0 %vm14025_vm1, %v12014_v43  ;;  %v1380_v8 = vcombine.low %v1356_v13, %v1372_v50  ;;  %v1381_v12 = vcombine.high %v1356_v13, %v1372_v50  ;;  %v1396_v16 = vcombine.low %v1363_v40, %v1379_v32 }
 0x31b   : > { %11971 = vmatpush3.bf16.xpose.msk.msra.mxu1 %vm14025_vm1, %v11966_v45  ;;  %12019 = vmatpush3.bf16.xpose.msk.msra.mxu0 %vm14025_vm1, %v12014_v43  ;;  %v1397_v10 = vcombine.high %v1363_v40, %v1379_v32  ;;  %v1440_v46 = vrot.slane %v1432_v63, %v13852_v30  ;;  %v1447_v2 = vrot.slane %v1433_v5, %v13852_v30  ;;  %v1215_v45 = vpop.permute.xlu1 %1214 }
 0x31c   : > { %v4600_v3 = vcombine.low %v14522_v47, %v14527_v11  ;;  %v1388_v4 = vrot.slane %v1380_v8, %v13857_v35  ;;  %v1395_v0 = vrot.slane %v1381_v12, %v13857_v35  ;;  %v1404_v37 = vrot.slane %v1396_v16, %v13857_v35  ;;  %4778 = vrot.lane.b32.xlu1 %v14580_v51, %s13116_s12 }
 0x31d   : > { %v4616_v43 = vcombine.low %v14534_v22, %v14537_v54  ;;  %v1411_v50 = vrot.slane %v1397_v10, %v13857_v35  ;;  %v1448_v32 = vcombine.low %v1424_v17, %v1440_v46  ;;  %v1449_v13 = vcombine.high %v1424_v17, %v1440_v46  ;;  %4776 = vrot.lane.b32.xlu0 %v14584_v52, %s13116_s12 }
 0x31e   : > { %v1464_v40 = vcombine.low %v1431_v15, %v1447_v2  ;;  %v1892_v63 = vcombine.low %v1388_v4, %v1395_v0  ;;  %v10715_v5 = vcombine.high %v1388_v4, %v1395_v0  ;;  %v1465_v8 = vcombine.high %v1431_v15, %v1447_v2 }
 0x31f   : > { %v4608_v12 = vrot.slane %v4600_v3, %v13857_v35  ;;  %v1908_v16 = vcombine.low %v1404_v37, %v1411_v50  ;;  %v10716_v41 = vcombine.high %v1404_v37, %v1411_v50  ;;  %v14620_v33 = vrot.slane %v1448_v32, %v13857_v35 }
 0x320   : > { %v14623_v22 = vrot.slane %v1449_v13, %v13857_v35  ;;  %v1899_v10 = vrot.slane %v1892_v63, %v13852_v30  ;;  %v1907_v17 = vrot.slane %v10715_v5, %v13852_v30  ;;  %v14628_v46 = vrot.slane %v1464_v40, %v13857_v35  ;;  %4826 = vrot.lane.b32.xlu1 %v14580_v51, %s13118_s26  ;;  %v1263_v40 = vpop.permute.xlu1 %1262 }
 0x321   : > { %v14631_v4 = vrot.slane %v1465_v8, %v13857_v35  ;;  %v1915_v15 = vrot.slane %v1908_v16, %v13852_v30  ;;  %v1923_v2 = vrot.slane %v10716_v41, %v13852_v30  ;;  %4824 = vrot.lane.b32.xlu0 %v14584_v52, %s13118_s26  ;;  %v4624_v5 = vrot.slane %v4616_v43, %v13857_v35 }
 0x322   : > { %v1924_v37 = vcombine.low %v1899_v10, %v1907_v17  ;;  %v1925_v50 = vcombine.high %v1899_v10, %v1907_v17  ;;  %v4668_v8 = vcombine.low %v14504_v6, %v14507_v28  ;;  %v4684_v10 = vcombine.low %v14512_v7, %v14515_v1  ;;  %v17549_v7 = vld [vmem:[#allocation41_spill] sm:$0xff]  ;;  %v17550_v6 = vld [vmem:[#allocation44_spill] sm:$0xff]  ;;  %v17551_v28 = vld [vmem:[#allocation43_spill] sm:$0xff] }
 0x323   : > { %v1940_v63 = vcombine.low %v1915_v15, %v1923_v2  ;;  %v1941_v41 = vcombine.high %v1915_v15, %v1923_v2  ;;  %v3649_v17 = vcombine.high %v13938_v44, %v13941_v20  ;;  %v4632_v15 = vcombine.low %v4608_v12, %v4624_v5 }
 0x324   : > { %v14651_v16 = vrot.slane %v1924_v37, %v13857_v35  ;;  %v14654_v0 = vrot.slane %v1925_v50, %v13857_v35  ;;  %v4676_v2 = vrot.slane %v4668_v8, %v13857_v35  ;;  %v1239_v37 = vpop.permute.xlu0 %1238  ;;  %v4692_v32 = vrot.slane %v4684_v10, %v13857_v35 }
 0x325   : > { %v14661_v13 = vrot.slane %v1940_v63, %v13857_v35  ;;  %v14664_v43 = vrot.slane %v1941_v41, %v13857_v35  ;;  %v4633_v50 = vcombine.high %v4608_v12, %v4624_v5  ;;  %v3663_v3 = vrot.slane %v3649_v17, %v13857_v35  ;;  %v1241_v12 = vpop.permute.xlu1 %1240 }
 0x326   : > { %17532 = vst [vmem:[#allocation91_spill] sm:$0xff] %v14654_v0  ;;  %v3665_v52 = vcombine.high %v13944_v21, %v13947_v25  ;;  %v3717_v44 = vcombine.high %v13904_v36, %v13907_v38  ;;  %v3733_v20 = vcombine.high %v13910_v39, %v13913_v42  ;;  %v1500_v63 = vcombine.low %v1215_v45, %v1263_v40 }
 0x327   : > { %17533 = vst [vmem:[#allocation92_spill] sm:$0xff] %v14664_v43  ;;  %v1501_v41 = vcombine.high %v1215_v45, %v1263_v40  ;;  %v4700_v51 = vcombine.low %v4676_v2, %v4692_v32  ;;  %v4701_v0 = vcombine.high %v4676_v2, %v4692_v32  ;;  %v17534_v43 = vld [vmem:[#allocation30_spill] sm:$0xff]  ;;  %v17535_v2 = vld [vmem:[#allocation49_spill] sm:$0xff]  ;;  %v3869_v54 = vcombine.high %v17551_v28, %v17550_v6 }
 0x328   : > { %v3679_v8 = vrot.slane %v3665_v52, %v13857_v35  ;;  %v1484_v10 = vcombine.low %v17534_v43, %v1239_v37  ;;  %v3731_v5 = vrot.slane %v3717_v44, %v13857_v35  ;;  %v3747_v17 = vrot.slane %v3733_v20, %v13857_v35  ;;  %v1217_v20 = vpop.permute.xlu0 %1216 }
 0x329   : > { %v1508_v21 = vrot.slane %v1500_v63, %v13852_v30  ;;  %v1515_v36 = vrot.slane %v1501_v41, %v13852_v30  ;;  %v11972_v38 = vpack.c.bf16 %v4700_v51, %v4632_v15  ;;  %v12020_v25 = vpack.c.bf16 %v4701_v0, %v4633_v50  ;;  %v17537_v51 = vld [vmem:[#allocation50_spill] sm:$0xff] }
 0x32a   : > { %v3682_v39 = vcombine.low %v3663_v3, %v3679_v8  ;;  %v3683_v42 = vcombine.high %v3663_v3, %v3679_v8  ;;  %v3750_v45 = vcombine.low %v3731_v5, %v3747_v17  ;;  %v3751_v40 = vcombine.high %v3731_v5, %v3747_v17 }
 0x32b   : > { %v1485_v32 = vcombine.high %v17534_v43, %v1239_v37  ;;  %v1492_v52 = vrot.slane %v1484_v10, %v13852_v30  ;;  %11974 = vmatprep.subr.msk.bf16.mxu1 %vm14025_vm1, %v11972_v38  ;;  %12022 = vmatprep.subr.msk.bf16.mxu0 %vm14025_vm1, %v12020_v25  ;;  %v14689_v44 = vadd.f32 %v14576_v19, %v17535_v2 }
 0x32c   : > { %v14693_v0 = vadd.f32 %v14576_v19, %v17537_v51  ;;  %v17539_v3 = vcombine.low %v14547_v56, %v14550_v60  ;;  %11977 = vmatpush3.bf16.xpose.msk.msra.mxu1 %vm14025_vm1, %v11972_v38  ;;  %12025 = vmatpush3.bf16.xpose.msk.msra.mxu0 %vm14025_vm1, %v12020_v25  ;;  %v12026_v15 = vpack.c.bf16 %v3750_v45, %v3682_v39  ;;  %v14720_v38 = vpop.permute.xlu1 %1218  ;;  %v17547_v51 = vld [vmem:[#allocation47_spill] sm:$0xff] }
 0x32d   : > { %17536 = vst [vmem:[#allocation30_spill] sm:$0xff] %v14689_v44  ;;  %v12074_v37 = vpack.c.bf16 %v3751_v40, %v3683_v42  ;;  %v1499_v50 = vrot.slane %v1485_v32, %v13852_v30  ;;  %v1516_v63 = vcombine.low %v1492_v52, %v1508_v21  ;;  %v1517_v41 = vcombine.high %v1492_v52, %v1508_v21  ;;  %v17543_v40 = vld [vmem:[#allocation32_spill] sm:$0xff] }
 0x32e   : > { %17538 = vst [vmem:[#allocation49_spill] sm:$0xff] %v14693_v0  ;;  %v14699_v43 = vrot.slane %v17539_v3, %v13852_v30  ;;  %v17540_v8 = vcombine.high %v14547_v56, %v14550_v60  ;;  %v17541_v5 = vcombine.low %v14553_v49, %v14556_v58  ;;  %4734 = vrot.lane.b32.xlu1 %v14689_v44, %s13117_s30 }
 0x32f   : > { %12028 = vmatprep.subr.msk.bf16.mxu1 %vm14025_vm1, %v12026_v15  ;;  %12076 = vmatprep.subr.msk.bf16.mxu0 %vm14025_vm1, %v12074_v37  ;;  %v1532_v56 = vcombine.low %v1499_v50, %v1515_v36  ;;  %v1533_v60 = vcombine.high %v1499_v50, %v1515_v36  ;;  %v17542_v21 = vcombine.high %v14553_v49, %v14556_v58 }
 0x330   : > { %v14710_v10 = vrot.slane %v17540_v8, %v13852_v30  ;;  %v14716_v17 = vrot.slane %v17541_v5, %v13852_v30  ;;  %v14733_v39 = vrot.slane %v1516_v63, %v13857_v35  ;;  %v14736_v42 = vrot.slane %v1517_v41, %v13857_v35  ;;  %4732 = vrot.lane.b32.xlu0 %v14693_v0, %s13117_s30  ;;  %v1265_v5 = vpop.permute.xlu0 %1264  ;;  %v1267_v41 = vpop.permute.xlu1 %1266 }
 0x331   : > { %v14730_v25 = vrot.slane %v17542_v21, %v13852_v30  ;;  %v1552_v32 = vcombine.low %v17543_v40, %v1241_v12  ;;  %v14744_v36 = vrot.slane %v1532_v56, %v13857_v35  ;;  %v14747_v49 = vrot.slane %v1533_v60, %v13857_v35  ;;  %v17544_v21 = vld [vmem:[#allocation46_spill] sm:$0xff] }
 0x332   : > { %v1856_v45 = vcombine.low %v14699_v43, %v14710_v10  ;;  %v1553_v52 = vcombine.high %v17543_v40, %v1241_v12  ;;  %4782 = vrot.lane.b32.xlu1 %v14689_v44, %s13116_s12  ;;  %v1956_v56 = vcombine.low %v14651_v16, %v14661_v13  ;;  %v1957_v60 = vcombine.high %v14651_v16, %v14661_v13 }
 0x333   : > { %v1872_v58 = vcombine.low %v14716_v17, %v14730_v25  ;;  %v1560_v50 = vrot.slane %v1552_v32, %v13852_v30  ;;  %v17546_v32 = vld [vmem:[#allocation48_spill] sm:$0xff] }
 0x334   : > { %v1864_v3 = vrot.slane %v1856_v45, %v13857_v35  ;;  %v1567_v8 = vrot.slane %v1553_v52, %v13852_v30  ;;  %v17545_v45 = vld [vmem:[#allocation45_spill] sm:$0xff]  ;;  %v3801_v63 = vcombine.high %v17547_v51, %v17546_v32  ;;  %4780 = vrot.lane.b32.xlu0 %v14693_v0, %s13116_s12  ;;  %v17548_v52 = vld [vmem:[#allocation42_spill] sm:$0xff] }
 0x335   : > { %v1880_v12 = vrot.slane %v1872_v58, %v13857_v35  ;;  %v3785_v40 = vcombine.high %v17545_v45, %v17544_v21  ;;  %v3853_v1 = vcombine.high %v17549_v7, %v17548_v52  ;;  %v1568_v21 = vcombine.low %v1217_v20, %v1265_v5 }
 0x336   : > { %v3815_v16 = vrot.slane %v3801_v63, %v13857_v35  ;;  %v1569_v45 = vcombine.high %v1217_v20, %v1265_v5  ;;  %4830 = vrot.lane.b32.xlu1 %v14689_v44, %s13118_s26  ;;  %v3883_v7 = vrot.slane %v3869_v54, %v13857_v35  ;;  %v1243_v63 = vpop.permute.xlu0 %1242  ;;  %v17569_v44 = vld [vmem:[#allocation53_spill] sm:$0xff] }
 0x337   : > { %v1888_v58 = vcombine.low %v1864_v3, %v1880_v12  ;;  %v1889_v2 = vcombine.high %v1864_v3, %v1880_v12  ;;  %v3799_v13 = vrot.slane %v3785_v40, %v13857_v35  ;;  %v3867_v51 = vrot.slane %v3853_v1, %v13857_v35 }
 0x338   : > { %v1636_v3 = vcombine.low %v14720_v38, %v1267_v41  ;;  %v1576_v20 = vrot.slane %v1568_v21, %v13852_v30  ;;  %v1583_v54 = vrot.slane %v1569_v45, %v13852_v30  ;;  %4828 = vrot.lane.b32.xlu0 %v14693_v0, %s13118_s26  ;;  %v1245_v21 = vpop.permute.xlu1 %1244  ;;  %v17568_v0 = vld [vmem:[#allocation54_spill] sm:$0xff] }
 0x339   : > { %11470 = vmatprep.mubr.msk.f32.mxu1 %vm7040_vm0, %v1888_v58  ;;  %11514 = vmatprep.mubr.msk.f32.mxu0 %vm7040_vm0, %v1889_v2  ;;  %v3818_v6 = vcombine.low %v3799_v13, %v3815_v16  ;;  %v3819_v28 = vcombine.high %v3799_v13, %v3815_v16  ;;  %v3886_v2 = vcombine.low %v3867_v51, %v3883_v7 }
 0x33a   : > { %11471 = vmatmul.mubr.msk.f32.vlgmr.msra.gmra.mrb[16].mxu1 %vm7040_vm0, %v1956_v56  ;;  %11515 = vmatmul.mubr.msk.f32.vlgmr.msra.gmra.mrb[24].mxu0 %vm7040_vm0, %v1957_v60  ;;  %v3887_v1 = vcombine.high %v3867_v51, %v3883_v7  ;;  %v1584_v12 = vcombine.low %v1560_v50, %v1576_v20  ;;  %v1585_v5 = vcombine.high %v1560_v50, %v1576_v20  ;;  %v17552_v50 = vld [vmem:[#allocation34_spill] sm:$0xff]  ;;  %v17567_v51 = vld [vmem:[#allocation51_spill] sm:$0xff] }
 0x33b   : > { %12031 = vmatpush3.bf16.xpose.msk.msra.mxu1 %vm14025_vm1, %v12026_v15  ;;  %12079 = vmatpush3.bf16.xpose.msk.msra.mxu0 %vm14025_vm1, %v12074_v37  ;;  %v1637_v56 = vcombine.high %v14720_v38, %v1267_v41  ;;  %v1644_v60 = vrot.slane %v1636_v3, %v13852_v30  ;;  %v12032_v40 = vpack.c.bf16 %v3886_v2, %v3818_v6  ;;  %v17554_v2 = vld [vmem:[#allocation59_spill] sm:$0xff]  ;;  %v17566_v6 = vld [vmem:[#allocation52_spill] sm:$0xff] }
 0x33c   : > { %v12080_v32 = vpack.c.bf16 %v3887_v1, %v3819_v28  ;;  %v1600_v15 = vcombine.low %v1567_v8, %v1583_v54  ;;  %v1601_v58 = vcombine.high %v1567_v8, %v1583_v54  ;;  %v14802_v37 = vrot.slane %v1584_v12, %v13857_v35  ;;  %v17565_v28 = vld [vmem:[#allocation57_spill] sm:$0xff] }
 0x33d   : > { %v14805_v52 = vrot.slane %v1585_v5, %v13857_v35  ;;  %v1651_v13 = vrot.slane %v1637_v56, %v13852_v30  ;;  %v1620_v16 = vcombine.low %v17552_v50, %v1243_v63  ;;  %12034 = vmatprep.subr.msk.bf16.mxu1 %vm14025_vm1, %v12032_v40  ;;  %v1621_v8 = vcombine.high %v17552_v50, %v1243_v63 }
 0x33e   : > { %12082 = vmatprep.subr.msk.bf16.mxu0 %vm14025_vm1, %v12080_v32  ;;  %v14814_v38 = vrot.slane %v1600_v15, %v13857_v35  ;;  %v14817_v41 = vrot.slane %v1601_v58, %v13857_v35  ;;  %v14827_v3 = vadd.f32 %v14576_v19, %v14142_v48  ;;  %v14836_v1 = vadd.f32 %v14576_v19, %v17554_v2 }
 0x33f   : > { %v1628_v7 = vrot.slane %v1620_v16, %v13852_v30  ;;  %v1635_v20 = vrot.slane %v1621_v8, %v13852_v30  ;;  %v17555_v12 = vcombine.low %v14620_v33, %v14623_v22  ;;  %v17556_v5 = vcombine.high %v14620_v33, %v14623_v22 }
 0x340   : > { %17553 = vst [vmem:[#allocation50_spill] sm:$0xff] %v14827_v3  ;;  %4738 = vrot.lane.b32.xlu1 %v14827_v3, %s13117_s30  ;;  %v17559_v16 = vcombine.high %v14628_v46, %v14631_v4  ;;  %4736 = vrot.lane.b32.xlu0 %v14836_v1, %s13117_s30  ;;  %v3989_v45 = vcombine.high %v17567_v51, %v17566_v6 }
 0x341   : > { %v1652_v54 = vcombine.low %v1628_v7, %v1644_v60  ;;  %v1653_v63 = vcombine.high %v1628_v7, %v1644_v60  ;;  %v14842_v48 = vrot.slane %v17555_v12, %v13852_v30  ;;  %v14848_v56 = vrot.slane %v17556_v5, %v13852_v30  ;;  %v17561_v7 = vld [vmem:[#allocation36_spill] sm:$0xff]  ;;  %v17563_v12 = vld [vmem:[#allocation55_spill] sm:$0xff] }
 0x342   : > { %v1668_v15 = vcombine.low %v1635_v20, %v1651_v13  ;;  %v1669_v58 = vcombine.high %v1635_v20, %v1651_v13  ;;  %v17557_v60 = vcombine.low %v14628_v46, %v14631_v4  ;;  %v14862_v8 = vrot.slane %v17559_v16, %v13852_v30  ;;  %v1221_v46 = vpop.permute.xlu0 %1220 }
 0x343   : > { %12037 = vmatpush3.bf16.xpose.msk.msra.mxu1 %vm14025_vm1, %v12032_v40  ;;  %v14867_v22 = vrot.slane %v1652_v54, %v13857_v35  ;;  %v14870_v33 = vrot.slane %v1653_v63, %v13857_v35  ;;  %v1992_v13 = vcombine.low %v14842_v48, %v14848_v56  ;;  %12085 = vmatpush3.bf16.xpose.msk.msra.mxu0 %vm14025_vm1, %v12080_v32  ;;  %v1223_v63 = vpop.permute.xlu1 %1222 }
 0x344   : > { %v14856_v50 = vrot.slane %v17557_v60, %v13852_v30  ;;  %17560 = vst [vmem:[#allocation46_spill] sm:$0xff] %v14862_v8  ;;  %v1688_v20 = vcombine.low %v17561_v7, %v1245_v21  ;;  %v14878_v4 = vrot.slane %v1668_v15, %v13857_v35  ;;  %v14881_v40 = vrot.slane %v1669_v58, %v13857_v35 }
 0x345   : > { %v1689_v54 = vcombine.high %v17561_v7, %v1245_v21  ;;  %v2000_v5 = vrot.slane %v1992_v13, %v13857_v35  ;;  %4786 = vrot.lane.b32.xlu1 %v14827_v3, %s13116_s12  ;;  %v17562_v7 = vld [vmem:[#allocation56_spill] sm:$0xff]  ;;  %v17564_v13 = vld [vmem:[#allocation58_spill] sm:$0xff]  ;;  %4784 = vrot.lane.b32.xlu0 %v14836_v1, %s13116_s12 }
 0x346   : > { %17558 = vst [vmem:[#allocation32_spill] sm:$0xff] %v14856_v50  ;;  %v2008_v2 = vcombine.low %v14856_v50, %v14862_v8  ;;  %v14894_v15 = vrot.slane %v1688_v20, %v13852_v30  ;;  %v3921_v32 = vcombine.high %v17563_v12, %v17562_v7  ;;  %v3937_v20 = vcombine.high %v17565_v28, %v17564_v13  ;;  %v1269_v28 = vpop.permute.xlu0 %1268 }
 0x347   : > { %v1703_v16 = vrot.slane %v1689_v54, %v13852_v30  ;;  %v4005_v50 = vcombine.high %v17569_v44, %v17568_v0  ;;  %v17572_v54 = vcombine.high %v14733_v39, %v14736_v42  ;;  %v4003_v0 = vrot.slane %v3989_v45, %v13857_v35 }
 0x348   : > { %v2016_v60 = vrot.slane %v2008_v2, %v13857_v35  ;;  %v17570_v2 = vcombine.low %v14733_v39, %v14736_v42  ;;  %v3935_v51 = vrot.slane %v3921_v32, %v13857_v35  ;;  %v3951_v44 = vrot.slane %v3937_v20, %v13857_v35 }
 0x349   : > { %v14922_v12 = vrot.slane %v17572_v54, %v13852_v30  ;;  %v4019_v6 = vrot.slane %v4005_v50, %v13857_v35  ;;  %4834 = vrot.lane.b32.xlu1 %v14827_v3, %s13118_s26  ;;  %v17573_v39 = vcombine.low %v14744_v36, %v14747_v49  ;;  %v17574_v45 = vcombine.high %v14744_v36, %v14747_v49 }
 0x34a   : > { %v2024_v21 = vcombine.low %v2000_v5, %v2016_v60  ;;  %v2025_v8 = vcombine.high %v2000_v5, %v2016_v60  ;;  %v14916_v58 = vrot.slane %v17570_v2, %v13852_v30  ;;  %v1271_v5 = vpop.permute.xlu1 %1270  ;;  %v3954_v60 = vcombine.low %v3935_v51, %v3951_v44  ;;  %4832 = vrot.lane.b32.xlu0 %v14836_v1, %s13118_s26 }
 0x34b   : > { %v14938_v42 = vrot.slane %v17573_v39, %v13852_v30  ;;  %v14944_v32 = vrot.slane %v17574_v45, %v13852_v30  ;;  %v3955_v7 = vcombine.high %v3935_v51, %v3951_v44  ;;  %v1704_v2 = vcombine.low %v1221_v46, %v1269_v28 }
 0x34c   : > { %17571 = vst [vmem:[#allocation45_spill] sm:$0xff] %v14916_v58  ;;  %11473 = vmatprep.mubr.msk.f32.mxu1 %vm7040_vm0, %v2024_v21  ;;  %11517 = vmatprep.mubr.msk.f32.mxu0 %vm7040_vm0, %v2025_v8  ;;  %v2060_v50 = vcombine.low %v14916_v58, %v14922_v12  ;;  %v4022_v21 = vcombine.low %v4003_v0, %v4019_v6 }
 0x34d   : > { %v4023_v8 = vcombine.high %v4003_v0, %v4019_v6  ;;  %v2076_v20 = vcombine.low %v14938_v42, %v14944_v32  ;;  %v1705_v54 = vcombine.high %v1221_v46, %v1269_v28  ;;  %v1772_v39 = vcombine.low %v1223_v63, %v1271_v5 }
 0x34e   : > { %v2068_v13 = vrot.slane %v2060_v50, %v13857_v35  ;;  %v12038_v36 = vpack.c.bf16 %v4022_v21, %v3954_v60  ;;  %v1773_v45 = vcombine.high %v1223_v63, %v1271_v5  ;;  %v1712_v58 = vrot.slane %v1704_v2, %v13852_v30  ;;  %v17575_v63 = vld [vmem:[#allocation64_spill] sm:$0xff] }
 0x34f   : > { %v12086_v49 = vpack.c.bf16 %v4023_v8, %v3955_v7  ;;  %v2084_v3 = vrot.slane %v2076_v20, %v13857_v35  ;;  %v1719_v51 = vrot.slane %v1705_v54, %v13852_v30  ;;  %v4057_v44 = vcombine.high %v14186_v31, %v14191_v27  ;;  %v1247_v8 = vpop.permute.xlu0 %1246  ;;  %v17578_v54 = vld [vmem:[#allocation63_spill] sm:$0xff] }
 0x350   : > { %12040 = vmatprep.subr.msk.bf16.mxu1 %vm14025_vm1, %v12038_v36  ;;  %v1780_v46 = vrot.slane %v1772_v39, %v13852_v30  ;;  %v1787_v0 = vrot.slane %v1773_v45, %v13852_v30  ;;  %v4073_v6 = vcombine.high %v17575_v63, %v14205_v29  ;;  %v1720_v5 = vcombine.low %v14894_v15, %v1712_v58 }
 0x351   : > { %12088 = vmatprep.subr.msk.bf16.mxu0 %vm14025_vm1, %v12086_v49  ;;  %v2092_v28 = vcombine.low %v2068_v13, %v2084_v3  ;;  %v2093_v50 = vcombine.high %v2068_v13, %v2084_v3  ;;  %v1721_v60 = vcombine.high %v14894_v15, %v1712_v58  ;;  %12043 = vmatpush3.bf16.xpose.msk.msra.mxu1 %vm14025_vm1, %v12038_v36  ;;  %v17576_v15 = vld [vmem:[#allocation61_spill] sm:$0xff]  ;;  %v17577_v58 = vld [vmem:[#allocation60_spill] sm:$0xff]  ;;  %v17579_v36 = vld [vmem:[#allocation62_spill] sm:$0xff] }
 0x352   : > { %v1736_v31 = vcombine.low %v1703_v16, %v1719_v51  ;;  %v1737_v27 = vcombine.high %v1703_v16, %v1719_v51  ;;  %12091 = vmatpush3.bf16.xpose.msk.msra.mxu0 %vm14025_vm1, %v12086_v49  ;;  %v4071_v21 = vrot.slane %v4057_v44, %v13857_v35  ;;  %v4087_v7 = vrot.slane %v4073_v6, %v13857_v35 }
 0x353   : > { %11474 = vmatmul.mubr.msk.f32.gmra.mrb[18].mxu1 %vm7040_vm0, %v2092_v28  ;;  %11518 = vmatmul.mubr.msk.f32.gmra.mrb[26].mxu0 %vm7040_vm0, %v2093_v50  ;;  %v14977_v29 = vrot.slane %v1720_v5, %v13857_v35  ;;  %v14980_v3 = vrot.slane %v1721_v60, %v13857_v35  ;;  %v4125_v16 = vcombine.high %v17577_v58, %v17576_v15  ;;  %v17580_v50 = vld [vmem:[#allocation35_spill] sm:$0xff]  ;;  %v17582_v15 = vld [vmem:[#allocation72_spill] sm:$0xff] }
 0x354   : > { %v14985_v13 = vrot.slane %v1736_v31, %v13857_v35  ;;  %v14988_v20 = vrot.slane %v1737_v27, %v13857_v35  ;;  %v4090_v2 = vcombine.low %v4071_v21, %v4087_v7  ;;  %v4141_v49 = vcombine.high %v17579_v36, %v17578_v54  ;;  %v17581_v31 = vld [vmem:[#allocation69_spill] sm:$0xff] }
 0x355   : > { %v2232_v39 = vcombine.low %v14977_v29, %v14980_v3  ;;  %v10725_v45 = vcombine.high %v14977_v29, %v14980_v3  ;;  %v4139_v51 = vrot.slane %v4125_v16, %v13857_v35  ;;  %v4091_v44 = vcombine.high %v4071_v21, %v4087_v7 }
 0x356   : > { %v2248_v63 = vcombine.low %v14985_v13, %v14988_v20  ;;  %v4155_v28 = vrot.slane %v4141_v49, %v13857_v35  ;;  %v1756_v5 = vcombine.low %v17580_v50, %v1247_v8  ;;  %v1757_v60 = vcombine.high %v17580_v50, %v1247_v8 }
 0x357   : > { %v15006_v27 = vadd.f32 %v14576_v19, %v17581_v31  ;;  %v15010_v58 = vadd.f32 %v14576_v19, %v17582_v15  ;;  %v17583_v21 = vcombine.low %v14802_v37, %v14805_v52  ;;  %v17584_v8 = vcombine.high %v14802_v37, %v14805_v52 }
 0x358   : > { %v4158_v16 = vcombine.low %v4139_v51, %v4155_v28  ;;  %v4159_v54 = vcombine.high %v4139_v51, %v4155_v28  ;;  %v1764_v36 = vrot.slane %v1756_v5, %v13852_v30  ;;  %v1771_v50 = vrot.slane %v1757_v60, %v13852_v30 }
 0x359   : > { %v15016_v7 = vrot.slane %v17583_v21, %v13852_v30  ;;  %v15023_v49 = vrot.slane %v17584_v8, %v13852_v30  ;;  %v17585_v31 = vcombine.low %v14814_v38, %v14817_v41  ;;  %v17586_v51 = vcombine.high %v14814_v38, %v14817_v41  ;;  %4742 = vrot.lane.b32.xlu1 %v15006_v27, %s13117_s30 }
 0x35a   : > { %4740 = vrot.lane.b32.xlu0 %v15010_v58, %s13117_s30  ;;  %v12044_v37 = vpack.c.bf16 %v4158_v16, %v4090_v2  ;;  %v12092_v52 = vpack.c.bf16 %v4159_v54, %v4091_v44  ;;  %v1788_v5 = vcombine.low %v1764_v36, %v1780_v46  ;;  %v1789_v60 = vcombine.high %v1764_v36, %v1780_v46 }
 0x35b   : > { %v15030_v15 = vrot.slane %v17585_v31, %v13852_v30  ;;  %v15036_v28 = vrot.slane %v17586_v51, %v13852_v30  ;;  %v1804_v21 = vcombine.low %v1771_v50, %v1787_v0  ;;  %v1805_v8 = vcombine.high %v1771_v50, %v1787_v0 }
 0x35c   : > { %v2128_v31 = vcombine.low %v15016_v7, %v15023_v49  ;;  %12046 = vmatprep.subr.msk.bf16.mxu1 %vm14025_vm1, %v12044_v37  ;;  %12094 = vmatprep.subr.msk.bf16.mxu0 %vm14025_vm1, %v12092_v52  ;;  %v15051_v41 = vrot.slane %v1788_v5, %v13857_v35  ;;  %v15054_v2 = vrot.slane %v1789_v60, %v13857_v35 }
 0x35d   : > { %v2144_v38 = vcombine.low %v15030_v15, %v15036_v28  ;;  %v17587_v46 = vcombine.low %v14867_v22, %v14870_v33  ;;  %v15063_v44 = vrot.slane %v1804_v21, %v13857_v35  ;;  %v15066_v16 = vrot.slane %v1805_v8, %v13857_v35  ;;  %12049 = vmatpush3.bf16.xpose.msk.msra.mxu1 %vm14025_vm1, %v12044_v37  ;;  %v17597_v37 = vld [vmem:[#allocation73_spill] sm:$0xff] }
 0x35e   : > { %v2136_v54 = vrot.slane %v2128_v31, %v13857_v35  ;;  %v2300_v50 = vcombine.low %v15051_v41, %v15054_v2  ;;  %v10727_v51 = vcombine.high %v15051_v41, %v15054_v2  ;;  %v17588_v5 = vcombine.high %v14867_v22, %v14870_v33  ;;  %12097 = vmatpush3.bf16.xpose.msk.msra.mxu0 %vm14025_vm1, %v12092_v52 }
 0x35f   : > { %v15060_v0 = vrot.slane %v17587_v46, %v13852_v30  ;;  %v2152_v36 = vrot.slane %v2144_v38, %v13857_v35  ;;  %v17589_v21 = vcombine.low %v14878_v4, %v14881_v40  ;;  %4790 = vrot.lane.b32.xlu1 %v15006_v27, %s13116_s12  ;;  %v17590_v22 = vcombine.high %v14878_v4, %v14881_v40  ;;  %v17591_v46 = vld [vmem:[#allocation71_spill] sm:$0xff]  ;;  %v17594_v4 = vld [vmem:[#allocation65_spill] sm:$0xff] }
 0x360   : > { %v15080_v60 = vrot.slane %v17588_v5, %v13852_v30  ;;  %v4193_v2 = vcombine.high %v14264_v34, %v14273_v59  ;;  %v17592_v5 = vld [vmem:[#allocation70_spill] sm:$0xff]  ;;  %4788 = vrot.lane.b32.xlu0 %v15010_v58, %s13116_s12  ;;  %v15118_v6 = vadd.f32 %v14576_v19, %v17597_v37  ;;  %v4329_v3 = vcombine.high %v14366_v18, %v14371_v14  ;;  %v17600_v14 = vld [vmem:[#allocation76_spill] sm:$0xff] }
 0x361   : > { %v15086_v8 = vrot.slane %v17589_v21, %v13852_v30  ;;  %v2160_v38 = vcombine.low %v2136_v54, %v2152_v36  ;;  %v2161_v41 = vcombine.high %v2136_v54, %v2152_v36  ;;  %v15100_v33 = vrot.slane %v17590_v22, %v13852_v30  ;;  %v17593_v54 = vld [vmem:[#allocation66_spill] sm:$0xff]  ;;  %v17595_v36 = vld [vmem:[#allocation68_spill] sm:$0xff]  ;;  %v17596_v22 = vld [vmem:[#allocation67_spill] sm:$0xff] }
 0x362   : > { %v2196_v52 = vcombine.low %v15060_v0, %v15080_v60  ;;  %v4209_v21 = vcombine.high %v17592_v5, %v17591_v46  ;;  %v4261_v40 = vcombine.high %v17594_v4, %v17593_v54  ;;  %v4277_v31 = vcombine.high %v17596_v22, %v17595_v36  ;;  %v17598_v54 = vld [vmem:[#allocation74_spill] sm:$0xff] }
 0x363   : > { %11476 = vmatprep.mubr.msk.f32.mxu1 %vm7040_vm0, %v2160_v38  ;;  %11520 = vmatprep.mubr.msk.f32.mxu0 %vm7040_vm0, %v2161_v41  ;;  %v2212_v59 = vcombine.low %v15086_v8, %v15100_v33  ;;  %v4207_v46 = vrot.slane %v4193_v2, %v13857_v35  ;;  %v15131_v37 = vadd.f32 %v14576_v19, %v17598_v54 }
 0x364   : > { %v2204_v34 = vrot.slane %v2196_v52, %v13857_v35  ;;  %v4223_v38 = vrot.slane %v4209_v21, %v13857_v35  ;;  %v4275_v41 = vrot.slane %v4261_v40, %v13857_v35  ;;  %v4291_v5 = vrot.slane %v4277_v31, %v13857_v35  ;;  %4838 = vrot.lane.b32.xlu1 %v15006_v27, %s13118_s26 }
 0x365   : > { %v15137_v52 = vrot.slane %v2232_v39, %v13852_v30  ;;  %v2220_v2 = vrot.slane %v2212_v59, %v13857_v35  ;;  %4836 = vrot.lane.b32.xlu0 %v15010_v58, %s13118_s26  ;;  %v15146_v31 = vrot.slane %v10725_v45, %v13852_v30  ;;  %v15152_v39 = vrot.slane %v2248_v63, %v13852_v30 }
 0x366   : > { %v4226_v21 = vcombine.low %v4207_v46, %v4223_v38  ;;  %v4227_v4 = vcombine.high %v4207_v46, %v4223_v38  ;;  %v4294_v40 = vcombine.low %v4275_v41, %v4291_v5  ;;  %v4295_v36 = vcombine.high %v4275_v41, %v4291_v5 }
 0x367   : > { %v17599_v22 = vcombine.high %v14985_v13, %v14988_v20  ;;  %v2228_v46 = vcombine.low %v2204_v34, %v2220_v2  ;;  %v2229_v38 = vcombine.high %v2204_v34, %v2220_v2  ;;  %v2264_v29 = vcombine.low %v15137_v52, %v15146_v31  ;;  %v15170_v13 = vpop.permute.xlu1 %4770  ;;  %v17601_v34 = vld [vmem:[#allocation75_spill] sm:$0xff]  ;;  %v17602_v2 = vld [vmem:[#allocation78_spill] sm:$0xff] }
 0x368   : > { %v12050_v45 = vpack.c.bf16 %v4294_v40, %v4226_v21  ;;  %v12098_v41 = vpack.c.bf16 %v4295_v36, %v4227_v4  ;;  %v4345_v5 = vcombine.high %v14380_v62, %v14383_v55  ;;  %4746 = vrot.lane.b32.xlu1 %v15118_v6, %s13117_s30  ;;  %v4343_v18 = vrot.slane %v4329_v3, %v13857_v35  ;;  %v17603_v21 = vld [vmem:[#allocation77_spill] sm:$0xff] }
 0x369   : > { %v15158_v59 = vrot.slane %v17599_v22, %v13852_v30  ;;  %11477 = vmatmul.mubr.msk.f32.gmra.mrb[20].mxu1 %vm7040_vm0, %v2228_v46  ;;  %11521 = vmatmul.mubr.msk.f32.gmra.mrb[28].mxu0 %vm7040_vm0, %v2229_v38  ;;  %v2272_v20 = vrot.slane %v2264_v29, %v13857_v35  ;;  %v4397_v54 = vcombine.high %v17601_v34, %v17600_v14 }
 0x36a   : > { %12052 = vmatprep.subr.msk.bf16.mxu1 %vm14025_vm1, %v12050_v45  ;;  %12100 = vmatprep.subr.msk.bf16.mxu0 %vm14025_vm1, %v12098_v41  ;;  %v4359_v55 = vrot.slane %v4345_v5, %v13857_v35  ;;  %v4413_v4 = vcombine.high %v17603_v21, %v17602_v2  ;;  %v15192_v36 = vrot.slane %v2300_v50, %v13852_v30 }
 0x36b   : > { %v2280_v63 = vcombine.low %v15152_v39, %v15158_v59  ;;  %12055 = vmatpush3.bf16.xpose.msk.msra.mxu1 %vm14025_vm1, %v12050_v45  ;;  %12103 = vmatpush3.bf16.xpose.msk.msra.mxu0 %vm14025_vm1, %v12098_v41  ;;  %v4411_v40 = vrot.slane %v4397_v54, %v13857_v35  ;;  %v15195_v22 = vrot.slane %v10727_v51, %v13852_v30  ;;  %v15220_v34 = vpop.permute.xlu1 %4818 }
 0x36c   : > { %v4362_v29 = vcombine.low %v4343_v18, %v4359_v55  ;;  %v4427_v3 = vrot.slane %v4413_v4, %v13857_v35  ;;  %4744 = vrot.lane.b32.xlu0 %v15131_v37, %s13117_s30  ;;  %v4363_v45 = vcombine.high %v4343_v18, %v4359_v55  ;;  %v17604_v41 = vcombine.low %v15063_v44, %v15066_v16 }
 0x36d   : > { %v2288_v62 = vrot.slane %v2280_v63, %v13857_v35  ;;  %v17605_v50 = vcombine.high %v15063_v44, %v15066_v16  ;;  %v2332_v5 = vcombine.low %v15192_v36, %v15195_v22  ;;  %4794 = vrot.lane.b32.xlu1 %v15118_v6, %s13116_s12  ;;  %v1857_v14 = vcombine.high %v14699_v43, %v14710_v10 }
 0x36e   : > { %v15204_v63 = vrot.slane %v17604_v41, %v13852_v30  ;;  %v4431_v18 = vcombine.high %v4411_v40, %v4427_v3  ;;  %v1873_v54 = vcombine.high %v14716_v17, %v14730_v25  ;;  %v4481_v43 = vcombine.high %v14465_v26, %v14468_v24  ;;  %v17607_v26 = vld [vmem:[#allocation81_spill] sm:$0xff]  ;;  %v17608_v25 = vld [vmem:[#allocation79_spill] sm:$0xff] }
 0x36f   : > { %v2296_v46 = vcombine.low %v2272_v20, %v2288_v62  ;;  %v2297_v38 = vcombine.high %v2272_v20, %v2288_v62  ;;  %v15210_v51 = vrot.slane %v17605_v50, %v13852_v30  ;;  %v4430_v20 = vcombine.low %v4411_v40, %v4427_v3 }
 0x370   : > { %v2340_v44 = vrot.slane %v2332_v5, %v13857_v35  ;;  %v4465_v62 = vcombine.high %v14444_v53, %v14451_v61  ;;  %v12104_v2 = vpack.c.bf16 %v4431_v18, %v4363_v45  ;;  %v1871_v21 = vrot.slane %v1857_v14, %v13857_v35  ;;  %4792 = vrot.lane.b32.xlu0 %v15131_v37, %s13116_s12  ;;  %v17606_v61 = vld [vmem:[#allocation82_spill] sm:$0xff]  ;;  %v15258_v5 = vpop.permute.xlu1 %4720 }
 0x371   : > { %11479 = vmatprep.mubr.msk.f32.mxu1 %vm7040_vm0, %v2296_v46  ;;  %11523 = vmatprep.mubr.msk.f32.mxu0 %vm7040_vm0, %v2297_v38  ;;  %v2348_v16 = vcombine.low %v15204_v63, %v15210_v51  ;;  %v12056_v55 = vpack.c.bf16 %v4430_v20, %v4362_v29  ;;  %v1887_v4 = vrot.slane %v1873_v54, %v13857_v35  ;;  %v17609_v20 = vld [vmem:[#allocation80_spill] sm:$0xff] }
 0x372   : > { %v4479_v40 = vrot.slane %v4465_v62, %v13857_v35  ;;  %v4533_v17 = vcombine.high %v14430_v23, %v14433_v9  ;;  %4842 = vrot.lane.b32.xlu1 %v15118_v6, %s13118_s26  ;;  %12106 = vmatprep.subr.msk.bf16.mxu0 %vm14025_vm1, %v12104_v2  ;;  %v4495_v53 = vrot.slane %v4481_v43, %v13857_v35  ;;  %v15270_v62 = vpop.permute.xlu0 %4722  ;;  %v17613_v43 = vld [vmem:[#allocation83_spill] sm:$0xff] }
 0x373   : > { %v2356_v10 = vrot.slane %v2348_v16, %v13857_v35  ;;  %12058 = vmatprep.subr.msk.bf16.mxu1 %vm14025_vm1, %v12056_v55  ;;  %v4549_v24 = vcombine.high %v17607_v26, %v17606_v61  ;;  %v15250_v46 = vadd.f32 %v14576_v19, %v17608_v25  ;;  %v1890_v9 = vcombine.low %v1871_v21, %v1887_v4  ;;  %v17611_v16 = vld [vmem:[#allocation87_spill] sm:$0xff]  ;;  %v17616_v26 = vld [vmem:[#allocation92_spill] sm:$0xff] }
 0x374   : > { %v1891_v29 = vcombine.high %v1871_v21, %v1887_v4  ;;  %12061 = vmatpush3.bf16.xpose.msk.msra.mxu1 %vm14025_vm1, %v12056_v55  ;;  %12109 = vmatpush3.bf16.xpose.msk.msra.mxu0 %vm14025_vm1, %v12104_v2  ;;  %v4498_v3 = vcombine.low %v4479_v40, %v4495_v53  ;;  %v4547_v45 = vrot.slane %v4533_v17, %v13857_v35  ;;  %v17612_v21 = vld [vmem:[#allocation84_spill] sm:$0xff]  ;;  %v17615_v4 = vld [vmem:[#allocation85_spill] sm:$0xff] }
 0x375   : > { %v2364_v38 = vcombine.low %v2340_v44, %v2356_v10  ;;  %v2365_v23 = vcombine.high %v2340_v44, %v2356_v10  ;;  %v4563_v41 = vrot.slane %v4549_v24, %v13857_v35  ;;  %v4499_v50 = vcombine.high %v4479_v40, %v4495_v53  ;;  %v17610_v44 = vld [vmem:[#allocation88_spill] sm:$0xff]  ;;  %4840 = vrot.lane.b32.xlu0 %v15131_v37, %s13118_s26  ;;  %v17617_v24 = vld [vmem:[#allocation91_spill] sm:$0xff] }
 0x376   : > { %v15264_v18 = vadd.f32 %v14576_v19, %v17609_v20  ;;  %v4601_v14 = vcombine.high %v14522_v47, %v14527_v11  ;;  %v4617_v54 = vcombine.high %v17611_v16, %v17610_v44  ;;  %v4669_v10 = vcombine.high %v17613_v43, %v17612_v21  ;;  %4798 = vrot.lane.b32.xlu1 %v15250_v46, %s13116_s12  ;;  %v17614_v19 = vld [vmem:[#allocation86_spill] sm:$0xff]  ;;  %v17620_v20 = vld [vmem:[#allocation45_spill] sm:$0xff]  ;;  %v15300_v44 = vpop.permute.xlu1 %4768 }
 0x377   : > { %11480 = vmatmul.mubr.msk.f32.gmra.mrb[22].mxu1 %vm7040_vm0, %v2364_v38  ;;  %11524 = vmatmul.mubr.msk.f32.gmra.mrb[30].mxu0 %vm7040_vm0, %v2365_v23  ;;  %v4566_v55 = vcombine.low %v4547_v45, %v4563_v41  ;;  %v4567_v2 = vcombine.high %v4547_v45, %v4563_v41  ;;  %v4685_v40 = vcombine.high %v17615_v4, %v17614_v19  ;;  %v17618_v45 = vld [vmem:[#allocation46_spill] sm:$0xff]  ;;  %v17619_v41 = vld [vmem:[#allocation32_spill] sm:$0xff] }
 0x378   : > { %11558 = vmatprep.mubr.msk.f32.mxu1 %vm7040_vm0, %v1890_v9  ;;  %11602 = vmatprep.mubr.msk.f32.mxu0 %vm7040_vm0, %v1891_v29  ;;  %v4615_v47 = vrot.slane %v4601_v14, %v13857_v35  ;;  %v4631_v11 = vrot.slane %v4617_v54, %v13857_v35  ;;  %v4683_v61 = vrot.slane %v4669_v10, %v13857_v35 }
 0x379   : > { %v12062_v17 = vpack.c.bf16 %v4566_v55, %v4498_v3  ;;  %v12110_v53 = vpack.c.bf16 %v4567_v2, %v4499_v50  ;;  %v1958_v25 = vcombine.low %v17617_v24, %v17616_v26  ;;  %v4699_v23 = vrot.slane %v4685_v40, %v13857_v35  ;;  %4750 = vrot.lane.b32.xlu0 %v15250_v46, %s13117_s30 }
 0x37a   : > { %v4634_v38 = vcombine.low %v4615_v47, %v4631_v11  ;;  %v4635_v9 = vcombine.high %v4615_v47, %v4631_v11  ;;  %v1959_v29 = vcombine.high %v17617_v24, %v17616_v26  ;;  %v1993_v3 = vcombine.high %v14842_v48, %v14848_v56  ;;  %4748 = vrot.lane.b32.xlu1 %v15264_v18, %s13117_s30  ;;  %v15308_v48 = vpop.permute.xlu0 %4816  ;;  %v15339_v4 = vpop.permute.xlu1 %4726 }
 0x37b   : > { %12064 = vmatprep.subr.msk.bf16.mxu1 %vm14025_vm1, %v12062_v17  ;;  %12112 = vmatprep.subr.msk.bf16.mxu0 %vm14025_vm1, %v12110_v53  ;;  %v2009_v50 = vcombine.high %v17619_v41, %v17618_v45  ;;  %v2061_v14 = vcombine.high %v17620_v20, %v14922_v12  ;;  %v4702_v16 = vcombine.low %v4683_v61, %v4699_v23 }
 0x37c   : > { %12067 = vmatpush3.bf16.xpose.msk.msra.mxu1 %vm14025_vm1, %v12062_v17  ;;  %v4703_v54 = vcombine.high %v4683_v61, %v4699_v23  ;;  %v2077_v55 = vcombine.high %v14938_v42, %v14944_v32  ;;  %12115 = vmatpush3.bf16.xpose.msk.msra.mxu0 %vm14025_vm1, %v12110_v53  ;;  %v15313_v56 = vrot.slane %v1993_v3, %v13857_v35 }
 0x37d   : > { %v15316_v12 = vrot.slane %v2009_v50, %v13857_v35  ;;  %v15319_v2 = vrot.slane %v2061_v14, %v13857_v35  ;;  %v2129_v21 = vcombine.high %v15016_v7, %v15023_v49  ;;  %v12068_v43 = vpack.c.bf16 %v4702_v16, %v4634_v38  ;;  %v17621_v7 = vld [vmem:[#allocation37_spill] sm:$0xff] }
 0x37e   : > { %v12116_v10 = vpack.c.bf16 %v4703_v54, %v4635_v9  ;;  %v15324_v42 = vrot.slane %v2077_v55, %v13857_v35  ;;  %v2145_v32 = vcombine.high %v15030_v15, %v15036_v28  ;;  %v4932_v49 = vcombine.low %v17621_v7, %v15170_v13  ;;  %v15352_v17 = vpop.permute.xlu0 %4724  ;;  %4796 = vrot.lane.b32.xlu1 %v15264_v18, %s13116_s12  ;;  %v4775_v20 = vpop.permute.xlu1 %4774  ;;  %v17622_v55 = vld [vmem:[#allocation38_spill] sm:$0xff] }
 0x37f   : > { %v2026_v47 = vcombine.low %v15313_v56, %v15316_v12  ;;  %v2027_v11 = vcombine.high %v15313_v56, %v15316_v12  ;;  %v15335_v19 = vrot.slane %v2129_v21, %v13857_v35  ;;  %12070 = vmatprep.subr.msk.bf16.mxu1 %vm14025_vm1, %v12068_v43  ;;  %v4933_v53 = vcombine.high %v17621_v7, %v15170_v13 }
 0x380   : > { %12118 = vmatprep.subr.msk.bf16.mxu0 %vm14025_vm1, %v12116_v10  ;;  %v2094_v15 = vcombine.low %v15319_v2, %v15324_v42  ;;  %v2095_v28 = vcombine.high %v15319_v2, %v15324_v42  ;;  %v15350_v40 = vrot.slane %v2145_v32, %v13857_v35  ;;  %v4940_v61 = vrot.slane %v4932_v49, %v13852_v30 }
 0x381   : > { %v2197_v38 = vcombine.high %v15060_v0, %v15080_v60  ;;  %v2213_v23 = vcombine.high %v15086_v8, %v15100_v33  ;;  %v2265_v45 = vcombine.high %v15137_v52, %v15146_v31  ;;  %v2281_v13 = vcombine.high %v15152_v39, %v15158_v59 }
 0x382   : > { %v2162_v9 = vcombine.low %v15335_v19, %v15350_v40  ;;  %v2163_v3 = vcombine.high %v15335_v19, %v15350_v40  ;;  %v4947_v41 = vrot.slane %v4933_v53, %v13852_v30  ;;  %v2333_v60 = vcombine.high %v15192_v36, %v15195_v22  ;;  %v4773_v16 = vpop.permute.xlu0 %4772 }
 0x383   : > { %v15373_v50 = vrot.slane %v2197_v38, %v13857_v35  ;;  %v15376_v0 = vrot.slane %v2213_v23, %v13857_v35  ;;  %v15383_v8 = vrot.slane %v2265_v45, %v13857_v35  ;;  %v15386_v33 = vrot.slane %v2281_v13, %v13857_v35 }
 0x384   : > { %12073 = vmatpush3.bf16.xpose.msk.msra.mxu1 %vm14025_vm1, %v12068_v43  ;;  %v2349_v52 = vcombine.high %v15204_v63, %v15210_v51  ;;  %v4948_v31 = vcombine.low %v15270_v62, %v15220_v34  ;;  %12121 = vmatpush3.bf16.xpose.msk.msra.mxu0 %vm14025_vm1, %v12116_v10  ;;  %v15399_v36 = vrot.slane %v2333_v60, %v13857_v35 }
 0x385   : > { %v2230_v39 = vcombine.low %v15373_v50, %v15376_v0  ;;  %v2231_v59 = vcombine.high %v15373_v50, %v15376_v0  ;;  %v4949_v22 = vcombine.high %v15270_v62, %v15220_v34  ;;  %v2298_v63 = vcombine.low %v15383_v8, %v15386_v33 }
 0x386   : > { %v2299_v57 = vcombine.high %v15383_v8, %v15386_v33  ;;  %v15408_v51 = vrot.slane %v2349_v52, %v13857_v35  ;;  %v4956_v14 = vrot.slane %v4948_v31, %v13852_v30  ;;  %v4864_v21 = vcombine.low %v17622_v55, %v15300_v44  ;;  %v17623_v52 = vld [vmem:[#allocation39_spill] sm:$0xff] }
 0x387   : > { %v4963_v54 = vrot.slane %v4949_v22, %v13852_v30  ;;  %v4865_v34 = vcombine.high %v17622_v55, %v15300_v44  ;;  %v4880_v62 = vcombine.low %v15258_v5, %v15308_v48  ;;  %v4881_v13 = vcombine.high %v15258_v5, %v15308_v48 }
 0x388   : > { %v2366_v43 = vcombine.low %v15399_v36, %v15408_v51  ;;  %v2367_v10 = vcombine.high %v15399_v36, %v15408_v51  ;;  %v4964_v32 = vcombine.low %v4940_v61, %v4956_v14  ;;  %v4965_v7 = vcombine.high %v4940_v61, %v4956_v14  ;;  %v4823_v14 = vpop.permute.xlu1 %4822 }
 0x389   : > { %v4980_v49 = vcombine.low %v4947_v41, %v4963_v54  ;;  %v4981_v53 = vcombine.high %v4947_v41, %v4963_v54  ;;  %v4872_v38 = vrot.slane %v4864_v21, %v13852_v30  ;;  %v4879_v23 = vrot.slane %v4865_v34, %v13852_v30 }
 0x38a   : > { %v15425_v45 = vrot.slane %v4964_v32, %v13857_v35  ;;  %v15428_v44 = vrot.slane %v4965_v7, %v13857_v35  ;;  %v4888_v60 = vrot.slane %v4880_v62, %v13852_v30  ;;  %v5068_v31 = vcombine.low %v17623_v52, %v4775_v20 }
 0x38b   : > { %11559 = vmatmul.mubr.msk.f32.vlgmr.msra.gmra.mrb[24].mxu1 %vm7040_vm0, %v1958_v25  ;;  %v15438_v61 = vrot.slane %v4980_v49, %v13857_v35  ;;  %v15441_v41 = vrot.slane %v4981_v53, %v13857_v35  ;;  %v5069_v22 = vcombine.high %v17623_v52, %v4775_v20  ;;  %11603 = vmatmul.mubr.msk.f32.vlgmr.msra.gmra.mrb[32].mxu0 %vm7040_vm0, %v1959_v29  ;;  %v4821_v20 = vpop.permute.xlu0 %4820 }
 0x38c   : > { %11561 = vmatprep.mubr.msk.f32.mxu1 %vm7040_vm0, %v2026_v47  ;;  %v6020_v5 = vcombine.low %v15425_v45, %v15428_v44  ;;  %v10763_v25 = vcombine.high %v15425_v45, %v15428_v44  ;;  %v4895_v48 = vrot.slane %v4881_v13, %v13852_v30  ;;  %11605 = vmatprep.mubr.msk.f32.mxu0 %vm7040_vm0, %v2027_v11  ;;  %v17624_v11 = vld [vmem:[#allocation40_spill] sm:$0xff]  ;;  %v15493_v53 = vpop.permute.xlu1 %4730 }
 0x38d   : > { %v6036_v26 = vcombine.low %v15438_v61, %v15441_v41  ;;  %v10764_v24 = vcombine.high %v15438_v61, %v15441_v41  ;;  %v4896_v29 = vcombine.low %v4872_v38, %v4888_v60  ;;  %v4897_v47 = vcombine.high %v4872_v38, %v4888_v60 }
 0x38e   : > { %v4912_v54 = vcombine.low %v4879_v23, %v4895_v48  ;;  %v4913_v55 = vcombine.high %v4879_v23, %v4895_v48  ;;  %v5076_v21 = vrot.slane %v5068_v31, %v13852_v30  ;;  %v5083_v34 = vrot.slane %v5069_v22, %v13852_v30 }
 0x38f   : > { %11562 = vmatmul.mubr.msk.f32.gmra.mrb[26].mxu1 %vm7040_vm0, %v2094_v15  ;;  %v4904_v56 = vrot.slane %v4896_v29, %v13857_v35  ;;  %v4911_v12 = vrot.slane %v4897_v47, %v13857_v35  ;;  %v5000_v62 = vcombine.low %v17624_v11, %v4773_v16  ;;  %v5001_v32 = vcombine.high %v17624_v11, %v4773_v16  ;;  %v15497_v60 = vpop.permute.xlu0 %4728 }
 0x390   : > { %11606 = vmatmul.mubr.msk.f32.gmra.mrb[34].mxu0 %vm7040_vm0, %v2095_v28  ;;  %11564 = vmatprep.mubr.msk.f32.mxu1 %vm7040_vm0, %v2162_v9  ;;  %v4920_v15 = vrot.slane %v4912_v54, %v13857_v35  ;;  %v4927_v7 = vrot.slane %v4913_v55, %v13857_v35  ;;  %v5084_v49 = vcombine.low %v15339_v4, %v4823_v14  ;;  %v4779_v29 = vpop.permute.xlu1 %4778 }
 0x391   : > { %11608 = vmatprep.mubr.msk.f32.mxu0 %vm7040_vm0, %v2163_v3  ;;  %v5952_v16 = vcombine.low %v4904_v56, %v4911_v12  ;;  %v10761_v2 = vcombine.high %v4904_v56, %v4911_v12  ;;  %v5008_v42 = vrot.slane %v5000_v62, %v13852_v30  ;;  %v5015_v28 = vrot.slane %v5001_v32, %v13852_v30 }
 0x392   : > { %v5968_v9 = vcombine.low %v4920_v15, %v4927_v7  ;;  %v10762_v38 = vcombine.high %v4920_v15, %v4927_v7  ;;  %v5085_v23 = vcombine.high %v15339_v4, %v4823_v14  ;;  %v5092_v13 = vrot.slane %v5084_v49, %v13852_v30 }
 0x393   : > { %11565 = vmatmul.mubr.msk.f32.gmra.mrb[28].mxu1 %vm7040_vm0, %v2230_v39  ;;  %v5016_v19 = vcombine.low %v15352_v17, %v4821_v20  ;;  %v5017_v40 = vcombine.high %v15352_v17, %v4821_v20  ;;  %v15506_v3 = vrot.slane %v5952_v16, %v13852_v30  ;;  %v15509_v52 = vrot.slane %v10761_v2, %v13852_v30 }
 0x394   : > { %11609 = vmatmul.mubr.msk.f32.gmra.mrb[36].mxu0 %vm7040_vm0, %v2231_v59  ;;  %11567 = vmatprep.mubr.msk.f32.mxu1 %vm7040_vm0, %v2298_v63  ;;  %v5099_v4 = vrot.slane %v5085_v23, %v13852_v30  ;;  %v5100_v39 = vcombine.low %v5076_v21, %v5092_v13  ;;  %v5101_v17 = vcombine.high %v5076_v21, %v5092_v13  ;;  %v4777_v21 = vpop.permute.xlu0 %4776 }
 0x395   : > { %11611 = vmatprep.mubr.msk.f32.mxu0 %vm7040_vm0, %v2299_v57  ;;  %v5024_v31 = vrot.slane %v5016_v19, %v13852_v30  ;;  %v5031_v50 = vrot.slane %v5017_v40, %v13852_v30  ;;  %v15527_v0 = vrot.slane %v5968_v9, %v13852_v30  ;;  %v15530_v59 = vrot.slane %v10762_v38, %v13852_v30  ;;  %v4827_v19 = vpop.permute.xlu1 %4826  ;;  %v17626_v40 = vld [vmem:[#allocation90_spill] sm:$0xff] }
 0x396   : > { %v15533_v63 = vrot.slane %v5100_v39, %v13857_v35  ;;  %v15536_v22 = vrot.slane %v5101_v17, %v13857_v35  ;;  %v5116_v14 = vcombine.low %v5083_v34, %v5099_v4  ;;  %v5117_v8 = vcombine.high %v5083_v34, %v5099_v4 }
 0x397   : > { %11568 = vmatmul.mubr.msk.f32.gmra.mrb[30].mxu1 %vm7040_vm0, %v2366_v43  ;;  %v5032_v33 = vcombine.low %v5008_v42, %v5024_v31  ;;  %v5033_v57 = vcombine.high %v5008_v42, %v5024_v31  ;;  %v5048_v48 = vcombine.low %v5015_v28, %v5031_v50  ;;  %v5049_v20 = vcombine.high %v5015_v28, %v5031_v50 }
 0x398   : > { %11612 = vmatmul.mubr.msk.f32.gmra.mrb[38].mxu0 %vm7040_vm0, %v2367_v10  ;;  %v15547_v47 = vrot.slane %v5116_v14, %v13857_v35  ;;  %v15550_v54 = vrot.slane %v5117_v8, %v13857_v35  ;;  %v6156_v55 = vcombine.low %v15533_v63, %v15536_v22  ;;  %v10767_v43 = vcombine.high %v15533_v63, %v15536_v22 }
 0x399   : > { %v5040_v34 = vrot.slane %v5032_v33, %v13857_v35  ;;  %v5047_v56 = vrot.slane %v5033_v57, %v13857_v35  ;;  %v15559_v36 = vrot.slane %v5048_v48, %v13857_v35  ;;  %v15562_v51 = vrot.slane %v5049_v20, %v13857_v35 }
 0x39a   : > { %v6172_v10 = vcombine.low %v15547_v47, %v15550_v54  ;;  %v10768_v12 = vcombine.high %v15547_v47, %v15550_v54  ;;  %v5984_v11 = vcombine.low %v15506_v3, %v15509_v52  ;;  %v6000_v62 = vcombine.low %v15527_v0, %v15530_v59 }
 0x39b   : > { %v6088_v32 = vcombine.low %v5040_v34, %v5047_v56  ;;  %v10765_v15 = vcombine.high %v5040_v34, %v5047_v56  ;;  %v6104_v7 = vcombine.low %v15559_v36, %v15562_v51  ;;  %v10766_v49 = vcombine.high %v15559_v36, %v15562_v51 }
 0x39c   : > { %v5992_v16 = vrot.slane %v5984_v11, %v13857_v35  ;;  %v6008_v2 = vrot.slane %v6000_v62, %v13857_v35  ;;  %v15582_v42 = vrot.slane %v6020_v5, %v13852_v30  ;;  %v15588_v28 = vrot.slane %v10763_v25, %v13852_v30  ;;  %v17625_v5 = vld [vmem:[#allocation89_spill] sm:$0xff] }
 0x39d   : > { %v15594_v9 = vrot.slane %v6036_v26, %v13852_v30  ;;  %v15600_v38 = vrot.slane %v10764_v24, %v13852_v30  ;;  %v5204_v23 = vcombine.low %v17625_v5, %v4779_v29  ;;  %v5205_v13 = vcombine.high %v17625_v5, %v4779_v29  ;;  %v4825_v26 = vpop.permute.xlu0 %4824 }
 0x39e   : > { %v6016_v45 = vcombine.low %v5992_v16, %v6008_v2  ;;  %v6052_v44 = vcombine.low %v15582_v42, %v15588_v28  ;;  %v6017_v25 = vcombine.high %v5992_v16, %v6008_v2  ;;  %v5136_v4 = vcombine.low %v17626_v40, %v4777_v21 }
 0x39f   : > { %v6068_v39 = vcombine.low %v15594_v9, %v15600_v38  ;;  %v5212_v61 = vrot.slane %v5204_v23, %v13852_v30  ;;  %v5219_v41 = vrot.slane %v5205_v13, %v13852_v30  ;;  %v5137_v24 = vcombine.high %v17626_v40, %v4777_v21 }
 0x3a0   : > { %v6060_v17 = vrot.slane %v6052_v44, %v13857_v35  ;;  %v5144_v31 = vrot.slane %v5136_v4, %v13852_v30  ;;  %v5220_v50 = vcombine.low %v15493_v53, %v4827_v19  ;;  %v5221_v14 = vcombine.high %v15493_v53, %v4827_v19  ;;  %v4735_v23 = vpop.permute.xlu1 %4734 }
 0x3a1   : > { %v6076_v8 = vrot.slane %v6068_v39, %v13857_v35  ;;  %v5151_v33 = vrot.slane %v5137_v24, %v13852_v30  ;;  %v5152_v57 = vcombine.low %v15497_v60, %v4825_v26  ;;  %v5153_v48 = vcombine.high %v15497_v60, %v4825_v26 }
 0x3a2   : > { %v5228_v20 = vrot.slane %v5220_v50, %v13852_v30  ;;  %v5235_v29 = vrot.slane %v5221_v14, %v13852_v30  ;;  %v15623_v21 = vrot.slane %v6088_v32, %v13852_v30  ;;  %v15626_v34 = vrot.slane %v10765_v15, %v13852_v30  ;;  %v4733_v39 = vpop.permute.xlu0 %4732 }
 0x3a3   : > { %v6084_v56 = vcombine.low %v6060_v17, %v6076_v8  ;;  %v6085_v53 = vcombine.high %v6060_v17, %v6076_v8  ;;  %v5160_v11 = vrot.slane %v5152_v57, %v13852_v30  ;;  %v5167_v62 = vrot.slane %v5153_v48, %v13852_v30 }
 0x3a4   : > { %17627 = vst [vmem:[#allocation48_spill] sm:$0xff] %v15623_v21  ;;  %17628 = vst [vmem:[#allocation47_spill] sm:$0xff] %v15626_v34  ;;  %v5236_v16 = vcombine.low %v5212_v61, %v5228_v20  ;;  %v5237_v2 = vcombine.high %v5212_v61, %v5228_v20  ;;  %v5252_v5 = vcombine.low %v5219_v41, %v5235_v29  ;;  %v17629_v20 = vld [vmem:[#allocation30_spill] sm:$0xff] }
 0x3a5   : > { %v5253_v60 = vcombine.high %v5219_v41, %v5235_v29  ;;  %v12122_v13 = vpack.c.bf16 %v6084_v56, %v6016_v45  ;;  %v12154_v19 = vpack.c.bf16 %v6085_v53, %v6017_v25  ;;  %v5168_v44 = vcombine.low %v5144_v31, %v5160_v11 }
 0x3a6   : > { %v5169_v40 = vcombine.high %v5144_v31, %v5160_v11  ;;  %v15631_v32 = vrot.slane %v5236_v16, %v13857_v35  ;;  %v15634_v15 = vrot.slane %v5237_v2, %v13857_v35  ;;  %v15637_v4 = vrot.slane %v5252_v5, %v13857_v35  ;;  %v4783_v31 = vpop.permute.xlu1 %4782  ;;  %v4781_v53 = vpop.permute.xlu0 %4780  ;;  %v17631_v2 = vld [vmem:[#allocation49_spill] sm:$0xff] }
 0x3a7   : > { %v15640_v26 = vrot.slane %v5253_v60, %v13857_v35  ;;  %12123 = vmatprep.subr.bf16.mxu1 %v12122_v13  ;;  %12155 = vmatprep.subr.bf16.mxu0 %v12154_v19  ;;  %v5176_v45 = vrot.slane %v5168_v44, %v13857_v35  ;;  %v5184_v61 = vcombine.low %v5151_v33, %v5167_v62 }
 0x3a8   : > { %v5183_v25 = vrot.slane %v5169_v40, %v13857_v35  ;;  %12125 = vmatpush3.bf16.msra.mxu1 %v12122_v13  ;;  %12157 = vmatpush3.bf16.msra.mxu0 %v12154_v19  ;;  %v6292_v41 = vcombine.low %v15631_v32, %v15634_v15  ;;  %v10771_v24 = vcombine.high %v15631_v32, %v15634_v15 }
 0x3a9   : > { %v6308_v17 = vcombine.low %v15637_v4, %v15640_v26  ;;  %v5185_v14 = vcombine.high %v5151_v33, %v5167_v62  ;;  %v5192_v8 = vrot.slane %v5184_v61, %v13857_v35  ;;  %v5340_v29 = vcombine.low %v17629_v20, %v4783_v31 }
 0x3aa   : > { %v6224_v57 = vcombine.low %v5176_v45, %v5183_v25  ;;  %v10769_v48 = vcombine.high %v5176_v45, %v5183_v25  ;;  %v5341_v56 = vcombine.high %v17629_v20, %v4783_v31  ;;  %v15659_v11 = vrot.slane %v6104_v7, %v13852_v30  ;;  %v4831_v44 = vpop.permute.xlu1 %4830 }
 0x3ab   : > { %v5199_v16 = vrot.slane %v5185_v14, %v13857_v35  ;;  %v5272_v5 = vcombine.low %v17631_v2, %v4781_v53  ;;  %v5273_v33 = vcombine.high %v17631_v2, %v4781_v53  ;;  %v15668_v62 = vrot.slane %v10766_v49, %v13852_v30 }
 0x3ac   : > { %17630 = vst [vmem:[#allocation42_spill] sm:$0xff] %v15659_v11  ;;  %v5348_v60 = vrot.slane %v5340_v29, %v13852_v30  ;;  %v5355_v13 = vrot.slane %v5341_v56, %v13852_v30  ;;  %v6120_v7 = vcombine.low %v15623_v21, %v15626_v34  ;;  %v15678_v19 = vrot.slane %v6156_v55, %v13852_v30 }
 0x3ad   : > { %17632 = vst [vmem:[#allocation41_spill] sm:$0xff] %v15668_v62  ;;  %v6240_v40 = vcombine.low %v5192_v8, %v5199_v16  ;;  %v10770_v45 = vcombine.high %v5192_v8, %v5199_v16  ;;  %v5280_v36 = vrot.slane %v5272_v5, %v13852_v30  ;;  %v5287_v51 = vrot.slane %v5273_v33, %v13852_v30 }
 0x3ae   : > { %17633 = vst [vmem:[#allocation44_spill] sm:$0xff] %v15678_v19  ;;  %v6128_v49 = vrot.slane %v6120_v7, %v13857_v35  ;;  %v6136_v25 = vcombine.low %v15659_v11, %v15668_v62  ;;  %v15689_v61 = vrot.slane %v10767_v43, %v13852_v30  ;;  %v15695_v55 = vrot.slane %v6172_v10, %v13852_v30  ;;  %v4829_v43 = vpop.permute.xlu0 %4828 }
 0x3af   : > { %v15701_v31 = vrot.slane %v10768_v12, %v13852_v30  ;;  %v5356_v14 = vcombine.low %v4735_v23, %v4831_v44  ;;  %v5357_v8 = vcombine.high %v4735_v23, %v4831_v44  ;;  %v15704_v20 = vrot.slane %v6224_v57, %v13852_v30 }
 0x3b0   : > { %17634 = vst [vmem:[#allocation43_spill] sm:$0xff] %v15689_v61  ;;  %17635 = vst [vmem:[#allocation34_spill] sm:$0xff] %v15695_v55  ;;  %v6144_v63 = vrot.slane %v6136_v25, %v13857_v35  ;;  %v6188_v22 = vcombine.low %v15678_v19, %v15689_v61  ;;  %v15710_v10 = vrot.slane %v10769_v48, %v13852_v30 }
 0x3b1   : > { %17636 = vst [vmem:[#allocation59_spill] sm:$0xff] %v15701_v31  ;;  %17637 = vst [vmem:[#allocation36_spill] sm:$0xff] %v15704_v20  ;;  %v15713_v29 = vrot.slane %v6240_v40, %v13852_v30  ;;  %v6204_v47 = vcombine.low %v15695_v55, %v15701_v31  ;;  %v5364_v54 = vrot.slane %v5356_v14, %v13852_v30 }
 0x3b2   : > { %17638 = vst [vmem:[#allocation56_spill] sm:$0xff] %v15710_v10  ;;  %v5371_v12 = vrot.slane %v5357_v8, %v13852_v30  ;;  %v5288_v23 = vcombine.low %v4733_v39, %v4829_v43  ;;  %v6152_v57 = vcombine.low %v6128_v49, %v6144_v63  ;;  %v6196_v56 = vrot.slane %v6188_v22, %v13857_v35  ;;  %v4739_v22 = vpop.permute.xlu1 %4738 }
 0x3b3   : > { %17639 = vst [vmem:[#allocation55_spill] sm:$0xff] %v15713_v29  ;;  %v6153_v53 = vcombine.high %v6128_v49, %v6144_v63  ;;  %v5289_v16 = vcombine.high %v4733_v39, %v4829_v43  ;;  %v6212_v2 = vrot.slane %v6204_v47, %v13857_v35  ;;  %v5372_v48 = vcombine.low %v5348_v60, %v5364_v54 }
 0x3b4   : > { %v5373_v5 = vcombine.high %v5348_v60, %v5364_v54  ;;  %v5388_v33 = vcombine.low %v5355_v13, %v5371_v12  ;;  %v5389_v7 = vcombine.high %v5355_v13, %v5371_v12  ;;  %v5296_v44 = vrot.slane %v5288_v23, %v13852_v30 }
 0x3b5   : > { %v5303_v40 = vrot.slane %v5289_v16, %v13852_v30  ;;  %v15724_v25 = vrot.slane %v10770_v45, %v13852_v30  ;;  %v6220_v14 = vcombine.low %v6196_v56, %v6212_v2  ;;  %v6221_v8 = vcombine.high %v6196_v56, %v6212_v2 }
 0x3b6   : > { %v15727_v50 = vrot.slane %v5372_v48, %v13857_v35  ;;  %v15730_v39 = vrot.slane %v5373_v5, %v13857_v35  ;;  %v15733_v49 = vrot.slane %v5388_v33, %v13857_v35  ;;  %v15736_v60 = vrot.slane %v5389_v7, %v13857_v35 }
 0x3b7   : > { %17640 = vst [vmem:[#allocation58_spill] sm:$0xff] %v15724_v25  ;;  %v5304_v13 = vcombine.low %v5280_v36, %v5296_v44  ;;  %v5305_v63 = vcombine.high %v5280_v36, %v5296_v44  ;;  %v12126_v43 = vpack.c.bf16 %v6220_v14, %v6152_v57  ;;  %v12158_v45 = vpack.c.bf16 %v6221_v8, %v6153_v53  ;;  %v4737_v53 = vpop.permute.xlu0 %4736  ;;  %v4787_v33 = vpop.permute.xlu1 %4786  ;;  %v17641_v8 = vld [vmem:[#allocation50_spill] sm:$0xff] }
 0x3b8   : > { %v5320_v36 = vcombine.low %v5287_v51, %v5303_v40  ;;  %v5321_v57 = vcombine.high %v5287_v51, %v5303_v40  ;;  %v6256_v2 = vcombine.low %v15704_v20, %v15710_v10  ;;  %v6272_v7 = vcombine.low %v15713_v29, %v15724_v25 }
 0x3b9   : > { %v5312_v56 = vrot.slane %v5304_v13, %v13857_v35  ;;  %v5319_v16 = vrot.slane %v5305_v63, %v13857_v35  ;;  %12127 = vmatprep.subr.bf16.mxu1 %v12126_v43  ;;  %12159 = vmatprep.subr.bf16.mxu0 %v12158_v45  ;;  %v5476_v13 = vcombine.low %v17641_v8, %v4787_v33 }
 0x3ba   : > { %12129 = vmatpush3.bf16.msra.mxu1 %v12126_v43  ;;  %12161 = vmatpush3.bf16.msra.mxu0 %v12158_v45  ;;  %v5328_v44 = vrot.slane %v5320_v36, %v13857_v35  ;;  %v5335_v14 = vrot.slane %v5321_v57, %v13857_v35  ;;  %v5477_v51 = vcombine.high %v17641_v8, %v4787_v33 }
 0x3bb   : > { %v6360_v48 = vcombine.low %v5312_v56, %v5319_v16  ;;  %v10773_v5 = vcombine.high %v5312_v56, %v5319_v16  ;;  %v6264_v40 = vrot.slane %v6256_v2, %v13857_v35  ;;  %v6280_v63 = vrot.slane %v6272_v7, %v13857_v35  ;;  %v4785_v2 = vpop.permute.xlu0 %4784  ;;  %v4835_v32 = vpop.permute.xlu1 %4834 }
 0x3bc   : > { %v15762_v43 = vrot.slane %v6292_v41, %v13852_v30  ;;  %v15768_v45 = vrot.slane %v10771_v24, %v13852_v30  ;;  %v6376_v56 = vcombine.low %v5328_v44, %v5335_v14  ;;  %v10774_v16 = vcombine.high %v5328_v44, %v5335_v14 }
 0x3bd   : > { %v5484_v36 = vrot.slane %v5476_v13, %v13852_v30  ;;  %v5491_v57 = vrot.slane %v5477_v51, %v13852_v30  ;;  %v5408_v33 = vcombine.low %v14836_v1, %v4785_v2  ;;  %v5409_v7 = vcombine.high %v14836_v1, %v4785_v2 }
 0x3be   : > { %v6288_v8 = vcombine.low %v6264_v40, %v6280_v63  ;;  %v15778_v41 = vrot.slane %v6308_v17, %v13852_v30  ;;  %v17642_v15 = vcombine.high %v15637_v4, %v15640_v26  ;;  %v6324_v44 = vcombine.low %v15762_v43, %v15768_v45 }
 0x3bf   : > { %v6289_v14 = vcombine.high %v6264_v40, %v6280_v63  ;;  %v5492_v13 = vcombine.low %v4739_v22, %v4835_v32  ;;  %v5416_v1 = vrot.slane %v5408_v33, %v13852_v30  ;;  %v5423_v51 = vrot.slane %v5409_v7, %v13852_v30 }
 0x3c0   : > { %v15784_v24 = vrot.slane %v17642_v15, %v13852_v30  ;;  %v5493_v2 = vcombine.high %v4739_v22, %v4835_v32  ;;  %v15791_v17 = vrot.slane %v6360_v48, %v13852_v30  ;;  %v6332_v23 = vrot.slane %v6324_v44, %v13857_v35  ;;  %v4833_v15 = vpop.permute.xlu0 %4832 }
 0x3c1   : > { %v5500_v26 = vrot.slane %v5492_v13, %v13852_v30  ;;  %v15798_v12 = vrot.slane %v10773_v5, %v13852_v30  ;;  %v5424_v63 = vcombine.low %v4737_v53, %v4833_v15  ;;  %v5425_v33 = vcombine.high %v4737_v53, %v4833_v15 }
 0x3c2   : > { %v6340_v4 = vcombine.low %v15778_v41, %v15784_v24  ;;  %v5507_v40 = vrot.slane %v5493_v2, %v13852_v30  ;;  %v15802_v22 = vrot.slane %v6376_v56, %v13852_v30  ;;  %v15806_v44 = vrot.slane %v10774_v16, %v13852_v30 }
 0x3c3   : > { %v5508_v7 = vcombine.low %v5484_v36, %v5500_v26  ;;  %v5509_v32 = vcombine.high %v5484_v36, %v5500_v26  ;;  %v5432_v47 = vrot.slane %v5424_v63, %v13852_v30  ;;  %v5439_v5 = vrot.slane %v5425_v33, %v13852_v30 }
 0x3c4   : > { %v6348_v48 = vrot.slane %v6340_v4, %v13857_v35  ;;  %v5524_v54 = vcombine.low %v5491_v57, %v5507_v40  ;;  %v5525_v13 = vcombine.high %v5491_v57, %v5507_v40 }
 0x3c5   : > { %v5516_v53 = vrot.slane %v5508_v7, %v13857_v35  ;;  %v5523_v56 = vrot.slane %v5509_v32, %v13857_v35  ;;  %v5440_v36 = vcombine.low %v5416_v1, %v5432_v47  ;;  %v5441_v26 = vcombine.high %v5416_v1, %v5432_v47 }
 0x3c6   : > { %v6356_v29 = vcombine.low %v6332_v23, %v6348_v48  ;;  %v6357_v2 = vcombine.high %v6332_v23, %v6348_v48  ;;  %v5532_v15 = vrot.slane %v5524_v54, %v13857_v35  ;;  %v5539_v4 = vrot.slane %v5525_v13, %v13857_v35 }
 0x3c7   : > { %v6564_v20 = vcombine.low %v5516_v53, %v5523_v56  ;;  %v10779_v57 = vcombine.high %v5516_v53, %v5523_v56  ;;  %v5448_v33 = vrot.slane %v5440_v36, %v13857_v35  ;;  %v5455_v23 = vrot.slane %v5441_v26, %v13857_v35 }
 0x3c8   : > { %v12130_v16 = vpack.c.bf16 %v6356_v29, %v6288_v8  ;;  %v12162_v25 = vpack.c.bf16 %v6357_v2, %v6289_v14  ;;  %v6580_v40 = vcombine.low %v5532_v15, %v5539_v4  ;;  %v10780_v63 = vcombine.high %v5532_v15, %v5539_v4 }
 0x3c9   : > { %v5456_v48 = vcombine.low %v5423_v51, %v5439_v5  ;;  %v5457_v7 = vcombine.high %v5423_v51, %v5439_v5  ;;  %v6392_v54 = vcombine.low %v15791_v17, %v15798_v12  ;;  %v6496_v47 = vcombine.low %v5448_v33, %v5455_v23 }
 0x3ca   : > { %12131 = vmatprep.subr.bf16.mxu1 %v12130_v16  ;;  %12163 = vmatprep.subr.bf16.mxu0 %v12162_v25  ;;  %v10777_v29 = vcombine.high %v5448_v33, %v5455_v23  ;;  %v6408_v8 = vcombine.low %v15802_v22, %v15806_v44  ;;  %v17643_v51 = vcombine.low %v15727_v50, %v15730_v39 }
 0x3cb   : > { %12133 = vmatpush3.bf16.msra.mxu1 %v12130_v16  ;;  %12165 = vmatpush3.bf16.msra.mxu0 %v12162_v25  ;;  %v5464_v14 = vrot.slane %v5456_v48, %v13857_v35  ;;  %v5471_v1 = vrot.slane %v5457_v7, %v13857_v35  ;;  %v6400_v32 = vrot.slane %v6392_v54, %v13857_v35  ;;  %v4743_v16 = vpop.permute.xlu1 %4742 }
 0x3cc   : > { %v15827_v13 = vrot.slane %v17643_v51, %v13852_v30  ;;  %v6416_v5 = vrot.slane %v6408_v8, %v13857_v35  ;;  %v17644_v25 = vcombine.high %v15727_v50, %v15730_v39  ;;  %v17645_v53 = vcombine.low %v15733_v49, %v15736_v60  ;;  %v4741_v39 = vpop.permute.xlu0 %4740 }
 0x3cd   : > { %v17646_v15 = vcombine.high %v15733_v49, %v15736_v60  ;;  %v6512_v36 = vcombine.low %v5464_v14, %v5471_v1  ;;  %v10778_v26 = vcombine.high %v5464_v14, %v5471_v1  ;;  %v15849_v33 = vrot.slane %v6496_v47, %v13852_v30 }
 0x3ce   : > { %v15834_v2 = vrot.slane %v17644_v25, %v13852_v30  ;;  %v15840_v56 = vrot.slane %v17645_v53, %v13852_v30  ;;  %v15852_v50 = vrot.slane %v10777_v29, %v13852_v30  ;;  %v6424_v23 = vcombine.low %v6400_v32, %v6416_v5 }
 0x3cf   : > { %v15846_v4 = vrot.slane %v17646_v15, %v13852_v30  ;;  %v6425_v49 = vcombine.high %v6400_v32, %v6416_v5  ;;  %v15859_v60 = vrot.slane %v6512_v36, %v13852_v30  ;;  %v15862_v54 = vrot.slane %v10778_v26, %v13852_v30 }
 0x3d0   : > { %v6460_v48 = vcombine.low %v15827_v13, %v15834_v2  ;;  %v6528_v47 = vcombine.low %v15849_v33, %v15852_v50  ;;  %v15867_v29 = vrot.slane %v6564_v20, %v13852_v30  ;;  %v15872_v1 = vrot.slane %v10779_v57, %v13852_v30 }
 0x3d1   : > { %v6476_v7 = vcombine.low %v15840_v56, %v15846_v4  ;;  %v15875_v32 = vrot.slane %v6580_v40, %v13852_v30  ;;  %v6544_v5 = vcombine.low %v15859_v60, %v15862_v54  ;;  %v15881_v25 = vrot.slane %v10780_v63, %v13852_v30  ;;  %v4791_v36 = vpop.permute.xlu1 %4790 }
 0x3d2   : > { %v6468_v8 = vrot.slane %v6460_v48, %v13857_v35  ;;  %v6536_v51 = vrot.slane %v6528_v47, %v13857_v35  ;;  %v5985_v20 = vcombine.high %v15506_v3, %v15509_v52  ;;  %v6596_v57 = vcombine.low %v15867_v29, %v15872_v1  ;;  %v4789_v52 = vpop.permute.xlu0 %4788 }
 0x3d3   : > { %v6484_v14 = vrot.slane %v6476_v7, %v13857_v35  ;;  %v6001_v40 = vcombine.high %v15527_v0, %v15530_v59  ;;  %v6552_v26 = vrot.slane %v6544_v5, %v13857_v35  ;;  %v6612_v48 = vcombine.low %v15875_v32, %v15881_v25 }
 0x3d4   : > { %v5612_v7 = vcombine.low %v15006_v27, %v4791_v36  ;;  %v5613_v3 = vcombine.high %v15006_v27, %v4791_v36  ;;  %v5545_v0 = vcombine.high %v15010_v58, %v4789_v52  ;;  %v6604_v59 = vrot.slane %v6596_v57, %v13857_v35 }
 0x3d5   : > { %v6492_v53 = vcombine.low %v6468_v8, %v6484_v14  ;;  %v6493_v15 = vcombine.high %v6468_v8, %v6484_v14  ;;  %v5544_v14 = vcombine.low %v15010_v58, %v4789_v52  ;;  %v15900_v5 = vrot.slane %v5985_v20, %v13857_v35 }
 0x3d6   : > { %v5620_v10 = vrot.slane %v5612_v7, %v13852_v30  ;;  %v6560_v63 = vcombine.low %v6536_v51, %v6552_v26  ;;  %v6620_v55 = vrot.slane %v6612_v48, %v13857_v35  ;;  %v5627_v27 = vrot.slane %v5613_v3, %v13852_v30 }
 0x3d7   : > { %v12134_v47 = vpack.c.bf16 %v6492_v53, %v6424_v23  ;;  %v12166_v8 = vpack.c.bf16 %v6493_v15, %v6425_v49  ;;  %v5552_v23 = vrot.slane %v5544_v14, %v13852_v30  ;;  %v4839_v49 = vpop.permute.xlu1 %4838  ;;  %v6561_v58 = vcombine.high %v6536_v51, %v6552_v26  ;;  %v4837_v57 = vpop.permute.xlu0 %4836 }
 0x3d8   : > { %v5628_v53 = vcombine.low %v4743_v16, %v4839_v49  ;;  %v5629_v15 = vcombine.high %v4743_v16, %v4839_v49  ;;  %v6628_v20 = vcombine.low %v6604_v59, %v6620_v55  ;;  %v6629_v36 = vcombine.high %v6604_v59, %v6620_v55 }
 0x3d9   : > { %12135 = vmatprep.subr.bf16.mxu1 %v12134_v47  ;;  %12167 = vmatprep.subr.bf16.mxu0 %v12166_v8  ;;  %v5559_v7 = vrot.slane %v5545_v0, %v13852_v30  ;;  %v5560_v52 = vcombine.low %v4741_v39, %v4837_v57  ;;  %v5561_v31 = vcombine.high %v4741_v39, %v4837_v57 }
 0x3da   : > { %12137 = vmatpush3.bf16.msra.mxu1 %v12134_v47  ;;  %12169 = vmatpush3.bf16.msra.mxu0 %v12166_v8  ;;  %v15908_v19 = vrot.slane %v6001_v40, %v13857_v35  ;;  %v5636_v48 = vrot.slane %v5628_v53, %v13852_v30  ;;  %v5643_v3 = vrot.slane %v5629_v15, %v13852_v30 }
 0x3db   : > { %v12138_v47 = vpack.c.bf16 %v6628_v20, %v6560_v63  ;;  %v12170_v8 = vpack.c.bf16 %v6629_v36, %v6561_v58  ;;  %v5568_v51 = vrot.slane %v5560_v52, %v13852_v30  ;;  %v5575_v16 = vrot.slane %v5561_v31, %v13852_v30  ;;  %v4747_v26 = vpop.permute.xlu1 %4746 }
 0x3dc   : > { %v5644_v14 = vcombine.low %v5620_v10, %v5636_v48  ;;  %v5645_v40 = vcombine.high %v5620_v10, %v5636_v48  ;;  %v5660_v0 = vcombine.low %v5627_v27, %v5643_v3  ;;  %v5661_v59 = vcombine.high %v5627_v27, %v5643_v3 }
 0x3dd   : > { %12139 = vmatprep.subr.bf16.mxu1 %v12138_v47  ;;  %v5576_v49 = vcombine.low %v5552_v23, %v5568_v51  ;;  %v5577_v53 = vcombine.high %v5552_v23, %v5568_v51  ;;  %v5592_v63 = vcombine.low %v5559_v7, %v5575_v16  ;;  %v5593_v58 = vcombine.high %v5559_v7, %v5575_v16 }
 0x3de   : > { %12171 = vmatprep.subr.bf16.mxu0 %v12170_v8  ;;  %v5652_v15 = vrot.slane %v5644_v14, %v13857_v35  ;;  %v5659_v31 = vrot.slane %v5645_v40, %v13857_v35  ;;  %v5668_v57 = vrot.slane %v5660_v0, %v13857_v35  ;;  %v5675_v20 = vrot.slane %v5661_v59, %v13857_v35  ;;  %v4745_v52 = vpop.permute.xlu0 %4744 }
 0x3df   : > { %12141 = vmatpush3.bf16.msra.mxu1 %v12138_v47  ;;  %v5584_v36 = vrot.slane %v5576_v49, %v13857_v35  ;;  %v5591_v10 = vrot.slane %v5577_v53, %v13857_v35  ;;  %v5600_v27 = vrot.slane %v5592_v63, %v13857_v35  ;;  %v5607_v23 = vrot.slane %v5593_v58, %v13857_v35  ;;  %v4795_v3 = vpop.permute.xlu1 %4794 }
 0x3e0   : > { %12173 = vmatpush3.bf16.msra.mxu0 %v12170_v8  ;;  %v6700_v7 = vcombine.low %v5652_v15, %v5659_v31  ;;  %v10783_v48 = vcombine.high %v5652_v15, %v5659_v31  ;;  %v6716_v0 = vcombine.low %v5668_v57, %v5675_v20  ;;  %v10784_v59 = vcombine.high %v5668_v57, %v5675_v20 }
 0x3e1   : > { %v6632_v51 = vcombine.low %v5584_v36, %v5591_v10  ;;  %v10781_v16 = vcombine.high %v5584_v36, %v5591_v10  ;;  %v6648_v14 = vcombine.low %v5600_v27, %v5607_v23  ;;  %v10782_v40 = vcombine.high %v5600_v27, %v5607_v23 }
 0x3e2   : > { %v5748_v47 = vcombine.low %v15118_v6, %v4795_v3  ;;  %v5749_v49 = vcombine.high %v15118_v6, %v4795_v3  ;;  %v4793_v57 = vpop.permute.xlu0 %4792  ;;  %v15943_v6 = vrot.slane %v6700_v7, %v13852_v30  ;;  %v15946_v36 = vrot.slane %v10783_v48, %v13852_v30 }
 0x3e3   : > { %v15929_v53 = vrot.slane %v6632_v51, %v13852_v30  ;;  %v15932_v63 = vrot.slane %v10781_v16, %v13852_v30  ;;  %v15935_v8 = vrot.slane %v6648_v14, %v13852_v30  ;;  %v15938_v58 = vrot.slane %v10782_v40, %v13852_v30 }
 0x3e4   : > { %v5756_v15 = vrot.slane %v5748_v47, %v13852_v30  ;;  %v5763_v31 = vrot.slane %v5749_v49, %v13852_v30  ;;  %v4843_v20 = vpop.permute.xlu1 %4842  ;;  %v5680_v51 = vcombine.low %v15131_v37, %v4793_v57  ;;  %v5681_v16 = vcombine.high %v15131_v37, %v4793_v57 }
 0x3e5   : > { %v5764_v10 = vcombine.low %v4747_v26, %v4843_v20  ;;  %v5765_v27 = vcombine.high %v4747_v26, %v4843_v20  ;;  %v6664_v23 = vcombine.low %v15929_v53, %v15932_v63  ;;  %v6680_v3 = vcombine.low %v15935_v8, %v15938_v58 }
 0x3e6   : > { %v15955_v14 = vrot.slane %v6716_v0, %v13852_v30  ;;  %v15958_v7 = vrot.slane %v10784_v59, %v13852_v30  ;;  %v6732_v49 = vcombine.low %v15943_v6, %v15946_v36 }
 0x3e7   : > { %v5772_v48 = vrot.slane %v5764_v10, %v13852_v30  ;;  %v5779_v26 = vrot.slane %v5765_v27, %v13852_v30  ;;  %v6672_v40 = vrot.slane %v6664_v23, %v13857_v35  ;;  %v6688_v47 = vrot.slane %v6680_v3, %v13857_v35  ;;  %v4841_v23 = vpop.permute.xlu0 %4840 }
 0x3e8   : > { %v6748_v37 = vcombine.low %v15955_v14, %v15958_v7  ;;  %v5688_v10 = vrot.slane %v5680_v51, %v13852_v30  ;;  %v5695_v27 = vrot.slane %v5681_v16, %v13852_v30  ;;  %v6740_v3 = vrot.slane %v6732_v49, %v13857_v35 }
 0x3e9   : > { %v5780_v57 = vcombine.low %v5756_v15, %v5772_v48  ;;  %v5781_v59 = vcombine.high %v5756_v15, %v5772_v48  ;;  %v5796_v20 = vcombine.low %v5763_v31, %v5779_v26  ;;  %v5797_v55 = vcombine.high %v5763_v31, %v5779_v26 }
 0x3ea   : > { %v6756_v39 = vrot.slane %v6748_v37, %v13857_v35  ;;  %v5696_v15 = vcombine.low %v4745_v52, %v4841_v23  ;;  %v5697_v48 = vcombine.high %v4745_v52, %v4841_v23  ;;  %v6696_v31 = vcombine.low %v6672_v40, %v6688_v47 }
 0x3eb   : > { %v5788_v61 = vrot.slane %v5780_v57, %v13857_v35  ;;  %v5795_v11 = vrot.slane %v5781_v59, %v13857_v35  ;;  %v5804_v62 = vrot.slane %v5796_v20, %v13857_v35  ;;  %v5811_v0 = vrot.slane %v5797_v55, %v13857_v35 }
 0x3ec   : > { %v6697_v26 = vcombine.high %v6672_v40, %v6688_v47  ;;  %v5704_v49 = vrot.slane %v5696_v15, %v13852_v30  ;;  %v5711_v37 = vrot.slane %v5697_v48, %v13852_v30  ;;  %v17647_v57 = vcombine.high %v15582_v42, %v15588_v28 }
 0x3ed   : > { %v6836_v51 = vcombine.low %v5788_v61, %v5795_v11  ;;  %v10787_v21 = vcombine.high %v5788_v61, %v5795_v11  ;;  %v6852_v16 = vcombine.low %v5804_v62, %v5811_v0  ;;  %v10788_v34 = vcombine.high %v5804_v62, %v5811_v0 }
 0x3ee   : > { %v6067_v59 = vrot.slane %v17647_v57, %v13857_v35  ;;  %v17648_v55 = vcombine.high %v15594_v9, %v15600_v38  ;;  %v6764_v20 = vcombine.low %v6740_v3, %v6756_v39  ;;  %v6765_v40 = vcombine.high %v6740_v3, %v6756_v39 }
 0x3ef   : > { %v15989_v11 = vrot.slane %v6836_v51, %v13852_v30  ;;  %v15992_v62 = vrot.slane %v10787_v21, %v13852_v30  ;;  %v5712_v61 = vcombine.low %v5688_v10, %v5704_v49  ;;  %v5713_v47 = vcombine.high %v5688_v10, %v5704_v49 }
 0x3f0   : > { %v6083_v52 = vrot.slane %v17648_v55, %v13857_v35  ;;  %v5728_v0 = vcombine.low %v5695_v27, %v5711_v37  ;;  %v5729_v23 = vcombine.high %v5695_v27, %v5711_v37  ;;  %v12142_v15 = vpack.c.bf16 %v6764_v20, %v6696_v31 }
 0x3f1   : > { %v12174_v42 = vpack.c.bf16 %v6765_v40, %v6697_v26  ;;  %v15995_v28 = vrot.slane %v6852_v16, %v13852_v30  ;;  %v15998_v9 = vrot.slane %v10788_v34, %v13852_v30  ;;  %v5720_v38 = vrot.slane %v5712_v61, %v13857_v35 }
 0x3f2   : > { %v5727_v39 = vrot.slane %v5713_v47, %v13857_v35  ;;  %v5736_v3 = vrot.slane %v5728_v0, %v13857_v35  ;;  %v5743_v21 = vrot.slane %v5729_v23, %v13857_v35  ;;  %12143 = vmatprep.subr.bf16.mxu1 %v12142_v15  ;;  %v6868_v10 = vcombine.low %v15989_v11, %v15992_v62 }
 0x3f3   : > { %12175 = vmatprep.subr.bf16.mxu0 %v12174_v42  ;;  %v6884_v27 = vcombine.low %v15995_v28, %v15998_v9  ;;  %v6086_v48 = vcombine.low %v6067_v59, %v6083_v52  ;;  %12145 = vmatpush3.bf16.msra.mxu1 %v12142_v15  ;;  %v17649_v47 = vcombine.low %v15900_v5, %v15908_v19 }
 0x3f4   : > { %v6768_v31 = vcombine.low %v5720_v38, %v5727_v39  ;;  %v10785_v34 = vcombine.high %v5720_v38, %v5727_v39  ;;  %v6784_v26 = vcombine.low %v5736_v3, %v5743_v21  ;;  %v10786_v51 = vcombine.high %v5736_v3, %v5743_v21  ;;  %12177 = vmatpush3.bf16.msra.mxu0 %v12174_v42 }
 0x3f5   : > { %v6876_v16 = vrot.slane %v6868_v10, %v13857_v35  ;;  %v6892_v49 = vrot.slane %v6884_v27, %v13857_v35  ;;  %v16029_v0 = vpack.c.bf16 %v6086_v48, %v17649_v47  ;;  %v6087_v23 = vcombine.high %v6067_v59, %v6083_v52 }
 0x3f6   : > { %v16011_v37 = vrot.slane %v6768_v31, %v13852_v30  ;;  %v16014_v57 = vrot.slane %v10785_v34, %v13852_v30  ;;  %v16017_v55 = vrot.slane %v6784_v26, %v13852_v30  ;;  %v16020_v20 = vrot.slane %v10786_v51, %v13852_v30 }
 0x3f7   : > { %v6900_v15 = vcombine.low %v6876_v16, %v6892_v49  ;;  %v6901_v39 = vcombine.high %v6876_v16, %v6892_v49  ;;  %v17650_v3 = vcombine.high %v15900_v5, %v15908_v19  ;;  %v6325_v48 = vcombine.high %v15762_v43, %v15768_v45 }
 0x3f8   : > { %v6800_v40 = vcombine.low %v16011_v37, %v16014_v57  ;;  %v6816_v61 = vcombine.low %v16017_v55, %v16020_v20  ;;  %v6341_v59 = vcombine.high %v15778_v41, %v15784_v24  ;;  %v6393_v52 = vcombine.high %v15791_v17, %v15798_v12 }
 0x3f9   : > { %v16036_v21 = vpack.c.bf16 %v6087_v23, %v17650_v3  ;;  %v16045_v26 = vrot.slane %v6325_v48, %v13857_v35  ;;  %v6409_v43 = vcombine.high %v15802_v22, %v15806_v44  ;;  %v6461_v45 = vcombine.high %v15827_v13, %v15834_v2 }
 0x3fa   : > { %v6808_v42 = vrot.slane %v6800_v40, %v13857_v35  ;;  %v6824_v38 = vrot.slane %v6816_v61, %v13857_v35  ;;  %v16048_v19 = vrot.slane %v6341_v59, %v13857_v35  ;;  %v6407_v5 = vrot.slane %v6393_v52, %v13857_v35 }
 0x3fb   : > { %v6477_v12 = vcombine.high %v15840_v56, %v15846_v4  ;;  %v6529_v41 = vcombine.high %v15849_v33, %v15852_v50  ;;  %v6545_v24 = vcombine.high %v15859_v60, %v15862_v54  ;;  %v6423_v22 = vrot.slane %v6409_v43, %v13857_v35 }
 0x3fc   : > { %v6832_v10 = vcombine.low %v6808_v42, %v6824_v38  ;;  %v6833_v27 = vcombine.high %v6808_v42, %v6824_v38  ;;  %v6597_v44 = vcombine.high %v15867_v29, %v15872_v1  ;;  %v6475_v13 = vrot.slane %v6461_v45, %v13857_v35 }
 0x3fd   : > { %v6491_v2 = vrot.slane %v6477_v12, %v13857_v35  ;;  %v6543_v56 = vrot.slane %v6529_v41, %v13857_v35  ;;  %v6559_v4 = vrot.slane %v6545_v24, %v13857_v35  ;;  %v6426_v33 = vcombine.low %v6407_v5, %v6423_v22 }
 0x3fe   : > { %v12146_v31 = vpack.c.bf16 %v6900_v15, %v6832_v10  ;;  %v12178_v34 = vpack.c.bf16 %v6901_v39, %v6833_v27  ;;  %v6427_v50 = vcombine.high %v6407_v5, %v6423_v22  ;;  %v6611_v49 = vrot.slane %v6597_v44, %v13857_v35 }
 0x3ff   : > { %v6494_v60 = vcombine.low %v6475_v13, %v6491_v2  ;;  %v6495_v54 = vcombine.high %v6475_v13, %v6491_v2  ;;  %v6562_v16 = vcombine.low %v6543_v56, %v6559_v4  ;;  %v6613_v40 = vcombine.high %v15875_v32, %v15881_v25 }
 0x400   : > { %12147 = vmatprep.subr.bf16.mxu1 %v12146_v31  ;;  %12179 = vmatprep.subr.bf16.mxu0 %v12178_v34  ;;  %v6563_v61 = vcombine.high %v6543_v56, %v6559_v4  ;;  %v6665_v29 = vcombine.high %v15929_v53, %v15932_v63  ;;  %v6681_v1 = vcombine.high %v15935_v8, %v15938_v58 }
 0x401   : > { %12149 = vmatpush3.bf16.msra.mxu1 %v12146_v31  ;;  %12181 = vmatpush3.bf16.msra.mxu0 %v12178_v34  ;;  %v16079_v47 = vpack.c.bf16 %v6494_v60, %v6426_v33  ;;  %v16081_v23 = vpack.c.bf16 %v6495_v54, %v6427_v50  ;;  %v6733_v15 = vcombine.high %v15943_v6, %v15946_v36 }
 0x402   : > { %v6749_v42 = vcombine.high %v15955_v14, %v15958_v7  ;;  %v6627_v38 = vrot.slane %v6613_v40, %v13857_v35  ;;  %v6679_v32 = vrot.slane %v6665_v29, %v13857_v35  ;;  %v6695_v25 = vrot.slane %v6681_v1, %v13857_v35 }
 0x403   : > { %v6801_v53 = vcombine.high %v16011_v37, %v16014_v57  ;;  %v6747_v63 = vrot.slane %v6733_v15, %v13857_v35  ;;  %v6817_v58 = vcombine.high %v16017_v55, %v16020_v20  ;;  %v6869_v6 = vcombine.high %v15989_v11, %v15992_v62 }
 0x404   : > { %v6763_v8 = vrot.slane %v6749_v42, %v13857_v35  ;;  %v6630_v36 = vcombine.low %v6611_v49, %v6627_v38  ;;  %v6631_v14 = vcombine.high %v6611_v49, %v6627_v38  ;;  %v6698_v7 = vcombine.low %v6679_v32, %v6695_v25 }
 0x405   : > { %v6699_v39 = vcombine.high %v6679_v32, %v6695_v25  ;;  %v6815_v27 = vrot.slane %v6801_v53, %v13857_v35  ;;  %v6831_v37 = vrot.slane %v6817_v58, %v13857_v35  ;;  %v6883_v34 = vrot.slane %v6869_v6, %v13857_v35 }
 0x406   : > { %v6766_v3 = vcombine.low %v6747_v63, %v6763_v8  ;;  %v6767_v10 = vcombine.high %v6747_v63, %v6763_v8  ;;  %v16100_v57 = vpack.c.bf16 %v6630_v36, %v6562_v16  ;;  %v16102_v31 = vpack.c.bf16 %v6631_v14, %v6563_v61 }
 0x407   : > { %v6885_v55 = vcombine.high %v15995_v28, %v15998_v9  ;;  %v6834_v20 = vcombine.low %v6815_v27, %v6831_v37  ;;  %v6835_v48 = vcombine.high %v6815_v27, %v6831_v37 }
 0x408   : > { %v16107_v11 = vpack.c.bf16 %v6766_v3, %v6698_v7  ;;  %v16109_v62 = vpack.c.bf16 %v6767_v10, %v6699_v39 }
 0x409   : > { %v6899_v5 = vrot.slane %v6885_v55, %v13857_v35 }
 0x40a   : > { %17651 = vst [vmem:[#allocation57_spill] sm:$0xff] %v16107_v11  ;;  %17652 = vst [vmem:[#allocation52_spill] sm:$0xff] %v16109_v62 }
 0x40b   : > { %v6902_v24 = vcombine.low %v6883_v34, %v6899_v5  ;;  %v6903_v22 = vcombine.high %v6883_v34, %v6899_v5 }
 0x40d   : > { %v11472_v59 = vpop.f32.mrb[16].mxu1  ;;  %v11516_v52 = vpop.f32.mrb[24].mxu0  ;;  %v16118_v28 = vpack.c.bf16 %v6902_v24, %v6834_v20  ;;  %v16120_v9 = vpack.c.bf16 %v6903_v22, %v6835_v48 }
 0x40e   : > { %v16112_v43 = vmul.f32 0.17677669, %v11472_v59  ;;  %v7179_v45 = vpop.f32.mrb[17].mxu1  ;;  %v7356_v12 = vpop.f32.mrb[25].mxu0  ;;  %v16122_v44 = vmul.f32 0.17677669, %v11516_v52 }
 0x40f   : > { %v16114_v41 = vmul.f32 0.17677669, %v7356_v12  ;;  %17653 = vst [vmem:[#allocation51_spill] sm:$0xff] %v16118_v28  ;;  %17654 = vst [vmem:[#allocation54_spill] sm:$0xff] %v16120_v9  ;;  %v16125_v13 = vmul.f32 0.17677669, %v7179_v45 }
 0x410   : > { %7783 = vmax.xlane.f32.xlu0 %v16112_v43 }
 0x411   : > { %7797 = vmax.xlane.f32.xlu1 %v16114_v41 }
 0x414   : > { %7799 = vmax.xlane.f32.xlu0 %v16122_v44 }
 0x418   : > { %7781 = vmax.xlane.f32.xlu0 %v16125_v13 }
 0x426   : > { %v11475_v2 = vpop.f32.mrb[18].mxu1  ;;  %v11519_v56 = vpop.f32.mrb[26].mxu0 }
 0x427   : > { %v16128_v4 = vmul.f32 0.17677669, %v11475_v2  ;;  %v16130_v33 = vmul.f32 0.17677669, %v11519_v56  ;;  %v7189_v50 = vpop.f32.mrb[19].mxu1  ;;  %v7366_v60 = vpop.f32.mrb[27].mxu0 }
 0x428   : > { %v16134_v54 = vmul.f32 0.17677669, %v7189_v50  ;;  %v16136_v16 = vmul.f32 0.17677669, %v7366_v60 }
 0x429   : > { %7803 = vmax.xlane.f32.xlu0 %v16130_v33  ;;  %7787 = vmax.xlane.f32.xlu1 %v16128_v4 }
 0x42d   : > { %7801 = vmax.xlane.f32.xlu0 %v16136_v16  ;;  %7785 = vmax.xlane.f32.xlu1 %v16134_v54 }
 0x43c   : > { %v11478_v49 = vpop.f32.mrb[20].mxu1  ;;  %v11522_v40 = vpop.f32.mrb[28].mxu0 }
 0x43d   : > { %v16140_v61 = vmul.f32 0.17677669, %v11478_v49  ;;  %v16142_v29 = vmul.f32 0.17677669, %v11522_v40  ;;  %v7199_v1 = vpop.f32.mrb[21].mxu1  ;;  %v7376_v15 = vpop.f32.mrb[29].mxu0 }
 0x43e   : > { %v16146_v42 = vmul.f32 0.17677669, %v7199_v1  ;;  %v16148_v38 = vmul.f32 0.17677669, %v7376_v15 }
 0x43f   : > { %7807 = vmax.xlane.f32.xlu0 %v16142_v29  ;;  %7791 = vmax.xlane.f32.xlu1 %v16140_v61 }
 0x443   : > { %7805 = vmax.xlane.f32.xlu0 %v16148_v38  ;;  %7789 = vmax.xlane.f32.xlu1 %v16146_v42 }
 0x44a   : > { %v11481_v32 = vpop.f32.mrb[22].mxu1  ;;  %v11525_v25 = vpop.f32.mrb[30].mxu0 }
 0x44b   : > { %v16152_v53 = vmul.f32 0.17677669, %v11481_v32  ;;  %v16154_v63 = vmul.f32 0.17677669, %v11525_v25  ;;  %v7209_v8 = vpop.f32.mrb[23].mxu1  ;;  %v7386_v58 = vpop.f32.mrb[31].mxu0 }
 0x44c   : > { %v16158_v6 = vmul.f32 0.17677669, %v7209_v8  ;;  %v16160_v36 = vmul.f32 0.17677669, %v7386_v58 }
 0x44d   : > { %7811 = vmax.xlane.f32.xlu0 %v16154_v63  ;;  %7795 = vmax.xlane.f32.xlu1 %v16152_v53 }
 0x451   : > { %7809 = vmax.xlane.f32.xlu0 %v16160_v36  ;;  %7793 = vmax.xlane.f32.xlu1 %v16158_v6 }
 0x45e   : > { %v11560_v14 = vpop.f32.mrb[24].mxu1  ;;  %v11604_v39 = vpop.f32.mrb[32].mxu0 }
 0x45f   : > { %v16164_v7 = vmul.f32 0.17677669, %v11560_v14  ;;  %v7533_v3 = vpop.f32.mrb[25].mxu1  ;;  %v16166_v10 = vmul.f32 0.17677669, %v11604_v39  ;;  %v7710_v27 = vpop.f32.mrb[33].mxu0 }
 0x460   : > { %v16170_v34 = vmul.f32 0.17677669, %v7533_v3  ;;  %v16172_v48 = vmul.f32 0.17677669, %v7710_v27  ;;  %v16212_v3 = vpop.permute.xlu1 %4798 }
 0x461   : > { %7815 = vmax.xlane.f32.xlu1 %v16164_v7  ;;  %7831 = vmax.xlane.f32.xlu0 %v16166_v10 }
 0x462   : > { %v11563_v37 = vpop.f32.mrb[26].mxu1 }
 0x463   : > { %v11607_v55 = vpop.f32.mrb[34].mxu0  ;;  %v7543_v20 = vpop.f32.mrb[27].mxu1  ;;  %v16176_v5 = vmul.f32 0.17677669, %v11563_v37 }
 0x464   : > { %v7720_v59 = vpop.f32.mrb[35].mxu0  ;;  %v16178_v24 = vmul.f32 0.17677669, %v11607_v55  ;;  %v16182_v56 = vmul.f32 0.17677669, %v7543_v20  ;;  %v16216_v27 = vpop.permute.xlu1 %4748 }
 0x465   : > { %7813 = vmax.xlane.f32.xlu1 %v16170_v34  ;;  %7829 = vmax.xlane.f32.xlu0 %v16172_v48  ;;  %v16184_v49 = vmul.f32 0.17677669, %v7720_v59  ;;  %v16218_v37 = vpop.permute.xlu0 %4750 }
 0x466   : > { %v11566_v52 = vpop.f32.mrb[28].mxu1 }
 0x467   : > { %v11610_v45 = vpop.f32.mrb[36].mxu0  ;;  %v7553_v12 = vpop.f32.mrb[29].mxu1  ;;  %v16188_v1 = vmul.f32 0.17677669, %v11566_v52 }
 0x468   : > { %v7730_v22 = vpop.f32.mrb[37].mxu0  ;;  %v16190_v15 = vmul.f32 0.17677669, %v11610_v45  ;;  %v16194_v32 = vmul.f32 0.17677669, %v7553_v12  ;;  %v16220_v55 = vpop.permute.xlu1 %4796 }
 0x469   : > { %7819 = vmax.xlane.f32.xlu1 %v16176_v5  ;;  %7835 = vmax.xlane.f32.xlu0 %v16178_v24  ;;  %v16196_v25 = vmul.f32 0.17677669, %v7730_v22 }
 0x46a   : > { %v11569_v2 = vpop.f32.mrb[30].mxu1 }
 0x46b   : > { %v11613_v50 = vpop.f32.mrb[38].mxu0  ;;  %v7563_v60 = vpop.f32.mrb[31].mxu1  ;;  %v16200_v8 = vmul.f32 0.17677669, %v11569_v2 }
 0x46c   : > { %v7740_v40 = vpop.f32.mrb[39].mxu0  ;;  %v16202_v58 = vmul.f32 0.17677669, %v11613_v50  ;;  %v16206_v14 = vmul.f32 0.17677669, %v7563_v60 }
 0x46d   : > { %7817 = vmax.xlane.f32.xlu1 %v16182_v56  ;;  %7833 = vmax.xlane.f32.xlu0 %v16184_v49  ;;  %v16208_v39 = vmul.f32 0.17677669, %v7740_v40 }
 0x471   : > { %7823 = vmax.xlane.f32.xlu1 %v16188_v1  ;;  %7839 = vmax.xlane.f32.xlu0 %v16190_v15 }
 0x475   : > { %7821 = vmax.xlane.f32.xlu1 %v16194_v32  ;;  %7837 = vmax.xlane.f32.xlu0 %v16196_v25 }
 0x479   : > { %7827 = vmax.xlane.f32.xlu1 %v16200_v8  ;;  %7843 = vmax.xlane.f32.xlu0 %v16202_v58 }
 0x47d   : > { %7825 = vmax.xlane.f32.xlu1 %v16206_v14  ;;  %7841 = vmax.xlane.f32.xlu0 %v16208_v39 }
 0x493   : > { %4844 = vrot.lane.b32.xlu0 %v15264_v18, %s13118_s26 }
 0x49d   : > { %v7784_v20 = vpop.xlane.xlu0 %7783 }
 0x49e   : > { %v7846_v59 = vsub.f32 %v16112_v43, %v7784_v20  ;;  %v7798_v52 = vpop.xlane.xlu1 %7797 }
 0x49f   : > { %v7853_v45 = vsub.f32 %v16114_v41, %v7798_v52 }
 0x4a0   : > { %v7879_v12 = vmul.f32 1.442695, %v7846_v59 }
 0x4a1   : > { %v7893_v22 = vmul.f32 1.442695, %v7853_v45  ;;  %v7800_v2 = vpop.xlane.xlu0 %7799 }
 0x4a2   : > { %v7854_v50 = vsub.f32 %v16122_v44, %v7800_v2 }
 0x4a3   : > { %12598 = vpow2.f32 %v7893_v22 }
 0x4a4   : > { %12600 = vpow2.f32 %v7879_v12  ;;  %v7895_v60 = vmul.f32 1.442695, %v7854_v50 }
 0x4a5   : > { %v7782_v40 = vpop.xlane.xlu0 %7781 }
 0x4a6   : > { %v7845_v51 = vsub.f32 %v16125_v13, %v7782_v40  ;;  %12602 = vpow2.f32 %v7895_v60 }
 0x4a8   : > { %v7877_v17 = vmul.f32 1.442695, %v7845_v51 }
 0x4aa   : > { %12604 = vpow2.f32 %v7877_v17 }
 0x4ad   : > { %v16229_v28 = vpop.eup %12598 }
 0x4ae   : > { %v16231_v43 = vpop.eup %12600  ;;  %7957 = vadd.xlane.f32.xlu1 %v16229_v28 }
 0x4b0   : > { %v16235_v41 = vpop.eup %12602 }
 0x4b2   : > { %7943 = vadd.xlane.f32.xlu0 %v16231_v43 }
 0x4b4   : > { %v16238_v44 = vpop.eup %12604 }
 0x4b6   : > { %7959 = vadd.xlane.f32.xlu0 %v16235_v41  ;;  %v7788_v20 = vpop.xlane.xlu1 %7787  ;;  %v7804_v59 = vpop.xlane.xlu0 %7803 }
 0x4b7   : > { %v7848_v13 = vsub.f32 %v16128_v4, %v7788_v20  ;;  %v7856_v17 = vsub.f32 %v16130_v33, %v7804_v59 }
 0x4b9   : > { %v7883_v51 = vmul.f32 1.442695, %v7848_v13  ;;  %v7899_v45 = vmul.f32 1.442695, %v7856_v17 }
 0x4ba   : > { %7941 = vadd.xlane.f32.xlu0 %v16238_v44  ;;  %v7786_v52 = vpop.xlane.xlu1 %7785  ;;  %v7802_v4 = vpop.xlane.xlu0 %7801 }
 0x4bb   : > { %12606 = vpow2.f32 %v7883_v51  ;;  %v7847_v12 = vsub.f32 %v16134_v54, %v7786_v52  ;;  %v7855_v13 = vsub.f32 %v16136_v16, %v7802_v4 }
 0x4bc   : > { %12608 = vpow2.f32 %v7899_v45 }
 0x4bd   : > { %v7881_v22 = vmul.f32 1.442695, %v7847_v12  ;;  %v7897_v45 = vmul.f32 1.442695, %v7855_v13 }
 0x4bf   : > { %4846 = vrot.lane.b32.xlu1 %v15250_v46, %s13118_s26  ;;  %12610 = vpow2.f32 %v7881_v22 }
 0x4c5   : > { %v16246_v2 = vpop.eup %12606 }
 0x4c6   : > { %7947 = vadd.xlane.f32.xlu0 %v16246_v2  ;;  %v16249_v33 = vpop.eup %12608 }
 0x4c9   : > { %v16253_v40 = vpop.eup %12610 }
 0x4ca   : > { %7963 = vadd.xlane.f32.xlu0 %v16249_v33 }
 0x4cc   : > { %v7808_v50 = vpop.xlane.xlu0 %7807  ;;  %v7792_v54 = vpop.xlane.xlu1 %7791 }
 0x4cd   : > { %v7858_v60 = vsub.f32 %v16142_v29, %v7808_v50  ;;  %v7850_v12 = vsub.f32 %v16140_v61, %v7792_v54 }
 0x4ce   : > { %7945 = vadd.xlane.f32.xlu0 %v16253_v40 }
 0x4cf   : > { %v7903_v20 = vmul.f32 1.442695, %v7858_v60  ;;  %v7887_v50 = vmul.f32 1.442695, %v7850_v12 }
 0x4d0   : > { %v7806_v59 = vpop.xlane.xlu0 %7805  ;;  %v7790_v52 = vpop.xlane.xlu1 %7789 }
 0x4d1   : > { %v7857_v17 = vsub.f32 %v16148_v38, %v7806_v59  ;;  %12612 = vpow2.f32 %v7903_v20  ;;  %v7849_v60 = vsub.f32 %v16146_v42, %v7790_v52 }
 0x4d3   : > { %v7901_v51 = vmul.f32 1.442695, %v7857_v17  ;;  %v7885_v38 = vmul.f32 1.442695, %v7849_v60 }
 0x4d5   : > { %12614 = vpow2.f32 %v7901_v51 }
 0x4d6   : > { %12616 = vpow2.f32 %v7897_v45 }
 0x4d7   : > { %12618 = vpow2.f32 %v7887_v50 }
 0x4da   : > { %v7796_v22 = vpop.xlane.xlu1 %7795  ;;  %v7812_v29 = vpop.xlane.xlu0 %7811 }
 0x4db   : > { %v7860_v9 = vsub.f32 %v16154_v63, %v7812_v29  ;;  %v16261_v62 = vpop.eup %12612  ;;  %v7852_v4 = vsub.f32 %v16152_v53, %v7796_v22 }
 0x4dc   : > { %7967 = vadd.xlane.f32.xlu0 %v16261_v62 }
 0x4dd   : > { %v7907_v11 = vmul.f32 1.442695, %v7860_v9  ;;  %v7891_v42 = vmul.f32 1.442695, %v7852_v4 }
 0x4de   : > { %v7810_v16 = vpop.xlane.xlu0 %7809  ;;  %v7794_v54 = vpop.xlane.xlu1 %7793 }
 0x4df   : > { %v7859_v61 = vsub.f32 %v16160_v36, %v7810_v16  ;;  %12620 = vpow2.f32 %v7907_v11  ;;  %v16266_v59 = vpop.eup %12614  ;;  %v7851_v9 = vsub.f32 %v16158_v6, %v7794_v54 }
 0x4e0   : > { %12622 = vpow2.f32 %v7885_v38  ;;  %7965 = vadd.xlane.f32.xlu0 %v16266_v59  ;;  %v16270_v63 = vpop.eup %12616 }
 0x4e1   : > { %v7905_v20 = vmul.f32 1.442695, %v7859_v61  ;;  %v7889_v53 = vmul.f32 1.442695, %v7851_v9  ;;  %v16273_v13 = vpop.eup %12618 }
 0x4e3   : > { %12624 = vpow2.f32 %v7905_v20  ;;  %7961 = vadd.xlane.f32.xlu1 %v16270_v63 }
 0x4e4   : > { %12626 = vpow2.f32 %v7891_v42 }
 0x4e5   : > { %12628 = vpow2.f32 %v7889_v53 }
 0x4e7   : > { %7951 = vadd.xlane.f32.xlu1 %v16273_v13 }
 0x4e9   : > { %v16275_v11 = vpop.eup %12620 }
 0x4ea   : > { %7971 = vadd.xlane.f32.xlu0 %v16275_v11  ;;  %v16279_v36 = vpop.eup %12622 }
 0x4eb   : > { %7949 = vadd.xlane.f32.xlu1 %v16279_v36 }
 0x4ed   : > { %v16281_v6 = vpop.eup %12624 }
 0x4ee   : > { %7969 = vadd.xlane.f32.xlu0 %v16281_v6  ;;  %v7816_v17 = vpop.xlane.xlu1 %7815  ;;  %v7832_v51 = vpop.xlane.xlu0 %7831 }
 0x4ef   : > { %v16285_v52 = vpop.eup %12626  ;;  %v7862_v12 = vsub.f32 %v16164_v7, %v7816_v17  ;;  %v7870_v60 = vsub.f32 %v16166_v10, %v7832_v51 }
 0x4f0   : > { %7955 = vadd.xlane.f32.xlu1 %v16285_v52  ;;  %v16290_v50 = vpop.eup %12628 }
 0x4f1   : > { %v7911_v54 = vmul.f32 1.442695, %v7862_v12  ;;  %v7927_v42 = vmul.f32 1.442695, %v7870_v60 }
 0x4f2   : > { %v7814_v45 = vpop.xlane.xlu1 %7813  ;;  %v7830_v29 = vpop.xlane.xlu0 %7829 }
 0x4f3   : > { %v7861_v22 = vsub.f32 %v16170_v34, %v7814_v45  ;;  %v7869_v16 = vsub.f32 %v16172_v48, %v7830_v29 }
 0x4f4   : > { %7953 = vadd.xlane.f32.xlu1 %v16290_v50 }
 0x4f5   : > { %v7909_v38 = vmul.f32 1.442695, %v7861_v22  ;;  %v7925_v4 = vmul.f32 1.442695, %v7869_v16 }
 0x4f6   : > { %v7820_v61 = vpop.xlane.xlu1 %7819  ;;  %v7836_v20 = vpop.xlane.xlu0 %7835 }
 0x4f7   : > { %12630 = vpow2.f32 %v7909_v38  ;;  %v7864_v34 = vsub.f32 %v16176_v5, %v7820_v61  ;;  %v7872_v10 = vsub.f32 %v16178_v24, %v7836_v20 }
 0x4f8   : > { %12632 = vpow2.f32 %v7925_v4 }
 0x4f9   : > { %12634 = vpow2.f32 %v7911_v54  ;;  %v7915_v12 = vmul.f32 1.442695, %v7864_v34  ;;  %v7931_v29 = vmul.f32 1.442695, %v7872_v10 }
 0x4fa   : > { %v7818_v7 = vpop.xlane.xlu1 %7817  ;;  %v7834_v53 = vpop.xlane.xlu0 %7833  ;;  %12636 = vpow2.f32 %v7927_v42 }
 0x4fb   : > { %v7863_v9 = vsub.f32 %v16182_v56, %v7818_v7  ;;  %v7871_v48 = vsub.f32 %v16184_v49, %v7834_v53 }
 0x4fd   : > { %v7913_v17 = vmul.f32 1.442695, %v7863_v9  ;;  %v7929_v51 = vmul.f32 1.442695, %v7871_v48 }
 0x4fe   : > { %v7824_v45 = vpop.xlane.xlu1 %7823  ;;  %v7840_v22 = vpop.xlane.xlu0 %7839 }
 0x4ff   : > { %12638 = vpow2.f32 %v7913_v17  ;;  %v7866_v24 = vsub.f32 %v16188_v1, %v7824_v45  ;;  %v7874_v38 = vsub.f32 %v16190_v15, %v7840_v22 }
 0x500   : > { %12640 = vpow2.f32 %v7929_v51 }
 0x501   : > { %v16299_v60 = vpop.eup %12630  ;;  %12642 = vpow2.f32 %v7915_v12  ;;  %v7919_v1 = vmul.f32 1.442695, %v7866_v24  ;;  %v7935_v34 = vmul.f32 1.442695, %v7874_v38 }
 0x502   : > { %v16301_v16 = vpop.eup %12632  ;;  %v7822_v5 = vpop.xlane.xlu1 %7821  ;;  %7973 = vadd.xlane.f32.xlu1 %v16299_v60  ;;  %12644 = vpow2.f32 %v7931_v29 }
 0x503   : > { %v7865_v56 = vsub.f32 %v16194_v32, %v7822_v5  ;;  %7989 = vadd.xlane.f32.xlu0 %v16301_v16  ;;  %v7838_v49 = vpop.xlane.xlu0 %7837  ;;  %v16309_v61 = vpop.eup %12634 }
 0x504   : > { %v7873_v4 = vsub.f32 %v16196_v25, %v7838_v49  ;;  %v16311_v20 = vpop.eup %12636 }
 0x505   : > { %v7917_v54 = vmul.f32 1.442695, %v7865_v56 }
 0x506   : > { %v7933_v42 = vmul.f32 1.442695, %v7873_v4  ;;  %v7828_v7 = vpop.xlane.xlu1 %7827  ;;  %7975 = vadd.xlane.f32.xlu1 %v16309_v61 }
 0x507   : > { %12646 = vpow2.f32 %v7917_v54  ;;  %7991 = vadd.xlane.f32.xlu0 %v16311_v20  ;;  %v7844_v32 = vpop.xlane.xlu0 %7843  ;;  %v7868_v53 = vsub.f32 %v16200_v8, %v7828_v7 }
 0x508   : > { %12648 = vpow2.f32 %v7933_v42  ;;  %v7876_v17 = vsub.f32 %v16202_v58, %v7844_v32  ;;  %v5817_v32 = vcombine.high %v15264_v18, %v16220_v55 }
 0x509   : > { %v16315_v9 = vpop.eup %12638  ;;  %12650 = vpow2.f32 %v7919_v1  ;;  %v7923_v5 = vmul.f32 1.442695, %v7868_v53  ;;  %v5816_v1 = vcombine.low %v15264_v18, %v16220_v55 }
 0x50a   : > { %v16317_v15 = vpop.eup %12640  ;;  %v7826_v25 = vpop.xlane.xlu1 %7825  ;;  %7977 = vadd.xlane.f32.xlu1 %v16315_v9  ;;  %12652 = vpow2.f32 %v7935_v34  ;;  %v7939_v8 = vmul.f32 1.442695, %v7876_v17 }
 0x50b   : > { %v7867_v10 = vsub.f32 %v16206_v14, %v7826_v25  ;;  %7993 = vadd.xlane.f32.xlu0 %v16317_v15  ;;  %v7842_v48 = vpop.xlane.xlu0 %7841  ;;  %v16325_v45 = vpop.eup %12642  ;;  %v5824_v53 = vrot.slane %v5816_v1, %v13852_v30 }
 0x50c   : > { %v7875_v51 = vsub.f32 %v16208_v39, %v7842_v48  ;;  %v16327_v22 = vpop.eup %12644 }
 0x50d   : > { %v7921_v12 = vmul.f32 1.442695, %v7867_v10  ;;  %17655 = vst [vmem:[#allocation53_spill] sm:$0xff] %v16327_v22  ;;  %v5831_v10 = vrot.slane %v5817_v32, %v13852_v30 }
 0x50e   : > { %v7937_v29 = vmul.f32 1.442695, %v7875_v51  ;;  %7979 = vadd.xlane.f32.xlu1 %v16325_v45 }
 0x50f   : > { %12654 = vpow2.f32 %v7921_v12  ;;  %7995 = vadd.xlane.f32.xlu0 %v16327_v22  ;;  %v4845_v54 = vpop.permute.xlu0 %4844 }
 0x510   : > { %12656 = vpow2.f32 %v7937_v29  ;;  %v5832_v42 = vcombine.low %v16216_v27, %v4845_v54  ;;  %v5833_v7 = vcombine.high %v16216_v27, %v4845_v54  ;;  %v5885_v54 = vcombine.high %v15250_v46, %v16212_v3 }
 0x511   : > { %v16331_v14 = vpop.eup %12646  ;;  %12658 = vpow2.f32 %v7923_v5 }
 0x512   : > { %17656 = vst [vmem:[#allocation64_spill] sm:$0xff] %v16331_v14  ;;  %v16333_v24 = vpop.eup %12648  ;;  %7981 = vadd.xlane.f32.xlu1 %v16331_v14  ;;  %12660 = vpow2.f32 %v7939_v8  ;;  %v5840_v34 = vrot.slane %v5832_v42, %v13852_v30  ;;  %v5847_v25 = vrot.slane %v5833_v7, %v13852_v30  ;;  %v5884_v8 = vcombine.low %v15250_v46, %v16212_v3 }
 0x513   : > { %17657 = vst [vmem:[#allocation61_spill] sm:$0xff] %v16333_v24  ;;  %7997 = vadd.xlane.f32.xlu0 %v16333_v24  ;;  %v16337_v58 = vpop.eup %12650 }
 0x514   : > { %17658 = vst [vmem:[#allocation60_spill] sm:$0xff] %v16337_v58  ;;  %v16339_v39 = vpop.eup %12652  ;;  %v5848_v48 = vcombine.low %v5824_v53, %v5840_v34  ;;  %v5849_v17 = vcombine.high %v5824_v53, %v5840_v34  ;;  %v5864_v51 = vcombine.low %v5831_v10, %v5847_v25  ;;  %v5865_v12 = vcombine.high %v5831_v10, %v5847_v25 }
 0x515   : > { %17659 = vst [vmem:[#allocation63_spill] sm:$0xff] %v16339_v39 }
 0x516   : > { %7983 = vadd.xlane.f32.xlu1 %v16337_v58  ;;  %v5856_v27 = vrot.slane %v5848_v48, %v13857_v35  ;;  %v5863_v5 = vrot.slane %v5849_v17, %v13857_v35  ;;  %v5872_v18 = vrot.slane %v5864_v51, %v13857_v35  ;;  %v5879_v55 = vrot.slane %v5865_v12, %v13857_v35 }
 0x517   : > { %7999 = vadd.xlane.f32.xlu0 %v16339_v39  ;;  %v5892_v48 = vrot.slane %v5884_v8, %v13852_v30  ;;  %v5899_v17 = vrot.slane %v5885_v54, %v13852_v30  ;;  %v17675_v39 = vld [vmem:[#allocation55_spill] sm:$0xff] }
 0x518   : > { %v6904_v34 = vcombine.low %v5856_v27, %v5863_v5  ;;  %v10789_v25 = vcombine.high %v5856_v27, %v5863_v5  ;;  %v6920_v53 = vcombine.low %v5872_v18, %v5879_v55  ;;  %v10790_v10 = vcombine.high %v5872_v18, %v5879_v55 }
 0x519   : > { %v16343_v56 = vpop.eup %12654 }
 0x51a   : > { %17660 = vst [vmem:[#allocation62_spill] sm:$0xff] %v16343_v56  ;;  %v16345_v49 = vpop.eup %12656  ;;  %7985 = vadd.xlane.f32.xlu1 %v16343_v56  ;;  %v16384_v27 = vrot.slane %v10789_v25, %v13852_v30  ;;  %v16387_v5 = vrot.slane %v6920_v53, %v13852_v30  ;;  %v16390_v18 = vrot.slane %v10790_v10, %v13852_v30 }
 0x51b   : > { %17661 = vst [vmem:[#allocation35_spill] sm:$0xff] %v16345_v49  ;;  %8001 = vadd.xlane.f32.xlu0 %v16345_v49  ;;  %v16349_v38 = vpop.eup %12658 }
 0x51c   : > { %17662 = vst [vmem:[#allocation69_spill] sm:$0xff] %v16349_v38  ;;  %v16351_v4 = vpop.eup %12660 }
 0x51d   : > { %17663 = vst [vmem:[#allocation72_spill] sm:$0xff] %v16351_v4 }
 0x51e   : > { %7987 = vadd.xlane.f32.xlu1 %v16349_v38 }
 0x51f   : > { %8003 = vadd.xlane.f32.xlu0 %v16351_v4 }
 0x53b   : > { %v7958_v29 = vpop.xlane.xlu1 %7957 }
 0x53c   : > { %12662 = vrcp.f32 %v7958_v29 }
 0x53f   : > { %v7944_v42 = vpop.xlane.xlu0 %7943  ;;  %v4847_v7 = vpop.permute.xlu1 %4846 }
 0x540   : > { %12664 = vrcp.f32 %v7944_v42  ;;  %v5900_v1 = vcombine.low %v16218_v37, %v4847_v7  ;;  %v5901_v32 = vcombine.high %v16218_v37, %v4847_v7  ;;  %v16381_v37 = vrot.slane %v6904_v34, %v13852_v30 }
 0x542   : > { %v5908_v12 = vrot.slane %v5900_v1, %v13852_v30  ;;  %v5915_v46 = vrot.slane %v5901_v32, %v13852_v30  ;;  %v6936_v10 = vcombine.low %v16381_v37, %v16384_v27 }
 0x543   : > { %v7960_v51 = vpop.xlane.xlu0 %7959 }
 0x544   : > { %12666 = vrcp.f32 %v7960_v51  ;;  %v5916_v3 = vcombine.low %v5892_v48, %v5908_v12  ;;  %v5917_v29 = vcombine.high %v5892_v48, %v5908_v12  ;;  %v5932_v42 = vcombine.low %v5899_v17, %v5915_v46 }
 0x545   : > { %v5933_v4 = vcombine.high %v5899_v17, %v5915_v46 }
 0x546   : > { %v12663_v55 = vpop.eup %12662  ;;  %v5924_v8 = vrot.slane %v5916_v3, %v13857_v35  ;;  %v5931_v54 = vrot.slane %v5917_v29, %v13857_v35  ;;  %v5940_v7 = vrot.slane %v5932_v42, %v13857_v35  ;;  %v17664_v42 = vld [vmem:[#allocation47_spill] sm:$0xff] }
 0x547   : > { %v5947_v1 = vrot.slane %v5933_v4, %v13857_v35  ;;  %v7942_v32 = vpop.xlane.xlu0 %7941  ;;  %v8022_v34 = vmul.f32 %v12663_v55, %v16229_v28  ;;  %v6952_v4 = vcombine.low %v16387_v5, %v16390_v18  ;;  %v17665_v55 = vld [vmem:[#allocation48_spill] sm:$0xff] }
 0x548   : > { %12668 = vrcp.f32 %v7942_v32  ;;  %v6972_v25 = vcombine.low %v5924_v8, %v5931_v54  ;;  %v10791_v48 = vcombine.high %v5924_v8, %v5931_v54  ;;  %v6121_v8 = vcombine.high %v17665_v55, %v17664_v42  ;;  %v17666_v54 = vld [vmem:[#allocation41_spill] sm:$0xff]  ;;  %v17668_v32 = vld [vmem:[#allocation43_spill] sm:$0xff] }
 0x549   : > { %v6988_v53 = vcombine.low %v5940_v7, %v5947_v1  ;;  %v10792_v17 = vcombine.high %v5940_v7, %v5947_v1  ;;  %8077 = vst [vmem:[%s16397_s16 + $0x40] sm:$0xff] %v8022_v34  ;;  %11690 = vmatprep.mubr.f32.mxu0 %v8022_v34  ;;  %v17667_v7 = vld [vmem:[#allocation42_spill] sm:$0xff]  ;;  %v17669_v34 = vld [vmem:[#allocation44_spill] sm:$0xff] }
 0x54a   : > { %v12665_v51 = vpop.eup %12664  ;;  %v16406_v28 = vrot.slane %v6972_v25, %v13852_v30  ;;  %v16409_v46 = vrot.slane %v10791_v48, %v13852_v30  ;;  %v6137_v1 = vcombine.high %v17667_v7, %v17666_v54  ;;  %v6189_v25 = vcombine.high %v17669_v34, %v17668_v32  ;;  %v17670_v48 = vld [vmem:[#allocation59_spill] sm:$0xff]  ;;  %v17672_v32 = vld [vmem:[#allocation56_spill] sm:$0xff] }
 0x54b   : > { %v8008_v12 = vmul.f32 %v12665_v51, %v16231_v43  ;;  %v16412_v3 = vrot.slane %v6988_v53, %v13852_v30  ;;  %v16415_v29 = vrot.slane %v10792_v17, %v13852_v30  ;;  %v17671_v53 = vld [vmem:[#allocation34_spill] sm:$0xff]  ;;  %v6944_v17 = vrot.slane %v6936_v10, %v13857_v35  ;;  %v17673_v34 = vld [vmem:[#allocation36_spill] sm:$0xff] }
 0x54c   : > { %v7004_v43 = vcombine.low %v16406_v28, %v16409_v46  ;;  %v6205_v51 = vcombine.high %v17671_v53, %v17670_v48  ;;  %v6960_v30 = vrot.slane %v6952_v4, %v13857_v35  ;;  %v6135_v7 = vrot.slane %v6121_v8, %v13857_v35  ;;  %v17674_v53 = vld [vmem:[#allocation58_spill] sm:$0xff] }
 0x54d   : > { %8070 = vst [vmem:[%s16397_s16 + $0x8] sm:$0xff] %v8008_v12  ;;  %v7020_v42 = vcombine.low %v16412_v3, %v16415_v29  ;;  %v6257_v56 = vcombine.high %v17673_v34, %v17672_v32  ;;  %v6151_v10 = vrot.slane %v6137_v1, %v13857_v35  ;;  %v6203_v4 = vrot.slane %v6189_v25, %v13857_v35 }
 0x54e   : > { %v12667_v38 = vpop.eup %12666  ;;  %v7012_v49 = vrot.slane %v7004_v43, %v13857_v35  ;;  %v6219_v48 = vrot.slane %v6205_v51, %v13857_v35  ;;  %v6968_v43 = vcombine.low %v6944_v17, %v6960_v30 }
 0x54f   : > { %v8024_v55 = vmul.f32 %v12667_v38, %v16235_v41  ;;  %v7028_v54 = vrot.slane %v7020_v42, %v13857_v35  ;;  %v6273_v41 = vcombine.high %v17675_v39, %v17674_v53  ;;  %v6969_v42 = vcombine.high %v6944_v17, %v6960_v30 }
 0x550   : > { %v6154_v1 = vcombine.low %v6135_v7, %v6151_v10  ;;  %v6222_v25 = vcombine.low %v6203_v4, %v6219_v48  ;;  %v6271_v51 = vrot.slane %v6257_v56, %v13857_v35  ;;  %v6155_v39 = vcombine.high %v6135_v7, %v6151_v10  ;;  %v17680_v10 = vld [vmem:[#allocation54_spill] sm:$0xff] }
 0x551   : > { %8078 = vst [vmem:[%s16397_s16 + $0x48] sm:$0xff] %v8024_v55  ;;  %v7036_v58 = vcombine.low %v7012_v49, %v7028_v54  ;;  %v7037_v24 = vcombine.high %v7012_v49, %v7028_v54  ;;  %v6223_v53 = vcombine.high %v6203_v4, %v6219_v48  ;;  %v6287_v22 = vrot.slane %v6273_v41, %v13857_v35 }
 0x552   : > { %v12669_v38 = vpop.eup %12668  ;;  %v17676_v49 = vcombine.low %v16045_v26, %v16048_v19 }
 0x553   : > { %v8006_v8 = vmul.f32 %v12669_v38, %v16238_v44  ;;  %v7948_v14 = vpop.xlane.xlu0 %7947  ;;  %v12150_v32 = vpack.c.bf16 %v7036_v58, %v6968_v43  ;;  %v12182_v34 = vpack.c.bf16 %v7037_v24, %v6969_v42  ;;  %v12190_v44 = vpack.c.bf16 %v6222_v25, %v6154_v1 }
 0x554   : > { %12670 = vrcp.f32 %v7948_v14  ;;  %v12222_v14 = vpack.c.bf16 %v6223_v53, %v6155_v39  ;;  %v6290_v24 = vcombine.low %v6271_v51, %v6287_v22  ;;  %v6291_v58 = vcombine.high %v6271_v51, %v6287_v22 }
 0x555   : > { %8069 = vst [vmem:[%s16397_s16] sm:$0xff] %v8006_v8  ;;  %11646 = vmatprep.mubr.f32.mxu1 %v8006_v8  ;;  %12151 = vmatprep.subr.bf16.mxu1 %v12150_v32 }
 0x556   : > { %12183 = vmatprep.subr.bf16.mxu0 %v12182_v34  ;;  %12153 = vmatpush3.bf16.msra.mxu1 %v12150_v32  ;;  %v12194_v17 = vpack.c.bf16 %v17676_v49, %v6290_v24 }
 0x557   : > { %12185 = vmatpush3.bf16.msra.mxu0 %v12182_v34  ;;  %v7964_v30 = vpop.xlane.xlu0 %7963  ;;  %12187 = vmatprep.subr.bf16.mxu1 %v16029_v0 }
 0x558   : > { %12219 = vmatprep.subr.bf16.mxu0 %v16036_v21  ;;  %12672 = vrcp.f32 %v7964_v30 }
 0x559   : > { %11647 = vmatmul.mubr.f32.vlgmr.msra.gmra.mrb[32].mxu1 %v8008_v12  ;;  %v17677_v12 = vcombine.high %v16045_v26, %v16048_v19  ;;  %v7005_v19 = vcombine.high %v16406_v28, %v16409_v46  ;;  %v6953_v28 = vcombine.high %v16387_v5, %v16390_v18 }
 0x55a   : > { %11691 = vmatmul.mubr.f32.vlgmr.msra.gmra.mrb[40].mxu0 %v8024_v55  ;;  %12189 = vmatpush3.bf16.msra.mxu1 %v16029_v0 }
 0x55b   : > { %12221 = vmatpush3.bf16.msra.mxu0 %v16036_v21  ;;  %v7946_v56 = vpop.xlane.xlu0 %7945  ;;  %12191 = vmatprep.subr.bf16.mxu1 %v12190_v44  ;;  %v12226_v55 = vpack.c.bf16 %v17677_v12, %v6291_v58 }
 0x55c   : > { %12223 = vmatprep.subr.bf16.mxu0 %v12222_v14  ;;  %12674 = vrcp.f32 %v7946_v56 }
 0x55e   : > { %v12671_v54 = vpop.eup %12670  ;;  %12193 = vmatpush3.bf16.msra.mxu1 %v12190_v44 }
 0x55f   : > { %12225 = vmatpush3.bf16.msra.mxu0 %v12222_v14  ;;  %v8012_v0 = vmul.f32 %v12671_v54, %v16246_v2  ;;  %12195 = vmatprep.subr.bf16.mxu1 %v12194_v17  ;;  %v7021_v2 = vcombine.high %v16412_v3, %v16415_v29  ;;  %v7019_v3 = vrot.slane %v7005_v19, %v13857_v35 }
 0x560   : > { %12227 = vmatprep.subr.bf16.mxu0 %v12226_v55 }
 0x561   : > { %8072 = vst [vmem:[%s16397_s16 + $0x18] sm:$0xff] %v8012_v0 }
 0x562   : > { %v12673_v21 = vpop.eup %12672  ;;  %12197 = vmatpush3.bf16.msra.mxu1 %v12194_v17 }
 0x563   : > { %12229 = vmatpush3.bf16.msra.mxu0 %v12226_v55  ;;  %12199 = vmatprep.subr.bf16.mxu1 %v16079_v47  ;;  %v16463_v26 = vmul.f32 %v12673_v21, %v16249_v33  ;;  %v6937_v33 = vcombine.high %v16381_v37, %v16384_v27  ;;  %v6967_v37 = vrot.slane %v6953_v28, %v13857_v35  ;;  %v17679_v27 = vld [vmem:[#allocation57_spill] sm:$0xff] }
 0x564   : > { %12231 = vmatprep.subr.bf16.mxu0 %v16081_v23 }
 0x565   : > { %8080 = vst [vmem:[%s16397_s16 + $0x58] sm:$0xff] %v16463_v26 }
 0x566   : > { %v12675_v22 = vpop.eup %12674  ;;  %12201 = vmatpush3.bf16.msra.mxu1 %v16079_v47  ;;  %v7035_v47 = vrot.slane %v7021_v2, %v13857_v35 }
 0x567   : > { %12233 = vmatpush3.bf16.msra.mxu0 %v16081_v23  ;;  %v8010_v7 = vmul.f32 %v12675_v22, %v16253_v40  ;;  %12203 = vmatprep.subr.bf16.mxu1 %v16100_v57  ;;  %v17678_v23 = vld [vmem:[#allocation52_spill] sm:$0xff]  ;;  %v6951_v40 = vrot.slane %v6937_v33, %v13857_v35 }
 0x568   : > { %12235 = vmatprep.subr.bf16.mxu0 %v16102_v31  ;;  %v7039_v18 = vcombine.high %v7019_v3, %v7035_v47  ;;  %v7038_v29 = vcombine.low %v7019_v3, %v7035_v47 }
 0x569   : > { %v7968_v46 = vpop.xlane.xlu0 %7967  ;;  %8071 = vst [vmem:[%s16397_s16 + $0x10] sm:$0xff] %v8010_v7  ;;  %11649 = vmatprep.mubr.f32.mxu1 %v8010_v7  ;;  %v6970_v48 = vcombine.low %v6951_v40, %v6967_v37 }
 0x56a   : > { %12676 = vrcp.f32 %v7968_v46  ;;  %11650 = vmatmul.mubr.f32.gmra.mrb[34].mxu1 %v8012_v0 }
 0x56b   : > { %12237 = vmatpush3.bf16.msra.mxu0 %v16102_v31  ;;  %12205 = vmatpush3.bf16.msra.mxu1 %v16100_v57  ;;  %v6971_v31 = vcombine.high %v6951_v40, %v6967_v37  ;;  %v17681_v57 = vld [vmem:[#allocation51_spill] sm:$0xff]  ;;  %v12214_v38 = vpack.c.bf16 %v7038_v29, %v6970_v48 }
 0x56c   : > { %12239 = vmatprep.subr.bf16.mxu0 %v17678_v23  ;;  %12207 = vmatprep.subr.bf16.mxu1 %v17679_v27 }
 0x56d   : > { %v7966_v5 = vpop.xlane.xlu0 %7965  ;;  %v12246_v41 = vpack.c.bf16 %v7039_v18, %v6971_v31 }
 0x56e   : > { %12678 = vrcp.f32 %v7966_v5 }
 0x56f   : > { %12241 = vmatpush3.bf16.msra.mxu0 %v17678_v23  ;;  %12209 = vmatpush3.bf16.msra.mxu1 %v17679_v27 }
 0x570   : > { %12243 = vmatprep.subr.bf16.mxu0 %v17680_v10  ;;  %12211 = vmatprep.subr.bf16.mxu1 %v17681_v57  ;;  %v7962_v4 = vpop.xlane.xlu1 %7961 }
 0x571   : > { %12680 = vrcp.f32 %v7962_v4  ;;  %v17683_v4 = vld [vmem:[#allocation64_spill] sm:$0xff] }
 0x573   : > { %12245 = vmatpush3.bf16.msra.mxu0 %v17680_v10  ;;  %12213 = vmatpush3.bf16.msra.mxu1 %v17681_v57  ;;  %v17682_v10 = vld [vmem:[#allocation53_spill] sm:$0xff] }
 0x574   : > { %12247 = vmatprep.subr.bf16.mxu0 %v12246_v41  ;;  %v12677_v43 = vpop.eup %12676  ;;  %12215 = vmatprep.subr.bf16.mxu1 %v12214_v38  ;;  %v7952_v42 = vpop.xlane.xlu1 %7951 }
 0x575   : > { %12682 = vrcp.f32 %v7952_v42  ;;  %v8032_v32 = vmul.f32 %v12677_v43, %v16261_v62 }
 0x577   : > { %v7972_v8 = vpop.xlane.xlu0 %7971  ;;  %12249 = vmatpush3.bf16.msra.mxu0 %v12246_v41  ;;  %12217 = vmatpush3.bf16.msra.mxu1 %v12214_v38  ;;  %8082 = vst [vmem:[%s16397_s16 + $0x68] sm:$0xff] %v8032_v32 }
 0x578   : > { %12684 = vrcp.f32 %v7972_v8  ;;  %v12679_v34 = vpop.eup %12678  ;;  %v7950_v1 = vpop.xlane.xlu1 %7949  ;;  %v17685_v8 = vld [vmem:[#allocation60_spill] sm:$0xff] }
 0x579   : > { %12686 = vrcp.f32 %v7950_v1  ;;  %v8030_v51 = vmul.f32 %v12679_v34, %v16266_v59  ;;  %v17686_v34 = vld [vmem:[#allocation63_spill] sm:$0xff] }
 0x57b   : > { %v7970_v25 = vpop.xlane.xlu0 %7969  ;;  %v12681_v39 = vpop.eup %12680  ;;  %8081 = vst [vmem:[%s16397_s16 + $0x60] sm:$0xff] %v8030_v51 }
 0x57c   : > { %12688 = vrcp.f32 %v7970_v25  ;;  %v8026_v30 = vmul.f32 %v12681_v39, %v16270_v63  ;;  %v17687_v39 = vld [vmem:[#allocation62_spill] sm:$0xff] }
 0x57d   : > { %v7956_v53 = vpop.xlane.xlu1 %7955 }
 0x57e   : > { %12690 = vrcp.f32 %v7956_v53  ;;  %8079 = vst [vmem:[%s16397_s16 + $0x50] sm:$0xff] %v8026_v30  ;;  %11693 = vmatprep.mubr.f32.mxu0 %v8026_v30  ;;  %v17688_v30 = vld [vmem:[#allocation35_spill] sm:$0xff] }
 0x57f   : > { %v12683_v62 = vpop.eup %12682  ;;  %11694 = vmatmul.mubr.f32.gmra.mrb[42].mxu0 %v16463_v26 }
 0x580   : > { %11696 = vmatprep.mubr.f32.mxu0 %v8030_v51  ;;  %v8016_v59 = vmul.f32 %v12683_v62, %v16273_v13 }
 0x581   : > { %v7954_v14 = vpop.xlane.xlu1 %7953 }
 0x582   : > { %v12685_v44 = vpop.eup %12684  ;;  %12692 = vrcp.f32 %v7954_v14  ;;  %8074 = vst [vmem:[%s16397_s16 + $0x28] sm:$0xff] %v8016_v59 }
 0x583   : > { %v8036_v24 = vmul.f32 %v12685_v44, %v16275_v11  ;;  %v12687_v58 = vpop.eup %12686  ;;  %11697 = vmatmul.mubr.f32.gmra.mrb[44].mxu0 %v8032_v32 }
 0x584   : > { %v8014_v56 = vmul.f32 %v12687_v58, %v16279_v36  ;;  %v17690_v58 = vld [vmem:[#allocation72_spill] sm:$0xff] }
 0x585   : > { %8084 = vst [vmem:[%s16397_s16 + $0x78] sm:$0xff] %v8036_v24 }
 0x586   : > { %v12689_v63 = vpop.eup %12688  ;;  %8073 = vst [vmem:[%s16397_s16 + $0x20] sm:$0xff] %v8014_v56  ;;  %11652 = vmatprep.mubr.f32.mxu1 %v8014_v56 }
 0x587   : > { %v8034_v49 = vmul.f32 %v12689_v63, %v16281_v6  ;;  %11653 = vmatmul.mubr.f32.gmra.mrb[36].mxu1 %v8016_v59  ;;  %v17689_v59 = vld [vmem:[#allocation69_spill] sm:$0xff] }
 0x588   : > { %v12691_v17 = vpop.eup %12690 }
 0x589   : > { %8083 = vst [vmem:[%s16397_s16 + $0x70] sm:$0xff] %v8034_v49  ;;  %11699 = vmatprep.mubr.f32.mxu0 %v8034_v49  ;;  %v8020_v13 = vmul.f32 %v12691_v17, %v16285_v52 }
 0x58a   : > { %11700 = vmatmul.mubr.f32.gmra.mrb[46].mxu0 %v8036_v24 }
 0x58b   : > { %8076 = vst [vmem:[%s16397_s16 + $0x38] sm:$0xff] %v8020_v13 }
 0x58c   : > { %v12693_v11 = vpop.eup %12692 }
 0x58d   : > { %v8018_v12 = vmul.f32 %v12693_v11, %v16290_v50 }
 0x58f   : > { %v7974_v55 = vpop.xlane.xlu1 %7973  ;;  %8075 = vst [vmem:[%s16397_s16 + $0x30] sm:$0xff] %v8018_v12  ;;  %11655 = vmatprep.mubr.f32.mxu1 %v8018_v12 }
 0x590   : > { %v7990_v54 = vpop.xlane.xlu0 %7989  ;;  %12694 = vrcp.f32 %v7974_v55  ;;  %11656 = vmatmul.mubr.f32.gmra.mrb[38].mxu1 %v8020_v13  ;;  %v9731_v55 = vld [vmem:[#allocation10] sm:$0xff] }
 0x591   : > { %12696 = vrcp.f32 %v7990_v54  ;;  %v9732_v54 = vld [vmem:[#allocation10 + $0x8] sm:$0xff] }
 0x593   : > { %v7976_v36 = vpop.xlane.xlu1 %7975 }
 0x594   : > { %v7992_v6 = vpop.xlane.xlu0 %7991  ;;  %12698 = vrcp.f32 %v7976_v36  ;;  %v9733_v36 = vld [vmem:[#allocation10 + $0x10] sm:$0xff] }
 0x595   : > { %12700 = vrcp.f32 %v7992_v6  ;;  %v12250_v6 = vpack.c.bf16 %v9732_v54, %v9731_v55 }
 0x597   : > { %v7978_v0 = vpop.xlane.xlu1 %7977  ;;  %12251 = vmatprep.subr.bf16.mxu1 %v12250_v6 }
 0x598   : > { %v7994_v21 = vpop.xlane.xlu0 %7993  ;;  %12702 = vrcp.f32 %v7978_v0  ;;  %v9734_v0 = vld [vmem:[#allocation10 + $0x18] sm:$0xff] }
 0x599   : > { %12704 = vrcp.f32 %v7994_v21  ;;  %v12254_v21 = vpack.c.bf16 %v9734_v0, %v9733_v36 }
 0x59a   : > { %v12695_v52 = vpop.eup %12694 }
 0x59b   : > { %v12697_v26 = vpop.eup %12696  ;;  %v7980_v50 = vpop.xlane.xlu1 %7979  ;;  %v8038_v19 = vmul.f32 %v12695_v52, %v16299_v60  ;;  %v9735_v52 = vld [vmem:[#allocation10 + $0x20] sm:$0xff] }
 0x59c   : > { %v7996_v2 = vpop.xlane.xlu0 %7995  ;;  %v8054_v22 = vmul.f32 %v12697_v26, %v16301_v16  ;;  %12706 = vrcp.f32 %v7980_v50  ;;  %v9736_v26 = vld [vmem:[#allocation10 + $0x28] sm:$0xff] }
 0x59d   : > { %12708 = vrcp.f32 %v7996_v2  ;;  %8085 = vst [vmem:[%s16397_s16 + $0x80] sm:$0xff] %v8038_v19  ;;  %11734 = vmatprep.mubr.f32.mxu1 %v8038_v19  ;;  %v12258_v50 = vpack.c.bf16 %v9736_v26, %v9735_v52  ;;  %v9737_v19 = vld [vmem:[#allocation10 + $0x30] sm:$0xff]  ;;  %v9738_v2 = vld [vmem:[#allocation10 + $0x38] sm:$0xff] }
 0x59e   : > { %v12699_v7 = vpop.eup %12698  ;;  %8093 = vst [vmem:[%s16397_s16 + $0xc0] sm:$0xff] %v8054_v22  ;;  %11778 = vmatprep.mubr.f32.mxu0 %v8054_v22  ;;  %v12262_v22 = vpack.c.bf16 %v9738_v2, %v9737_v19 }
 0x59f   : > { %v12701_v33 = vpop.eup %12700  ;;  %v8040_v28 = vmul.f32 %v12699_v7, %v16309_v61  ;;  %v7982_v46 = vpop.xlane.xlu1 %7981  ;;  %v9739_v7 = vld [vmem:[#allocation10 + $0x40] sm:$0xff] }
 0x5a0   : > { %v8056_v3 = vmul.f32 %v12701_v33, %v16311_v20  ;;  %v7998_v60 = vpop.xlane.xlu0 %7997  ;;  %12710 = vrcp.f32 %v7982_v46  ;;  %v9740_v33 = vld [vmem:[#allocation10 + $0x48] sm:$0xff] }
 0x5a1   : > { %8086 = vst [vmem:[%s16397_s16 + $0x88] sm:$0xff] %v8040_v28  ;;  %12712 = vrcp.f32 %v7998_v60  ;;  %11735 = vmatmul.mubr.f32.vlgmr.msra.gmra.mrb[40].mxu1 %v8040_v28  ;;  %v12266_v46 = vpack.c.bf16 %v9740_v33, %v9739_v7  ;;  %v9741_v60 = vld [vmem:[#allocation10 + $0x50] sm:$0xff] }
 0x5a2   : > { %v12703_v16 = vpop.eup %12702  ;;  %8094 = vst [vmem:[%s16397_s16 + $0xc8] sm:$0xff] %v8056_v3  ;;  %11779 = vmatmul.mubr.f32.vlgmr.msra.gmra.mrb[48].mxu0 %v8056_v3  ;;  %12253 = vmatpush3.bf16.msra.mxu1 %v12250_v6 }
 0x5a3   : > { %v12705_v47 = vpop.eup %12704  ;;  %v7984_v23 = vpop.xlane.xlu1 %7983  ;;  %v8042_v40 = vmul.f32 %v12703_v16, %v16315_v9  ;;  %12255 = vmatprep.subr.bf16.mxu1 %v12254_v21  ;;  %v9742_v16 = vld [vmem:[#allocation10 + $0x58] sm:$0xff] }
 0x5a4   : > { %v8000_v37 = vpop.xlane.xlu0 %7999  ;;  %v8058_v61 = vmul.f32 %v12705_v47, %v16317_v15  ;;  %12714 = vrcp.f32 %v7984_v23  ;;  %v12270_v23 = vpack.c.bf16 %v9742_v16, %v9741_v60 }
 0x5a5   : > { %12716 = vrcp.f32 %v8000_v37  ;;  %8087 = vst [vmem:[%s16397_s16 + $0x90] sm:$0xff] %v8042_v40  ;;  %11737 = vmatprep.mubr.f32.mxu1 %v8042_v40 }
 0x5a6   : > { %v12707_v20 = vpop.eup %12706  ;;  %8095 = vst [vmem:[%s16397_s16 + $0xd0] sm:$0xff] %v8058_v61  ;;  %11781 = vmatprep.mubr.f32.mxu0 %v8058_v61  ;;  %12257 = vmatpush3.bf16.msra.mxu1 %v12254_v21 }
 0x5a7   : > { %v12709_v27 = vpop.eup %12708  ;;  %v7986_v5 = vpop.xlane.xlu1 %7985  ;;  %v8044_v18 = vmul.f32 %v12707_v20, %v16325_v45  ;;  %v17684_v45 = vld [vmem:[#allocation61_spill] sm:$0xff]  ;;  %12259 = vmatprep.subr.bf16.mxu1 %v12258_v50 }
 0x5a8   : > { %v8002_v29 = vpop.xlane.xlu0 %8001  ;;  %v8060_v9 = vmul.f32 %v12709_v27, %v17682_v10  ;;  %12718 = vrcp.f32 %v7986_v5 }
 0x5a9   : > { %12720 = vrcp.f32 %v8002_v29  ;;  %8088 = vst [vmem:[%s16397_s16 + $0x98] sm:$0xff] %v8044_v18  ;;  %11738 = vmatmul.mubr.f32.gmra.mrb[42].mxu1 %v8044_v18 }
 0x5aa   : > { %v12711_v15 = vpop.eup %12710  ;;  %8096 = vst [vmem:[%s16397_s16 + $0xd8] sm:$0xff] %v8060_v9  ;;  %11782 = vmatmul.mubr.f32.gmra.mrb[50].mxu0 %v8060_v9  ;;  %12261 = vmatpush3.bf16.msra.mxu1 %v12258_v50 }
 0x5ab   : > { %v12713_v31 = vpop.eup %12712  ;;  %v7988_v57 = vpop.xlane.xlu1 %7987  ;;  %v8046_v48 = vmul.f32 %v12711_v15, %v17683_v4  ;;  %12263 = vmatprep.subr.bf16.mxu1 %v12262_v22 }
 0x5ac   : > { %v8004_v41 = vpop.xlane.xlu0 %8003  ;;  %v8062_v38 = vmul.f32 %v12713_v31, %v17684_v45  ;;  %12722 = vrcp.f32 %v7988_v57 }
 0x5ad   : > { %12724 = vrcp.f32 %v8004_v41  ;;  %8089 = vst [vmem:[%s16397_s16 + $0xa0] sm:$0xff] %v8046_v48  ;;  %11740 = vmatprep.mubr.f32.mxu1 %v8046_v48 }
 0x5ae   : > { %v12715_v43 = vpop.eup %12714  ;;  %8097 = vst [vmem:[%s16397_s16 + $0xe0] sm:$0xff] %v8062_v38  ;;  %11784 = vmatprep.mubr.f32.mxu0 %v8062_v38  ;;  %12265 = vmatpush3.bf16.msra.mxu1 %v12262_v22 }
 0x5af   : > { %v12717_v42 = vpop.eup %12716  ;;  %v8048_v32 = vmul.f32 %v12715_v43, %v17685_v8  ;;  %12267 = vmatprep.subr.bf16.mxu1 %v12266_v46 }
 0x5b0   : > { %v8064_v1 = vmul.f32 %v12717_v42, %v17686_v34  ;;  %v17691_v42 = vld [vmem:[#allocation33_spill] sm:$0xff] }
 0x5b1   : > { %8090 = vst [vmem:[%s16397_s16 + $0xa8] sm:$0xff] %v8048_v32  ;;  %11741 = vmatmul.mubr.f32.gmra.mrb[44].mxu1 %v8048_v32 }
 0x5b2   : > { %v12719_v25 = vpop.eup %12718  ;;  %8098 = vst [vmem:[%s16397_s16 + $0xe8] sm:$0xff] %v8064_v1  ;;  %11785 = vmatmul.mubr.f32.gmra.mrb[52].mxu0 %v8064_v1  ;;  %12269 = vmatpush3.bf16.msra.mxu1 %v12266_v46 }
 0x5b3   : > { %v12721_v51 = vpop.eup %12720  ;;  %v8050_v53 = vmul.f32 %v12719_v25, %v17687_v39  ;;  %12271 = vmatprep.subr.bf16.mxu1 %v12270_v23 }
 0x5b4   : > { %v8066_v62 = vmul.f32 %v12721_v51, %v17688_v30 }
 0x5b5   : > { %8091 = vst [vmem:[%s16397_s16 + $0xb0] sm:$0xff] %v8050_v53  ;;  %11743 = vmatprep.mubr.f32.mxu1 %v8050_v53 }
 0x5b6   : > { %v12723_v44 = vpop.eup %12722  ;;  %8099 = vst [vmem:[%s16397_s16 + $0xf0] sm:$0xff] %v8066_v62  ;;  %11787 = vmatprep.mubr.f32.mxu0 %v8066_v62  ;;  %12273 = vmatpush3.bf16.msra.mxu1 %v12270_v23 }
 0x5b7   : > { %v12725_v14 = vpop.eup %12724  ;;  %v8052_v24 = vmul.f32 %v12723_v44, %v17689_v59 }
 0x5b8   : > { %v8068_v63 = vmul.f32 %v12725_v14, %v17690_v58 }
 0x5b9   : > { %8092 = vst [vmem:[%s16397_s16 + $0xb8] sm:$0xff] %v8052_v24  ;;  %11744 = vmatmul.mubr.f32.gmra.mrb[46].mxu1 %v8052_v24 }
 0x5ba   : > { %8100 = vst [vmem:[%s16397_s16 + $0xf8] sm:$0xff] %v8068_v63  ;;  %11788 = vmatmul.mubr.f32.gmra.mrb[54].mxu0 %v8068_v63 }
 0x62c   : > { %v11648_v56 = vpop.f32.mrb[32].mxu1 }
 0x62d   : > { %v11692_v49 = vpop.f32.mrb[40].mxu0  ;;  %v8167_v17 = vpop.f32.mrb[33].mxu1 }
 0x62e   : > { %v16546_v13 = vpop.f32.mrb[41].mxu0 }
 0x63d   : > { %v16548_v11 = vpop.f32.mrb[34].mxu1 }
 0x63e   : > { %v16550_v12 = vpop.f32.mrb[35].mxu1 }
 0x652   : > { %v16552_v28 = vpop.f32.mrb[42].mxu0 }
 0x653   : > { %v16554_v3 = vpop.f32.mrb[43].mxu0 }
 0x656   : > { %v16556_v47 = vpop.f32.mrb[44].mxu0 }
 0x657   : > { %v16558_v40 = vpop.f32.mrb[45].mxu0 }
 0x65a   : > { %v16560_v37 = vpop.f32.mrb[36].mxu1 }
 0x65b   : > { %v16564_v20 = vpop.f32.mrb[37].mxu1 }
 0x65d   : > { %v16562_v61 = vpop.f32.mrb[46].mxu0 }
 0x65e   : > { %v16566_v27 = vpop.f32.mrb[47].mxu0 }
 0x663   : > { %v16568_v5 = vpop.f32.mrb[38].mxu1 }
 0x664   : > { %v16570_v18 = vpop.f32.mrb[39].mxu1 }
 0x674   : > { %v11736_v29 = vpop.f32.mrb[40].mxu1 }
 0x675   : > { %v11780_v10 = vpop.f32.mrb[48].mxu0  ;;  %v8589_v9 = vcombine.low %v11648_v56, %v11736_v29  ;;  %v8590_v15 = vcombine.high %v11648_v56, %v11736_v29  ;;  %v8377_v31 = vpop.f32.mrb[41].mxu1 }
 0x676   : > { %v8605_v57 = vcombine.low %v11692_v49, %v11780_v10  ;;  %v8606_v4 = vcombine.high %v11692_v49, %v11780_v10  ;;  %v8482_v48 = vpop.f32.mrb[49].mxu0  ;;  %v8521_v41 = vcombine.low %v8167_v17, %v8377_v31  ;;  %v8522_v45 = vcombine.high %v8167_v17, %v8377_v31 }
 0x677   : > { %v8537_v38 = vcombine.low %v16546_v13, %v8482_v48  ;;  %v8538_v43 = vcombine.high %v16546_v13, %v8482_v48  ;;  %v8597_v8 = vrot.slane %v8589_v9, %v17691_v42  ;;  %v8604_v32 = vrot.slane %v8590_v15, %v17691_v42 }
 0x678   : > { %v8613_v34 = vrot.slane %v8605_v57, %v17691_v42  ;;  %v8620_v1 = vrot.slane %v8606_v4, %v17691_v42  ;;  %v8529_v25 = vrot.slane %v8521_v41, %v17691_v42  ;;  %v8536_v51 = vrot.slane %v8522_v45, %v17691_v42 }
 0x679   : > { %v8545_v39 = vrot.slane %v8537_v38, %v17691_v42  ;;  %v8552_v53 = vrot.slane %v8538_v43, %v17691_v42 }
 0x67a   : > { %v8621_v30 = vcombine.low %v8597_v8, %v8613_v34  ;;  %v8622_v62 = vcombine.high %v8597_v8, %v8613_v34  ;;  %v8637_v44 = vcombine.low %v8604_v32, %v8620_v1  ;;  %v8638_v14 = vcombine.high %v8604_v32, %v8620_v1 }
 0x67b   : > { %v8553_v59 = vcombine.low %v8529_v25, %v8545_v39  ;;  %v8554_v24 = vcombine.high %v8529_v25, %v8545_v39  ;;  %v8569_v58 = vcombine.low %v8536_v51, %v8552_v53  ;;  %v8570_v63 = vcombine.high %v8536_v51, %v8552_v53 }
 0x67c   : > { %v8629_v56 = vrot.slane %v8621_v30, %v13857_v35  ;;  %v8636_v49 = vrot.slane %v8622_v62, %v13857_v35  ;;  %v8645_v17 = vrot.slane %v8637_v44, %v13857_v35  ;;  %v8652_v13 = vrot.slane %v8638_v14, %v13857_v35  ;;  %v11739_v55 = vpop.f32.mrb[42].mxu1 }
 0x67d   : > { %v8561_v54 = vrot.slane %v8553_v59, %v13857_v35  ;;  %v8568_v36 = vrot.slane %v8554_v24, %v13857_v35  ;;  %v8577_v6 = vrot.slane %v8569_v58, %v13857_v35  ;;  %v8584_v0 = vrot.slane %v8570_v63, %v13857_v35  ;;  %v11783_v21 = vpop.f32.mrb[50].mxu0  ;;  %v8387_v52 = vpop.f32.mrb[43].mxu1 }
 0x67e   : > { %v9133_v26 = vcombine.low %v8629_v56, %v8636_v49  ;;  %v10891_v50 = vcombine.high %v8629_v56, %v8636_v49  ;;  %v9149_v19 = vcombine.low %v8645_v17, %v8652_v13  ;;  %v10892_v2 = vcombine.high %v8645_v17, %v8652_v13  ;;  %v8492_v22 = vpop.f32.mrb[51].mxu0 }
 0x67f   : > { %v9065_v7 = vcombine.low %v8561_v54, %v8568_v36  ;;  %v10889_v33 = vcombine.high %v8561_v54, %v8568_v36  ;;  %v9081_v46 = vcombine.low %v8577_v6, %v8584_v0  ;;  %v10890_v60 = vcombine.high %v8577_v6, %v8584_v0 }
 0x680   : > { %v16591_v16 = vrot.slane %v9133_v26, %v17691_v42  ;;  %v16594_v23 = vrot.slane %v10891_v50, %v17691_v42  ;;  %v16597_v29 = vrot.slane %v9149_v19, %v17691_v42  ;;  %v16600_v10 = vrot.slane %v10892_v2, %v17691_v42 }
 0x681   : > { %v16603_v9 = vrot.slane %v9065_v7, %v17691_v42  ;;  %v16606_v15 = vrot.slane %v10889_v33, %v17691_v42  ;;  %v16609_v31 = vrot.slane %v9081_v46, %v17691_v42  ;;  %v16612_v57 = vrot.slane %v10890_v60, %v17691_v42 }
 0x682   : > { %v8741_v4 = vcombine.low %v16552_v28, %v11783_v21  ;;  %v8742_v48 = vcombine.high %v16552_v28, %v11783_v21  ;;  %v8673_v41 = vcombine.low %v16554_v3, %v8492_v22  ;;  %v8674_v45 = vcombine.high %v16554_v3, %v8492_v22 }
 0x683   : > { %v8725_v38 = vcombine.low %v16548_v11, %v11739_v55  ;;  %v8726_v43 = vcombine.high %v16548_v11, %v11739_v55  ;;  %v8657_v8 = vcombine.low %v16550_v12, %v8387_v52  ;;  %v8658_v32 = vcombine.high %v16550_v12, %v8387_v52 }
 0x684   : > { %v8749_v34 = vrot.slane %v8741_v4, %v17691_v42  ;;  %v8756_v1 = vrot.slane %v8742_v48, %v17691_v42  ;;  %v8681_v25 = vrot.slane %v8673_v41, %v17691_v42  ;;  %v8688_v28 = vrot.slane %v8674_v45, %v17691_v42  ;;  %v11742_v51 = vpop.f32.mrb[44].mxu1 }
 0x685   : > { %v8733_v39 = vrot.slane %v8725_v38, %v17691_v42  ;;  %v8740_v3 = vrot.slane %v8726_v43, %v17691_v42  ;;  %v8665_v53 = vrot.slane %v8657_v8, %v17691_v42  ;;  %v8672_v11 = vrot.slane %v8658_v32, %v17691_v42  ;;  %v11786_v30 = vpop.f32.mrb[52].mxu0  ;;  %v8397_v62 = vpop.f32.mrb[45].mxu1 }
 0x686   : > { %v8877_v12 = vcombine.low %v16556_v47, %v11786_v30  ;;  %v8878_v44 = vcombine.high %v16556_v47, %v11786_v30  ;;  %v8502_v14 = vpop.f32.mrb[53].mxu0  ;;  %v8861_v59 = vcombine.low %v16560_v37, %v11742_v51  ;;  %v8862_v24 = vcombine.high %v16560_v37, %v11742_v51 }
 0x687   : > { %v8757_v58 = vcombine.low %v8733_v39, %v8749_v34  ;;  %v8758_v63 = vcombine.high %v8733_v39, %v8749_v34  ;;  %v8773_v56 = vcombine.low %v8740_v3, %v8756_v1  ;;  %v8774_v49 = vcombine.high %v8740_v3, %v8756_v1 }
 0x688   : > { %v8689_v17 = vcombine.low %v8665_v53, %v8681_v25  ;;  %v8690_v13 = vcombine.high %v8665_v53, %v8681_v25  ;;  %v8705_v55 = vcombine.low %v8672_v11, %v8688_v28  ;;  %v8706_v54 = vcombine.high %v8672_v11, %v8688_v28 }
 0x689   : > { %v8765_v36 = vrot.slane %v8757_v58, %v13857_v35  ;;  %v8772_v6 = vrot.slane %v8758_v63, %v13857_v35  ;;  %v8781_v0 = vrot.slane %v8773_v56, %v13857_v35  ;;  %v8788_v47 = vrot.slane %v8774_v49, %v13857_v35 }
 0x68a   : > { %v8697_v21 = vrot.slane %v8689_v17, %v13857_v35  ;;  %v8704_v37 = vrot.slane %v8690_v13, %v13857_v35  ;;  %v8713_v52 = vrot.slane %v8705_v55, %v13857_v35  ;;  %v8720_v26 = vrot.slane %v8706_v54, %v13857_v35 }
 0x68b   : > { %v9269_v50 = vcombine.low %v8765_v36, %v8772_v6  ;;  %v10895_v19 = vcombine.high %v8765_v36, %v8772_v6  ;;  %v9285_v2 = vcombine.low %v8781_v0, %v8788_v47  ;;  %v10896_v22 = vcombine.high %v8781_v0, %v8788_v47 }
 0x68c   : > { %v9201_v7 = vcombine.low %v8697_v21, %v8704_v37  ;;  %v10893_v33 = vcombine.high %v8697_v21, %v8704_v37  ;;  %v9217_v46 = vcombine.low %v8713_v52, %v8720_v26  ;;  %v10894_v60 = vcombine.high %v8713_v52, %v8720_v26  ;;  %v16642_v4 = vpop.f32.mrb[46].mxu1 }
 0x68d   : > { %v16645_v48 = vrot.slane %v9269_v50, %v17691_v42  ;;  %v16648_v41 = vrot.slane %v10895_v19, %v17691_v42  ;;  %v16651_v45 = vrot.slane %v9285_v2, %v17691_v42  ;;  %v16654_v38 = vrot.slane %v10896_v22, %v17691_v42  ;;  %v11789_v43 = vpop.f32.mrb[54].mxu0  ;;  %v16656_v8 = vpop.f32.mrb[47].mxu1 }
 0x68e   : > { %v16659_v32 = vrot.slane %v9201_v7, %v17691_v42  ;;  %v16662_v34 = vrot.slane %v10893_v33, %v17691_v42  ;;  %v16665_v1 = vrot.slane %v9217_v46, %v17691_v42  ;;  %v16668_v25 = vrot.slane %v10894_v60, %v17691_v42  ;;  %v8512_v28 = vpop.f32.mrb[55].mxu0 }
 0x68f   : > { %v8885_v51 = vrot.slane %v8877_v12, %v17691_v42  ;;  %v8892_v39 = vrot.slane %v8878_v44, %v17691_v42  ;;  %v8809_v3 = vcombine.low %v16558_v40, %v8502_v14  ;;  %v8810_v53 = vcombine.high %v16558_v40, %v8502_v14 }
 0x690   : > { %v8869_v11 = vrot.slane %v8861_v59, %v17691_v42  ;;  %v8876_v30 = vrot.slane %v8862_v24, %v17691_v42  ;;  %v8793_v58 = vcombine.low %v16564_v20, %v8397_v62  ;;  %v8794_v63 = vcombine.high %v16564_v20, %v8397_v62 }
 0x691   : > { %v8817_v56 = vrot.slane %v8809_v3, %v17691_v42  ;;  %v8824_v49 = vrot.slane %v8810_v53, %v17691_v42  ;;  %v9013_v12 = vcombine.low %v16562_v61, %v11789_v43  ;;  %v9014_v44 = vcombine.high %v16562_v61, %v11789_v43 }
 0x692   : > { %v8893_v17 = vcombine.low %v8869_v11, %v8885_v51  ;;  %v8894_v13 = vcombine.high %v8869_v11, %v8885_v51  ;;  %v8909_v55 = vcombine.low %v8876_v30, %v8892_v39  ;;  %v8910_v40 = vcombine.high %v8876_v30, %v8892_v39 }
 0x693   : > { %v8801_v14 = vrot.slane %v8793_v58, %v17691_v42  ;;  %v8808_v59 = vrot.slane %v8794_v63, %v17691_v42  ;;  %v16685_v24 = vrot.slane %v9013_v12, %v17691_v42  ;;  %v16688_v20 = vrot.slane %v9014_v44, %v17691_v42 }
 0x694   : > { %v8901_v62 = vrot.slane %v8893_v17, %v13857_v35  ;;  %v8908_v54 = vrot.slane %v8894_v13, %v13857_v35  ;;  %v8917_v61 = vrot.slane %v8909_v55, %v13857_v35  ;;  %v8924_v36 = vrot.slane %v8910_v40, %v13857_v35 }
 0x695   : > { %v8825_v6 = vcombine.low %v8801_v14, %v8817_v56  ;;  %v8826_v0 = vcombine.high %v8801_v14, %v8817_v56  ;;  %v8841_v47 = vcombine.low %v8808_v59, %v8824_v49  ;;  %v8842_v21 = vcombine.high %v8808_v59, %v8824_v49 }
 0x696   : > { %v9405_v37 = vcombine.low %v8901_v62, %v8908_v54  ;;  %v10899_v52 = vcombine.high %v8901_v62, %v8908_v54  ;;  %v9421_v26 = vcombine.low %v8917_v61, %v8924_v36  ;;  %v10900_v50 = vcombine.high %v8917_v61, %v8924_v36 }
 0x697   : > { %v8833_v19 = vrot.slane %v8825_v6, %v13857_v35  ;;  %v8840_v2 = vrot.slane %v8826_v0, %v13857_v35  ;;  %v8849_v22 = vrot.slane %v8841_v47, %v13857_v35  ;;  %v8856_v7 = vrot.slane %v8842_v21, %v13857_v35 }
 0x698   : > { %v16699_v33 = vrot.slane %v9405_v37, %v17691_v42  ;;  %v16702_v46 = vrot.slane %v10899_v52, %v17691_v42  ;;  %v16705_v60 = vrot.slane %v9421_v26, %v17691_v42  ;;  %v16708_v43 = vrot.slane %v10900_v50, %v17691_v42 }
 0x699   : > { %v9337_v51 = vcombine.low %v8833_v19, %v8840_v2  ;;  %v10897_v39 = vcombine.high %v8833_v19, %v8840_v2  ;;  %v9353_v3 = vcombine.low %v8849_v22, %v8856_v7  ;;  %v10898_v53 = vcombine.high %v8849_v22, %v8856_v7 }
 0x69a   : > { %v8945_v11 = vcombine.low %v16566_v27, %v8512_v28  ;;  %v8946_v30 = vcombine.high %v16566_v27, %v8512_v28  ;;  %v9098_v58 = vcombine.high %v16603_v9, %v16606_v15  ;;  %v9114_v63 = vcombine.high %v16609_v31, %v16612_v57 }
 0x69b   : > { %v16717_v56 = vrot.slane %v9337_v51, %v17691_v42  ;;  %v16720_v49 = vrot.slane %v10897_v39, %v17691_v42  ;;  %v16723_v12 = vrot.slane %v9353_v3, %v17691_v42  ;;  %v16726_v44 = vrot.slane %v10898_v53, %v17691_v42 }
 0x69c   : > { %v8953_v27 = vrot.slane %v8945_v11, %v17691_v42  ;;  %v8960_v28 = vrot.slane %v8946_v30, %v17691_v42  ;;  %v9112_v17 = vrot.slane %v9098_v58, %v13857_v35  ;;  %v9128_v13 = vrot.slane %v9114_v63, %v13857_v35 }
 0x69d   : > { %v9166_v55 = vcombine.high %v16591_v16, %v16594_v23  ;;  %v9182_v40 = vcombine.high %v16597_v29, %v16600_v10  ;;  %v9097_v14 = vcombine.low %v16603_v9, %v16606_v15  ;;  %v9113_v59 = vcombine.low %v16609_v31, %v16612_v57 }
 0x69e   : > { %v9131_v62 = vcombine.low %v9112_v17, %v9128_v13  ;;  %v9165_v54 = vcombine.low %v16591_v16, %v16594_v23  ;;  %v9181_v61 = vcombine.low %v16597_v29, %v16600_v10  ;;  %v8997_v36 = vcombine.low %v16568_v5, %v16642_v4 }
 0x69f   : > { %v9180_v6 = vrot.slane %v9166_v55, %v13857_v35  ;;  %v9196_v0 = vrot.slane %v9182_v40, %v13857_v35  ;;  %v16749_v47 = vrot.slane %v9097_v14, %v13857_v35  ;;  %v16752_v9 = vrot.slane %v9113_v59, %v13857_v35 }
 0x6a0   : > { %v16755_v15 = vrot.slane %v9165_v54, %v13857_v35  ;;  %v16758_v16 = vrot.slane %v9181_v61, %v13857_v35  ;;  %v8998_v23 = vcombine.high %v16568_v5, %v16642_v4  ;;  %v9005_v29 = vrot.slane %v8997_v36, %v17691_v42 }
 0x6a1   : > { %v9199_v10 = vcombine.low %v9180_v6, %v9196_v0  ;;  %v9130_v31 = vcombine.high %v16749_v47, %v16752_v9  ;;  %v8929_v57 = vcombine.low %v16570_v18, %v16656_v8  ;;  %v8930_v21 = vcombine.high %v16570_v18, %v16656_v8 }
 0x6a2   : > { %v9198_v37 = vcombine.high %v16755_v15, %v16758_v16  ;;  %v9012_v52 = vrot.slane %v8998_v23, %v17691_v42  ;;  %v9029_v26 = vcombine.low %v9005_v29, %v16685_v24  ;;  %v9030_v5 = vcombine.high %v9005_v29, %v16685_v24 }
 0x6a3   : > { %v12543_v4 = vpack.i.bf16 %v9199_v10, %v9131_v62  ;;  %v8937_v50 = vrot.slane %v8929_v57, %v17691_v42  ;;  %v8944_v19 = vrot.slane %v8930_v21, %v17691_v42  ;;  %v9132_v2 = vcombine.high %v9112_v17, %v9128_v13 }
 0x6a4   : > { %v12538_v22 = vpack.i.bf16 %v9198_v37, %v9130_v31  ;;  %v9037_v7 = vrot.slane %v9029_v26, %v13857_v35  ;;  %v9044_v18 = vrot.slane %v9030_v5, %v13857_v35  ;;  %v9045_v8 = vcombine.low %v9012_v52, %v16688_v20 }
 0x6a5   : > { %12544 = vrot.lane.b32.xlu0 %v12543_v4, %s13116_s12  ;;  %v9046_v51 = vcombine.high %v9012_v52, %v16688_v20  ;;  %v8961_v39 = vcombine.low %v8937_v50, %v8953_v27  ;;  %v8962_v3 = vcombine.high %v8937_v50, %v8953_v27  ;;  %v8977_v24 = vcombine.low %v8944_v19, %v8960_v28 }
 0x6a6   : > { %12539 = vrot.lane.b32.xlu1 %v12538_v22, %s13118_s26  ;;  %v9053_v53 = vrot.slane %v9045_v8, %v13857_v35  ;;  %v9541_v11 = vcombine.low %v9037_v7, %v9044_v18  ;;  %v10903_v30 = vcombine.high %v9037_v7, %v9044_v18  ;;  %v8978_v58 = vcombine.high %v8944_v19, %v8960_v28 }
 0x6a7   : > { %v9060_v63 = vrot.slane %v9046_v51, %v13857_v35  ;;  %v8969_v17 = vrot.slane %v8961_v39, %v13857_v35  ;;  %v8976_v13 = vrot.slane %v8962_v3, %v13857_v35  ;;  %v8985_v55 = vrot.slane %v8977_v24, %v13857_v35 }
 0x6a8   : > { %v16788_v20 = vrot.slane %v9541_v11, %v17691_v42  ;;  %v16791_v27 = vrot.slane %v10903_v30, %v17691_v42  ;;  %v8992_v40 = vrot.slane %v8978_v58, %v13857_v35  ;;  %v9200_v14 = vcombine.high %v9180_v6, %v9196_v0 }
 0x6a9   : > { %v9557_v59 = vcombine.low %v9053_v53, %v9060_v63  ;;  %v10904_v62 = vcombine.high %v9053_v53, %v9060_v63  ;;  %v9473_v28 = vcombine.low %v8969_v17, %v8976_v13  ;;  %v10901_v54 = vcombine.high %v8969_v17, %v8976_v13 }
 0x6aa   : > { %v9489_v61 = vcombine.low %v8985_v55, %v8992_v40  ;;  %v10902_v36 = vcombine.high %v8985_v55, %v8992_v40  ;;  %v12548_v23 = vpack.i.bf16 %v9200_v14, %v9132_v2  ;;  %v9234_v29 = vcombine.high %v16659_v32, %v16662_v34 }
 0x6ab   : > { %v16797_v10 = vrot.slane %v9557_v59, %v17691_v42  ;;  %v16800_v31 = vrot.slane %v10904_v62, %v17691_v42  ;;  %v16803_v57 = vrot.slane %v9473_v28, %v17691_v42  ;;  %v16806_v6 = vrot.slane %v10901_v54, %v17691_v42 }
 0x6ac   : > { %v16809_v0 = vrot.slane %v9489_v61, %v17691_v42  ;;  %v16812_v21 = vrot.slane %v10902_v36, %v17691_v42  ;;  %12549 = vrot.lane.b32.xlu1 %v12548_v23, %s13117_s30  ;;  %v9248_v37 = vrot.slane %v9234_v29, %v13857_v35  ;;  %v9250_v52 = vcombine.high %v16665_v1, %v16668_v25 }
 0x6ad   : > { %v9302_v26 = vcombine.high %v16645_v48, %v16648_v41  ;;  %v9318_v5 = vcombine.high %v16651_v45, %v16654_v38  ;;  %v9233_v4 = vcombine.low %v16659_v32, %v16662_v34  ;;  %v9249_v42 = vcombine.low %v16665_v1, %v16668_v25 }
 0x6ae   : > { %v9264_v50 = vrot.slane %v9250_v52, %v13857_v35  ;;  %v9301_v19 = vcombine.low %v16645_v48, %v16648_v41  ;;  %v9317_v2 = vcombine.low %v16651_v45, %v16654_v38  ;;  %v9370_v22 = vcombine.high %v16717_v56, %v16720_v49 }
 0x6af   : > { %v9316_v7 = vrot.slane %v9302_v26, %v13857_v35  ;;  %v9332_v18 = vrot.slane %v9318_v5, %v13857_v35  ;;  %v16836_v32 = vrot.slane %v9233_v4, %v13857_v35  ;;  %v16839_v34 = vrot.slane %v9249_v42, %v13857_v35 }
 0x6b0   : > { %v9267_v1 = vcombine.low %v9248_v37, %v9264_v50  ;;  %v16842_v25 = vrot.slane %v9301_v19, %v13857_v35  ;;  %v16845_v48 = vrot.slane %v9317_v2, %v13857_v35  ;;  %v9268_v41 = vcombine.high %v9248_v37, %v9264_v50  ;;  %v9743_v19 = vld [vmem:[#allocation10 + $0x60] sm:$0xff] }
 0x6b1   : > { %v9335_v45 = vcombine.low %v9316_v7, %v9332_v18  ;;  %v9266_v38 = vcombine.high %v16836_v32, %v16839_v34  ;;  %v9336_v8 = vcombine.high %v9316_v7, %v9332_v18  ;;  %v9384_v51 = vrot.slane %v9370_v22, %v13857_v35  ;;  %v9745_v18 = vld [vmem:[#allocation10 + $0x70] sm:$0xff] }
 0x6b2   : > { %v9334_v39 = vcombine.high %v16842_v25, %v16845_v48  ;;  %v9386_v3 = vcombine.high %v16723_v12, %v16726_v44  ;;  %v9438_v24 = vcombine.high %v16699_v33, %v16702_v46  ;;  %v9454_v53 = vcombine.high %v16705_v60, %v16708_v43 }
 0x6b3   : > { %v12558_v11 = vpack.i.bf16 %v9335_v45, %v9267_v1  ;;  %v12563_v30 = vpack.i.bf16 %v9336_v8, %v9268_v41  ;;  %v9369_v58 = vcombine.low %v16717_v56, %v16720_v49  ;;  %v9385_v63 = vcombine.low %v16723_v12, %v16726_v44  ;;  %v9746_v1 = vld [vmem:[#allocation10 + $0x78] sm:$0xff] }
 0x6b4   : > { %v12553_v17 = vpack.i.bf16 %v9334_v39, %v9266_v38  ;;  %v9400_v13 = vrot.slane %v9386_v3, %v13857_v35  ;;  %v9452_v55 = vrot.slane %v9438_v24, %v13857_v35  ;;  %v9468_v40 = vrot.slane %v9454_v53, %v13857_v35 }
 0x6b5   : > { %12559 = vrot.lane.b32.xlu0 %v12558_v11, %s13116_s12  ;;  %v16867_v14 = vrot.slane %v9369_v58, %v13857_v35  ;;  %v16870_v59 = vrot.slane %v9385_v63, %v13857_v35  ;;  %v9437_v56 = vcombine.low %v16699_v33, %v16702_v46  ;;  %v9453_v49 = vcombine.low %v16705_v60, %v16708_v43 }
 0x6b6   : > { %12554 = vrot.lane.b32.xlu1 %v12553_v17, %s13118_s26  ;;  %v9403_v12 = vcombine.low %v9384_v51, %v9400_v13  ;;  %v9471_v44 = vcombine.low %v9452_v55, %v9468_v40  ;;  %v9404_v62 = vcombine.high %v9384_v51, %v9400_v13  ;;  %v9472_v28 = vcombine.high %v9452_v55, %v9468_v40 }
 0x6b7   : > { %v9402_v54 = vcombine.high %v16867_v14, %v16870_v59  ;;  %v16880_v61 = vrot.slane %v9437_v56, %v13857_v35  ;;  %v16883_v36 = vrot.slane %v9453_v49, %v13857_v35  ;;  %v9506_v33 = vcombine.high %v16803_v57, %v16806_v6 }
 0x6b8   : > { %v12573_v46 = vpack.i.bf16 %v9471_v44, %v9403_v12  ;;  %v12578_v60 = vpack.i.bf16 %v9472_v28, %v9404_v62  ;;  %v9522_v43 = vcombine.high %v16809_v0, %v16812_v21  ;;  %v9574_v23 = vcombine.high %v16788_v20, %v16791_v27 }
 0x6b9   : > { %v9470_v29 = vcombine.high %v16880_v61, %v16883_v36  ;;  %v9520_v37 = vrot.slane %v9506_v33, %v13857_v35  ;;  %v9590_v52 = vcombine.high %v16797_v10, %v16800_v31  ;;  %v9505_v26 = vcombine.low %v16803_v57, %v16806_v6  ;;  %v9744_v6 = vld [vmem:[#allocation10 + $0x68] sm:$0xff] }
 0x6ba   : > { %12564 = vrot.lane.b32.xlu1 %v12563_v30, %s13117_s30  ;;  %v9536_v5 = vrot.slane %v9522_v43, %v13857_v35  ;;  %v9588_v4 = vrot.slane %v9574_v23, %v13857_v35  ;;  %v9521_v42 = vcombine.low %v16809_v0, %v16812_v21  ;;  %v9573_v50 = vcombine.low %v16788_v20, %v16791_v27 }
 0x6bb   : > { %v12568_v2 = vpack.i.bf16 %v9470_v29, %v9402_v54  ;;  %v9604_v22 = vrot.slane %v9590_v52, %v13857_v35  ;;  %v16907_v7 = vrot.slane %v9505_v26, %v13857_v35  ;;  %v9589_v57 = vcombine.low %v16797_v10, %v16800_v31 }
 0x6bc   : > { %v9539_v41 = vcombine.low %v9520_v37, %v9536_v5  ;;  %v16912_v45 = vrot.slane %v9521_v42, %v13857_v35  ;;  %v16915_v0 = vrot.slane %v9573_v50, %v13857_v35  ;;  %v9540_v20 = vcombine.high %v9520_v37, %v9536_v5 }
 0x6bd   : > { %12569 = vrot.lane.b32.xlu0 %v12568_v2, %s13118_s26  ;;  %v9607_v27 = vcombine.low %v9588_v4, %v9604_v22  ;;  %v16919_v21 = vrot.slane %v9589_v57, %v13857_v35  ;;  %v9608_v38 = vcombine.high %v9588_v4, %v9604_v22  ;;  %v9197_v10 = vcombine.low %v16755_v15, %v16758_v16 }
 0x6be   : > { %12574 = vrot.lane.b32.xlu1 %v12573_v46, %s13116_s12  ;;  %v9538_v31 = vcombine.high %v16907_v7, %v16912_v45  ;;  %v12274_v8 = vpack.c.bf16 %v9744_v6, %v9743_v19  ;;  %v12278_v51 = vpack.c.bf16 %v9746_v1, %v9745_v18  ;;  %v9129_v35 = vcombine.low %v16749_v47, %v16752_v9 }
 0x6bf   : > { %v12588_v39 = vpack.i.bf16 %v9607_v27, %v9539_v41  ;;  %v9606_v3 = vcombine.high %v16915_v0, %v16919_v21  ;;  %v12593_v24 = vpack.i.bf16 %v9608_v38, %v9540_v20  ;;  %v9265_v53 = vcombine.low %v16836_v32, %v16839_v34 }
 0x6c0   : > { %12275 = vmatprep.subr.bf16.mxu1 %v12274_v8  ;;  %v9333_v15 = vcombine.low %v16842_v25, %v16845_v48  ;;  %v9401_v16 = vcombine.low %v16867_v14, %v16870_v59  ;;  %v9469_v30 = vcombine.low %v16880_v61, %v16883_v36  ;;  %v9537_v47 = vcombine.low %v16907_v7, %v16912_v45 }
 0x6c1   : > { %12579 = vrot.lane.b32.xlu0 %v12578_v60, %s13117_s30  ;;  %v12583_v11 = vpack.i.bf16 %v9606_v3, %v9538_v31  ;;  %12277 = vmatpush3.bf16.msra.mxu1 %v12274_v8  ;;  %v9605_v9 = vcombine.low %v16915_v0, %v16919_v21 }
 0x6c2   : > { %12279 = vmatprep.subr.bf16.mxu1 %v12278_v51 }
 0x6c3   : > { %12584 = vrot.lane.b32.xlu1 %v12583_v11, %s13118_s26  ;;  %s17692_s26 = sld [smem:[#allocation101_spill]] }
 0x6c5   : > { %12589 = vrot.lane.b32.xlu0 %v12588_v39, %s13116_s12  ;;  %12281 = vmatpush3.bf16.msra.mxu1 %v12278_v51  ;;  %s17696_s12 = sld [smem:[#allocation103_spill]] }
 0x6c7   : > { %12594 = vrot.lane.b32.xlu1 %v12593_v24, %s13117_s30  ;;  %s17700_s30 = sld [smem:[#allocation27_spill]] }
 0x6c9   : > { %v10905_v45 = vld [vmem:[%s17692_s26] ss:$0 sm:$0xff]  ;;  %s17411_s26 = sshll.u32 %s17465_s9, 3 }
 0x717   : > { %v12545_v48 = vpop.permute.xlu0 %12544 }
 0x718   : > { %v12540_v32 = vpop.permute.xlu1 %12539  ;;  %v12547_v58 = vunpack.i.h.bf16 %v12545_v48  ;;  %v12546_v63 = vunpack.i.l.bf16 %v12545_v48  ;;  %v12760_v48 = vld [vmem:[%s13584_s8] sm:$0xff] }
 0x719   : > { %v12542_v34 = vunpack.i.h.bf16 %v12540_v32  ;;  %v12541_v25 = vunpack.i.l.bf16 %v12540_v32 }
 0x71b   : > { %v9706_v17 = vsel %vm7040_vm0, %v9197_v10, %v12542_v34  ;;  %v9705_v13 = vsel %vm7040_vm0, %v9129_v35, %v12541_v25  ;;  %v12759_v34 = vld [vmem:[%s13584_s8 + $0x8] sm:$0xff] }
 0x71c   : > { %v9715_v59 = vsel %vm9713_vm2, %v9706_v17, %v12547_v58  ;;  %v9714_v56 = vsel %vm9713_vm2, %v9705_v13, %v12546_v63 }
 0x71e   : > { %v12550_v55 = vpop.permute.xlu1 %12549 }
 0x71f   : > { %v12552_v40 = vunpack.i.h.bf16 %v12550_v55  ;;  %v12551_v14 = vunpack.i.l.bf16 %v12550_v55 }
 0x721   : > { %v9723_v49 = vsel %vm9722_vm3, %v9714_v56, %v12551_v14  ;;  %v9724_v12 = vsel %vm9722_vm3, %v9715_v59, %v12552_v40  ;;  %v12761_v40 = vld [vmem:[%s13584_s8 + $0x10] sm:$0xff]  ;;  %v12762_v56 = vld [vmem:[%s13584_s8 + $0x18] sm:$0xff] }
 0x722   : > { %11822 = vmatprep.mubr.f32.mxu1 %v9723_v49 }
 0x723   : > { %11823 = vmatmul.mubr.f32.vlgmr.msra.gmra.mrb[48].mxu1 %v9724_v12 }
 0x727   : > { %v12560_v44 = vpop.permute.xlu0 %12559 }
 0x728   : > { %v12555_v62 = vpop.permute.xlu1 %12554  ;;  %v12562_v61 = vunpack.i.h.bf16 %v12560_v44  ;;  %v12561_v36 = vunpack.i.l.bf16 %v12560_v44 }
 0x729   : > { %v12557_v28 = vunpack.i.h.bf16 %v12555_v62  ;;  %v12556_v54 = vunpack.i.l.bf16 %v12555_v62 }
 0x72b   : > { %v9707_v33 = vsel %vm7040_vm0, %v9265_v53, %v12556_v54  ;;  %v9708_v46 = vsel %vm7040_vm0, %v9333_v15, %v12557_v28  ;;  %v12763_v28 = vld [vmem:[%s13584_s8 + $0x28] sm:$0xff] }
 0x72c   : > { %v12565_v60 = vpop.permute.xlu1 %12564  ;;  %v9716_v29 = vsel %vm9713_vm2, %v9707_v33, %v12561_v36  ;;  %v9717_v37 = vsel %vm9713_vm2, %v9708_v46, %v12562_v61  ;;  %v12764_v61 = vld [vmem:[%s13584_s8 + $0x20] sm:$0xff] }
 0x72d   : > { %v12567_v43 = vunpack.i.h.bf16 %v12565_v60  ;;  %v12566_v23 = vunpack.i.l.bf16 %v12565_v60 }
 0x72f   : > { %v12570_v52 = vpop.permute.xlu0 %12569  ;;  %v9725_v26 = vsel %vm9722_vm3, %v9716_v29, %v12566_v23  ;;  %v9726_v5 = vsel %vm9722_vm3, %v9717_v37, %v12567_v43  ;;  %v12765_v23 = vld [vmem:[%s13584_s8 + $0x38] sm:$0xff]  ;;  %v12766_v37 = vld [vmem:[%s13584_s8 + $0x30] sm:$0xff]  ;;  %s17697_s8 = sld [smem:[#allocation105_spill]] }
 0x730   : > { %v12575_v4 = vpop.permute.xlu1 %12574  ;;  %v12572_v42 = vunpack.i.h.bf16 %v12570_v52  ;;  %v12571_v50 = vunpack.i.l.bf16 %v12570_v52  ;;  %11825 = vmatprep.mubr.f32.mxu1 %v9725_v26  ;;  %v9987_v26 = vld [vmem:[#allocation11 + $0x8] sm:$0xff] }
 0x731   : > { %v12577_v19 = vunpack.i.h.bf16 %v12575_v4  ;;  %v12576_v2 = vunpack.i.l.bf16 %v12575_v4  ;;  %11826 = vmatmul.mubr.f32.gmra.mrb[50].mxu1 %v9726_v5  ;;  %v9989_v5 = vld [vmem:[#allocation11 + $0x18] sm:$0xff]  ;;  %v9986_v4 = vld [vmem:[#allocation11] sm:$0xff] }
 0x732   : > { %v9709_v22 = vsel %vm7040_vm0, %v9401_v16, %v12571_v50  ;;  %v9710_v57 = vsel %vm7040_vm0, %v9469_v30, %v12572_v42  ;;  %v12282_v42 = vpack.c.bf16 %v9989_v5, %v9987_v26  ;;  %v9988_v50 = vld [vmem:[#allocation11 + $0x10] sm:$0xff]  ;;  %v10006_v5 = vld [vmem:[#allocation11 + $0xa0] sm:$0xff] }
 0x733   : > { %v12580_v6 = vpop.permute.xlu0 %12579  ;;  %v9718_v20 = vsel %vm9713_vm2, %v9709_v22, %v12576_v2  ;;  %v9719_v27 = vsel %vm9713_vm2, %v9710_v57, %v12577_v19  ;;  %v9991_v19 = vld [vmem:[#allocation11 + $0x28] sm:$0xff]  ;;  %v9993_v2 = vld [vmem:[#allocation11 + $0x38] sm:$0xff]  ;;  %v12284_v22 = vpack.c.bf16 %v9988_v50, %v9986_v4  ;;  %v10008_v4 = vld [vmem:[#allocation11 + $0xb0] sm:$0xff] }
 0x734   : > { %v12582_v18 = vunpack.i.h.bf16 %v12580_v6  ;;  %v12581_v1 = vunpack.i.l.bf16 %v12580_v6  ;;  %v12286_v57 = vpack.c.bf16 %v9993_v2, %v9991_v19  ;;  %v9990_v6 = vld [vmem:[#allocation11 + $0x20] sm:$0xff]  ;;  %12283 = vmatprep.subr.bf16.mxu0 %v12282_v42  ;;  %v10011_v42 = vld [vmem:[#allocation11 + $0xc8] sm:$0xff]  ;;  %v10013_v50 = vld [vmem:[#allocation11 + $0xd8] sm:$0xff]  ;;  %v12304_v19 = vpack.c.bf16 %v10008_v4, %v10006_v5 }
 0x735   : > { %v12585_v41 = vpop.permute.xlu1 %12584  ;;  %12285 = vmatpush1.bf16.msra.mxu0 %v12284_v22  ;;  %v12306_v2 = vpack.c.bf16 %v10013_v50, %v10011_v42  ;;  %v10010_v22 = vld [vmem:[#allocation11 + $0xc0] sm:$0xff] }
 0x736   : > { %v12587_v38 = vunpack.i.h.bf16 %v12585_v41  ;;  %v12586_v10 = vunpack.i.l.bf16 %v12585_v41  ;;  %v9727_v31 = vsel %vm9722_vm3, %v9718_v20, %v12581_v1  ;;  %v9728_v8 = vsel %vm9722_vm3, %v9719_v27, %v12582_v18  ;;  %v9992_v18 = vld [vmem:[#allocation11 + $0x30] sm:$0xff]  ;;  %v9995_v1 = vld [vmem:[#allocation11 + $0x48] sm:$0xff]  ;;  %v9997_v41 = vld [vmem:[#allocation11 + $0x58] sm:$0xff]  ;;  %12287 = vmatprep.subr.bf16.mxu0 %v12286_v57 }
 0x737   : > { %v12590_v51 = vpop.permute.xlu0 %12589  ;;  %11828 = vmatprep.mubr.f32.mxu1 %v9727_v31  ;;  %v12288_v20 = vpack.c.bf16 %v9992_v18, %v9990_v6  ;;  %v12290_v27 = vpack.c.bf16 %v9997_v41, %v9995_v1  ;;  %v10012_v57 = vld [vmem:[#allocation11 + $0xd0] sm:$0xff]  ;;  %v10015_v6 = vld [vmem:[#allocation11 + $0xe8] sm:$0xff]  ;;  %v10017_v18 = vld [vmem:[#allocation11 + $0xf8] sm:$0xff]  ;;  %v13121_v41 = vmov 0.0  }
 0x738   : > { %v12592_v39 = vunpack.i.h.bf16 %v12590_v51  ;;  %v12591_v3 = vunpack.i.l.bf16 %v12590_v51  ;;  %11829 = vmatmul.mubr.f32.gmra.mrb[52].mxu1 %v9728_v8  ;;  %v9711_v24 = vsel %vm7040_vm0, %v9537_v47, %v12586_v10  ;;  %v9712_v35 = vsel %vm7040_vm0, %v9605_v9, %v12587_v38  ;;  %v9994_v38 = vld [vmem:[#allocation11 + $0x40] sm:$0xff]  ;;  %v9996_v10 = vld [vmem:[#allocation11 + $0x50] sm:$0xff]  ;;  %10094 = vmatprep.mubr.f32.mxu0 %v13121_v41 }
 0x739   : > { %v12595_v53 = vpop.permute.xlu1 %12594  ;;  %12289 = vmatpush1.bf16.msra.mxu0 %v12288_v20  ;;  %v12292_v31 = vpack.c.bf16 %v9996_v10, %v9994_v38  ;;  %v12308_v1 = vpack.c.bf16 %v10012_v57, %v10010_v22  ;;  %v12310_v20 = vpack.c.bf16 %v10017_v18, %v10015_v6  ;;  %v10016_v38 = vld [vmem:[#allocation11 + $0xf0] sm:$0xff]  ;;  %v17035_v18 = vld [vmem:[%s17693_s4] ss:$0 sm:$0xff] }
 0x73a   : > { %v12597_v15 = vunpack.i.h.bf16 %v12595_v53  ;;  %v12596_v16 = vunpack.i.l.bf16 %v12595_v53  ;;  %v9720_v11 = vsel %vm9713_vm2, %v9711_v24, %v12591_v3  ;;  %v9721_v30 = vsel %vm9713_vm2, %v9712_v35, %v12592_v39  ;;  %12291 = vmatprep.subr.bf16.mxu0 %v12290_v27  ;;  %v10014_v27 = vld [vmem:[#allocation11 + $0xe0] sm:$0xff] }
 0x73b   : > { %v12312_v10 = vpack.c.bf16 %v10016_v38, %v10014_v27  ;;  %v17042_v38 = vld [vmem:[%s17694_s24] ss:$0 sm:$0xff] }
 0x73c   : > { %v9729_v32 = vsel %vm9722_vm3, %v9720_v11, %v12596_v16  ;;  %v9730_v7 = vsel %vm9722_vm3, %v9721_v30, %v12597_v15 }
 0x73d   : > { %11831 = vmatprep.mubr.f32.mxu1 %v9729_v32  ;;  %12293 = vmatpush1.bf16.msra.mxu0 %v12292_v31  ;;  %v10175_v31 = vld [vmem:[#allocation13 + $0x80] sm:$0xff] }
 0x73e   : > { %11832 = vmatmul.mubr.f32.gmra.mrb[54].mxu1 %v9730_v7 }
 0x7f6   : > { %v11824_v0 = vpop.f32.mrb[48].mxu1 }
 0x7f7   : > { %v9826_v21 = vadd.f32 %v11824_v0, %v10905_v45  ;;  %v9820_v47 = vpop.f32.mrb[49].mxu1 }
 0x7f8   : > { %v9821_v9 = vadd.f32 %v10905_v45, %v9820_v47 }
 0x7f9   : > { %v16980_v25 = vadd.f32 %v12759_v34, %v9826_v21 }
 0x7fa   : > { %v9859_v58 = vadd.f32 %v12760_v48, %v9821_v9 }
 0x7fb   : > { %9871 = vadd.xlane.f32.xlu1 %v16980_v25 }
 0x7fc   : > { %9869 = vadd.xlane.f32.xlu0 %v9859_v58 }
 0x804   : > { %v11827_v63 = vpop.f32.mrb[50].mxu1 }
 0x805   : > { %v9830_v17 = vpop.f32.mrb[51].mxu1  ;;  %v9836_v55 = vadd.f32 %v11827_v63, %v10905_v45 }
 0x806   : > { %v9831_v13 = vadd.f32 %v10905_v45, %v9830_v17 }
 0x807   : > { %v9862_v49 = vadd.f32 %v12762_v56, %v9836_v55 }
 0x808   : > { %v9861_v14 = vadd.f32 %v12761_v40, %v9831_v13 }
 0x80a   : > { %9873 = vadd.xlane.f32.xlu0 %v9861_v14 }
 0x80b   : > { %v11830_v59 = vpop.f32.mrb[52].mxu1 }
 0x80c   : > { %v9846_v12 = vadd.f32 %v11830_v59, %v10905_v45  ;;  %v9840_v44 = vpop.f32.mrb[53].mxu1 }
 0x80d   : > { %v9841_v62 = vadd.f32 %v10905_v45, %v9840_v44  ;;  %v9999_v44 = vld [vmem:[#allocation11 + $0x68] sm:$0xff] }
 0x80e   : > { %v16987_v54 = vadd.f32 %v12763_v28, %v9846_v12  ;;  %9875 = vadd.xlane.f32.xlu0 %v9862_v49  ;;  %v9998_v28 = vld [vmem:[#allocation11 + $0x60] sm:$0xff] }
 0x80f   : > { %v9863_v36 = vadd.f32 %v12764_v61, %v9841_v62  ;;  %v10001_v62 = vld [vmem:[#allocation11 + $0x78] sm:$0xff]  ;;  %v10000_v61 = vld [vmem:[#allocation11 + $0x70] sm:$0xff] }
 0x811   : > { %9877 = vadd.xlane.f32.xlu1 %v9863_v36  ;;  %v11833_v33 = vpop.f32.mrb[54].mxu1 }
 0x812   : > { %9879 = vadd.xlane.f32.xlu0 %v16987_v54  ;;  %v9856_v46 = vadd.f32 %v11833_v33, %v10905_v45  ;;  %v9850_v60 = vpop.f32.mrb[55].mxu1  ;;  %v10005_v33 = vld [vmem:[#allocation11 + $0x98] sm:$0xff] }
 0x813   : > { %v9851_v43 = vadd.f32 %v10905_v45, %v9850_v60 }
 0x814   : > { %v16992_v29 = vadd.f32 %v12765_v23, %v9856_v46  ;;  %v12296_v46 = vpack.c.bf16 %v10000_v61, %v9998_v28  ;;  %v10004_v23 = vld [vmem:[#allocation11 + $0x90] sm:$0xff]  ;;  %v10167_v28 = vld [vmem:[#allocation13 + $0x40] sm:$0xff] }
 0x815   : > { %v9865_v52 = vadd.f32 %v12766_v37, %v9851_v43  ;;  %v10002_v43 = vld [vmem:[#allocation11 + $0x80] sm:$0xff]  ;;  %v10009_v37 = vld [vmem:[#allocation11 + $0xb8] sm:$0xff]  ;;  %v10185_v61 = vld [vmem:[#allocation13 + $0xd0] sm:$0xff] }
 0x816   : > { %9883 = vadd.xlane.f32.xlu0 %v16992_v29 }
 0x817   : > { %9881 = vadd.xlane.f32.xlu1 %v9865_v52 }
 0x888   : > { %v9872_v8 = vpop.xlane.xlu1 %9871 }
 0x889   : > { %v9887_v51 = vmul.f32 0.0078125, %v9872_v8  ;;  %v9870_v39 = vpop.xlane.xlu0 %9869  ;;  %v10176_v8 = vld [vmem:[#allocation13 + $0x88] sm:$0xff] }
 0x88a   : > { %v9886_v3 = vmul.f32 0.0078125, %v9870_v39  ;;  %v12314_v39 = vpack.c.bf16 %v10176_v8, %v10175_v31 }
 0x88b   : > { %v16997_v24 = vsub.f32 %v16980_v25, %v9887_v51  ;;  %v10159_v51 = vld [vmem:[#allocation13] sm:$0xff] }
 0x88c   : > { %v16999_v35 = vsub.f32 %v9859_v58, %v9886_v3  ;;  %v10160_v3 = vld [vmem:[#allocation13 + $0x8] sm:$0xff]  ;;  %12315 = vmatprep.subr.bf16.mxu1 %v12314_v39 }
 0x88d   : > { %v9903_v53 = vmul.f32 %v16997_v24, %v16997_v24 }
 0x88e   : > { %v9902_v15 = vmul.f32 %v16999_v35, %v16999_v35 }
 0x88f   : > { %9912 = vadd.xlane.f32.xlu0 %v9903_v53  ;;  %v10177_v53 = vld [vmem:[#allocation13 + $0x90] sm:$0xff] }
 0x890   : > { %9910 = vadd.xlane.f32.xlu1 %v9902_v15  ;;  %v10178_v15 = vld [vmem:[#allocation13 + $0x98] sm:$0xff] }
 0x897   : > { %v9874_v16 = vpop.xlane.xlu0 %9873 }
 0x898   : > { %v9888_v11 = vmul.f32 0.0078125, %v9874_v16  ;;  %v12316_v16 = vpack.c.bf16 %v10160_v3, %v10159_v51 }
 0x89a   : > { %v17005_v30 = vsub.f32 %v9861_v14, %v9888_v11  ;;  %v12318_v11 = vpack.c.bf16 %v10178_v15, %v10177_v53  ;;  %12317 = vmatpush3.bf16.msra.mxu1 %v12316_v16 }
 0x89b   : > { %v9876_v32 = vpop.xlane.xlu0 %9875 }
 0x89c   : > { %v9889_v7 = vmul.f32 0.0078125, %v9876_v32  ;;  %v9904_v45 = vmul.f32 %v17005_v30, %v17005_v30  ;;  %v10161_v32 = vld [vmem:[#allocation13 + $0x10] sm:$0xff]  ;;  %12319 = vmatprep.subr.bf16.mxu1 %v12318_v11 }
 0x89e   : > { %v17009_v0 = vsub.f32 %v9862_v49, %v9889_v7  ;;  %9914 = vadd.xlane.f32.xlu1 %v9904_v45  ;;  %v9878_v21 = vpop.xlane.xlu1 %9877  ;;  %v10162_v7 = vld [vmem:[#allocation13 + $0x18] sm:$0xff]  ;;  %v10179_v45 = vld [vmem:[#allocation13 + $0xa0] sm:$0xff] }
 0x89f   : > { %v9890_v47 = vmul.f32 0.0078125, %v9878_v21  ;;  %v9880_v9 = vpop.xlane.xlu0 %9879  ;;  %v10180_v21 = vld [vmem:[#allocation13 + $0xa8] sm:$0xff] }
 0x8a0   : > { %v9891_v34 = vmul.f32 0.0078125, %v9880_v9  ;;  %v9905_v25 = vmul.f32 %v17009_v0, %v17009_v0  ;;  %v12322_v9 = vpack.c.bf16 %v10180_v21, %v10179_v45 }
 0x8a1   : > { %v17013_v48 = vsub.f32 %v9863_v36, %v9890_v47  ;;  %v10003_v36 = vld [vmem:[#allocation11 + $0x88] sm:$0xff]  ;;  %v12320_v47 = vpack.c.bf16 %v10162_v7, %v10161_v32 }
 0x8a2   : > { %v17016_v58 = vsub.f32 %v16987_v54, %v9891_v34  ;;  %9916 = vadd.xlane.f32.xlu0 %v9905_v25  ;;  %v12294_v54 = vpack.c.bf16 %v10001_v62, %v9999_v44  ;;  %v12298_v60 = vpack.c.bf16 %v10005_v33, %v10003_v36  ;;  %v10163_v34 = vld [vmem:[#allocation13 + $0x20] sm:$0xff]  ;;  %v10164_v25 = vld [vmem:[#allocation13 + $0x28] sm:$0xff]  ;;  %v10186_v36 = vld [vmem:[#allocation13 + $0xd8] sm:$0xff] }
 0x8a3   : > { %v9906_v63 = vmul.f32 %v17013_v48, %v17013_v48  ;;  %v9884_v17 = vpop.xlane.xlu0 %9883  ;;  %12321 = vmatpush3.bf16.msra.mxu1 %v12320_v47 }
 0x8a4   : > { %v9907_v13 = vmul.f32 %v17016_v58, %v17016_v58  ;;  %v9893_v55 = vmul.f32 0.0078125, %v9884_v17  ;;  %v9882_v40 = vpop.xlane.xlu1 %9881  ;;  %12295 = vmatprep.subr.bf16.mxu0 %v12294_v54  ;;  %v10182_v17 = vld [vmem:[#allocation13 + $0xb8] sm:$0xff]  ;;  %12323 = vmatprep.subr.bf16.mxu1 %v12322_v9  ;;  %v10168_v54 = vld [vmem:[#allocation13 + $0x48] sm:$0xff] }
 0x8a5   : > { %9918 = vadd.xlane.f32.xlu1 %v9906_v63  ;;  %v9892_v14 = vmul.f32 0.0078125, %v9882_v40  ;;  %12297 = vmatpush1.bf16.msra.mxu0 %v12296_v46  ;;  %v10181_v63 = vld [vmem:[#allocation13 + $0xb0] sm:$0xff]  ;;  %v12332_v33 = vpack.c.bf16 %v10168_v54, %v10167_v28  ;;  %v12334_v46 = vpack.c.bf16 %v10186_v36, %v10185_v61 }
 0x8a6   : > { %9920 = vadd.xlane.f32.xlu0 %v9907_v13  ;;  %v17023_v59 = vsub.f32 %v16992_v29, %v9893_v55  ;;  %v10007_v29 = vld [vmem:[#allocation11 + $0xa8] sm:$0xff]  ;;  %12299 = vmatprep.subr.bf16.mxu0 %v12298_v60  ;;  %v12324_v13 = vpack.c.bf16 %v10164_v25, %v10163_v34  ;;  %v12326_v55 = vpack.c.bf16 %v10182_v17, %v10181_v63  ;;  %v10165_v40 = vld [vmem:[#allocation13 + $0x30] sm:$0xff] }
 0x8a7   : > { %v17025_v56 = vsub.f32 %v9865_v52, %v9892_v14  ;;  %v12300_v52 = vpack.c.bf16 %v10004_v23, %v10002_v43  ;;  %v12302_v26 = vpack.c.bf16 %v10009_v37, %v10007_v29  ;;  %v10166_v14 = vld [vmem:[#allocation13 + $0x38] sm:$0xff]  ;;  %v10169_v60 = vld [vmem:[#allocation13 + $0x50] sm:$0xff]  ;;  %v10187_v23 = vld [vmem:[#allocation13 + $0xe0] sm:$0xff] }
 0x8a8   : > { %v9909_v49 = vmul.f32 %v17023_v59, %v17023_v59  ;;  %12325 = vmatpush3.bf16.msra.mxu1 %v12324_v13  ;;  %v12328_v44 = vpack.c.bf16 %v10166_v14, %v10165_v40  ;;  %v10170_v43 = vld [vmem:[#allocation13 + $0x58] sm:$0xff]  ;;  %v10188_v29 = vld [vmem:[#allocation13 + $0xe8] sm:$0xff] }
 0x8a9   : > { %v9908_v12 = vmul.f32 %v17025_v56, %v17025_v56  ;;  %12301 = vmatpush1.bf16.msra.mxu0 %v12300_v52  ;;  %12327 = vmatprep.subr.bf16.mxu1 %v12326_v55  ;;  %v12336_v37 = vpack.c.bf16 %v10170_v43, %v10169_v60  ;;  %v12338_v52 = vpack.c.bf16 %v10188_v29, %v10187_v23  ;;  %v10171_v23 = vld [vmem:[#allocation13 + $0x60] sm:$0xff] }
 0x8aa   : > { %9924 = vadd.xlane.f32.xlu0 %v9909_v49  ;;  %12303 = vmatprep.subr.bf16.mxu0 %v12302_v26  ;;  %v10183_v49 = vld [vmem:[#allocation13 + $0xc0] sm:$0xff] }
 0x8ab   : > { %9922 = vadd.xlane.f32.xlu1 %v9908_v12  ;;  %v10184_v12 = vld [vmem:[#allocation13 + $0xc8] sm:$0xff] }
 0x8ac   : > { %v12330_v62 = vpack.c.bf16 %v10184_v12, %v10183_v49  ;;  %12329 = vmatpush3.bf16.msra.mxu1 %v12328_v44 }
 0x8ad   : > { %12305 = vmatpush1.bf16.msra.mxu0 %v12304_v19 }
 0x8ae   : > { %12307 = vmatprep.subr.bf16.mxu0 %v12306_v2  ;;  %12331 = vmatprep.subr.bf16.mxu1 %v12330_v62 }
 0x8b0   : > { %12333 = vmatpush3.bf16.msra.mxu1 %v12332_v33 }
 0x8b1   : > { %12309 = vmatpush1.bf16.msra.mxu0 %v12308_v1  ;;  %12335 = vmatprep.subr.bf16.mxu1 %v12334_v46 }
 0x8b2   : > { %12311 = vmatprep.subr.bf16.mxu0 %v12310_v20 }
 0x8b4   : > { %12337 = vmatpush3.bf16.msra.mxu1 %v12336_v37  ;;  %v10189_v37 = vld [vmem:[#allocation13 + $0xf0] sm:$0xff] }
 0x8b5   : > { %12313 = vmatpush1.bf16.msra.mxu0 %v12312_v10  ;;  %12339 = vmatprep.subr.bf16.mxu1 %v12338_v52  ;;  %v10190_v52 = vld [vmem:[#allocation13 + $0xf8] sm:$0xff] }
 0x91c   : > { %v9913_v26 = vpop.xlane.xlu0 %9912 }
 0x91d   : > { %v9927_v5 = vmul.f32 0.0078125, %v9913_v26  ;;  %v9911_v4 = vpop.xlane.xlu1 %9910  ;;  %v12342_v26 = vpack.c.bf16 %v10190_v52, %v10189_v37 }
 0x91e   : > { %v9926_v42 = vmul.f32 0.0078125, %v9911_v4  ;;  %v10174_v4 = vld [vmem:[#allocation13 + $0x78] sm:$0xff] }
 0x91f   : > { %v9935_v50 = vadd.f32 1e-05, %v9927_v5  ;;  %v10173_v5 = vld [vmem:[#allocation13 + $0x70] sm:$0xff] }
 0x920   : > { %v9934_v19 = vadd.f32 1e-05, %v9926_v42  ;;  %v12344_v42 = vpack.c.bf16 %v10174_v4, %v10173_v5 }
 0x921   : > { %12726 = vrsqrt.f32 %v9935_v50  ;;  %v17695_v50 = vld [vmem:[#allocation31_spill] sm:$0xff] }
 0x922   : > { %12728 = vrsqrt.f32 %v9934_v19  ;;  %v10022_v19 = vsub.s32 0, %v17695_v50 }
 0x92b   : > { %v12727_v2 = vpop.eup %12726  ;;  %v9915_v22 = vpop.xlane.xlu1 %9914 }
 0x92c   : > { %v12729_v57 = vpop.eup %12728  ;;  %v9928_v6 = vmul.f32 0.0078125, %v9915_v22  ;;  %v9951_v20 = vmul.f32 %v12727_v2, %v16997_v24  ;;  %v10026_v2 = vsub.s32 1, %v17695_v50 }
 0x92d   : > { %v9950_v1 = vmul.f32 %v12729_v57, %v16999_v35 }
 0x92e   : > { %v9936_v27 = vadd.f32 1e-05, %v9928_v6  ;;  %v9965_v39 = vmul.f32 %v17035_v18, %v9951_v20 }
 0x92f   : > { %v9917_v10 = vpop.xlane.xlu0 %9916  ;;  %v9964_v31 = vmul.f32 %v17035_v18, %v9950_v1 }
 0x930   : > { %12730 = vrsqrt.f32 %v9936_v27  ;;  %v9929_v8 = vmul.f32 0.0078125, %v9917_v10  ;;  %v17052_v11 = vadd.f32 %v17042_v38, %v9965_v39 }
 0x931   : > { %v17046_v51 = vadd.f32 %v17042_v38, %v9964_v31 }
 0x932   : > { %v9937_v3 = vadd.f32 1e-05, %v9929_v8  ;;  %v9919_v35 = vpop.xlane.xlu1 %9918 }
 0x933   : > { %v9930_v53 = vmul.f32 0.0078125, %v9919_v35  ;;  %v9921_v24 = vpop.xlane.xlu0 %9920  ;;  %10095 = vmatmul.mubr.f32.vlgmr.msra.gmra.mrb[56].mxu0 %v17046_v51 }
 0x934   : > { %12732 = vrsqrt.f32 %v9937_v3  ;;  %v9931_v15 = vmul.f32 0.0078125, %v9921_v24  ;;  %10100 = vmatprep.mubr.f32.mxu0 %v13121_v41 }
 0x935   : > { %v9938_v16 = vadd.f32 1e-05, %v9930_v53 }
 0x936   : > { %v9939_v32 = vadd.f32 1e-05, %v9931_v15 }
 0x937   : > { %12734 = vrsqrt.f32 %v9938_v16  ;;  %v9925_v7 = vpop.xlane.xlu0 %9924  ;;  %10101 = vmatmul.mubr.f32.gmra.mrb[58].mxu0 %v17052_v11 }
 0x938   : > { %12736 = vrsqrt.f32 %v9939_v32  ;;  %v9933_v45 = vmul.f32 0.0078125, %v9925_v7  ;;  %v9923_v21 = vpop.xlane.xlu1 %9922  ;;  %10106 = vmatprep.mubr.f32.mxu0 %v13121_v41 }
 0x939   : > { %v9932_v47 = vmul.f32 0.0078125, %v9923_v21 }
 0x93a   : > { %v12731_v9 = vpop.eup %12730  ;;  %v9941_v34 = vadd.f32 1e-05, %v9933_v45 }
 0x93b   : > { %v9940_v25 = vadd.f32 1e-05, %v9932_v47  ;;  %v9952_v63 = vmul.f32 %v12731_v9, %v17005_v30 }
 0x93d   : > { %12738 = vrsqrt.f32 %v9940_v25  ;;  %v9966_v17 = vmul.f32 %v17035_v18, %v9952_v63 }
 0x93e   : > { %v12733_v13 = vpop.eup %12732  ;;  %12740 = vrsqrt.f32 %v9941_v34 }
 0x93f   : > { %v17059_v55 = vadd.f32 %v17042_v38, %v9966_v17  ;;  %v9953_v40 = vmul.f32 %v12733_v13, %v17009_v0 }
 0x941   : > { %v12735_v14 = vpop.eup %12734  ;;  %10107 = vmatmul.mubr.f32.gmra.mrb[60].mxu0 %v17059_v55  ;;  %v9967_v49 = vmul.f32 %v17035_v18, %v9953_v40 }
 0x942   : > { %v12737_v12 = vpop.eup %12736  ;;  %10112 = vmatprep.mubr.f32.mxu0 %v13121_v41  ;;  %v9954_v30 = vmul.f32 %v12735_v14, %v17013_v48 }
 0x943   : > { %v17067_v44 = vadd.f32 %v17042_v38, %v9967_v49  ;;  %v9955_v62 = vmul.f32 %v12737_v12, %v17016_v58 }
 0x944   : > { %v9968_v28 = vmul.f32 %v17035_v18, %v9954_v30 }
 0x945   : > { %10113 = vmatmul.mubr.f32.gmra.mrb[62].mxu0 %v17067_v44  ;;  %v9969_v61 = vmul.f32 %v17035_v18, %v9955_v62 }
 0x946   : > { %10118 = vmatprep.mubr.f32.mxu0 %v13121_v41  ;;  %v17074_v0 = vadd.f32 %v17042_v38, %v9968_v28 }
 0x947   : > { %v12739_v54 = vpop.eup %12738  ;;  %v17082_v33 = vadd.f32 %v17042_v38, %v9969_v61 }
 0x948   : > { %v12741_v36 = vpop.eup %12740  ;;  %v9956_v48 = vmul.f32 %v12739_v54, %v17025_v56 }
 0x949   : > { %10119 = vmatmul.mubr.f32.gmra.mrb[64].mxu0 %v17074_v0  ;;  %v9957_v46 = vmul.f32 %v12741_v36, %v17023_v59  ;;  %v10172_v59 = vld [vmem:[#allocation13 + $0x68] sm:$0xff] }
 0x94a   : > { %10124 = vmatprep.mubr.f32.mxu0 %v13121_v41  ;;  %v9970_v58 = vmul.f32 %v17035_v18, %v9956_v48  ;;  %v12340_v29 = vpack.c.bf16 %v10172_v59, %v10171_v23 }
 0x94b   : > { %v9971_v56 = vmul.f32 %v17035_v18, %v9957_v46 }
 0x94c   : > { %v17087_v60 = vadd.f32 %v17042_v38, %v9970_v58  ;;  %12341 = vmatpush3.bf16.msra.mxu1 %v12340_v29 }
 0x94d   : > { %10125 = vmatmul.mubr.f32.gmra.mrb[66].mxu0 %v17082_v33  ;;  %v17094_v43 = vadd.f32 %v17042_v38, %v9971_v56  ;;  %12343 = vmatprep.subr.bf16.mxu1 %v12342_v26 }
 0x94e   : > { %10130 = vmatprep.mubr.f32.mxu0 %v13121_v41 }
 0x950   : > { %12345 = vmatpush3.bf16.msra.mxu1 %v12344_v42  ;;  %v10908_v42 = vld [vmem:[%s17697_s8] ss:$0 sm:$0xff]  ;;  %s10914_s8 = sshll.u32 %s17700_s30, 4 }
 0x951   : > { %10131 = vmatmul.mubr.f32.gmra.mrb[68].mxu0 %v17087_v60  ;;  %s10455_s7 = sadd.s32 %s10914_s8, %s17411_s26  ;;  %s10438_s8 = scalar_lea.sflag [#allocation4], %s16223_s1 }
 0x952   : > { %10136 = vmatprep.mubr.f32.mxu0 %v13121_v41  ;;  %v10018_v41 = vld [vmem:[%s17696_s12] sm:$0x3]  ;;  %s17150_s12 = scalar_lea.vmem [#allocation14], %s10707_s25 }
 0x953   : > { %v10023_v22 = vrot.slane %v10018_v41, %v10022_v19  ;;  %v10027_v57 = vrot.slane %v10018_v41, %v10026_v2  ;;  %s10458_s4 = sshll.u32 %s17150_s12, 4  ;;  %s17183_s4 = int_to_ptr.vmem [resolvable:$true] %s10458_s4 }
 0x954   : > { %s12965_s26 = scalar_lea.vmem %s17183_s4, 1024 }
 0x955   : > { %10137 = vmatmul.mubr.f32.gmra.mrb[70].mxu0 %v17094_v43  ;;  %p12966_p5 = scmp.ne.s32.totalorder %s17183_s4, %s12965_s26 }
 0x957   : > { %p12967_p6 = pnand %p12966_p5, %p17702_p13 }
 0x959   : > { %p12968_p9 = pneg %p12967_p6 }
 0xa06   : > { %v10096_v6 = vpop.f32.mrb[56].mxu0 }
 0xa07   : > { %v10097_v18 = vadd.f32 %v10096_v6, %v10023_v22  ;;  %v10098_v1 = vpop.f32.mrb[57].mxu0 }
 0xa08   : > { %v10099_v20 = vadd.f32 %v10098_v1, %v10027_v57 }
 0xa09   : > { %v10143_v10 = vmax.f32 %v10097_v18, 0.0 }
 0xa0a   : > { %v10144_v27 = vmax.f32 %v10099_v20, 0.0  ;;  %v10102_v38 = vpop.f32.mrb[58].mxu0 }
 0xa0b   : > { %v10103_v31 = vadd.f32 %v10102_v38, %v10023_v22  ;;  %v10104_v8 = vpop.f32.mrb[59].mxu0 }
 0xa0c   : > { %v10105_v39 = vadd.f32 %v10104_v8, %v10027_v57  ;;  %10262 = vmatprep.mubr.f32.mxu1 %v10144_v27 }
 0xa0d   : > { %10263 = vmatmul.mubr.f32.vlgmr.msra.gmra.mrb[56].mxu1 %v10143_v10  ;;  %v10145_v35 = vmax.f32 %v10103_v31, 0.0 }
 0xa0e   : > { %v10146_v3 = vmax.f32 %v10105_v39, 0.0 }
 0xa10   : > { %10267 = vmatprep.mubr.f32.mxu1 %v10146_v3 }
 0xa11   : > { %10268 = vmatmul.mubr.f32.gmra.mrb[58].mxu1 %v10145_v35 }
 0xa14   : > { %v10108_v53 = vpop.f32.mrb[60].mxu0 }
 0xa15   : > { %v10109_v24 = vadd.f32 %v10108_v53, %v10023_v22  ;;  %v10110_v15 = vpop.f32.mrb[61].mxu0 }
 0xa16   : > { %v10111_v16 = vadd.f32 %v10110_v15, %v10027_v57 }
 0xa17   : > { %v10147_v45 = vmax.f32 %v10109_v24, 0.0 }
 0xa18   : > { %v10148_v32 = vmax.f32 %v10111_v16, 0.0  ;;  %v10114_v7 = vpop.f32.mrb[62].mxu0 }
 0xa19   : > { %v10115_v21 = vadd.f32 %v10114_v7, %v10023_v22  ;;  %v10116_v47 = vpop.f32.mrb[63].mxu0 }
 0xa1a   : > { %v10117_v9 = vadd.f32 %v10116_v47, %v10027_v57  ;;  %10272 = vmatprep.mubr.f32.mxu1 %v10148_v32 }
 0xa1b   : > { %10273 = vmatmul.mubr.f32.gmra.mrb[60].mxu1 %v10147_v45  ;;  %v10149_v63 = vmax.f32 %v10115_v21, 0.0 }
 0xa1c   : > { %v10150_v34 = vmax.f32 %v10117_v9, 0.0  ;;  %v10120_v25 = vpop.f32.mrb[64].mxu0 }
 0xa1d   : > { %v10121_v17 = vadd.f32 %v10120_v25, %v10023_v22  ;;  %v10122_v13 = vpop.f32.mrb[65].mxu0 }
 0xa1e   : > { %v10123_v40 = vadd.f32 %v10122_v13, %v10027_v57  ;;  %10277 = vmatprep.mubr.f32.mxu1 %v10150_v34 }
 0xa1f   : > { %10278 = vmatmul.mubr.f32.gmra.mrb[62].mxu1 %v10149_v63  ;;  %v10151_v12 = vmax.f32 %v10121_v17, 0.0 }
 0xa20   : > { %v10152_v14 = vmax.f32 %v10123_v40, 0.0  ;;  %v10126_v49 = vpop.f32.mrb[66].mxu0 }
 0xa21   : > { %v10127_v30 = vadd.f32 %v10126_v49, %v10023_v22  ;;  %v10128_v62 = vpop.f32.mrb[67].mxu0 }
 0xa22   : > { %v10129_v28 = vadd.f32 %v10128_v62, %v10027_v57  ;;  %10282 = vmatprep.mubr.f32.mxu1 %v10152_v14 }
 0xa23   : > { %10283 = vmatmul.mubr.f32.gmra.mrb[64].mxu1 %v10151_v12  ;;  %v10153_v36 = vmax.f32 %v10127_v30, 0.0 }
 0xa24   : > { %v10154_v54 = vmax.f32 %v10129_v28, 0.0  ;;  %v10132_v61 = vpop.f32.mrb[68].mxu0 }
 0xa25   : > { %v10133_v48 = vadd.f32 %v10132_v61, %v10023_v22  ;;  %v10134_v58 = vpop.f32.mrb[69].mxu0 }
 0xa26   : > { %v10135_v46 = vadd.f32 %v10134_v58, %v10027_v57  ;;  %10287 = vmatprep.mubr.f32.mxu1 %v10154_v54 }
 0xa27   : > { %10288 = vmatmul.mubr.f32.gmra.mrb[66].mxu1 %v10153_v36  ;;  %v10155_v59 = vmax.f32 %v10133_v48, 0.0 }
 0xa28   : > { %v10156_v56 = vmax.f32 %v10135_v46, 0.0  ;;  %v10138_v23 = vpop.f32.mrb[70].mxu0 }
 0xa29   : > { %v10139_v29 = vadd.f32 %v10138_v23, %v10023_v22  ;;  %v10140_v37 = vpop.f32.mrb[71].mxu0 }
 0xa2a   : > { %v10141_v52 = vadd.f32 %v10140_v37, %v10027_v57  ;;  %10292 = vmatprep.mubr.f32.mxu1 %v10156_v56 }
 0xa2b   : > { %10293 = vmatmul.mubr.f32.gmra.mrb[68].mxu1 %v10155_v59  ;;  %v10157_v5 = vmax.f32 %v10139_v29, 0.0 }
 0xa2c   : > { %v10158_v26 = vmax.f32 %v10141_v52, 0.0 }
 0xa2e   : > { %10297 = vmatprep.mubr.f32.mxu1 %v10158_v26 }
 0xa2f   : > { %10298 = vmatmul.mubr.f32.gmra.mrb[70].mxu1 %v10157_v5 }
 0xae0   : > { %v11258_v4 = vpop.f32.mrb[56].mxu1 }
 0xae1   : > { %v11259_v50 = vpop.f32.mrb[57].mxu1 }
 0xae2   : > { %v11260_v19 = vadd.f32 %v11259_v50, %v11258_v4 }
 0xae4   : > { %v10265_v41 = vadd.f32 %v11260_v19, %v10908_v42  ;;  %v11261_v2 = vpop.f32.mrb[58].mxu1 }
 0xae5   : > { %v11262_v6 = vpop.f32.mrb[59].mxu1 }
 0xae6   : > { %v11263_v18 = vadd.f32 %v11262_v6, %v11261_v2  ;;  %v10303_v22 = vadd.f32 %v10265_v41, %v17046_v51 }
 0xae8   : > { %v10270_v57 = vadd.f32 %v11263_v18, %v10908_v42  ;;  %10313 = vadd.xlane.f32.xlu1 %v10303_v22 }
 0xaea   : > { %v10304_v1 = vadd.f32 %v10270_v57, %v17052_v11 }
 0xaec   : > { %10315 = vadd.xlane.f32.xlu0 %v10304_v1 }
 0xaee   : > { %v11264_v20 = vpop.f32.mrb[60].mxu1 }
 0xaef   : > { %v11265_v27 = vpop.f32.mrb[61].mxu1 }
 0xaf0   : > { %v11266_v38 = vadd.f32 %v11265_v27, %v11264_v20 }
 0xaf2   : > { %v10275_v10 = vadd.f32 %v11266_v38, %v10908_v42  ;;  %v11267_v31 = vpop.f32.mrb[62].mxu1 }
 0xaf3   : > { %v11268_v8 = vpop.f32.mrb[63].mxu1 }
 0xaf4   : > { %v11269_v39 = vadd.f32 %v11268_v8, %v11267_v31  ;;  %v10305_v3 = vadd.f32 %v10275_v10, %v17059_v55 }
 0xaf6   : > { %v10280_v35 = vadd.f32 %v11269_v39, %v10908_v42  ;;  %10317 = vadd.xlane.f32.xlu1 %v10305_v3  ;;  %v11270_v53 = vpop.f32.mrb[64].mxu1  ;;  %v17140_v39 = vld [vmem:[%s17698_s23] ss:$0 sm:$0xff]  ;;  %s10915_s23 = sshll.u32 %s10455_s7, 7  ;;  %s13122_s7 = smov [#allocation14]  }
 0xaf7   : > { %v11271_v24 = vpop.f32.mrb[65].mxu1  ;;  %s12969_s5 = sshll.u32 %s13122_s7, 4  ;;  %s12970_s5 = int_to_ptr.vmem [resolvable:$false] %s12969_s5 }
 0xaf8   : > { %v11272_v15 = vadd.f32 %v11271_v24, %v11270_v53  ;;  %v10306_v51 = vadd.f32 %v10280_v35, %v17067_v44  ;;  %v17146_v53 = vld [vmem:[%s17699_s6] ss:$0 sm:$0xff]  ;;  %s17189_s6 = scalar_lea.hbm %s17701_s10, %s10915_s23  ;;  %s12971_s11 = scalar_lea.vmem %s12970_s5, 2048 }
 0xaf9   : > { %p12972_p11 = scmp.lt.s32.totalorder %s17183_s4, %s12970_s5  ;;  %p12973_p12 = scmp.lt.s32.totalorder %s12971_s11, %s12965_s26 }
 0xafa   : > { %v10285_v16 = vadd.f32 %v11272_v15, %v10908_v42  ;;  %10319 = vadd.xlane.f32.xlu0 %v10306_v51  ;;  %v11273_v11 = vpop.f32.mrb[66].mxu1 }
 0xafb   : > { %v11274_v32 = vpop.f32.mrb[67].mxu1  ;;  %p12974_p1 = por %p12973_p12, %p12972_p11 }
 0xafc   : > { %v11275_v7 = vadd.f32 %v11274_v32, %v11273_v11  ;;  %v10307_v45 = vadd.f32 %v10285_v16, %v17074_v0 }
 0xafd   : > { %p12975_p0 = pnand %p12974_p1, %p12968_p9 }
 0xafe   : > { %v10290_v21 = vadd.f32 %v11275_v7, %v10908_v42  ;;  %10321 = vadd.xlane.f32.xlu1 %v10307_v45  ;;  %v11276_v47 = vpop.f32.mrb[68].mxu1 }
 0xaff   : > { %v11277_v9 = vpop.f32.mrb[69].mxu1 }
 0xb00   : > { %v11278_v34 = vadd.f32 %v11277_v9, %v11276_v47  ;;  %v10308_v55 = vadd.f32 %v10290_v21, %v17082_v33 }
 0xb02   : > { %v10295_v25 = vadd.f32 %v11278_v34, %v10908_v42  ;;  %10323 = vadd.xlane.f32.xlu0 %v10308_v55  ;;  %v11279_v63 = vpop.f32.mrb[70].mxu1 }
 0xb03   : > { %v11280_v17 = vpop.f32.mrb[71].mxu1 }
 0xb04   : > { %v11281_v13 = vadd.f32 %v11280_v17, %v11279_v63  ;;  %v10309_v44 = vadd.f32 %v10295_v25, %v17087_v60 }
 0xb06   : > { %v10300_v40 = vadd.f32 %v11281_v13, %v10908_v42  ;;  %10325 = vadd.xlane.f32.xlu1 %v10309_v44 }
 0xb08   : > { %v10310_v14 = vadd.f32 %v10300_v40, %v17094_v43 }
 0xb0a   : > { %10327 = vadd.xlane.f32.xlu0 %v10310_v14 }
 0xb75   : > { %v10314_v0 = vpop.xlane.xlu1 %10313 }
 0xb76   : > { %v10329_v49 = vmul.f32 0.0078125, %v10314_v0 }
 0xb78   : > { %v10337_v12 = vsub.f32 %v10303_v22, %v10329_v49 }
 0xb79   : > { %v10316_v30 = vpop.xlane.xlu0 %10315 }
 0xb7a   : > { %v10330_v62 = vmul.f32 0.0078125, %v10316_v30  ;;  %v10345_v28 = vmul.f32 %v10337_v12, %v10337_v12 }
 0xb7c   : > { %v10338_v54 = vsub.f32 %v10304_v1, %v10330_v62  ;;  %10353 = vadd.xlane.f32.xlu1 %v10345_v28 }
 0xb7e   : > { %v10346_v33 = vmul.f32 %v10338_v54, %v10338_v54 }
 0xb80   : > { %10355 = vadd.xlane.f32.xlu0 %v10346_v33 }
 0xb83   : > { %v10318_v61 = vpop.xlane.xlu1 %10317 }
 0xb84   : > { %v10331_v36 = vmul.f32 0.0078125, %v10318_v61 }
 0xb86   : > { %v17113_v48 = vsub.f32 %v10305_v3, %v10331_v36 }
 0xb87   : > { %v10320_v60 = vpop.xlane.xlu0 %10319 }
 0xb88   : > { %v10332_v58 = vmul.f32 0.0078125, %v10320_v60  ;;  %v10347_v43 = vmul.f32 %v17113_v48, %v17113_v48 }
 0xb8a   : > { %v17117_v46 = vsub.f32 %v10306_v51, %v10332_v58  ;;  %10357 = vadd.xlane.f32.xlu1 %v10347_v43 }
 0xb8b   : > { %v10322_v56 = vpop.xlane.xlu1 %10321 }
 0xb8c   : > { %v10333_v23 = vmul.f32 0.0078125, %v10322_v56  ;;  %v10348_v59 = vmul.f32 %v17117_v46, %v17117_v46 }
 0xb8e   : > { %v17121_v29 = vsub.f32 %v10307_v45, %v10333_v23  ;;  %10359 = vadd.xlane.f32.xlu0 %v10348_v59 }
 0xb8f   : > { %v10324_v37 = vpop.xlane.xlu0 %10323 }
 0xb90   : > { %v10334_v52 = vmul.f32 0.0078125, %v10324_v37  ;;  %v10349_v26 = vmul.f32 %v17121_v29, %v17121_v29 }
 0xb92   : > { %v17125_v5 = vsub.f32 %v10308_v55, %v10334_v52  ;;  %10361 = vadd.xlane.f32.xlu1 %v10349_v26 }
 0xb93   : > { %v10326_v4 = vpop.xlane.xlu1 %10325 }
 0xb94   : > { %v10335_v42 = vmul.f32 0.0078125, %v10326_v4  ;;  %v10350_v50 = vmul.f32 %v17125_v5, %v17125_v5 }
 0xb96   : > { %v17129_v19 = vsub.f32 %v10309_v44, %v10335_v42  ;;  %10363 = vadd.xlane.f32.xlu0 %v10350_v50 }
 0xb97   : > { %v10328_v41 = vpop.xlane.xlu0 %10327 }
 0xb98   : > { %v10336_v2 = vmul.f32 0.0078125, %v10328_v41  ;;  %v10351_v6 = vmul.f32 %v17129_v19, %v17129_v19 }
 0xb9a   : > { %v17133_v18 = vsub.f32 %v10310_v14, %v10336_v2  ;;  %10365 = vadd.xlane.f32.xlu1 %v10351_v6 }
 0xb9c   : > { %v10352_v22 = vmul.f32 %v17133_v18, %v17133_v18 }
 0xb9e   : > { %10367 = vadd.xlane.f32.xlu0 %v10352_v22 }
 0xc09   : > { %v10354_v57 = vpop.xlane.xlu1 %10353 }
 0xc0a   : > { %v10369_v1 = vmul.f32 0.0078125, %v10354_v57 }
 0xc0c   : > { %v10377_v20 = vadd.f32 1e-05, %v10369_v1 }
 0xc0d   : > { %v10356_v27 = vpop.xlane.xlu0 %10355 }
 0xc0e   : > { %12742 = vrsqrt.f32 %v10377_v20  ;;  %v10370_v38 = vmul.f32 0.0078125, %v10356_v27 }
 0xc10   : > { %v10378_v10 = vadd.f32 1e-05, %v10370_v38 }
 0xc12   : > { %12744 = vrsqrt.f32 %v10378_v10 }
 0xc17   : > { %v10358_v31 = vpop.xlane.xlu1 %10357 }
 0xc18   : > { %v12743_v8 = vpop.eup %12742  ;;  %v10371_v3 = vmul.f32 0.0078125, %v10358_v31 }
 0xc19   : > { %v10393_v35 = vmul.f32 %v12743_v8, %v10337_v12 }
 0xc1a   : > { %v10379_v24 = vadd.f32 1e-05, %v10371_v3 }
 0xc1b   : > { %v10407_v15 = vmul.f32 %v17140_v39, %v10393_v35  ;;  %v10360_v51 = vpop.xlane.xlu0 %10359 }
 0xc1c   : > { %v12745_v16 = vpop.eup %12744  ;;  %12746 = vrsqrt.f32 %v10379_v24  ;;  %v10372_v11 = vmul.f32 0.0078125, %v10360_v51 }
 0xc1d   : > { %v10421_v32 = vadd.f32 %v17146_v53, %v10407_v15  ;;  %v10394_v7 = vmul.f32 %v12745_v16, %v10338_v54 }
 0xc1e   : > { %v10380_v45 = vadd.f32 1e-05, %v10372_v11 }
 0xc1f   : > { %10429 = vst [vmem:[%s17150_s12] sm:$0xff] %v10421_v32  ;;  %v10408_v21 = vmul.f32 %v17140_v39, %v10394_v7  ;;  %v10362_v47 = vpop.xlane.xlu1 %10361 }
 0xc20   : > { %12748 = vrsqrt.f32 %v10380_v45  ;;  %v10373_v9 = vmul.f32 0.0078125, %v10362_v47 }
 0xc21   : > { %v10422_v34 = vadd.f32 %v17146_v53, %v10408_v21 }
 0xc22   : > { %v10381_v55 = vadd.f32 1e-05, %v10373_v9 }
 0xc23   : > { %10430 = vst [vmem:[%s17150_s12 + $0x8] sm:$0xff] %v10422_v34  ;;  %v10364_v25 = vpop.xlane.xlu0 %10363 }
 0xc24   : > { %12750 = vrsqrt.f32 %v10381_v55  ;;  %v10374_v63 = vmul.f32 0.0078125, %v10364_v25 }
 0xc26   : > { %v12747_v17 = vpop.eup %12746  ;;  %v10382_v13 = vadd.f32 1e-05, %v10374_v63 }
 0xc27   : > { %v10395_v44 = vmul.f32 %v12747_v17, %v17113_v48  ;;  %v10366_v40 = vpop.xlane.xlu1 %10365 }
 0xc28   : > { %12752 = vrsqrt.f32 %v10382_v13  ;;  %v10375_v14 = vmul.f32 0.0078125, %v10366_v40 }
 0xc29   : > { %v10409_v0 = vmul.f32 %v17140_v39, %v10395_v44 }
 0xc2a   : > { %v12749_v49 = vpop.eup %12748  ;;  %v10383_v12 = vadd.f32 1e-05, %v10375_v14 }
 0xc2b   : > { %v10423_v30 = vadd.f32 %v17146_v53, %v10409_v0  ;;  %v10396_v62 = vmul.f32 %v12749_v49, %v17117_v46  ;;  %v10368_v28 = vpop.xlane.xlu0 %10367 }
 0xc2c   : > { %12754 = vrsqrt.f32 %v10383_v12  ;;  %v10376_v54 = vmul.f32 0.0078125, %v10368_v28 }
 0xc2d   : > { %10431 = vst [vmem:[%s17150_s12 + $0x10] sm:$0xff] %v10423_v30  ;;  %v10410_v33 = vmul.f32 %v17140_v39, %v10396_v62 }
 0xc2e   : > { %v12751_v61 = vpop.eup %12750  ;;  %v10384_v36 = vadd.f32 1e-05, %v10376_v54 }
 0xc2f   : > { %v10424_v48 = vadd.f32 %v17146_v53, %v10410_v33  ;;  %v10397_v60 = vmul.f32 %v12751_v61, %v17121_v29 }
 0xc30   : > { %12756 = vrsqrt.f32 %v10384_v36 }
 0xc31   : > { %10432 = vst [vmem:[%s17150_s12 + $0x18] sm:$0xff] %v10424_v48  ;;  %v10411_v58 = vmul.f32 %v17140_v39, %v10397_v60 }
 0xc32   : > { %v12753_v43 = vpop.eup %12752 }
 0xc33   : > { %v10425_v46 = vadd.f32 %v17146_v53, %v10411_v58  ;;  %v10398_v56 = vmul.f32 %v12753_v43, %v17125_v5 }
 0xc35   : > { %10433 = vst [vmem:[%s17150_s12 + $0x20] sm:$0xff] %v10425_v46  ;;  %v10412_v23 = vmul.f32 %v17140_v39, %v10398_v56 }
 0xc36   : > { %v12755_v59 = vpop.eup %12754 }
 0xc37   : > { %v10426_v29 = vadd.f32 %v17146_v53, %v10412_v23  ;;  %v10399_v37 = vmul.f32 %v12755_v59, %v17129_v19 }
 0xc39   : > { %10434 = vst [vmem:[%s17150_s12 + $0x28] sm:$0xff] %v10426_v29  ;;  %v10413_v52 = vmul.f32 %v17140_v39, %v10399_v37 }
 0xc3a   : > { %v12757_v26 = vpop.eup %12756 }
 0xc3b   : > { %v10427_v5 = vadd.f32 %v17146_v53, %v10413_v52  ;;  %v10400_v4 = vmul.f32 %v12757_v26, %v17133_v18 }
 0xc3d   : > { %10435 = vst [vmem:[%s17150_s12 + $0x30] sm:$0xff] %v10427_v5  ;;  %v10414_v42 = vmul.f32 %v17140_v39, %v10400_v4 }
 0xc3f   : > { %v10428_v50 = vadd.f32 %v17146_v53, %v10414_v42 }
 0xc41   : > { %10436 = vst [vmem:[%s17150_s12 + $0x38] sm:$0xff] %v10428_v50 }
 0xc42   : > { %12978 = shalt.err (!%p12975_p0)
}
 0xc43   : > { %s12979_s12 = scalar_lea.hbm %s17189_s6, 1024  ;;  %s12983_s24 = scalar_lea.hbm %s17701_s10, 4096 }
 0xc44   : > { %p12980_p7 = scmp.ne.s32.totalorder %s17189_s6, %s12979_s12  ;;  %p12984_p10 = scmp.lt.u32.totalorder %s17189_s6, %s17701_s10 }
 0xc45   : > { %p12985_p3 = scmp.lt.u32.totalorder %s12983_s24, %s12979_s12  ;;  %p12987_p5 = scmp.lt.u32.totalorder %s12979_s12, %s17189_s6 }
 0xc46   : > { %p12981_p2 = pnand %p12980_p7, %p17702_p13 }
 0xc47   : > { %p12986_p8 = por %p12985_p3, %p12984_p10 }
 0xc48   : > { %p12982_p4 = pneg %p12981_p2 }
 0xc49   : > { %p12988_p6 = por %p12987_p5, %p12986_p8 }
 0xc4b   : > { %p12989_p9 = pnand %p12988_p6, %p12982_p4 }
 0xc4d   : > { %12992 = shalt.err (!%p12989_p9)
}
 0xc4e   : > { %s13123_s11 = smov 128   ;;  %s13124_s26 = smov 8  }
 0xc4f   : > { %12372 = dma.vmem_to_hbm [thread:$0]  (%p17702_p13), %s17183_s4, 1024, %s17189_s6, %s10438_s8, %s13123_s11, %s13123_s11, %s13124_s26  }
 0xc50   : > { %s10443_s23 = scalar_lea.sflag [#allocation16], %s16223_s1 }
 0xc51   : > { %s10917_s12 = sshll.u32 %s17700_s30, 6  ;;  %s10492_s25 = sshll.u32 %s16397_s16, 4  ;;  %s10493_s25 = int_to_ptr.vmem [resolvable:$true] %s10492_s25 }
 0xc52   : > { %s17703_s24 = sshll.u32 %s17465_s9, 3  ;;  %s17704_s4 = sld [smem:[#allocation111_spill]] }
 0xc53   : > { %s10473_s7 = sadd.s32 %s10917_s12, %s17703_s24  ;;  %s13125_s6 = smov 1024  }
 0xc54   : > { %s10918_s5 = sshll.u32 %s10473_s7, 7  ;;  %12373 = sst [smem:[#allocation18]] (%p17702_p13), %s13125_s6 }
 0xc55   : > { %s13126_s8 = smov 2048   ;;  %s13127_s11 = smov 8  }
 0xc56   : > { %12374 = sst [smem:[#allocation18 + $0x1]] (%p17702_p13), %s13126_s8  ;;  %s13128_s30 = smov 128  }
 0xc57   : > { %12375 = sst [smem:[#allocation18 + $0x2]] (%p17702_p13), %s13127_s11  ;;  %s13129_s9 = smov [#allocation17]  }
 0xc58   : > { %s10475_s1 = scalar_lea.hbm %s17704_s4, %s10918_s5  ;;  %12376 = sst [smem:[#allocation18 + $0x3]] (%p17702_p13), %s13128_s30 }
 0xc59   : > { %12377 = sst [smem:[#allocation18 + $0x4]] (%p17702_p13), %s13128_s30  ;;  %s13130_s16 = smov 0  }
 0xc5a   : > { %12378 = sst [smem:[#allocation18 + $0x5]] (%p17702_p13), %s13127_s11 }
 0xc5b   : > { %12379 = dma.general (%p17702_p13), %s10493_s25, 4096, %s10475_s1, %s10443_s23, %s13129_s9, [#allocation18], %s13130_s16, 0  }
 0xc5c PF: > { %s17705_s13 = sld [smem:[#allocation25_spill]]  ;;  %p12425_p11 = scmp.ge.s32.totalorder %s13103_s2, 2 }
 0xc5d   : > { %p17706_p12 = scmp.ne.s32.totalorder %s17459_s3, 0 }
 0xc5f   : > { %p12406_p1 = pnand %p12425_p11, %p17706_p12 }
 0xc62   : > { %s10520_s10 = sand.u32 1, %s17705_s13  }
 0xc63   : > { %s10521_s26 = scalar_lea.sflag [#allocation4], %s10520_s10 }
 0xc64   : > { %13054 = dma.done.wait (!%p12406_p1), %s10521_s26, 1024  }
 0xc65   : > { %13056 = vsyncadd (!%p12406_p1), %s10521_s26, 4294966272  ;;  %s10530_s12 = scalar_lea.sflag [#allocation16], %s10520_s10 }
 0xc66   : > { %13058 = dma.done.wait (!%p12406_p1), %s10530_s12, 4096  }
 0xc67   : > { %13060 = vsyncadd (!%p12406_p1), %s10530_s12, 4294963200  ;;  %s41_s2 = sadd.s32 1, %s13103_s2   ;;  %s17707_s15 = smov %s13504_s27 }
 0xc68   : > { %p38_p0 = scmp.ge.s32.totalorder %s41_s2, 6   ;;  %s17708_s23 = smov %s17720_s20 }
 0xc69   : > { %s17709_s27 = smov %s13067_s28  ;;  %s17710_s28 = smov %s13071_s29 }
 0xc6a   : > { %s17711_s29 = smov %s17707_s15  ;;  %s17712_s30 = smov %s13079_s0 }
 0xc6b   : > { %s17713_s0 = smov %s13083_s19  ;;  %s17714_s19 = smov %s13501_s17 }
 0xc6c   : > { %s17715_s1 = smov %s13095_s21  ;;  %s17716_s20 = smov %s13099_s22 }
 0xc6d   : > { %s17717_s21 = smov %s17708_s23  ;;  %s17718_s22 = smov %s17724_s18 }
 0xc6e   :  { %40 = sbr.rel (!%p38_p0) target bundleno = 34 (0x22), region = 180 }
 0xc75   :  { %10535 = vsyncpa [#allocation3], 1 }
 0xc76   :  { %10537 = vsyncpa [#allocation3 + $0x1], 1 }
 0xc77   :  { %10538 = vsyncpa [#allocation6], 1 }
 0xc78   :  { %10539 = vsyncpa [#allocation9], 1 }
 0xc79   :  { %10540 = vsyncpa [#allocation12], 1 }
 0xc7a   :  { %10541 = vsyncpa [#allocation4], 1 }
 0xc7b   :  { %10543 = vsyncpa [#allocation4 + $0x1], 1 }
 0xc7c   :  { %10544 = vsyncpa [#allocation16], 1 }
 0xc7d   :  { %10546 = vsyncpa [#allocation16 + $0x1], 1 }

</bundles_post_ra>
